<compile_context>
chip_gen: v7x
topology: tpu7x:2x2x1
jax: 0.10.0
libtpu: 0.0.40
codegen_flags: <defaults>
</compile_context>

<pallas_src>
import functools
import math

import jax
import jax.numpy as jnp
from jax.experimental import pallas as pl
from jax.experimental.pallas import tpu as pltpu


MY_CFG = [32, 32, 64, 64, 'M', 128, 128, 'M', 256, 256]
NUM_CLASSES = 78
BN_EPS = 1e-5


# ----------------------------------------------------------------------------
# Pallas kernels
# ----------------------------------------------------------------------------
def _conv_bn_relu_kernel(x_ref, w_ref, b_ref, o_ref, *,
                         kh, kw, cout, hout, wout, relu):
    """Fused conv + folded-BN bias + ReLU for one batch element.

    x_ref: (1, Hp, Wp, Cin)   padded NHWC input, bf16, resident in VMEM
    w_ref: (kh*kw, Cin, Cout) bf16 weights (BN scale already folded in)
    b_ref: (1, Cout)          f32 folded bias
    o_ref: (1, Hout, Wout, Cout) bf16 output
    """
    bias = b_ref[...]                                        # (1, Cout) f32

    def row(ho, carry):
        # full reduction over the kh*kw taps for one output row, in registers.
        acc = jnp.zeros((wout, cout), jnp.float32)
        for di in range(kh):
            for dj in range(kw):
                xw = x_ref[0, ho + di, pl.ds(dj, wout), :]   # (Wout, Cin) bf16
                wt = w_ref[di * kw + dj]                     # (Cin, Cout) bf16
                acc = acc + jnp.dot(xw, wt,
                                    preferred_element_type=jnp.float32)
        y = acc + bias
        if relu:
            y = jnp.maximum(y, 0.0)
        o_ref[0, ho] = y.astype(o_ref.dtype)
        return carry

    jax.lax.fori_loop(0, hout, row, 0)


def _head_kernel(x_ref, w_ref, b_ref, o_ref):
    """Fused tail: newCnn 1x1-conv matmul + bias + log_softmax over classes.

    x_ref: (M, Cin) bf16 rows already in (w, b) order
    w_ref: (Cin, nc) bf16 ; b_ref: (1, nc) f32 ; o_ref: (M, nc) f32
    """
    y = jnp.dot(x_ref[...], w_ref[...], preferred_element_type=jnp.float32)
    y = y + b_ref[...]
    m = jnp.max(y, axis=-1, keepdims=True)
    s = y - m
    lse = jnp.log(jnp.sum(jnp.exp(s), axis=-1, keepdims=True))
    o_ref[...] = s - lse


# ----------------------------------------------------------------------------
# Wrappers (cheap glue in plain JAX, all heavy compute in Pallas)
# ----------------------------------------------------------------------------
def conv_bn_relu(x, w, bias, kh, kw, ph, pw, relu=True):
    """x: (B,H,W,Cin) bf16 NHWC. w: (kh*kw, Cin, Cout) bf16. bias: (1,Cout) f32."""
    B, H, W, Cin = x.shape
    Cout = w.shape[-1]
    if ph or pw:
        x = jnp.pad(x, ((0, 0), (ph, ph), (pw, pw), (0, 0)))
    Hp, Wp = H + 2 * ph, W + 2 * pw
    Hout, Wout = Hp - kh + 1, Wp - kw + 1
    kernel = functools.partial(_conv_bn_relu_kernel, kh=kh, kw=kw, cout=Cout,
                               hout=Hout, wout=Wout, relu=relu)
    return pl.pallas_call(
        kernel,
        out_shape=jax.ShapeDtypeStruct((B, Hout, Wout, Cout), jnp.bfloat16),
        grid=(B,),
        in_specs=[
            pl.BlockSpec((1, Hp, Wp, Cin), lambda b: (b, 0, 0, 0)),
            pl.BlockSpec((kh * kw, Cin, Cout), lambda b: (0, 0, 0)),
            pl.BlockSpec((1, Cout), lambda b: (0, 0)),
        ],
        out_specs=pl.BlockSpec((1, Hout, Wout, Cout), lambda b: (b, 0, 0, 0)),
        compiler_params=pltpu.CompilerParams(
            dimension_semantics=("parallel",),
            vmem_limit_bytes=32 * 1024 * 1024,
        ),
    )(x, w, bias)


def maxpool2d(x, kh, kw, sh, sw, ceil_mode):
    """PyTorch-semantics MaxPool2d (padding=0). XLA-fused max tree over strided
    views — no kh*kw stacked tensor in HBM (per perf review)."""
    B, H, W, C = x.shape
    if ceil_mode:
        Hout = -(-(H - kh) // sh) + 1
        Wout = -(-(W - kw) // sw) + 1
    else:
        Hout = (H - kh) // sh + 1
        Wout = (W - kw) // sw + 1
    hpad = max(0, (Hout - 1) * sh + kh - H)
    wpad = max(0, (Wout - 1) * sw + kw - W)
    if hpad or wpad:
        x = jnp.pad(x, ((0, 0), (0, hpad), (0, wpad), (0, 0)),
                    constant_values=-jnp.inf)
    out = None
    for di in range(kh):
        for dj in range(kw):
            win = x[:, di:di + (Hout - 1) * sh + 1:sh,
                    dj:dj + (Wout - 1) * sw + 1:sw, :]
            out = win if out is None else jnp.maximum(out, win)
    return out


def newcnn_log_softmax(rows, w, bias):
    """rows: (M, Cin) bf16 -> (M, nc) f32 log-probs, one fused Pallas call."""
    M = rows.shape[0]
    nc = w.shape[1]
    return pl.pallas_call(
        _head_kernel,
        out_shape=jax.ShapeDtypeStruct((M, nc), jnp.float32),
    )(rows, w, bias)


# ----------------------------------------------------------------------------
# Parameter construction (deterministic, synthetic)
# ----------------------------------------------------------------------------
def init_params(key, cfg=MY_CFG, num_classes=NUM_CLASSES):
    feature = []
    in_c = 3
    for i, c in enumerate(cfg):
        if c == 'M':
            feature.append(('pool', None))
            continue
        if i == 0:
            kh, kw, ph, pw = 5, 5, 0, 0
        else:
            kh, kw, ph, pw = 3, 3, 0, 1
        key, wkey, bkey = jax.random.split(key, 3)
        fan_in = kh * kw * in_c
        w = jax.random.normal(wkey, (kh, kw, in_c, c), jnp.float32) / math.sqrt(fan_in)
        b = jax.random.normal(bkey, (c,), jnp.float32) * 0.01
        # BatchNorm2d default inference stats (gamma=1, beta=0, mean=0, var=1),
        # folded: the scale goes into the weight columns, the rest into a bias.
        gamma = jnp.ones((c,), jnp.float32)
        beta = jnp.zeros((c,), jnp.float32)
        mean = jnp.zeros((c,), jnp.float32)
        var = jnp.ones((c,), jnp.float32)
        scale = gamma / jnp.sqrt(var + BN_EPS)
        bias = ((b - mean) * scale + beta).reshape(1, c)
        w_folded = (w * scale[None, None, None, :]).reshape(kh * kw, in_c, c)
        feature.append(('conv', dict(w=w_folded.astype(jnp.bfloat16),
                                     bias=bias.astype(jnp.float32),
                                     kh=kh, kw=kw, ph=ph, pw=pw)))
        in_c = c
    key, wkey, bkey = jax.random.split(key, 3)
    new_w = jax.random.normal(wkey, (in_c, num_classes), jnp.float32) / math.sqrt(in_c)
    new_b = jax.random.normal(bkey, (num_classes,), jnp.float32) * 0.01
    return dict(feature=feature,
                newcnn_w=new_w.astype(jnp.bfloat16),
                newcnn_b=new_b.reshape(1, num_classes).astype(jnp.float32))


# ----------------------------------------------------------------------------
# Forward pass (export=False branch of myNet1.forward)
# ----------------------------------------------------------------------------
def mynet1_forward(params, x_nchw):
    x = jnp.transpose(x_nchw, (0, 2, 3, 1)).astype(jnp.bfloat16)   # NCHW -> NHWC
    for kind, p in params['feature']:
        if kind == 'pool':
            x = maxpool2d(x, 3, 3, 2, 2, ceil_mode=True)
        else:
            x = conv_bn_relu(x, p['w'], p['bias'], p['kh'], p['kw'],
                             p['ph'], p['pw'], relu=True)
    # self.loc = MaxPool2d((5, 2), (1, 1), ceil_mode=False)
    x = maxpool2d(x, 5, 2, 1, 1, ceil_mode=False)
    B, H, W, C = x.shape
    assert H == 1, 'the height of conv must be 1'
    nc = params['newcnn_w'].shape[1]
    # squeeze(2) + permute(2, 0, 1): rows reordered to (w, b) in cheap XLA glue,
    # then matmul + bias + log_softmax run as one fused Pallas kernel.
    rows = jnp.transpose(x[:, 0, :, :], (1, 0, 2)).reshape(W * B, C)
    out = newcnn_log_softmax(rows, params['newcnn_w'], params['newcnn_b'])
    return out.reshape(W, B, nc)
    # TODO(synk): export=True branch (argmax over classes) not implemented; the
    # reference module's default path (export=False) is reproduced here.


# ----------------------------------------------------------------------------
if __name__ == "__main__":
    key = jax.random.PRNGKey(0)
    key, pkey, xkey = jax.random.split(key, 3)
    params = init_params(pkey)
    # Input height 56 is the smallest that collapses to feature height 1 at `loc`.
    x = jax.random.normal(xkey, (2, 3, 56, 56), jnp.float32)
    fwd = jax.jit(functools.partial(mynet1_forward, params))
    out = jax.block_until_ready(fwd(x))
    assert out.shape == (12, 2, NUM_CLASSES), out.shape
    assert bool(jnp.all(jnp.isfinite(out)))
    # log_softmax rows should sum to ~1 in probability space.
    assert bool(jnp.allclose(jnp.sum(jnp.exp(out), axis=-1), 1.0, atol=1e-4))
    print("KERNEL_OK")
</pallas_src>

<mosaic_0001>
module attributes {stable_mosaic.version = 11 : i64} {
  func.func @_conv_bn_relu_kernel(%arg0: i32, %arg1: memref<1x56x56x3xbf16, #tpu.memory_space<vmem>>, %arg2: memref<25x3x32xbf16, #tpu.memory_space<vmem>>, %arg3: memref<1x32xf32, #tpu.memory_space<vmem>>, %arg4: memref<1x52x52x32xbf16, #tpu.memory_space<vmem>>) attributes {dimension_semantics = [#tpu.dimension_semantics<parallel>], iteration_bounds = array<i64: 2>, scalar_prefetch = 0 : i64, scratch_operands = 0 : i64, tpu.core_type = #tpu.core_type<tc>, window_params = [{transform_indices = @transform_0, window_bounds = array<i64: 1, 56, 56, 3>}, {pipeline_mode = #tpu.pipeline_mode<synchronous>, transform_indices = @transform_1, window_bounds = array<i64: 25, 3, 32>}, {pipeline_mode = #tpu.pipeline_mode<synchronous>, transform_indices = @transform_2, window_bounds = array<i64: 1, 32>}, {transform_indices = @transform_3, window_bounds = array<i64: 1, 52, 52, 32>}]} {
    %c0 = arith.constant 0 : index
    %c0_0 = arith.constant 0 : index
    %0 = vector.load %arg3[%c0, %c0_0] : memref<1x32xf32, #tpu.memory_space<vmem>>, vector<1x32xf32>
    %c0_i32 = arith.constant 0 : i32
    %c52_i32 = arith.constant 52 : i32
    %1 = arith.addi %c0_i32, %c52_i32 : i32
    %c1_i32 = arith.constant 1 : i32
    scf.for %arg5 = %c0_i32 to %1 step %c1_i32  : i32 {
      %cst = arith.constant 0.000000e+00 : f32
      %2 = vector.broadcast %cst : f32 to vector<52x32xf32>
      %c0_i32_2 = arith.constant 0 : i32
      %3 = arith.addi %arg5, %c0_i32_2 : i32
      %c0_3 = arith.constant 0 : index
      %4 = arith.index_cast %3 : i32 to index
      %c0_4 = arith.constant 0 : index
      %c0_5 = arith.constant 0 : index
      %5 = vector.load %arg1[%c0_3, %4, %c0_4, %c0_5] : memref<1x56x56x3xbf16, #tpu.memory_space<vmem>>, vector<1x1x52x3xbf16>
      %6 = vector.shape_cast %5 : vector<1x1x52x3xbf16> to vector<52x3xbf16>
      %c0_6 = arith.constant 0 : index
      %c0_7 = arith.constant 0 : index
      %c0_8 = arith.constant 0 : index
      %7 = vector.load %arg2[%c0_6, %c0_7, %c0_8] : memref<25x3x32xbf16, #tpu.memory_space<vmem>>, vector<1x3x32xbf16>
      %8 = vector.shape_cast %7 : vector<1x3x32xbf16> to vector<3x32xbf16>
      %cst_9 = arith.constant dense<0.000000e+00> : vector<52x32xf32>
      %9 = tpu.matmul %6, %8, %cst_9 {dimension_numbers = #tpu.dot_dimension_numbers<[1], [0], [0], [1], [0, 0, 1, 1], [], []>} : vector<52x3xbf16>, vector<3x32xbf16>, vector<52x32xf32> -> vector<52x32xf32>
      %10 = arith.addf %2, %9 : vector<52x32xf32>
      %c0_i32_10 = arith.constant 0 : i32
      %11 = arith.addi %arg5, %c0_i32_10 : i32
      %c0_11 = arith.constant 0 : index
      %12 = arith.index_cast %11 : i32 to index
      %c1 = arith.constant 1 : index
      %c0_12 = arith.constant 0 : index
      %13 = vector.load %arg1[%c0_11, %12, %c1, %c0_12] : memref<1x56x56x3xbf16, #tpu.memory_space<vmem>>, vector<1x1x52x3xbf16>
      %14 = vector.shape_cast %13 : vector<1x1x52x3xbf16> to vector<52x3xbf16>
      %c1_13 = arith.constant 1 : index
      %c0_14 = arith.constant 0 : index
      %c0_15 = arith.constant 0 : index
      %15 = vector.load %arg2[%c1_13, %c0_14, %c0_15] : memref<25x3x32xbf16, #tpu.memory_space<vmem>>, vector<1x3x32xbf16>
      %16 = vector.shape_cast %15 : vector<1x3x32xbf16> to vector<3x32xbf16>
      %cst_16 = arith.constant dense<0.000000e+00> : vector<52x32xf32>
      %17 = tpu.matmul %14, %16, %cst_16 {dimension_numbers = #tpu.dot_dimension_numbers<[1], [0], [0], [1], [0, 0, 1, 1], [], []>} : vector<52x3xbf16>, vector<3x32xbf16>, vector<52x32xf32> -> vector<52x32xf32>
      %18 = arith.addf %10, %17 : vector<52x32xf32>
      %c0_i32_17 = arith.constant 0 : i32
      %19 = arith.addi %arg5, %c0_i32_17 : i32
      %c0_18 = arith.constant 0 : index
      %20 = arith.index_cast %19 : i32 to index
      %c2 = arith.constant 2 : index
      %c0_19 = arith.constant 0 : index
      %21 = vector.load %arg1[%c0_18, %20, %c2, %c0_19] : memref<1x56x56x3xbf16, #tpu.memory_space<vmem>>, vector<1x1x52x3xbf16>
      %22 = vector.shape_cast %21 : vector<1x1x52x3xbf16> to vector<52x3xbf16>
      %c2_20 = arith.constant 2 : index
      %c0_21 = arith.constant 0 : index
      %c0_22 = arith.constant 0 : index
      %23 = vector.load %arg2[%c2_20, %c0_21, %c0_22] : memref<25x3x32xbf16, #tpu.memory_space<vmem>>, vector<1x3x32xbf16>
      %24 = vector.shape_cast %23 : vector<1x3x32xbf16> to vector<3x32xbf16>
      %cst_23 = arith.constant dense<0.000000e+00> : vector<52x32xf32>
      %25 = tpu.matmul %22, %24, %cst_23 {dimension_numbers = #tpu.dot_dimension_numbers<[1], [0], [0], [1], [0, 0, 1, 1], [], []>} : vector<52x3xbf16>, vector<3x32xbf16>, vector<52x32xf32> -> vector<52x32xf32>
      %26 = arith.addf %18, %25 : vector<52x32xf32>
      %c0_i32_24 = arith.constant 0 : i32
      %27 = arith.addi %arg5, %c0_i32_24 : i32
      %c0_25 = arith.constant 0 : index
      %28 = arith.index_cast %27 : i32 to index
      %c3 = arith.constant 3 : index
      %c0_26 = arith.constant 0 : index
      %29 = vector.load %arg1[%c0_25, %28, %c3, %c0_26] : memref<1x56x56x3xbf16, #tpu.memory_space<vmem>>, vector<1x1x52x3xbf16>
      %30 = vector.shape_cast %29 : vector<1x1x52x3xbf16> to vector<52x3xbf16>
      %c3_27 = arith.constant 3 : index
      %c0_28 = arith.constant 0 : index
      %c0_29 = arith.constant 0 : index
      %31 = vector.load %arg2[%c3_27, %c0_28, %c0_29] : memref<25x3x32xbf16, #tpu.memory_space<vmem>>, vector<1x3x32xbf16>
      %32 = vector.shape_cast %31 : vector<1x3x32xbf16> to vector<3x32xbf16>
      %cst_30 = arith.constant dense<0.000000e+00> : vector<52x32xf32>
      %33 = tpu.matmul %30, %32, %cst_30 {dimension_numbers = #tpu.dot_dimension_numbers<[1], [0], [0], [1], [0, 0, 1, 1], [], []>} : vector<52x3xbf16>, vector<3x32xbf16>, vector<52x32xf32> -> vector<52x32xf32>
      %34 = arith.addf %26, %33 : vector<52x32xf32>
      %c0_i32_31 = arith.constant 0 : i32
      %35 = arith.addi %arg5, %c0_i32_31 : i32
      %c0_32 = arith.constant 0 : index
      %36 = arith.index_cast %35 : i32 to index
      %c4 = arith.constant 4 : index
      %c0_33 = arith.constant 0 : index
      %37 = vector.load %arg1[%c0_32, %36, %c4, %c0_33] : memref<1x56x56x3xbf16, #tpu.memory_space<vmem>>, vector<1x1x52x3xbf16>
      %38 = vector.shape_cast %37 : vector<1x1x52x3xbf16> to vector<52x3xbf16>
      %c4_34 = arith.constant 4 : index
      %c0_35 = arith.constant 0 : index
      %c0_36 = arith.constant 0 : index
      %39 = vector.load %arg2[%c4_34, %c0_35, %c0_36] : memref<25x3x32xbf16, #tpu.memory_space<vmem>>, vector<1x3x32xbf16>
      %40 = vector.shape_cast %39 : vector<1x3x32xbf16> to vector<3x32xbf16>
      %cst_37 = arith.constant dense<0.000000e+00> : vector<52x32xf32>
      %41 = tpu.matmul %38, %40, %cst_37 {dimension_numbers = #tpu.dot_dimension_numbers<[1], [0], [0], [1], [0, 0, 1, 1], [], []>} : vector<52x3xbf16>, vector<3x32xbf16>, vector<52x32xf32> -> vector<52x32xf32>
      %42 = arith.addf %34, %41 : vector<52x32xf32>
      %c1_i32_38 = arith.constant 1 : i32
      %43 = arith.addi %arg5, %c1_i32_38 : i32
      %c0_39 = arith.constant 0 : index
      %44 = arith.index_cast %43 : i32 to index
      %c0_40 = arith.constant 0 : index
      %c0_41 = arith.constant 0 : index
      %45 = vector.load %arg1[%c0_39, %44, %c0_40, %c0_41] : memref<1x56x56x3xbf16, #tpu.memory_space<vmem>>, vector<1x1x52x3xbf16>
      %46 = vector.shape_cast %45 : vector<1x1x52x3xbf16> to vector<52x3xbf16>
      %c5 = arith.constant 5 : index
      %c0_42 = arith.constant 0 : index
      %c0_43 = arith.constant 0 : index
      %47 = vector.load %arg2[%c5, %c0_42, %c0_43] : memref<25x3x32xbf16, #tpu.memory_space<vmem>>, vector<1x3x32xbf16>
      %48 = vector.shape_cast %47 : vector<1x3x32xbf16> to vector<3x32xbf16>
      %cst_44 = arith.constant dense<0.000000e+00> : vector<52x32xf32>
      %49 = tpu.matmul %46, %48, %cst_44 {dimension_numbers = #tpu.dot_dimension_numbers<[1], [0], [0], [1], [0, 0, 1, 1], [], []>} : vector<52x3xbf16>, vector<3x32xbf16>, vector<52x32xf32> -> vector<52x32xf32>
      %50 = arith.addf %42, %49 : vector<52x32xf32>
      %c1_i32_45 = arith.constant 1 : i32
      %51 = arith.addi %arg5, %c1_i32_45 : i32
      %c0_46 = arith.constant 0 : index
      %52 = arith.index_cast %51 : i32 to index
      %c1_47 = arith.constant 1 : index
      %c0_48 = arith.constant 0 : index
      %53 = vector.load %arg1[%c0_46, %52, %c1_47, %c0_48] : memref<1x56x56x3xbf16, #tpu.memory_space<vmem>>, vector<1x1x52x3xbf16>
      %54 = vector.shape_cast %53 : vector<1x1x52x3xbf16> to vector<52x3xbf16>
      %c6 = arith.constant 6 : index
      %c0_49 = arith.constant 0 : index
      %c0_50 = arith.constant 0 : index
      %55 = vector.load %arg2[%c6, %c0_49, %c0_50] : memref<25x3x32xbf16, #tpu.memory_space<vmem>>, vector<1x3x32xbf16>
      %56 = vector.shape_cast %55 : vector<1x3x32xbf16> to vector<3x32xbf16>
      %cst_51 = arith.constant dense<0.000000e+00> : vector<52x32xf32>
      %57 = tpu.matmul %54, %56, %cst_51 {dimension_numbers = #tpu.dot_dimension_numbers<[1], [0], [0], [1], [0, 0, 1, 1], [], []>} : vector<52x3xbf16>, vector<3x32xbf16>, vector<52x32xf32> -> vector<52x32xf32>
      %58 = arith.addf %50, %57 : vector<52x32xf32>
      %c1_i32_52 = arith.constant 1 : i32
      %59 = arith.addi %arg5, %c1_i32_52 : i32
      %c0_53 = arith.constant 0 : index
      %60 = arith.index_cast %59 : i32 to index
      %c2_54 = arith.constant 2 : index
      %c0_55 = arith.constant 0 : index
      %61 = vector.load %arg1[%c0_53, %60, %c2_54, %c0_55] : memref<1x56x56x3xbf16, #tpu.memory_space<vmem>>, vector<1x1x52x3xbf16>
      %62 = vector.shape_cast %61 : vector<1x1x52x3xbf16> to vector<52x3xbf16>
      %c7 = arith.constant 7 : index
      %c0_56 = arith.constant 0 : index
      %c0_57 = arith.constant 0 : index
      %63 = vector.load %arg2[%c7, %c0_56, %c0_57] : memref<25x3x32xbf16, #tpu.memory_space<vmem>>, vector<1x3x32xbf16>
      %64 = vector.shape_cast %63 : vector<1x3x32xbf16> to vector<3x32xbf16>
      %cst_58 = arith.constant dense<0.000000e+00> : vector<52x32xf32>
      %65 = tpu.matmul %62, %64, %cst_58 {dimension_numbers = #tpu.dot_dimension_numbers<[1], [0], [0], [1], [0, 0, 1, 1], [], []>} : vector<52x3xbf16>, vector<3x32xbf16>, vector<52x32xf32> -> vector<52x32xf32>
      %66 = arith.addf %58, %65 : vector<52x32xf32>
      %c1_i32_59 = arith.constant 1 : i32
      %67 = arith.addi %arg5, %c1_i32_59 : i32
      %c0_60 = arith.constant 0 : index
      %68 = arith.index_cast %67 : i32 to index
      %c3_61 = arith.constant 3 : index
      %c0_62 = arith.constant 0 : index
      %69 = vector.load %arg1[%c0_60, %68, %c3_61, %c0_62] : memref<1x56x56x3xbf16, #tpu.memory_space<vmem>>, vector<1x1x52x3xbf16>
      %70 = vector.shape_cast %69 : vector<1x1x52x3xbf16> to vector<52x3xbf16>
      %c8 = arith.constant 8 : index
      %c0_63 = arith.constant 0 : index
      %c0_64 = arith.constant 0 : index
      %71 = vector.load %arg2[%c8, %c0_63, %c0_64] : memref<25x3x32xbf16, #tpu.memory_space<vmem>>, vector<1x3x32xbf16>
      %72 = vector.shape_cast %71 : vector<1x3x32xbf16> to vector<3x32xbf16>
      %cst_65 = arith.constant dense<0.000000e+00> : vector<52x32xf32>
      %73 = tpu.matmul %70, %72, %cst_65 {dimension_numbers = #tpu.dot_dimension_numbers<[1], [0], [0], [1], [0, 0, 1, 1], [], []>} : vector<52x3xbf16>, vector<3x32xbf16>, vector<52x32xf32> -> vector<52x32xf32>
      %74 = arith.addf %66, %73 : vector<52x32xf32>
      %c1_i32_66 = arith.constant 1 : i32
      %75 = arith.addi %arg5, %c1_i32_66 : i32
      %c0_67 = arith.constant 0 : index
      %76 = arith.index_cast %75 : i32 to index
      %c4_68 = arith.constant 4 : index
      %c0_69 = arith.constant 0 : index
      %77 = vector.load %arg1[%c0_67, %76, %c4_68, %c0_69] : memref<1x56x56x3xbf16, #tpu.memory_space<vmem>>, vector<1x1x52x3xbf16>
      %78 = vector.shape_cast %77 : vector<1x1x52x3xbf16> to vector<52x3xbf16>
      %c9 = arith.constant 9 : index
      %c0_70 = arith.constant 0 : index
      %c0_71 = arith.constant 0 : index
      %79 = vector.load %arg2[%c9, %c0_70, %c0_71] : memref<25x3x32xbf16, #tpu.memory_space<vmem>>, vector<1x3x32xbf16>
      %80 = vector.shape_cast %79 : vector<1x3x32xbf16> to vector<3x32xbf16>
      %cst_72 = arith.constant dense<0.000000e+00> : vector<52x32xf32>
      %81 = tpu.matmul %78, %80, %cst_72 {dimension_numbers = #tpu.dot_dimension_numbers<[1], [0], [0], [1], [0, 0, 1, 1], [], []>} : vector<52x3xbf16>, vector<3x32xbf16>, vector<52x32xf32> -> vector<52x32xf32>
      %82 = arith.addf %74, %81 : vector<52x32xf32>
      %c2_i32 = arith.constant 2 : i32
      %83 = arith.addi %arg5, %c2_i32 : i32
      %c0_73 = arith.constant 0 : index
      %84 = arith.index_cast %83 : i32 to index
      %c0_74 = arith.constant 0 : index
      %c0_75 = arith.constant 0 : index
      %85 = vector.load %arg1[%c0_73, %84, %c0_74, %c0_75] : memref<1x56x56x3xbf16, #tpu.memory_space<vmem>>, vector<1x1x52x3xbf16>
      %86 = vector.shape_cast %85 : vector<1x1x52x3xbf16> to vector<52x3xbf16>
      %c10 = arith.constant 10 : index
      %c0_76 = arith.constant 0 : index
      %c0_77 = arith.constant 0 : index
      %87 = vector.load %arg2[%c10, %c0_76, %c0_77] : memref<25x3x32xbf16, #tpu.memory_space<vmem>>, vector<1x3x32xbf16>
      %88 = vector.shape_cast %87 : vector<1x3x32xbf16> to vector<3x32xbf16>
      %cst_78 = arith.constant dense<0.000000e+00> : vector<52x32xf32>
      %89 = tpu.matmul %86, %88, %cst_78 {dimension_numbers = #tpu.dot_dimension_numbers<[1], [0], [0], [1], [0, 0, 1, 1], [], []>} : vector<52x3xbf16>, vector<3x32xbf16>, vector<52x32xf32> -> vector<52x32xf32>
      %90 = arith.addf %82, %89 : vector<52x32xf32>
      %c2_i32_79 = arith.constant 2 : i32
      %91 = arith.addi %arg5, %c2_i32_79 : i32
      %c0_80 = arith.constant 0 : index
      %92 = arith.index_cast %91 : i32 to index
      %c1_81 = arith.constant 1 : index
      %c0_82 = arith.constant 0 : index
      %93 = vector.load %arg1[%c0_80, %92, %c1_81, %c0_82] : memref<1x56x56x3xbf16, #tpu.memory_space<vmem>>, vector<1x1x52x3xbf16>
      %94 = vector.shape_cast %93 : vector<1x1x52x3xbf16> to vector<52x3xbf16>
      %c11 = arith.constant 11 : index
      %c0_83 = arith.constant 0 : index
      %c0_84 = arith.constant 0 : index
      %95 = vector.load %arg2[%c11, %c0_83, %c0_84] : memref<25x3x32xbf16, #tpu.memory_space<vmem>>, vector<1x3x32xbf16>
      %96 = vector.shape_cast %95 : vector<1x3x32xbf16> to vector<3x32xbf16>
      %cst_85 = arith.constant dense<0.000000e+00> : vector<52x32xf32>
      %97 = tpu.matmul %94, %96, %cst_85 {dimension_numbers = #tpu.dot_dimension_numbers<[1], [0], [0], [1], [0, 0, 1, 1], [], []>} : vector<52x3xbf16>, vector<3x32xbf16>, vector<52x32xf32> -> vector<52x32xf32>
      %98 = arith.addf %90, %97 : vector<52x32xf32>
      %c2_i32_86 = arith.constant 2 : i32
      %99 = arith.addi %arg5, %c2_i32_86 : i32
      %c0_87 = arith.constant 0 : index
      %100 = arith.index_cast %99 : i32 to index
      %c2_88 = arith.constant 2 : index
      %c0_89 = arith.constant 0 : index
      %101 = vector.load %arg1[%c0_87, %100, %c2_88, %c0_89] : memref<1x56x56x3xbf16, #tpu.memory_space<vmem>>, vector<1x1x52x3xbf16>
      %102 = vector.shape_cast %101 : vector<1x1x52x3xbf16> to vector<52x3xbf16>
      %c12 = arith.constant 12 : index
      %c0_90 = arith.constant 0 : index
      %c0_91 = arith.constant 0 : index
      %103 = vector.load %arg2[%c12, %c0_90, %c0_91] : memref<25x3x32xbf16, #tpu.memory_space<vmem>>, vector<1x3x32xbf16>
      %104 = vector.shape_cast %103 : vector<1x3x32xbf16> to vector<3x32xbf16>
      %cst_92 = arith.constant dense<0.000000e+00> : vector<52x32xf32>
      %105 = tpu.matmul %102, %104, %cst_92 {dimension_numbers = #tpu.dot_dimension_numbers<[1], [0], [0], [1], [0, 0, 1, 1], [], []>} : vector<52x3xbf16>, vector<3x32xbf16>, vector<52x32xf32> -> vector<52x32xf32>
      %106 = arith.addf %98, %105 : vector<52x32xf32>
      %c2_i32_93 = arith.constant 2 : i32
      %107 = arith.addi %arg5, %c2_i32_93 : i32
      %c0_94 = arith.constant 0 : index
      %108 = arith.index_cast %107 : i32 to index
      %c3_95 = arith.constant 3 : index
      %c0_96 = arith.constant 0 : index
      %109 = vector.load %arg1[%c0_94, %108, %c3_95, %c0_96] : memref<1x56x56x3xbf16, #tpu.memory_space<vmem>>, vector<1x1x52x3xbf16>
      %110 = vector.shape_cast %109 : vector<1x1x52x3xbf16> to vector<52x3xbf16>
      %c13 = arith.constant 13 : index
      %c0_97 = arith.constant 0 : index
      %c0_98 = arith.constant 0 : index
      %111 = vector.load %arg2[%c13, %c0_97, %c0_98] : memref<25x3x32xbf16, #tpu.memory_space<vmem>>, vector<1x3x32xbf16>
      %112 = vector.shape_cast %111 : vector<1x3x32xbf16> to vector<3x32xbf16>
      %cst_99 = arith.constant dense<0.000000e+00> : vector<52x32xf32>
      %113 = tpu.matmul %110, %112, %cst_99 {dimension_numbers = #tpu.dot_dimension_numbers<[1], [0], [0], [1], [0, 0, 1, 1], [], []>} : vector<52x3xbf16>, vector<3x32xbf16>, vector<52x32xf32> -> vector<52x32xf32>
      %114 = arith.addf %106, %113 : vector<52x32xf32>
      %c2_i32_100 = arith.constant 2 : i32
      %115 = arith.addi %arg5, %c2_i32_100 : i32
      %c0_101 = arith.constant 0 : index
      %116 = arith.index_cast %115 : i32 to index
      %c4_102 = arith.constant 4 : index
      %c0_103 = arith.constant 0 : index
      %117 = vector.load %arg1[%c0_101, %116, %c4_102, %c0_103] : memref<1x56x56x3xbf16, #tpu.memory_space<vmem>>, vector<1x1x52x3xbf16>
      %118 = vector.shape_cast %117 : vector<1x1x52x3xbf16> to vector<52x3xbf16>
      %c14 = arith.constant 14 : index
      %c0_104 = arith.constant 0 : index
      %c0_105 = arith.constant 0 : index
      %119 = vector.load %arg2[%c14, %c0_104, %c0_105] : memref<25x3x32xbf16, #tpu.memory_space<vmem>>, vector<1x3x32xbf16>
      %120 = vector.shape_cast %119 : vector<1x3x32xbf16> to vector<3x32xbf16>
      %cst_106 = arith.constant dense<0.000000e+00> : vector<52x32xf32>
      %121 = tpu.matmul %118, %120, %cst_106 {dimension_numbers = #tpu.dot_dimension_numbers<[1], [0], [0], [1], [0, 0, 1, 1], [], []>} : vector<52x3xbf16>, vector<3x32xbf16>, vector<52x32xf32> -> vector<52x32xf32>
      %122 = arith.addf %114, %121 : vector<52x32xf32>
      %c3_i32 = arith.constant 3 : i32
      %123 = arith.addi %arg5, %c3_i32 : i32
      %c0_107 = arith.constant 0 : index
      %124 = arith.index_cast %123 : i32 to index
      %c0_108 = arith.constant 0 : index
      %c0_109 = arith.constant 0 : index
      %125 = vector.load %arg1[%c0_107, %124, %c0_108, %c0_109] : memref<1x56x56x3xbf16, #tpu.memory_space<vmem>>, vector<1x1x52x3xbf16>
      %126 = vector.shape_cast %125 : vector<1x1x52x3xbf16> to vector<52x3xbf16>
      %c15 = arith.constant 15 : index
      %c0_110 = arith.constant 0 : index
      %c0_111 = arith.constant 0 : index
      %127 = vector.load %arg2[%c15, %c0_110, %c0_111] : memref<25x3x32xbf16, #tpu.memory_space<vmem>>, vector<1x3x32xbf16>
      %128 = vector.shape_cast %127 : vector<1x3x32xbf16> to vector<3x32xbf16>
      %cst_112 = arith.constant dense<0.000000e+00> : vector<52x32xf32>
      %129 = tpu.matmul %126, %128, %cst_112 {dimension_numbers = #tpu.dot_dimension_numbers<[1], [0], [0], [1], [0, 0, 1, 1], [], []>} : vector<52x3xbf16>, vector<3x32xbf16>, vector<52x32xf32> -> vector<52x32xf32>
      %130 = arith.addf %122, %129 : vector<52x32xf32>
      %c3_i32_113 = arith.constant 3 : i32
      %131 = arith.addi %arg5, %c3_i32_113 : i32
      %c0_114 = arith.constant 0 : index
      %132 = arith.index_cast %131 : i32 to index
      %c1_115 = arith.constant 1 : index
      %c0_116 = arith.constant 0 : index
      %133 = vector.load %arg1[%c0_114, %132, %c1_115, %c0_116] : memref<1x56x56x3xbf16, #tpu.memory_space<vmem>>, vector<1x1x52x3xbf16>
      %134 = vector.shape_cast %133 : vector<1x1x52x3xbf16> to vector<52x3xbf16>
      %c16 = arith.constant 16 : index
      %c0_117 = arith.constant 0 : index
      %c0_118 = arith.constant 0 : index
      %135 = vector.load %arg2[%c16, %c0_117, %c0_118] : memref<25x3x32xbf16, #tpu.memory_space<vmem>>, vector<1x3x32xbf16>
      %136 = vector.shape_cast %135 : vector<1x3x32xbf16> to vector<3x32xbf16>
      %cst_119 = arith.constant dense<0.000000e+00> : vector<52x32xf32>
      %137 = tpu.matmul %134, %136, %cst_119 {dimension_numbers = #tpu.dot_dimension_numbers<[1], [0], [0], [1], [0, 0, 1, 1], [], []>} : vector<52x3xbf16>, vector<3x32xbf16>, vector<52x32xf32> -> vector<52x32xf32>
      %138 = arith.addf %130, %137 : vector<52x32xf32>
      %c3_i32_120 = arith.constant 3 : i32
      %139 = arith.addi %arg5, %c3_i32_120 : i32
      %c0_121 = arith.constant 0 : index
      %140 = arith.index_cast %139 : i32 to index
      %c2_122 = arith.constant 2 : index
      %c0_123 = arith.constant 0 : index
      %141 = vector.load %arg1[%c0_121, %140, %c2_122, %c0_123] : memref<1x56x56x3xbf16, #tpu.memory_space<vmem>>, vector<1x1x52x3xbf16>
      %142 = vector.shape_cast %141 : vector<1x1x52x3xbf16> to vector<52x3xbf16>
      %c17 = arith.constant 17 : index
      %c0_124 = arith.constant 0 : index
      %c0_125 = arith.constant 0 : index
      %143 = vector.load %arg2[%c17, %c0_124, %c0_125] : memref<25x3x32xbf16, #tpu.memory_space<vmem>>, vector<1x3x32xbf16>
      %144 = vector.shape_cast %143 : vector<1x3x32xbf16> to vector<3x32xbf16>
      %cst_126 = arith.constant dense<0.000000e+00> : vector<52x32xf32>
      %145 = tpu.matmul %142, %144, %cst_126 {dimension_numbers = #tpu.dot_dimension_numbers<[1], [0], [0], [1], [0, 0, 1, 1], [], []>} : vector<52x3xbf16>, vector<3x32xbf16>, vector<52x32xf32> -> vector<52x32xf32>
      %146 = arith.addf %138, %145 : vector<52x32xf32>
      %c3_i32_127 = arith.constant 3 : i32
      %147 = arith.addi %arg5, %c3_i32_127 : i32
      %c0_128 = arith.constant 0 : index
      %148 = arith.index_cast %147 : i32 to index
      %c3_129 = arith.constant 3 : index
      %c0_130 = arith.constant 0 : index
      %149 = vector.load %arg1[%c0_128, %148, %c3_129, %c0_130] : memref<1x56x56x3xbf16, #tpu.memory_space<vmem>>, vector<1x1x52x3xbf16>
      %150 = vector.shape_cast %149 : vector<1x1x52x3xbf16> to vector<52x3xbf16>
      %c18 = arith.constant 18 : index
      %c0_131 = arith.constant 0 : index
      %c0_132 = arith.constant 0 : index
      %151 = vector.load %arg2[%c18, %c0_131, %c0_132] : memref<25x3x32xbf16, #tpu.memory_space<vmem>>, vector<1x3x32xbf16>
      %152 = vector.shape_cast %151 : vector<1x3x32xbf16> to vector<3x32xbf16>
      %cst_133 = arith.constant dense<0.000000e+00> : vector<52x32xf32>
      %153 = tpu.matmul %150, %152, %cst_133 {dimension_numbers = #tpu.dot_dimension_numbers<[1], [0], [0], [1], [0, 0, 1, 1], [], []>} : vector<52x3xbf16>, vector<3x32xbf16>, vector<52x32xf32> -> vector<52x32xf32>
      %154 = arith.addf %146, %153 : vector<52x32xf32>
      %c3_i32_134 = arith.constant 3 : i32
      %155 = arith.addi %arg5, %c3_i32_134 : i32
      %c0_135 = arith.constant 0 : index
      %156 = arith.index_cast %155 : i32 to index
      %c4_136 = arith.constant 4 : index
      %c0_137 = arith.constant 0 : index
      %157 = vector.load %arg1[%c0_135, %156, %c4_136, %c0_137] : memref<1x56x56x3xbf16, #tpu.memory_space<vmem>>, vector<1x1x52x3xbf16>
      %158 = vector.shape_cast %157 : vector<1x1x52x3xbf16> to vector<52x3xbf16>
      %c19 = arith.constant 19 : index
      %c0_138 = arith.constant 0 : index
      %c0_139 = arith.constant 0 : index
      %159 = vector.load %arg2[%c19, %c0_138, %c0_139] : memref<25x3x32xbf16, #tpu.memory_space<vmem>>, vector<1x3x32xbf16>
      %160 = vector.shape_cast %159 : vector<1x3x32xbf16> to vector<3x32xbf16>
      %cst_140 = arith.constant dense<0.000000e+00> : vector<52x32xf32>
      %161 = tpu.matmul %158, %160, %cst_140 {dimension_numbers = #tpu.dot_dimension_numbers<[1], [0], [0], [1], [0, 0, 1, 1], [], []>} : vector<52x3xbf16>, vector<3x32xbf16>, vector<52x32xf32> -> vector<52x32xf32>
      %162 = arith.addf %154, %161 : vector<52x32xf32>
      %c4_i32 = arith.constant 4 : i32
      %163 = arith.addi %arg5, %c4_i32 : i32
      %c0_141 = arith.constant 0 : index
      %164 = arith.index_cast %163 : i32 to index
      %c0_142 = arith.constant 0 : index
      %c0_143 = arith.constant 0 : index
      %165 = vector.load %arg1[%c0_141, %164, %c0_142, %c0_143] : memref<1x56x56x3xbf16, #tpu.memory_space<vmem>>, vector<1x1x52x3xbf16>
      %166 = vector.shape_cast %165 : vector<1x1x52x3xbf16> to vector<52x3xbf16>
      %c20 = arith.constant 20 : index
      %c0_144 = arith.constant 0 : index
      %c0_145 = arith.constant 0 : index
      %167 = vector.load %arg2[%c20, %c0_144, %c0_145] : memref<25x3x32xbf16, #tpu.memory_space<vmem>>, vector<1x3x32xbf16>
      %168 = vector.shape_cast %167 : vector<1x3x32xbf16> to vector<3x32xbf16>
      %cst_146 = arith.constant dense<0.000000e+00> : vector<52x32xf32>
      %169 = tpu.matmul %166, %168, %cst_146 {dimension_numbers = #tpu.dot_dimension_numbers<[1], [0], [0], [1], [0, 0, 1, 1], [], []>} : vector<52x3xbf16>, vector<3x32xbf16>, vector<52x32xf32> -> vector<52x32xf32>
      %170 = arith.addf %162, %169 : vector<52x32xf32>
      %c4_i32_147 = arith.constant 4 : i32
      %171 = arith.addi %arg5, %c4_i32_147 : i32
      %c0_148 = arith.constant 0 : index
      %172 = arith.index_cast %171 : i32 to index
      %c1_149 = arith.constant 1 : index
      %c0_150 = arith.constant 0 : index
      %173 = vector.load %arg1[%c0_148, %172, %c1_149, %c0_150] : memref<1x56x56x3xbf16, #tpu.memory_space<vmem>>, vector<1x1x52x3xbf16>
      %174 = vector.shape_cast %173 : vector<1x1x52x3xbf16> to vector<52x3xbf16>
      %c21 = arith.constant 21 : index
      %c0_151 = arith.constant 0 : index
      %c0_152 = arith.constant 0 : index
      %175 = vector.load %arg2[%c21, %c0_151, %c0_152] : memref<25x3x32xbf16, #tpu.memory_space<vmem>>, vector<1x3x32xbf16>
      %176 = vector.shape_cast %175 : vector<1x3x32xbf16> to vector<3x32xbf16>
      %cst_153 = arith.constant dense<0.000000e+00> : vector<52x32xf32>
      %177 = tpu.matmul %174, %176, %cst_153 {dimension_numbers = #tpu.dot_dimension_numbers<[1], [0], [0], [1], [0, 0, 1, 1], [], []>} : vector<52x3xbf16>, vector<3x32xbf16>, vector<52x32xf32> -> vector<52x32xf32>
      %178 = arith.addf %170, %177 : vector<52x32xf32>
      %c4_i32_154 = arith.constant 4 : i32
      %179 = arith.addi %arg5, %c4_i32_154 : i32
      %c0_155 = arith.constant 0 : index
      %180 = arith.index_cast %179 : i32 to index
      %c2_156 = arith.constant 2 : index
      %c0_157 = arith.constant 0 : index
      %181 = vector.load %arg1[%c0_155, %180, %c2_156, %c0_157] : memref<1x56x56x3xbf16, #tpu.memory_space<vmem>>, vector<1x1x52x3xbf16>
      %182 = vector.shape_cast %181 : vector<1x1x52x3xbf16> to vector<52x3xbf16>
      %c22 = arith.constant 22 : index
      %c0_158 = arith.constant 0 : index
      %c0_159 = arith.constant 0 : index
      %183 = vector.load %arg2[%c22, %c0_158, %c0_159] : memref<25x3x32xbf16, #tpu.memory_space<vmem>>, vector<1x3x32xbf16>
      %184 = vector.shape_cast %183 : vector<1x3x32xbf16> to vector<3x32xbf16>
      %cst_160 = arith.constant dense<0.000000e+00> : vector<52x32xf32>
      %185 = tpu.matmul %182, %184, %cst_160 {dimension_numbers = #tpu.dot_dimension_numbers<[1], [0], [0], [1], [0, 0, 1, 1], [], []>} : vector<52x3xbf16>, vector<3x32xbf16>, vector<52x32xf32> -> vector<52x32xf32>
      %186 = arith.addf %178, %185 : vector<52x32xf32>
      %c4_i32_161 = arith.constant 4 : i32
      %187 = arith.addi %arg5, %c4_i32_161 : i32
      %c0_162 = arith.constant 0 : index
      %188 = arith.index_cast %187 : i32 to index
      %c3_163 = arith.constant 3 : index
      %c0_164 = arith.constant 0 : index
      %189 = vector.load %arg1[%c0_162, %188, %c3_163, %c0_164] : memref<1x56x56x3xbf16, #tpu.memory_space<vmem>>, vector<1x1x52x3xbf16>
      %190 = vector.shape_cast %189 : vector<1x1x52x3xbf16> to vector<52x3xbf16>
      %c23 = arith.constant 23 : index
      %c0_165 = arith.constant 0 : index
      %c0_166 = arith.constant 0 : index
      %191 = vector.load %arg2[%c23, %c0_165, %c0_166] : memref<25x3x32xbf16, #tpu.memory_space<vmem>>, vector<1x3x32xbf16>
      %192 = vector.shape_cast %191 : vector<1x3x32xbf16> to vector<3x32xbf16>
      %cst_167 = arith.constant dense<0.000000e+00> : vector<52x32xf32>
      %193 = tpu.matmul %190, %192, %cst_167 {dimension_numbers = #tpu.dot_dimension_numbers<[1], [0], [0], [1], [0, 0, 1, 1], [], []>} : vector<52x3xbf16>, vector<3x32xbf16>, vector<52x32xf32> -> vector<52x32xf32>
      %194 = arith.addf %186, %193 : vector<52x32xf32>
      %c4_i32_168 = arith.constant 4 : i32
      %195 = arith.addi %arg5, %c4_i32_168 : i32
      %c0_169 = arith.constant 0 : index
      %196 = arith.index_cast %195 : i32 to index
      %c4_170 = arith.constant 4 : index
      %c0_171 = arith.constant 0 : index
      %197 = vector.load %arg1[%c0_169, %196, %c4_170, %c0_171] : memref<1x56x56x3xbf16, #tpu.memory_space<vmem>>, vector<1x1x52x3xbf16>
      %198 = vector.shape_cast %197 : vector<1x1x52x3xbf16> to vector<52x3xbf16>
      %c24 = arith.constant 24 : index
      %c0_172 = arith.constant 0 : index
      %c0_173 = arith.constant 0 : index
      %199 = vector.load %arg2[%c24, %c0_172, %c0_173] : memref<25x3x32xbf16, #tpu.memory_space<vmem>>, vector<1x3x32xbf16>
      %200 = vector.shape_cast %199 : vector<1x3x32xbf16> to vector<3x32xbf16>
      %cst_174 = arith.constant dense<0.000000e+00> : vector<52x32xf32>
      %201 = tpu.matmul %198, %200, %cst_174 {dimension_numbers = #tpu.dot_dimension_numbers<[1], [0], [0], [1], [0, 0, 1, 1], [], []>} : vector<52x3xbf16>, vector<3x32xbf16>, vector<52x32xf32> -> vector<52x32xf32>
      %202 = arith.addf %194, %201 : vector<52x32xf32>
      %203 = vector.broadcast %0 : vector<1x32xf32> to vector<52x32xf32>
      %204 = arith.addf %202, %203 : vector<52x32xf32>
      %cst_175 = arith.constant 0.000000e+00 : f32
      %205 = vector.broadcast %cst_175 : f32 to vector<52x32xf32>
      %206 = arith.maximumf %204, %205 : vector<52x32xf32>
      %207 = arith.truncf %206 : vector<52x32xf32> to vector<52x32xbf16>
      %c0_176 = arith.constant 0 : index
      %208 = arith.index_cast %arg5 : i32 to index
      %c0_177 = arith.constant 0 : index
      %c0_178 = arith.constant 0 : index
      %209 = vector.load %arg4[%c0_176, %208, %c0_177, %c0_178] : memref<1x52x52x32xbf16, #tpu.memory_space<vmem>>, vector<1x1x52x32xbf16>
      %210 = vector.shape_cast %209 : vector<1x1x52x32xbf16> to vector<52x32xbf16>
      %211 = vector.shape_cast %207 : vector<52x32xbf16> to vector<1x1x52x32xbf16>
      tpu.vector_store %arg4[%c0_176, %208, %c0_177, %c0_178], %211 {strides = array<i32>} : memref<1x52x52x32xbf16, #tpu.memory_space<vmem>>, vector<1x1x52x32xbf16>,
    }
    %c52_i32_1 = arith.constant 52 : i32
    return
  }
  func.func @transform_0(%arg0: i32) -> (i32, i32, i32, i32) {
    %c0_i32 = arith.constant 0 : i32
    %c0_i32_0 = arith.constant 0 : i32
    %c0_i32_1 = arith.constant 0 : i32
    %c0_i32_2 = arith.constant 0 : i32
    return %arg0, %c0_i32, %c0_i32_0, %c0_i32_1 : i32, i32, i32, i32
  }
  func.func @transform_1(%arg0: i32) -> (i32, i32, i32) {
    %c0_i32 = arith.constant 0 : i32
    %c0_i32_0 = arith.constant 0 : i32
    %c0_i32_1 = arith.constant 0 : i32
    %c0_i32_2 = arith.constant 0 : i32
    return %c0_i32, %c0_i32_0, %c0_i32_1 : i32, i32, i32
  }
  func.func @transform_2(%arg0: i32) -> (i32, i32) {
    %c0_i32 = arith.constant 0 : i32
    %c0_i32_0 = arith.constant 0 : i32
    %c0_i32_1 = arith.constant 0 : i32
    return %c0_i32, %c0_i32_0 : i32, i32
  }
  func.func @transform_3(%arg0: i32) -> (i32, i32, i32, i32) {
    %c0_i32 = arith.constant 0 : i32
    %c0_i32_0 = arith.constant 0 : i32
    %c0_i32_1 = arith.constant 0 : i32
    %c0_i32_2 = arith.constant 0 : i32
    return %arg0, %c0_i32, %c0_i32_0, %c0_i32_1 : i32, i32, i32, i32
  }
}

module attributes {stable_mosaic.version = 11 : i64} {
  func.func @_conv_bn_relu_kernel(%arg0: i32, %arg1: memref<1x52x54x32xbf16, #tpu.memory_space<vmem>>, %arg2: memref<9x32x32xbf16, #tpu.memory_space<vmem>>, %arg3: memref<1x32xf32, #tpu.memory_space<vmem>>, %arg4: memref<1x50x52x32xbf16, #tpu.memory_space<vmem>>) attributes {dimension_semantics = [#tpu.dimension_semantics<parallel>], iteration_bounds = array<i64: 2>, scalar_prefetch = 0 : i64, scratch_operands = 0 : i64, tpu.core_type = #tpu.core_type<tc>, window_params = [{transform_indices = @transform_0, window_bounds = array<i64: 1, 52, 54, 32>}, {pipeline_mode = #tpu.pipeline_mode<synchronous>, transform_indices = @transform_1, window_bounds = array<i64: 9, 32, 32>}, {pipeline_mode = #tpu.pipeline_mode<synchronous>, transform_indices = @transform_2, window_bounds = array<i64: 1, 32>}, {transform_indices = @transform_3, window_bounds = array<i64: 1, 50, 52, 32>}]} {
    %c0 = arith.constant 0 : index
    %c0_0 = arith.constant 0 : index
    %0 = vector.load %arg3[%c0, %c0_0] : memref<1x32xf32, #tpu.memory_space<vmem>>, vector<1x32xf32>
    %c0_i32 = arith.constant 0 : i32
    %c50_i32 = arith.constant 50 : i32
    %1 = arith.addi %c0_i32, %c50_i32 : i32
    %c1_i32 = arith.constant 1 : i32
    scf.for %arg5 = %c0_i32 to %1 step %c1_i32  : i32 {
      %cst = arith.constant 0.000000e+00 : f32
      %2 = vector.broadcast %cst : f32 to vector<52x32xf32>
      %c0_i32_2 = arith.constant 0 : i32
      %3 = arith.addi %arg5, %c0_i32_2 : i32
      %c0_3 = arith.constant 0 : index
      %4 = arith.index_cast %3 : i32 to index
      %c0_4 = arith.constant 0 : index
      %c0_5 = arith.constant 0 : index
      %5 = vector.load %arg1[%c0_3, %4, %c0_4, %c0_5] : memref<1x52x54x32xbf16, #tpu.memory_space<vmem>>, vector<1x1x52x32xbf16>
      %6 = vector.shape_cast %5 : vector<1x1x52x32xbf16> to vector<52x32xbf16>
      %c0_6 = arith.constant 0 : index
      %c0_7 = arith.constant 0 : index
      %c0_8 = arith.constant 0 : index
      %7 = vector.load %arg2[%c0_6, %c0_7, %c0_8] : memref<9x32x32xbf16, #tpu.memory_space<vmem>>, vector<1x32x32xbf16>
      %8 = vector.shape_cast %7 : vector<1x32x32xbf16> to vector<32x32xbf16>
      %cst_9 = arith.constant dense<0.000000e+00> : vector<52x32xf32>
      %9 = tpu.matmul %6, %8, %cst_9 {dimension_numbers = #tpu.dot_dimension_numbers<[1], [0], [0], [1], [0, 0, 1, 1], [], []>} : vector<52x32xbf16>, vector<32x32xbf16>, vector<52x32xf32> -> vector<52x32xf32>
      %10 = arith.addf %2, %9 : vector<52x32xf32>
      %c0_i32_10 = arith.constant 0 : i32
      %11 = arith.addi %arg5, %c0_i32_10 : i32
      %c0_11 = arith.constant 0 : index
      %12 = arith.index_cast %11 : i32 to index
      %c1 = arith.constant 1 : index
      %c0_12 = arith.constant 0 : index
      %13 = vector.load %arg1[%c0_11, %12, %c1, %c0_12] : memref<1x52x54x32xbf16, #tpu.memory_space<vmem>>, vector<1x1x52x32xbf16>
      %14 = vector.shape_cast %13 : vector<1x1x52x32xbf16> to vector<52x32xbf16>
      %c1_13 = arith.constant 1 : index
      %c0_14 = arith.constant 0 : index
      %c0_15 = arith.constant 0 : index
      %15 = vector.load %arg2[%c1_13, %c0_14, %c0_15] : memref<9x32x32xbf16, #tpu.memory_space<vmem>>, vector<1x32x32xbf16>
      %16 = vector.shape_cast %15 : vector<1x32x32xbf16> to vector<32x32xbf16>
      %cst_16 = arith.constant dense<0.000000e+00> : vector<52x32xf32>
      %17 = tpu.matmul %14, %16, %cst_16 {dimension_numbers = #tpu.dot_dimension_numbers<[1], [0], [0], [1], [0, 0, 1, 1], [], []>} : vector<52x32xbf16>, vector<32x32xbf16>, vector<52x32xf32> -> vector<52x32xf32>
      %18 = arith.addf %10, %17 : vector<52x32xf32>
      %c0_i32_17 = arith.constant 0 : i32
      %19 = arith.addi %arg5, %c0_i32_17 : i32
      %c0_18 = arith.constant 0 : index
      %20 = arith.index_cast %19 : i32 to index
      %c2 = arith.constant 2 : index
      %c0_19 = arith.constant 0 : index
      %21 = vector.load %arg1[%c0_18, %20, %c2, %c0_19] : memref<1x52x54x32xbf16, #tpu.memory_space<vmem>>, vector<1x1x52x32xbf16>
      %22 = vector.shape_cast %21 : vector<1x1x52x32xbf16> to vector<52x32xbf16>
      %c2_20 = arith.constant 2 : index
      %c0_21 = arith.constant 0 : index
      %c0_22 = arith.constant 0 : index
      %23 = vector.load %arg2[%c2_20, %c0_21, %c0_22] : memref<9x32x32xbf16, #tpu.memory_space<vmem>>, vector<1x32x32xbf16>
      %24 = vector.shape_cast %23 : vector<1x32x32xbf16> to vector<32x32xbf16>
      %cst_23 = arith.constant dense<0.000000e+00> : vector<52x32xf32>
      %25 = tpu.matmul %22, %24, %cst_23 {dimension_numbers = #tpu.dot_dimension_numbers<[1], [0], [0], [1], [0, 0, 1, 1], [], []>} : vector<52x32xbf16>, vector<32x32xbf16>, vector<52x32xf32> -> vector<52x32xf32>
      %26 = arith.addf %18, %25 : vector<52x32xf32>
      %c1_i32_24 = arith.constant 1 : i32
      %27 = arith.addi %arg5, %c1_i32_24 : i32
      %c0_25 = arith.constant 0 : index
      %28 = arith.index_cast %27 : i32 to index
      %c0_26 = arith.constant 0 : index
      %c0_27 = arith.constant 0 : index
      %29 = vector.load %arg1[%c0_25, %28, %c0_26, %c0_27] : memref<1x52x54x32xbf16, #tpu.memory_space<vmem>>, vector<1x1x52x32xbf16>
      %30 = vector.shape_cast %29 : vector<1x1x52x32xbf16> to vector<52x32xbf16>
      %c3 = arith.constant 3 : index
      %c0_28 = arith.constant 0 : index
      %c0_29 = arith.constant 0 : index
      %31 = vector.load %arg2[%c3, %c0_28, %c0_29] : memref<9x32x32xbf16, #tpu.memory_space<vmem>>, vector<1x32x32xbf16>
      %32 = vector.shape_cast %31 : vector<1x32x32xbf16> to vector<32x32xbf16>
      %cst_30 = arith.constant dense<0.000000e+00> : vector<52x32xf32>
      %33 = tpu.matmul %30, %32, %cst_30 {dimension_numbers = #tpu.dot_dimension_numbers<[1], [0], [0], [1], [0, 0, 1, 1], [], []>} : vector<52x32xbf16>, vector<32x32xbf16>, vector<52x32xf32> -> vector<52x32xf32>
      %34 = arith.addf %26, %33 : vector<52x32xf32>
      %c1_i32_31 = arith.constant 1 : i32
      %35 = arith.addi %arg5, %c1_i32_31 : i32
      %c0_32 = arith.constant 0 : index
      %36 = arith.index_cast %35 : i32 to index
      %c1_33 = arith.constant 1 : index
      %c0_34 = arith.constant 0 : index
      %37 = vector.load %arg1[%c0_32, %36, %c1_33, %c0_34] : memref<1x52x54x32xbf16, #tpu.memory_space<vmem>>, vector<1x1x52x32xbf16>
      %38 = vector.shape_cast %37 : vector<1x1x52x32xbf16> to vector<52x32xbf16>
      %c4 = arith.constant 4 : index
      %c0_35 = arith.constant 0 : index
      %c0_36 = arith.constant 0 : index
      %39 = vector.load %arg2[%c4, %c0_35, %c0_36] : memref<9x32x32xbf16, #tpu.memory_space<vmem>>, vector<1x32x32xbf16>
      %40 = vector.shape_cast %39 : vector<1x32x32xbf16> to vector<32x32xbf16>
      %cst_37 = arith.constant dense<0.000000e+00> : vector<52x32xf32>
      %41 = tpu.matmul %38, %40, %cst_37 {dimension_numbers = #tpu.dot_dimension_numbers<[1], [0], [0], [1], [0, 0, 1, 1], [], []>} : vector<52x32xbf16>, vector<32x32xbf16>, vector<52x32xf32> -> vector<52x32xf32>
      %42 = arith.addf %34, %41 : vector<52x32xf32>
      %c1_i32_38 = arith.constant 1 : i32
      %43 = arith.addi %arg5, %c1_i32_38 : i32
      %c0_39 = arith.constant 0 : index
      %44 = arith.index_cast %43 : i32 to index
      %c2_40 = arith.constant 2 : index
      %c0_41 = arith.constant 0 : index
      %45 = vector.load %arg1[%c0_39, %44, %c2_40, %c0_41] : memref<1x52x54x32xbf16, #tpu.memory_space<vmem>>, vector<1x1x52x32xbf16>
      %46 = vector.shape_cast %45 : vector<1x1x52x32xbf16> to vector<52x32xbf16>
      %c5 = arith.constant 5 : index
      %c0_42 = arith.constant 0 : index
      %c0_43 = arith.constant 0 : index
      %47 = vector.load %arg2[%c5, %c0_42, %c0_43] : memref<9x32x32xbf16, #tpu.memory_space<vmem>>, vector<1x32x32xbf16>
      %48 = vector.shape_cast %47 : vector<1x32x32xbf16> to vector<32x32xbf16>
      %cst_44 = arith.constant dense<0.000000e+00> : vector<52x32xf32>
      %49 = tpu.matmul %46, %48, %cst_44 {dimension_numbers = #tpu.dot_dimension_numbers<[1], [0], [0], [1], [0, 0, 1, 1], [], []>} : vector<52x32xbf16>, vector<32x32xbf16>, vector<52x32xf32> -> vector<52x32xf32>
      %50 = arith.addf %42, %49 : vector<52x32xf32>
      %c2_i32 = arith.constant 2 : i32
      %51 = arith.addi %arg5, %c2_i32 : i32
      %c0_45 = arith.constant 0 : index
      %52 = arith.index_cast %51 : i32 to index
      %c0_46 = arith.constant 0 : index
      %c0_47 = arith.constant 0 : index
      %53 = vector.load %arg1[%c0_45, %52, %c0_46, %c0_47] : memref<1x52x54x32xbf16, #tpu.memory_space<vmem>>, vector<1x1x52x32xbf16>
      %54 = vector.shape_cast %53 : vector<1x1x52x32xbf16> to vector<52x32xbf16>
      %c6 = arith.constant 6 : index
      %c0_48 = arith.constant 0 : index
      %c0_49 = arith.constant 0 : index
      %55 = vector.load %arg2[%c6, %c0_48, %c0_49] : memref<9x32x32xbf16, #tpu.memory_space<vmem>>, vector<1x32x32xbf16>
      %56 = vector.shape_cast %55 : vector<1x32x32xbf16> to vector<32x32xbf16>
      %cst_50 = arith.constant dense<0.000000e+00> : vector<52x32xf32>
      %57 = tpu.matmul %54, %56, %cst_50 {dimension_numbers = #tpu.dot_dimension_numbers<[1], [0], [0], [1], [0, 0, 1, 1], [], []>} : vector<52x32xbf16>, vector<32x32xbf16>, vector<52x32xf32> -> vector<52x32xf32>
      %58 = arith.addf %50, %57 : vector<52x32xf32>
      %c2_i32_51 = arith.constant 2 : i32
      %59 = arith.addi %arg5, %c2_i32_51 : i32
      %c0_52 = arith.constant 0 : index
      %60 = arith.index_cast %59 : i32 to index
      %c1_53 = arith.constant 1 : index
      %c0_54 = arith.constant 0 : index
      %61 = vector.load %arg1[%c0_52, %60, %c1_53, %c0_54] : memref<1x52x54x32xbf16, #tpu.memory_space<vmem>>, vector<1x1x52x32xbf16>
      %62 = vector.shape_cast %61 : vector<1x1x52x32xbf16> to vector<52x32xbf16>
      %c7 = arith.constant 7 : index
      %c0_55 = arith.constant 0 : index
      %c0_56 = arith.constant 0 : index
      %63 = vector.load %arg2[%c7, %c0_55, %c0_56] : memref<9x32x32xbf16, #tpu.memory_space<vmem>>, vector<1x32x32xbf16>
      %64 = vector.shape_cast %63 : vector<1x32x32xbf16> to vector<32x32xbf16>
      %cst_57 = arith.constant dense<0.000000e+00> : vector<52x32xf32>
      %65 = tpu.matmul %62, %64, %cst_57 {dimension_numbers = #tpu.dot_dimension_numbers<[1], [0], [0], [1], [0, 0, 1, 1], [], []>} : vector<52x32xbf16>, vector<32x32xbf16>, vector<52x32xf32> -> vector<52x32xf32>
      %66 = arith.addf %58, %65 : vector<52x32xf32>
      %c2_i32_58 = arith.constant 2 : i32
      %67 = arith.addi %arg5, %c2_i32_58 : i32
      %c0_59 = arith.constant 0 : index
      %68 = arith.index_cast %67 : i32 to index
      %c2_60 = arith.constant 2 : index
      %c0_61 = arith.constant 0 : index
      %69 = vector.load %arg1[%c0_59, %68, %c2_60, %c0_61] : memref<1x52x54x32xbf16, #tpu.memory_space<vmem>>, vector<1x1x52x32xbf16>
      %70 = vector.shape_cast %69 : vector<1x1x52x32xbf16> to vector<52x32xbf16>
      %c8 = arith.constant 8 : index
      %c0_62 = arith.constant 0 : index
      %c0_63 = arith.constant 0 : index
      %71 = vector.load %arg2[%c8, %c0_62, %c0_63] : memref<9x32x32xbf16, #tpu.memory_space<vmem>>, vector<1x32x32xbf16>
      %72 = vector.shape_cast %71 : vector<1x32x32xbf16> to vector<32x32xbf16>
      %cst_64 = arith.constant dense<0.000000e+00> : vector<52x32xf32>
      %73 = tpu.matmul %70, %72, %cst_64 {dimension_numbers = #tpu.dot_dimension_numbers<[1], [0], [0], [1], [0, 0, 1, 1], [], []>} : vector<52x32xbf16>, vector<32x32xbf16>, vector<52x32xf32> -> vector<52x32xf32>
      %74 = arith.addf %66, %73 : vector<52x32xf32>
      %75 = vector.broadcast %0 : vector<1x32xf32> to vector<52x32xf32>
      %76 = arith.addf %74, %75 : vector<52x32xf32>
      %cst_65 = arith.constant 0.000000e+00 : f32
      %77 = vector.broadcast %cst_65 : f32 to vector<52x32xf32>
      %78 = arith.maximumf %76, %77 : vector<52x32xf32>
      %79 = arith.truncf %78 : vector<52x32xf32> to vector<52x32xbf16>
      %c0_66 = arith.constant 0 : index
      %80 = arith.index_cast %arg5 : i32 to index
      %c0_67 = arith.constant 0 : index
      %c0_68 = arith.constant 0 : index
      %81 = vector.load %arg4[%c0_66, %80, %c0_67, %c0_68] : memref<1x50x52x32xbf16, #tpu.memory_space<vmem>>, vector<1x1x52x32xbf16>
      %82 = vector.shape_cast %81 : vector<1x1x52x32xbf16> to vector<52x32xbf16>
      %83 = vector.shape_cast %79 : vector<52x32xbf16> to vector<1x1x52x32xbf16>
      tpu.vector_store %arg4[%c0_66, %80, %c0_67, %c0_68], %83 {strides = array<i32>} : memref<1x50x52x32xbf16, #tpu.memory_space<vmem>>, vector<1x1x52x32xbf16>,
    }
    %c50_i32_1 = arith.constant 50 : i32
    return
  }
  func.func @transform_0(%arg0: i32) -> (i32, i32, i32, i32) {
    %c0_i32 = arith.constant 0 : i32
    %c0_i32_0 = arith.constant 0 : i32
    %c0_i32_1 = arith.constant 0 : i32
    %c0_i32_2 = arith.constant 0 : i32
    return %arg0, %c0_i32, %c0_i32_0, %c0_i32_1 : i32, i32, i32, i32
  }
  func.func @transform_1(%arg0: i32) -> (i32, i32, i32) {
    %c0_i32 = arith.constant 0 : i32
    %c0_i32_0 = arith.constant 0 : i32
    %c0_i32_1 = arith.constant 0 : i32
    %c0_i32_2 = arith.constant 0 : i32
    return %c0_i32, %c0_i32_0, %c0_i32_1 : i32, i32, i32
  }
  func.func @transform_2(%arg0: i32) -> (i32, i32) {
    %c0_i32 = arith.constant 0 : i32
    %c0_i32_0 = arith.constant 0 : i32
    %c0_i32_1 = arith.constant 0 : i32
    return %c0_i32, %c0_i32_0 : i32, i32
  }
  func.func @transform_3(%arg0: i32) -> (i32, i32, i32, i32) {
    %c0_i32 = arith.constant 0 : i32
    %c0_i32_0 = arith.constant 0 : i32
    %c0_i32_1 = arith.constant 0 : i32
    %c0_i32_2 = arith.constant 0 : i32
    return %arg0, %c0_i32, %c0_i32_0, %c0_i32_1 : i32, i32, i32, i32
  }
}

module attributes {stable_mosaic.version = 11 : i64} {
  func.func @_conv_bn_relu_kernel(%arg0: i32, %arg1: memref<1x50x54x32xbf16, #tpu.memory_space<vmem>>, %arg2: memref<9x32x64xbf16, #tpu.memory_space<vmem>>, %arg3: memref<1x64xf32, #tpu.memory_space<vmem>>, %arg4: memref<1x48x52x64xbf16, #tpu.memory_space<vmem>>) attributes {dimension_semantics = [#tpu.dimension_semantics<parallel>], iteration_bounds = array<i64: 2>, scalar_prefetch = 0 : i64, scratch_operands = 0 : i64, tpu.core_type = #tpu.core_type<tc>, window_params = [{transform_indices = @transform_0, window_bounds = array<i64: 1, 50, 54, 32>}, {pipeline_mode = #tpu.pipeline_mode<synchronous>, transform_indices = @transform_1, window_bounds = array<i64: 9, 32, 64>}, {pipeline_mode = #tpu.pipeline_mode<synchronous>, transform_indices = @transform_2, window_bounds = array<i64: 1, 64>}, {transform_indices = @transform_3, window_bounds = array<i64: 1, 48, 52, 64>}]} {
    %c0 = arith.constant 0 : index
    %c0_0 = arith.constant 0 : index
    %0 = vector.load %arg3[%c0, %c0_0] : memref<1x64xf32, #tpu.memory_space<vmem>>, vector<1x64xf32>
    %c0_i32 = arith.constant 0 : i32
    %c48_i32 = arith.constant 48 : i32
    %1 = arith.addi %c0_i32, %c48_i32 : i32
    %c1_i32 = arith.constant 1 : i32
    scf.for %arg5 = %c0_i32 to %1 step %c1_i32  : i32 {
      %cst = arith.constant 0.000000e+00 : f32
      %2 = vector.broadcast %cst : f32 to vector<52x64xf32>
      %c0_i32_2 = arith.constant 0 : i32
      %3 = arith.addi %arg5, %c0_i32_2 : i32
      %c0_3 = arith.constant 0 : index
      %4 = arith.index_cast %3 : i32 to index
      %c0_4 = arith.constant 0 : index
      %c0_5 = arith.constant 0 : index
      %5 = vector.load %arg1[%c0_3, %4, %c0_4, %c0_5] : memref<1x50x54x32xbf16, #tpu.memory_space<vmem>>, vector<1x1x52x32xbf16>
      %6 = vector.shape_cast %5 : vector<1x1x52x32xbf16> to vector<52x32xbf16>
      %c0_6 = arith.constant 0 : index
      %c0_7 = arith.constant 0 : index
      %c0_8 = arith.constant 0 : index
      %7 = vector.load %arg2[%c0_6, %c0_7, %c0_8] : memref<9x32x64xbf16, #tpu.memory_space<vmem>>, vector<1x32x64xbf16>
      %8 = vector.shape_cast %7 : vector<1x32x64xbf16> to vector<32x64xbf16>
      %cst_9 = arith.constant dense<0.000000e+00> : vector<52x64xf32>
      %9 = tpu.matmul %6, %8, %cst_9 {dimension_numbers = #tpu.dot_dimension_numbers<[1], [0], [0], [1], [0, 0, 1, 1], [], []>} : vector<52x32xbf16>, vector<32x64xbf16>, vector<52x64xf32> -> vector<52x64xf32>
      %10 = arith.addf %2, %9 : vector<52x64xf32>
      %c0_i32_10 = arith.constant 0 : i32
      %11 = arith.addi %arg5, %c0_i32_10 : i32
      %c0_11 = arith.constant 0 : index
      %12 = arith.index_cast %11 : i32 to index
      %c1 = arith.constant 1 : index
      %c0_12 = arith.constant 0 : index
      %13 = vector.load %arg1[%c0_11, %12, %c1, %c0_12] : memref<1x50x54x32xbf16, #tpu.memory_space<vmem>>, vector<1x1x52x32xbf16>
      %14 = vector.shape_cast %13 : vector<1x1x52x32xbf16> to vector<52x32xbf16>
      %c1_13 = arith.constant 1 : index
      %c0_14 = arith.constant 0 : index
      %c0_15 = arith.constant 0 : index
      %15 = vector.load %arg2[%c1_13, %c0_14, %c0_15] : memref<9x32x64xbf16, #tpu.memory_space<vmem>>, vector<1x32x64xbf16>
      %16 = vector.shape_cast %15 : vector<1x32x64xbf16> to vector<32x64xbf16>
      %cst_16 = arith.constant dense<0.000000e+00> : vector<52x64xf32>
      %17 = tpu.matmul %14, %16, %cst_16 {dimension_numbers = #tpu.dot_dimension_numbers<[1], [0], [0], [1], [0, 0, 1, 1], [], []>} : vector<52x32xbf16>, vector<32x64xbf16>, vector<52x64xf32> -> vector<52x64xf32>
      %18 = arith.addf %10, %17 : vector<52x64xf32>
      %c0_i32_17 = arith.constant 0 : i32
      %19 = arith.addi %arg5, %c0_i32_17 : i32
      %c0_18 = arith.constant 0 : index
      %20 = arith.index_cast %19 : i32 to index
      %c2 = arith.constant 2 : index
      %c0_19 = arith.constant 0 : index
      %21 = vector.load %arg1[%c0_18, %20, %c2, %c0_19] : memref<1x50x54x32xbf16, #tpu.memory_space<vmem>>, vector<1x1x52x32xbf16>
      %22 = vector.shape_cast %21 : vector<1x1x52x32xbf16> to vector<52x32xbf16>
      %c2_20 = arith.constant 2 : index
      %c0_21 = arith.constant 0 : index
      %c0_22 = arith.constant 0 : index
      %23 = vector.load %arg2[%c2_20, %c0_21, %c0_22] : memref<9x32x64xbf16, #tpu.memory_space<vmem>>, vector<1x32x64xbf16>
      %24 = vector.shape_cast %23 : vector<1x32x64xbf16> to vector<32x64xbf16>
      %cst_23 = arith.constant dense<0.000000e+00> : vector<52x64xf32>
      %25 = tpu.matmul %22, %24, %cst_23 {dimension_numbers = #tpu.dot_dimension_numbers<[1], [0], [0], [1], [0, 0, 1, 1], [], []>} : vector<52x32xbf16>, vector<32x64xbf16>, vector<52x64xf32> -> vector<52x64xf32>
      %26 = arith.addf %18, %25 : vector<52x64xf32>
      %c1_i32_24 = arith.constant 1 : i32
      %27 = arith.addi %arg5, %c1_i32_24 : i32
      %c0_25 = arith.constant 0 : index
      %28 = arith.index_cast %27 : i32 to index
      %c0_26 = arith.constant 0 : index
      %c0_27 = arith.constant 0 : index
      %29 = vector.load %arg1[%c0_25, %28, %c0_26, %c0_27] : memref<1x50x54x32xbf16, #tpu.memory_space<vmem>>, vector<1x1x52x32xbf16>
      %30 = vector.shape_cast %29 : vector<1x1x52x32xbf16> to vector<52x32xbf16>
      %c3 = arith.constant 3 : index
      %c0_28 = arith.constant 0 : index
      %c0_29 = arith.constant 0 : index
      %31 = vector.load %arg2[%c3, %c0_28, %c0_29] : memref<9x32x64xbf16, #tpu.memory_space<vmem>>, vector<1x32x64xbf16>
      %32 = vector.shape_cast %31 : vector<1x32x64xbf16> to vector<32x64xbf16>
      %cst_30 = arith.constant dense<0.000000e+00> : vector<52x64xf32>
      %33 = tpu.matmul %30, %32, %cst_30 {dimension_numbers = #tpu.dot_dimension_numbers<[1], [0], [0], [1], [0, 0, 1, 1], [], []>} : vector<52x32xbf16>, vector<32x64xbf16>, vector<52x64xf32> -> vector<52x64xf32>
      %34 = arith.addf %26, %33 : vector<52x64xf32>
      %c1_i32_31 = arith.constant 1 : i32
      %35 = arith.addi %arg5, %c1_i32_31 : i32
      %c0_32 = arith.constant 0 : index
      %36 = arith.index_cast %35 : i32 to index
      %c1_33 = arith.constant 1 : index
      %c0_34 = arith.constant 0 : index
      %37 = vector.load %arg1[%c0_32, %36, %c1_33, %c0_34] : memref<1x50x54x32xbf16, #tpu.memory_space<vmem>>, vector<1x1x52x32xbf16>
      %38 = vector.shape_cast %37 : vector<1x1x52x32xbf16> to vector<52x32xbf16>
      %c4 = arith.constant 4 : index
      %c0_35 = arith.constant 0 : index
      %c0_36 = arith.constant 0 : index
      %39 = vector.load %arg2[%c4, %c0_35, %c0_36] : memref<9x32x64xbf16, #tpu.memory_space<vmem>>, vector<1x32x64xbf16>
      %40 = vector.shape_cast %39 : vector<1x32x64xbf16> to vector<32x64xbf16>
      %cst_37 = arith.constant dense<0.000000e+00> : vector<52x64xf32>
      %41 = tpu.matmul %38, %40, %cst_37 {dimension_numbers = #tpu.dot_dimension_numbers<[1], [0], [0], [1], [0, 0, 1, 1], [], []>} : vector<52x32xbf16>, vector<32x64xbf16>, vector<52x64xf32> -> vector<52x64xf32>
      %42 = arith.addf %34, %41 : vector<52x64xf32>
      %c1_i32_38 = arith.constant 1 : i32
      %43 = arith.addi %arg5, %c1_i32_38 : i32
      %c0_39 = arith.constant 0 : index
      %44 = arith.index_cast %43 : i32 to index
      %c2_40 = arith.constant 2 : index
      %c0_41 = arith.constant 0 : index
      %45 = vector.load %arg1[%c0_39, %44, %c2_40, %c0_41] : memref<1x50x54x32xbf16, #tpu.memory_space<vmem>>, vector<1x1x52x32xbf16>
      %46 = vector.shape_cast %45 : vector<1x1x52x32xbf16> to vector<52x32xbf16>
      %c5 = arith.constant 5 : index
      %c0_42 = arith.constant 0 : index
      %c0_43 = arith.constant 0 : index
      %47 = vector.load %arg2[%c5, %c0_42, %c0_43] : memref<9x32x64xbf16, #tpu.memory_space<vmem>>, vector<1x32x64xbf16>
      %48 = vector.shape_cast %47 : vector<1x32x64xbf16> to vector<32x64xbf16>
      %cst_44 = arith.constant dense<0.000000e+00> : vector<52x64xf32>
      %49 = tpu.matmul %46, %48, %cst_44 {dimension_numbers = #tpu.dot_dimension_numbers<[1], [0], [0], [1], [0, 0, 1, 1], [], []>} : vector<52x32xbf16>, vector<32x64xbf16>, vector<52x64xf32> -> vector<52x64xf32>
      %50 = arith.addf %42, %49 : vector<52x64xf32>
      %c2_i32 = arith.constant 2 : i32
      %51 = arith.addi %arg5, %c2_i32 : i32
      %c0_45 = arith.constant 0 : index
      %52 = arith.index_cast %51 : i32 to index
      %c0_46 = arith.constant 0 : index
      %c0_47 = arith.constant 0 : index
      %53 = vector.load %arg1[%c0_45, %52, %c0_46, %c0_47] : memref<1x50x54x32xbf16, #tpu.memory_space<vmem>>, vector<1x1x52x32xbf16>
      %54 = vector.shape_cast %53 : vector<1x1x52x32xbf16> to vector<52x32xbf16>
      %c6 = arith.constant 6 : index
      %c0_48 = arith.constant 0 : index
      %c0_49 = arith.constant 0 : index
      %55 = vector.load %arg2[%c6, %c0_48, %c0_49] : memref<9x32x64xbf16, #tpu.memory_space<vmem>>, vector<1x32x64xbf16>
      %56 = vector.shape_cast %55 : vector<1x32x64xbf16> to vector<32x64xbf16>
      %cst_50 = arith.constant dense<0.000000e+00> : vector<52x64xf32>
      %57 = tpu.matmul %54, %56, %cst_50 {dimension_numbers = #tpu.dot_dimension_numbers<[1], [0], [0], [1], [0, 0, 1, 1], [], []>} : vector<52x32xbf16>, vector<32x64xbf16>, vector<52x64xf32> -> vector<52x64xf32>
      %58 = arith.addf %50, %57 : vector<52x64xf32>
      %c2_i32_51 = arith.constant 2 : i32
      %59 = arith.addi %arg5, %c2_i32_51 : i32
      %c0_52 = arith.constant 0 : index
      %60 = arith.index_cast %59 : i32 to index
      %c1_53 = arith.constant 1 : index
      %c0_54 = arith.constant 0 : index
      %61 = vector.load %arg1[%c0_52, %60, %c1_53, %c0_54] : memref<1x50x54x32xbf16, #tpu.memory_space<vmem>>, vector<1x1x52x32xbf16>
      %62 = vector.shape_cast %61 : vector<1x1x52x32xbf16> to vector<52x32xbf16>
      %c7 = arith.constant 7 : index
      %c0_55 = arith.constant 0 : index
      %c0_56 = arith.constant 0 : index
      %63 = vector.load %arg2[%c7, %c0_55, %c0_56] : memref<9x32x64xbf16, #tpu.memory_space<vmem>>, vector<1x32x64xbf16>
      %64 = vector.shape_cast %63 : vector<1x32x64xbf16> to vector<32x64xbf16>
      %cst_57 = arith.constant dense<0.000000e+00> : vector<52x64xf32>
      %65 = tpu.matmul %62, %64, %cst_57 {dimension_numbers = #tpu.dot_dimension_numbers<[1], [0], [0], [1], [0, 0, 1, 1], [], []>} : vector<52x32xbf16>, vector<32x64xbf16>, vector<52x64xf32> -> vector<52x64xf32>
      %66 = arith.addf %58, %65 : vector<52x64xf32>
      %c2_i32_58 = arith.constant 2 : i32
      %67 = arith.addi %arg5, %c2_i32_58 : i32
      %c0_59 = arith.constant 0 : index
      %68 = arith.index_cast %67 : i32 to index
      %c2_60 = arith.constant 2 : index
      %c0_61 = arith.constant 0 : index
      %69 = vector.load %arg1[%c0_59, %68, %c2_60, %c0_61] : memref<1x50x54x32xbf16, #tpu.memory_space<vmem>>, vector<1x1x52x32xbf16>
      %70 = vector.shape_cast %69 : vector<1x1x52x32xbf16> to vector<52x32xbf16>
      %c8 = arith.constant 8 : index
      %c0_62 = arith.constant 0 : index
      %c0_63 = arith.constant 0 : index
      %71 = vector.load %arg2[%c8, %c0_62, %c0_63] : memref<9x32x64xbf16, #tpu.memory_space<vmem>>, vector<1x32x64xbf16>
      %72 = vector.shape_cast %71 : vector<1x32x64xbf16> to vector<32x64xbf16>
      %cst_64 = arith.constant dense<0.000000e+00> : vector<52x64xf32>
      %73 = tpu.matmul %70, %72, %cst_64 {dimension_numbers = #tpu.dot_dimension_numbers<[1], [0], [0], [1], [0, 0, 1, 1], [], []>} : vector<52x32xbf16>, vector<32x64xbf16>, vector<52x64xf32> -> vector<52x64xf32>
      %74 = arith.addf %66, %73 : vector<52x64xf32>
      %75 = vector.broadcast %0 : vector<1x64xf32> to vector<52x64xf32>
      %76 = arith.addf %74, %75 : vector<52x64xf32>
      %cst_65 = arith.constant 0.000000e+00 : f32
      %77 = vector.broadcast %cst_65 : f32 to vector<52x64xf32>
      %78 = arith.maximumf %76, %77 : vector<52x64xf32>
      %79 = arith.truncf %78 : vector<52x64xf32> to vector<52x64xbf16>
      %c0_66 = arith.constant 0 : index
      %80 = arith.index_cast %arg5 : i32 to index
      %c0_67 = arith.constant 0 : index
      %c0_68 = arith.constant 0 : index
      %81 = vector.load %arg4[%c0_66, %80, %c0_67, %c0_68] : memref<1x48x52x64xbf16, #tpu.memory_space<vmem>>, vector<1x1x52x64xbf16>
      %82 = vector.shape_cast %81 : vector<1x1x52x64xbf16> to vector<52x64xbf16>
      %83 = vector.shape_cast %79 : vector<52x64xbf16> to vector<1x1x52x64xbf16>
      tpu.vector_store %arg4[%c0_66, %80, %c0_67, %c0_68], %83 {strides = array<i32>} : memref<1x48x52x64xbf16, #tpu.memory_space<vmem>>, vector<1x1x52x64xbf16>,
    }
    %c48_i32_1 = arith.constant 48 : i32
    return
  }
  func.func @transform_0(%arg0: i32) -> (i32, i32, i32, i32) {
    %c0_i32 = arith.constant 0 : i32
    %c0_i32_0 = arith.constant 0 : i32
    %c0_i32_1 = arith.constant 0 : i32
    %c0_i32_2 = arith.constant 0 : i32
    return %arg0, %c0_i32, %c0_i32_0, %c0_i32_1 : i32, i32, i32, i32
  }
  func.func @transform_1(%arg0: i32) -> (i32, i32, i32) {
    %c0_i32 = arith.constant 0 : i32
    %c0_i32_0 = arith.constant 0 : i32
    %c0_i32_1 = arith.constant 0 : i32
    %c0_i32_2 = arith.constant 0 : i32
    return %c0_i32, %c0_i32_0, %c0_i32_1 : i32, i32, i32
  }
  func.func @transform_2(%arg0: i32) -> (i32, i32) {
    %c0_i32 = arith.constant 0 : i32
    %c0_i32_0 = arith.constant 0 : i32
    %c0_i32_1 = arith.constant 0 : i32
    return %c0_i32, %c0_i32_0 : i32, i32
  }
  func.func @transform_3(%arg0: i32) -> (i32, i32, i32, i32) {
    %c0_i32 = arith.constant 0 : i32
    %c0_i32_0 = arith.constant 0 : i32
    %c0_i32_1 = arith.constant 0 : i32
    %c0_i32_2 = arith.constant 0 : i32
    return %arg0, %c0_i32, %c0_i32_0, %c0_i32_1 : i32, i32, i32, i32
  }
}

module attributes {stable_mosaic.version = 11 : i64} {
  func.func @_conv_bn_relu_kernel(%arg0: i32, %arg1: memref<1x48x54x64xbf16, #tpu.memory_space<vmem>>, %arg2: memref<9x64x64xbf16, #tpu.memory_space<vmem>>, %arg3: memref<1x64xf32, #tpu.memory_space<vmem>>, %arg4: memref<1x46x52x64xbf16, #tpu.memory_space<vmem>>) attributes {dimension_semantics = [#tpu.dimension_semantics<parallel>], iteration_bounds = array<i64: 2>, scalar_prefetch = 0 : i64, scratch_operands = 0 : i64, tpu.core_type = #tpu.core_type<tc>, window_params = [{transform_indices = @transform_0, window_bounds = array<i64: 1, 48, 54, 64>}, {pipeline_mode = #tpu.pipeline_mode<synchronous>, transform_indices = @transform_1, window_bounds = array<i64: 9, 64, 64>}, {pipeline_mode = #tpu.pipeline_mode<synchronous>, transform_indices = @transform_2, window_bounds = array<i64: 1, 64>}, {transform_indices = @transform_3, window_bounds = array<i64: 1, 46, 52, 64>}]} {
    %c0 = arith.constant 0 : index
    %c0_0 = arith.constant 0 : index
    %0 = vector.load %arg3[%c0, %c0_0] : memref<1x64xf32, #tpu.memory_space<vmem>>, vector<1x64xf32>
    %c0_i32 = arith.constant 0 : i32
    %c46_i32 = arith.constant 46 : i32
    %1 = arith.addi %c0_i32, %c46_i32 : i32
    %c1_i32 = arith.constant 1 : i32
    scf.for %arg5 = %c0_i32 to %1 step %c1_i32  : i32 {
      %cst = arith.constant 0.000000e+00 : f32
      %2 = vector.broadcast %cst : f32 to vector<52x64xf32>
      %c0_i32_2 = arith.constant 0 : i32
      %3 = arith.addi %arg5, %c0_i32_2 : i32
      %c0_3 = arith.constant 0 : index
      %4 = arith.index_cast %3 : i32 to index
      %c0_4 = arith.constant 0 : index
      %c0_5 = arith.constant 0 : index
      %5 = vector.load %arg1[%c0_3, %4, %c0_4, %c0_5] : memref<1x48x54x64xbf16, #tpu.memory_space<vmem>>, vector<1x1x52x64xbf16>
      %6 = vector.shape_cast %5 : vector<1x1x52x64xbf16> to vector<52x64xbf16>
      %c0_6 = arith.constant 0 : index
      %c0_7 = arith.constant 0 : index
      %c0_8 = arith.constant 0 : index
      %7 = vector.load %arg2[%c0_6, %c0_7, %c0_8] : memref<9x64x64xbf16, #tpu.memory_space<vmem>>, vector<1x64x64xbf16>
      %8 = vector.shape_cast %7 : vector<1x64x64xbf16> to vector<64x64xbf16>
      %cst_9 = arith.constant dense<0.000000e+00> : vector<52x64xf32>
      %9 = tpu.matmul %6, %8, %cst_9 {dimension_numbers = #tpu.dot_dimension_numbers<[1], [0], [0], [1], [0, 0, 1, 1], [], []>} : vector<52x64xbf16>, vector<64x64xbf16>, vector<52x64xf32> -> vector<52x64xf32>
      %10 = arith.addf %2, %9 : vector<52x64xf32>
      %c0_i32_10 = arith.constant 0 : i32
      %11 = arith.addi %arg5, %c0_i32_10 : i32
      %c0_11 = arith.constant 0 : index
      %12 = arith.index_cast %11 : i32 to index
      %c1 = arith.constant 1 : index
      %c0_12 = arith.constant 0 : index
      %13 = vector.load %arg1[%c0_11, %12, %c1, %c0_12] : memref<1x48x54x64xbf16, #tpu.memory_space<vmem>>, vector<1x1x52x64xbf16>
      %14 = vector.shape_cast %13 : vector<1x1x52x64xbf16> to vector<52x64xbf16>
      %c1_13 = arith.constant 1 : index
      %c0_14 = arith.constant 0 : index
      %c0_15 = arith.constant 0 : index
      %15 = vector.load %arg2[%c1_13, %c0_14, %c0_15] : memref<9x64x64xbf16, #tpu.memory_space<vmem>>, vector<1x64x64xbf16>
      %16 = vector.shape_cast %15 : vector<1x64x64xbf16> to vector<64x64xbf16>
      %cst_16 = arith.constant dense<0.000000e+00> : vector<52x64xf32>
      %17 = tpu.matmul %14, %16, %cst_16 {dimension_numbers = #tpu.dot_dimension_numbers<[1], [0], [0], [1], [0, 0, 1, 1], [], []>} : vector<52x64xbf16>, vector<64x64xbf16>, vector<52x64xf32> -> vector<52x64xf32>
      %18 = arith.addf %10, %17 : vector<52x64xf32>
      %c0_i32_17 = arith.constant 0 : i32
      %19 = arith.addi %arg5, %c0_i32_17 : i32
      %c0_18 = arith.constant 0 : index
      %20 = arith.index_cast %19 : i32 to index
      %c2 = arith.constant 2 : index
      %c0_19 = arith.constant 0 : index
      %21 = vector.load %arg1[%c0_18, %20, %c2, %c0_19] : memref<1x48x54x64xbf16, #tpu.memory_space<vmem>>, vector<1x1x52x64xbf16>
      %22 = vector.shape_cast %21 : vector<1x1x52x64xbf16> to vector<52x64xbf16>
      %c2_20 = arith.constant 2 : index
      %c0_21 = arith.constant 0 : index
      %c0_22 = arith.constant 0 : index
      %23 = vector.load %arg2[%c2_20, %c0_21, %c0_22] : memref<9x64x64xbf16, #tpu.memory_space<vmem>>, vector<1x64x64xbf16>
      %24 = vector.shape_cast %23 : vector<1x64x64xbf16> to vector<64x64xbf16>
      %cst_23 = arith.constant dense<0.000000e+00> : vector<52x64xf32>
      %25 = tpu.matmul %22, %24, %cst_23 {dimension_numbers = #tpu.dot_dimension_numbers<[1], [0], [0], [1], [0, 0, 1, 1], [], []>} : vector<52x64xbf16>, vector<64x64xbf16>, vector<52x64xf32> -> vector<52x64xf32>
      %26 = arith.addf %18, %25 : vector<52x64xf32>
      %c1_i32_24 = arith.constant 1 : i32
      %27 = arith.addi %arg5, %c1_i32_24 : i32
      %c0_25 = arith.constant 0 : index
      %28 = arith.index_cast %27 : i32 to index
      %c0_26 = arith.constant 0 : index
      %c0_27 = arith.constant 0 : index
      %29 = vector.load %arg1[%c0_25, %28, %c0_26, %c0_27] : memref<1x48x54x64xbf16, #tpu.memory_space<vmem>>, vector<1x1x52x64xbf16>
      %30 = vector.shape_cast %29 : vector<1x1x52x64xbf16> to vector<52x64xbf16>
      %c3 = arith.constant 3 : index
      %c0_28 = arith.constant 0 : index
      %c0_29 = arith.constant 0 : index
      %31 = vector.load %arg2[%c3, %c0_28, %c0_29] : memref<9x64x64xbf16, #tpu.memory_space<vmem>>, vector<1x64x64xbf16>
      %32 = vector.shape_cast %31 : vector<1x64x64xbf16> to vector<64x64xbf16>
      %cst_30 = arith.constant dense<0.000000e+00> : vector<52x64xf32>
      %33 = tpu.matmul %30, %32, %cst_30 {dimension_numbers = #tpu.dot_dimension_numbers<[1], [0], [0], [1], [0, 0, 1, 1], [], []>} : vector<52x64xbf16>, vector<64x64xbf16>, vector<52x64xf32> -> vector<52x64xf32>
      %34 = arith.addf %26, %33 : vector<52x64xf32>
      %c1_i32_31 = arith.constant 1 : i32
      %35 = arith.addi %arg5, %c1_i32_31 : i32
      %c0_32 = arith.constant 0 : index
      %36 = arith.index_cast %35 : i32 to index
      %c1_33 = arith.constant 1 : index
      %c0_34 = arith.constant 0 : index
      %37 = vector.load %arg1[%c0_32, %36, %c1_33, %c0_34] : memref<1x48x54x64xbf16, #tpu.memory_space<vmem>>, vector<1x1x52x64xbf16>
      %38 = vector.shape_cast %37 : vector<1x1x52x64xbf16> to vector<52x64xbf16>
      %c4 = arith.constant 4 : index
      %c0_35 = arith.constant 0 : index
      %c0_36 = arith.constant 0 : index
      %39 = vector.load %arg2[%c4, %c0_35, %c0_36] : memref<9x64x64xbf16, #tpu.memory_space<vmem>>, vector<1x64x64xbf16>
      %40 = vector.shape_cast %39 : vector<1x64x64xbf16> to vector<64x64xbf16>
      %cst_37 = arith.constant dense<0.000000e+00> : vector<52x64xf32>
      %41 = tpu.matmul %38, %40, %cst_37 {dimension_numbers = #tpu.dot_dimension_numbers<[1], [0], [0], [1], [0, 0, 1, 1], [], []>} : vector<52x64xbf16>, vector<64x64xbf16>, vector<52x64xf32> -> vector<52x64xf32>
      %42 = arith.addf %34, %41 : vector<52x64xf32>
      %c1_i32_38 = arith.constant 1 : i32
      %43 = arith.addi %arg5, %c1_i32_38 : i32
      %c0_39 = arith.constant 0 : index
      %44 = arith.index_cast %43 : i32 to index
      %c2_40 = arith.constant 2 : index
      %c0_41 = arith.constant 0 : index
      %45 = vector.load %arg1[%c0_39, %44, %c2_40, %c0_41] : memref<1x48x54x64xbf16, #tpu.memory_space<vmem>>, vector<1x1x52x64xbf16>
      %46 = vector.shape_cast %45 : vector<1x1x52x64xbf16> to vector<52x64xbf16>
      %c5 = arith.constant 5 : index
      %c0_42 = arith.constant 0 : index
      %c0_43 = arith.constant 0 : index
      %47 = vector.load %arg2[%c5, %c0_42, %c0_43] : memref<9x64x64xbf16, #tpu.memory_space<vmem>>, vector<1x64x64xbf16>
      %48 = vector.shape_cast %47 : vector<1x64x64xbf16> to vector<64x64xbf16>
      %cst_44 = arith.constant dense<0.000000e+00> : vector<52x64xf32>
      %49 = tpu.matmul %46, %48, %cst_44 {dimension_numbers = #tpu.dot_dimension_numbers<[1], [0], [0], [1], [0, 0, 1, 1], [], []>} : vector<52x64xbf16>, vector<64x64xbf16>, vector<52x64xf32> -> vector<52x64xf32>
      %50 = arith.addf %42, %49 : vector<52x64xf32>
      %c2_i32 = arith.constant 2 : i32
      %51 = arith.addi %arg5, %c2_i32 : i32
      %c0_45 = arith.constant 0 : index
      %52 = arith.index_cast %51 : i32 to index
      %c0_46 = arith.constant 0 : index
      %c0_47 = arith.constant 0 : index
      %53 = vector.load %arg1[%c0_45, %52, %c0_46, %c0_47] : memref<1x48x54x64xbf16, #tpu.memory_space<vmem>>, vector<1x1x52x64xbf16>
      %54 = vector.shape_cast %53 : vector<1x1x52x64xbf16> to vector<52x64xbf16>
      %c6 = arith.constant 6 : index
      %c0_48 = arith.constant 0 : index
      %c0_49 = arith.constant 0 : index
      %55 = vector.load %arg2[%c6, %c0_48, %c0_49] : memref<9x64x64xbf16, #tpu.memory_space<vmem>>, vector<1x64x64xbf16>
      %56 = vector.shape_cast %55 : vector<1x64x64xbf16> to vector<64x64xbf16>
      %cst_50 = arith.constant dense<0.000000e+00> : vector<52x64xf32>
      %57 = tpu.matmul %54, %56, %cst_50 {dimension_numbers = #tpu.dot_dimension_numbers<[1], [0], [0], [1], [0, 0, 1, 1], [], []>} : vector<52x64xbf16>, vector<64x64xbf16>, vector<52x64xf32> -> vector<52x64xf32>
      %58 = arith.addf %50, %57 : vector<52x64xf32>
      %c2_i32_51 = arith.constant 2 : i32
      %59 = arith.addi %arg5, %c2_i32_51 : i32
      %c0_52 = arith.constant 0 : index
      %60 = arith.index_cast %59 : i32 to index
      %c1_53 = arith.constant 1 : index
      %c0_54 = arith.constant 0 : index
      %61 = vector.load %arg1[%c0_52, %60, %c1_53, %c0_54] : memref<1x48x54x64xbf16, #tpu.memory_space<vmem>>, vector<1x1x52x64xbf16>
      %62 = vector.shape_cast %61 : vector<1x1x52x64xbf16> to vector<52x64xbf16>
      %c7 = arith.constant 7 : index
      %c0_55 = arith.constant 0 : index
      %c0_56 = arith.constant 0 : index
      %63 = vector.load %arg2[%c7, %c0_55, %c0_56] : memref<9x64x64xbf16, #tpu.memory_space<vmem>>, vector<1x64x64xbf16>
      %64 = vector.shape_cast %63 : vector<1x64x64xbf16> to vector<64x64xbf16>
      %cst_57 = arith.constant dense<0.000000e+00> : vector<52x64xf32>
      %65 = tpu.matmul %62, %64, %cst_57 {dimension_numbers = #tpu.dot_dimension_numbers<[1], [0], [0], [1], [0, 0, 1, 1], [], []>} : vector<52x64xbf16>, vector<64x64xbf16>, vector<52x64xf32> -> vector<52x64xf32>
      %66 = arith.addf %58, %65 : vector<52x64xf32>
      %c2_i32_58 = arith.constant 2 : i32
      %67 = arith.addi %arg5, %c2_i32_58 : i32
      %c0_59 = arith.constant 0 : index
      %68 = arith.index_cast %67 : i32 to index
      %c2_60 = arith.constant 2 : index
      %c0_61 = arith.constant 0 : index
      %69 = vector.load %arg1[%c0_59, %68, %c2_60, %c0_61] : memref<1x48x54x64xbf16, #tpu.memory_space<vmem>>, vector<1x1x52x64xbf16>
      %70 = vector.shape_cast %69 : vector<1x1x52x64xbf16> to vector<52x64xbf16>
      %c8 = arith.constant 8 : index
      %c0_62 = arith.constant 0 : index
      %c0_63 = arith.constant 0 : index
      %71 = vector.load %arg2[%c8, %c0_62, %c0_63] : memref<9x64x64xbf16, #tpu.memory_space<vmem>>, vector<1x64x64xbf16>
      %72 = vector.shape_cast %71 : vector<1x64x64xbf16> to vector<64x64xbf16>
      %cst_64 = arith.constant dense<0.000000e+00> : vector<52x64xf32>
      %73 = tpu.matmul %70, %72, %cst_64 {dimension_numbers = #tpu.dot_dimension_numbers<[1], [0], [0], [1], [0, 0, 1, 1], [], []>} : vector<52x64xbf16>, vector<64x64xbf16>, vector<52x64xf32> -> vector<52x64xf32>
      %74 = arith.addf %66, %73 : vector<52x64xf32>
      %75 = vector.broadcast %0 : vector<1x64xf32> to vector<52x64xf32>
      %76 = arith.addf %74, %75 : vector<52x64xf32>
      %cst_65 = arith.constant 0.000000e+00 : f32
      %77 = vector.broadcast %cst_65 : f32 to vector<52x64xf32>
      %78 = arith.maximumf %76, %77 : vector<52x64xf32>
      %79 = arith.truncf %78 : vector<52x64xf32> to vector<52x64xbf16>
      %c0_66 = arith.constant 0 : index
      %80 = arith.index_cast %arg5 : i32 to index
      %c0_67 = arith.constant 0 : index
      %c0_68 = arith.constant 0 : index
      %81 = vector.load %arg4[%c0_66, %80, %c0_67, %c0_68] : memref<1x46x52x64xbf16, #tpu.memory_space<vmem>>, vector<1x1x52x64xbf16>
      %82 = vector.shape_cast %81 : vector<1x1x52x64xbf16> to vector<52x64xbf16>
      %83 = vector.shape_cast %79 : vector<52x64xbf16> to vector<1x1x52x64xbf16>
      tpu.vector_store %arg4[%c0_66, %80, %c0_67, %c0_68], %83 {strides = array<i32>} : memref<1x46x52x64xbf16, #tpu.memory_space<vmem>>, vector<1x1x52x64xbf16>,
    }
    %c46_i32_1 = arith.constant 46 : i32
    return
  }
  func.func @transform_0(%arg0: i32) -> (i32, i32, i32, i32) {
    %c0_i32 = arith.constant 0 : i32
    %c0_i32_0 = arith.constant 0 : i32
    %c0_i32_1 = arith.constant 0 : i32
    %c0_i32_2 = arith.constant 0 : i32
    return %arg0, %c0_i32, %c0_i32_0, %c0_i32_1 : i32, i32, i32, i32
  }
  func.func @transform_1(%arg0: i32) -> (i32, i32, i32) {
    %c0_i32 = arith.constant 0 : i32
    %c0_i32_0 = arith.constant 0 : i32
    %c0_i32_1 = arith.constant 0 : i32
    %c0_i32_2 = arith.constant 0 : i32
    return %c0_i32, %c0_i32_0, %c0_i32_1 : i32, i32, i32
  }
  func.func @transform_2(%arg0: i32) -> (i32, i32) {
    %c0_i32 = arith.constant 0 : i32
    %c0_i32_0 = arith.constant 0 : i32
    %c0_i32_1 = arith.constant 0 : i32
    return %c0_i32, %c0_i32_0 : i32, i32
  }
  func.func @transform_3(%arg0: i32) -> (i32, i32, i32, i32) {
    %c0_i32 = arith.constant 0 : i32
    %c0_i32_0 = arith.constant 0 : i32
    %c0_i32_1 = arith.constant 0 : i32
    %c0_i32_2 = arith.constant 0 : i32
    return %arg0, %c0_i32, %c0_i32_0, %c0_i32_1 : i32, i32, i32, i32
  }
}

module attributes {stable_mosaic.version = 11 : i64} {
  func.func @_conv_bn_relu_kernel(%arg0: i32, %arg1: memref<1x23x28x64xbf16, #tpu.memory_space<vmem>>, %arg2: memref<9x64x128xbf16, #tpu.memory_space<vmem>>, %arg3: memref<1x128xf32, #tpu.memory_space<vmem>>, %arg4: memref<1x21x26x128xbf16, #tpu.memory_space<vmem>>) attributes {dimension_semantics = [#tpu.dimension_semantics<parallel>], iteration_bounds = array<i64: 2>, scalar_prefetch = 0 : i64, scratch_operands = 0 : i64, tpu.core_type = #tpu.core_type<tc>, window_params = [{transform_indices = @transform_0, window_bounds = array<i64: 1, 23, 28, 64>}, {pipeline_mode = #tpu.pipeline_mode<synchronous>, transform_indices = @transform_1, window_bounds = array<i64: 9, 64, 128>}, {pipeline_mode = #tpu.pipeline_mode<synchronous>, transform_indices = @transform_2, window_bounds = array<i64: 1, 128>}, {transform_indices = @transform_3, window_bounds = array<i64: 1, 21, 26, 128>}]} {
    %c0 = arith.constant 0 : index
    %c0_0 = arith.constant 0 : index
    %0 = vector.load %arg3[%c0, %c0_0] : memref<1x128xf32, #tpu.memory_space<vmem>>, vector<1x128xf32>
    %c0_i32 = arith.constant 0 : i32
    %c21_i32 = arith.constant 21 : i32
    %1 = arith.addi %c0_i32, %c21_i32 : i32
    %c1_i32 = arith.constant 1 : i32
    scf.for %arg5 = %c0_i32 to %1 step %c1_i32  : i32 {
      %cst = arith.constant 0.000000e+00 : f32
      %2 = vector.broadcast %cst : f32 to vector<26x128xf32>
      %c0_i32_2 = arith.constant 0 : i32
      %3 = arith.addi %arg5, %c0_i32_2 : i32
      %c0_3 = arith.constant 0 : index
      %4 = arith.index_cast %3 : i32 to index
      %c0_4 = arith.constant 0 : index
      %c0_5 = arith.constant 0 : index
      %5 = vector.load %arg1[%c0_3, %4, %c0_4, %c0_5] : memref<1x23x28x64xbf16, #tpu.memory_space<vmem>>, vector<1x1x26x64xbf16>
      %6 = vector.shape_cast %5 : vector<1x1x26x64xbf16> to vector<26x64xbf16>
      %c0_6 = arith.constant 0 : index
      %c0_7 = arith.constant 0 : index
      %c0_8 = arith.constant 0 : index
      %7 = vector.load %arg2[%c0_6, %c0_7, %c0_8] : memref<9x64x128xbf16, #tpu.memory_space<vmem>>, vector<1x64x128xbf16>
      %8 = vector.shape_cast %7 : vector<1x64x128xbf16> to vector<64x128xbf16>
      %cst_9 = arith.constant dense<0.000000e+00> : vector<26x128xf32>
      %9 = tpu.matmul %6, %8, %cst_9 {dimension_numbers = #tpu.dot_dimension_numbers<[1], [0], [0], [1], [0, 0, 1, 1], [], []>} : vector<26x64xbf16>, vector<64x128xbf16>, vector<26x128xf32> -> vector<26x128xf32>
      %10 = arith.addf %2, %9 : vector<26x128xf32>
      %c0_i32_10 = arith.constant 0 : i32
      %11 = arith.addi %arg5, %c0_i32_10 : i32
      %c0_11 = arith.constant 0 : index
      %12 = arith.index_cast %11 : i32 to index
      %c1 = arith.constant 1 : index
      %c0_12 = arith.constant 0 : index
      %13 = vector.load %arg1[%c0_11, %12, %c1, %c0_12] : memref<1x23x28x64xbf16, #tpu.memory_space<vmem>>, vector<1x1x26x64xbf16>
      %14 = vector.shape_cast %13 : vector<1x1x26x64xbf16> to vector<26x64xbf16>
      %c1_13 = arith.constant 1 : index
      %c0_14 = arith.constant 0 : index
      %c0_15 = arith.constant 0 : index
      %15 = vector.load %arg2[%c1_13, %c0_14, %c0_15] : memref<9x64x128xbf16, #tpu.memory_space<vmem>>, vector<1x64x128xbf16>
      %16 = vector.shape_cast %15 : vector<1x64x128xbf16> to vector<64x128xbf16>
      %cst_16 = arith.constant dense<0.000000e+00> : vector<26x128xf32>
      %17 = tpu.matmul %14, %16, %cst_16 {dimension_numbers = #tpu.dot_dimension_numbers<[1], [0], [0], [1], [0, 0, 1, 1], [], []>} : vector<26x64xbf16>, vector<64x128xbf16>, vector<26x128xf32> -> vector<26x128xf32>
      %18 = arith.addf %10, %17 : vector<26x128xf32>
      %c0_i32_17 = arith.constant 0 : i32
      %19 = arith.addi %arg5, %c0_i32_17 : i32
      %c0_18 = arith.constant 0 : index
      %20 = arith.index_cast %19 : i32 to index
      %c2 = arith.constant 2 : index
      %c0_19 = arith.constant 0 : index
      %21 = vector.load %arg1[%c0_18, %20, %c2, %c0_19] : memref<1x23x28x64xbf16, #tpu.memory_space<vmem>>, vector<1x1x26x64xbf16>
      %22 = vector.shape_cast %21 : vector<1x1x26x64xbf16> to vector<26x64xbf16>
      %c2_20 = arith.constant 2 : index
      %c0_21 = arith.constant 0 : index
      %c0_22 = arith.constant 0 : index
      %23 = vector.load %arg2[%c2_20, %c0_21, %c0_22] : memref<9x64x128xbf16, #tpu.memory_space<vmem>>, vector<1x64x128xbf16>
      %24 = vector.shape_cast %23 : vector<1x64x128xbf16> to vector<64x128xbf16>
      %cst_23 = arith.constant dense<0.000000e+00> : vector<26x128xf32>
      %25 = tpu.matmul %22, %24, %cst_23 {dimension_numbers = #tpu.dot_dimension_numbers<[1], [0], [0], [1], [0, 0, 1, 1], [], []>} : vector<26x64xbf16>, vector<64x128xbf16>, vector<26x128xf32> -> vector<26x128xf32>
      %26 = arith.addf %18, %25 : vector<26x128xf32>
      %c1_i32_24 = arith.constant 1 : i32
      %27 = arith.addi %arg5, %c1_i32_24 : i32
      %c0_25 = arith.constant 0 : index
      %28 = arith.index_cast %27 : i32 to index
      %c0_26 = arith.constant 0 : index
      %c0_27 = arith.constant 0 : index
      %29 = vector.load %arg1[%c0_25, %28, %c0_26, %c0_27] : memref<1x23x28x64xbf16, #tpu.memory_space<vmem>>, vector<1x1x26x64xbf16>
      %30 = vector.shape_cast %29 : vector<1x1x26x64xbf16> to vector<26x64xbf16>
      %c3 = arith.constant 3 : index
      %c0_28 = arith.constant 0 : index
      %c0_29 = arith.constant 0 : index
      %31 = vector.load %arg2[%c3, %c0_28, %c0_29] : memref<9x64x128xbf16, #tpu.memory_space<vmem>>, vector<1x64x128xbf16>
      %32 = vector.shape_cast %31 : vector<1x64x128xbf16> to vector<64x128xbf16>
      %cst_30 = arith.constant dense<0.000000e+00> : vector<26x128xf32>
      %33 = tpu.matmul %30, %32, %cst_30 {dimension_numbers = #tpu.dot_dimension_numbers<[1], [0], [0], [1], [0, 0, 1, 1], [], []>} : vector<26x64xbf16>, vector<64x128xbf16>, vector<26x128xf32> -> vector<26x128xf32>
      %34 = arith.addf %26, %33 : vector<26x128xf32>
      %c1_i32_31 = arith.constant 1 : i32
      %35 = arith.addi %arg5, %c1_i32_31 : i32
      %c0_32 = arith.constant 0 : index
      %36 = arith.index_cast %35 : i32 to index
      %c1_33 = arith.constant 1 : index
      %c0_34 = arith.constant 0 : index
      %37 = vector.load %arg1[%c0_32, %36, %c1_33, %c0_34] : memref<1x23x28x64xbf16, #tpu.memory_space<vmem>>, vector<1x1x26x64xbf16>
      %38 = vector.shape_cast %37 : vector<1x1x26x64xbf16> to vector<26x64xbf16>
      %c4 = arith.constant 4 : index
      %c0_35 = arith.constant 0 : index
      %c0_36 = arith.constant 0 : index
      %39 = vector.load %arg2[%c4, %c0_35, %c0_36] : memref<9x64x128xbf16, #tpu.memory_space<vmem>>, vector<1x64x128xbf16>
      %40 = vector.shape_cast %39 : vector<1x64x128xbf16> to vector<64x128xbf16>
      %cst_37 = arith.constant dense<0.000000e+00> : vector<26x128xf32>
      %41 = tpu.matmul %38, %40, %cst_37 {dimension_numbers = #tpu.dot_dimension_numbers<[1], [0], [0], [1], [0, 0, 1, 1], [], []>} : vector<26x64xbf16>, vector<64x128xbf16>, vector<26x128xf32> -> vector<26x128xf32>
      %42 = arith.addf %34, %41 : vector<26x128xf32>
      %c1_i32_38 = arith.constant 1 : i32
      %43 = arith.addi %arg5, %c1_i32_38 : i32
      %c0_39 = arith.constant 0 : index
      %44 = arith.index_cast %43 : i32 to index
      %c2_40 = arith.constant 2 : index
      %c0_41 = arith.constant 0 : index
      %45 = vector.load %arg1[%c0_39, %44, %c2_40, %c0_41] : memref<1x23x28x64xbf16, #tpu.memory_space<vmem>>, vector<1x1x26x64xbf16>
      %46 = vector.shape_cast %45 : vector<1x1x26x64xbf16> to vector<26x64xbf16>
      %c5 = arith.constant 5 : index
      %c0_42 = arith.constant 0 : index
      %c0_43 = arith.constant 0 : index
      %47 = vector.load %arg2[%c5, %c0_42, %c0_43] : memref<9x64x128xbf16, #tpu.memory_space<vmem>>, vector<1x64x128xbf16>
      %48 = vector.shape_cast %47 : vector<1x64x128xbf16> to vector<64x128xbf16>
      %cst_44 = arith.constant dense<0.000000e+00> : vector<26x128xf32>
      %49 = tpu.matmul %46, %48, %cst_44 {dimension_numbers = #tpu.dot_dimension_numbers<[1], [0], [0], [1], [0, 0, 1, 1], [], []>} : vector<26x64xbf16>, vector<64x128xbf16>, vector<26x128xf32> -> vector<26x128xf32>
      %50 = arith.addf %42, %49 : vector<26x128xf32>
      %c2_i32 = arith.constant 2 : i32
      %51 = arith.addi %arg5, %c2_i32 : i32
      %c0_45 = arith.constant 0 : index
      %52 = arith.index_cast %51 : i32 to index
      %c0_46 = arith.constant 0 : index
      %c0_47 = arith.constant 0 : index
      %53 = vector.load %arg1[%c0_45, %52, %c0_46, %c0_47] : memref<1x23x28x64xbf16, #tpu.memory_space<vmem>>, vector<1x1x26x64xbf16>
      %54 = vector.shape_cast %53 : vector<1x1x26x64xbf16> to vector<26x64xbf16>
      %c6 = arith.constant 6 : index
      %c0_48 = arith.constant 0 : index
      %c0_49 = arith.constant 0 : index
      %55 = vector.load %arg2[%c6, %c0_48, %c0_49] : memref<9x64x128xbf16, #tpu.memory_space<vmem>>, vector<1x64x128xbf16>
      %56 = vector.shape_cast %55 : vector<1x64x128xbf16> to vector<64x128xbf16>
      %cst_50 = arith.constant dense<0.000000e+00> : vector<26x128xf32>
      %57 = tpu.matmul %54, %56, %cst_50 {dimension_numbers = #tpu.dot_dimension_numbers<[1], [0], [0], [1], [0, 0, 1, 1], [], []>} : vector<26x64xbf16>, vector<64x128xbf16>, vector<26x128xf32> -> vector<26x128xf32>
      %58 = arith.addf %50, %57 : vector<26x128xf32>
      %c2_i32_51 = arith.constant 2 : i32
      %59 = arith.addi %arg5, %c2_i32_51 : i32
      %c0_52 = arith.constant 0 : index
      %60 = arith.index_cast %59 : i32 to index
      %c1_53 = arith.constant 1 : index
      %c0_54 = arith.constant 0 : index
      %61 = vector.load %arg1[%c0_52, %60, %c1_53, %c0_54] : memref<1x23x28x64xbf16, #tpu.memory_space<vmem>>, vector<1x1x26x64xbf16>
      %62 = vector.shape_cast %61 : vector<1x1x26x64xbf16> to vector<26x64xbf16>
      %c7 = arith.constant 7 : index
      %c0_55 = arith.constant 0 : index
      %c0_56 = arith.constant 0 : index
      %63 = vector.load %arg2[%c7, %c0_55, %c0_56] : memref<9x64x128xbf16, #tpu.memory_space<vmem>>, vector<1x64x128xbf16>
      %64 = vector.shape_cast %63 : vector<1x64x128xbf16> to vector<64x128xbf16>
      %cst_57 = arith.constant dense<0.000000e+00> : vector<26x128xf32>
      %65 = tpu.matmul %62, %64, %cst_57 {dimension_numbers = #tpu.dot_dimension_numbers<[1], [0], [0], [1], [0, 0, 1, 1], [], []>} : vector<26x64xbf16>, vector<64x128xbf16>, vector<26x128xf32> -> vector<26x128xf32>
      %66 = arith.addf %58, %65 : vector<26x128xf32>
      %c2_i32_58 = arith.constant 2 : i32
      %67 = arith.addi %arg5, %c2_i32_58 : i32
      %c0_59 = arith.constant 0 : index
      %68 = arith.index_cast %67 : i32 to index
      %c2_60 = arith.constant 2 : index
      %c0_61 = arith.constant 0 : index
      %69 = vector.load %arg1[%c0_59, %68, %c2_60, %c0_61] : memref<1x23x28x64xbf16, #tpu.memory_space<vmem>>, vector<1x1x26x64xbf16>
      %70 = vector.shape_cast %69 : vector<1x1x26x64xbf16> to vector<26x64xbf16>
      %c8 = arith.constant 8 : index
      %c0_62 = arith.constant 0 : index
      %c0_63 = arith.constant 0 : index
      %71 = vector.load %arg2[%c8, %c0_62, %c0_63] : memref<9x64x128xbf16, #tpu.memory_space<vmem>>, vector<1x64x128xbf16>
      %72 = vector.shape_cast %71 : vector<1x64x128xbf16> to vector<64x128xbf16>
      %cst_64 = arith.constant dense<0.000000e+00> : vector<26x128xf32>
      %73 = tpu.matmul %70, %72, %cst_64 {dimension_numbers = #tpu.dot_dimension_numbers<[1], [0], [0], [1], [0, 0, 1, 1], [], []>} : vector<26x64xbf16>, vector<64x128xbf16>, vector<26x128xf32> -> vector<26x128xf32>
      %74 = arith.addf %66, %73 : vector<26x128xf32>
      %75 = vector.broadcast %0 : vector<1x128xf32> to vector<26x128xf32>
      %76 = arith.addf %74, %75 : vector<26x128xf32>
      %cst_65 = arith.constant 0.000000e+00 : f32
      %77 = vector.broadcast %cst_65 : f32 to vector<26x128xf32>
      %78 = arith.maximumf %76, %77 : vector<26x128xf32>
      %79 = arith.truncf %78 : vector<26x128xf32> to vector<26x128xbf16>
      %c0_66 = arith.constant 0 : index
      %80 = arith.index_cast %arg5 : i32 to index
      %c0_67 = arith.constant 0 : index
      %c0_68 = arith.constant 0 : index
      %81 = vector.load %arg4[%c0_66, %80, %c0_67, %c0_68] : memref<1x21x26x128xbf16, #tpu.memory_space<vmem>>, vector<1x1x26x128xbf16>
      %82 = vector.shape_cast %81 : vector<1x1x26x128xbf16> to vector<26x128xbf16>
      %83 = vector.shape_cast %79 : vector<26x128xbf16> to vector<1x1x26x128xbf16>
      tpu.vector_store %arg4[%c0_66, %80, %c0_67, %c0_68], %83 {strides = array<i32>} : memref<1x21x26x128xbf16, #tpu.memory_space<vmem>>, vector<1x1x26x128xbf16>,
    }
    %c21_i32_1 = arith.constant 21 : i32
    return
  }
  func.func @transform_0(%arg0: i32) -> (i32, i32, i32, i32) {
    %c0_i32 = arith.constant 0 : i32
    %c0_i32_0 = arith.constant 0 : i32
    %c0_i32_1 = arith.constant 0 : i32
    %c0_i32_2 = arith.constant 0 : i32
    return %arg0, %c0_i32, %c0_i32_0, %c0_i32_1 : i32, i32, i32, i32
  }
  func.func @transform_1(%arg0: i32) -> (i32, i32, i32) {
    %c0_i32 = arith.constant 0 : i32
    %c0_i32_0 = arith.constant 0 : i32
    %c0_i32_1 = arith.constant 0 : i32
    %c0_i32_2 = arith.constant 0 : i32
    return %c0_i32, %c0_i32_0, %c0_i32_1 : i32, i32, i32
  }
  func.func @transform_2(%arg0: i32) -> (i32, i32) {
    %c0_i32 = arith.constant 0 : i32
    %c0_i32_0 = arith.constant 0 : i32
    %c0_i32_1 = arith.constant 0 : i32
    return %c0_i32, %c0_i32_0 : i32, i32
  }
  func.func @transform_3(%arg0: i32) -> (i32, i32, i32, i32) {
    %c0_i32 = arith.constant 0 : i32
    %c0_i32_0 = arith.constant 0 : i32
    %c0_i32_1 = arith.constant 0 : i32
    %c0_i32_2 = arith.constant 0 : i32
    return %arg0, %c0_i32, %c0_i32_0, %c0_i32_1 : i32, i32, i32, i32
  }
}

module attributes {stable_mosaic.version = 11 : i64} {
  func.func @_conv_bn_relu_kernel(%arg0: i32, %arg1: memref<1x21x28x128xbf16, #tpu.memory_space<vmem>>, %arg2: memref<9x128x128xbf16, #tpu.memory_space<vmem>>, %arg3: memref<1x128xf32, #tpu.memory_space<vmem>>, %arg4: memref<1x19x26x128xbf16, #tpu.memory_space<vmem>>) attributes {dimension_semantics = [#tpu.dimension_semantics<parallel>], iteration_bounds = array<i64: 2>, scalar_prefetch = 0 : i64, scratch_operands = 0 : i64, tpu.core_type = #tpu.core_type<tc>, window_params = [{transform_indices = @transform_0, window_bounds = array<i64: 1, 21, 28, 128>}, {pipeline_mode = #tpu.pipeline_mode<synchronous>, transform_indices = @transform_1, window_bounds = array<i64: 9, 128, 128>}, {pipeline_mode = #tpu.pipeline_mode<synchronous>, transform_indices = @transform_2, window_bounds = array<i64: 1, 128>}, {transform_indices = @transform_3, window_bounds = array<i64: 1, 19, 26, 128>}]} {
    %c0 = arith.constant 0 : index
    %c0_0 = arith.constant 0 : index
    %0 = vector.load %arg3[%c0, %c0_0] : memref<1x128xf32, #tpu.memory_space<vmem>>, vector<1x128xf32>
    %c0_i32 = arith.constant 0 : i32
    %c19_i32 = arith.constant 19 : i32
    %1 = arith.addi %c0_i32, %c19_i32 : i32
    %c1_i32 = arith.constant 1 : i32
    scf.for %arg5 = %c0_i32 to %1 step %c1_i32  : i32 {
      %cst = arith.constant 0.000000e+00 : f32
      %2 = vector.broadcast %cst : f32 to vector<26x128xf32>
      %c0_i32_2 = arith.constant 0 : i32
      %3 = arith.addi %arg5, %c0_i32_2 : i32
      %c0_3 = arith.constant 0 : index
      %4 = arith.index_cast %3 : i32 to index
      %c0_4 = arith.constant 0 : index
      %c0_5 = arith.constant 0 : index
      %5 = vector.load %arg1[%c0_3, %4, %c0_4, %c0_5] : memref<1x21x28x128xbf16, #tpu.memory_space<vmem>>, vector<1x1x26x128xbf16>
      %6 = vector.shape_cast %5 : vector<1x1x26x128xbf16> to vector<26x128xbf16>
      %c0_6 = arith.constant 0 : index
      %c0_7 = arith.constant 0 : index
      %c0_8 = arith.constant 0 : index
      %7 = vector.load %arg2[%c0_6, %c0_7, %c0_8] : memref<9x128x128xbf16, #tpu.memory_space<vmem>>, vector<1x128x128xbf16>
      %8 = vector.shape_cast %7 : vector<1x128x128xbf16> to vector<128x128xbf16>
      %cst_9 = arith.constant dense<0.000000e+00> : vector<26x128xf32>
      %9 = tpu.matmul %6, %8, %cst_9 {dimension_numbers = #tpu.dot_dimension_numbers<[1], [0], [0], [1], [0, 0, 1, 1], [], []>} : vector<26x128xbf16>, vector<128x128xbf16>, vector<26x128xf32> -> vector<26x128xf32>
      %10 = arith.addf %2, %9 : vector<26x128xf32>
      %c0_i32_10 = arith.constant 0 : i32
      %11 = arith.addi %arg5, %c0_i32_10 : i32
      %c0_11 = arith.constant 0 : index
      %12 = arith.index_cast %11 : i32 to index
      %c1 = arith.constant 1 : index
      %c0_12 = arith.constant 0 : index
      %13 = vector.load %arg1[%c0_11, %12, %c1, %c0_12] : memref<1x21x28x128xbf16, #tpu.memory_space<vmem>>, vector<1x1x26x128xbf16>
      %14 = vector.shape_cast %13 : vector<1x1x26x128xbf16> to vector<26x128xbf16>
      %c1_13 = arith.constant 1 : index
      %c0_14 = arith.constant 0 : index
      %c0_15 = arith.constant 0 : index
      %15 = vector.load %arg2[%c1_13, %c0_14, %c0_15] : memref<9x128x128xbf16, #tpu.memory_space<vmem>>, vector<1x128x128xbf16>
      %16 = vector.shape_cast %15 : vector<1x128x128xbf16> to vector<128x128xbf16>
      %cst_16 = arith.constant dense<0.000000e+00> : vector<26x128xf32>
      %17 = tpu.matmul %14, %16, %cst_16 {dimension_numbers = #tpu.dot_dimension_numbers<[1], [0], [0], [1], [0, 0, 1, 1], [], []>} : vector<26x128xbf16>, vector<128x128xbf16>, vector<26x128xf32> -> vector<26x128xf32>
      %18 = arith.addf %10, %17 : vector<26x128xf32>
      %c0_i32_17 = arith.constant 0 : i32
      %19 = arith.addi %arg5, %c0_i32_17 : i32
      %c0_18 = arith.constant 0 : index
      %20 = arith.index_cast %19 : i32 to index
      %c2 = arith.constant 2 : index
      %c0_19 = arith.constant 0 : index
      %21 = vector.load %arg1[%c0_18, %20, %c2, %c0_19] : memref<1x21x28x128xbf16, #tpu.memory_space<vmem>>, vector<1x1x26x128xbf16>
      %22 = vector.shape_cast %21 : vector<1x1x26x128xbf16> to vector<26x128xbf16>
      %c2_20 = arith.constant 2 : index
      %c0_21 = arith.constant 0 : index
      %c0_22 = arith.constant 0 : index
      %23 = vector.load %arg2[%c2_20, %c0_21, %c0_22] : memref<9x128x128xbf16, #tpu.memory_space<vmem>>, vector<1x128x128xbf16>
      %24 = vector.shape_cast %23 : vector<1x128x128xbf16> to vector<128x128xbf16>
      %cst_23 = arith.constant dense<0.000000e+00> : vector<26x128xf32>
      %25 = tpu.matmul %22, %24, %cst_23 {dimension_numbers = #tpu.dot_dimension_numbers<[1], [0], [0], [1], [0, 0, 1, 1], [], []>} : vector<26x128xbf16>, vector<128x128xbf16>, vector<26x128xf32> -> vector<26x128xf32>
      %26 = arith.addf %18, %25 : vector<26x128xf32>
      %c1_i32_24 = arith.constant 1 : i32
      %27 = arith.addi %arg5, %c1_i32_24 : i32
      %c0_25 = arith.constant 0 : index
      %28 = arith.index_cast %27 : i32 to index
      %c0_26 = arith.constant 0 : index
      %c0_27 = arith.constant 0 : index
      %29 = vector.load %arg1[%c0_25, %28, %c0_26, %c0_27] : memref<1x21x28x128xbf16, #tpu.memory_space<vmem>>, vector<1x1x26x128xbf16>
      %30 = vector.shape_cast %29 : vector<1x1x26x128xbf16> to vector<26x128xbf16>
      %c3 = arith.constant 3 : index
      %c0_28 = arith.constant 0 : index
      %c0_29 = arith.constant 0 : index
      %31 = vector.load %arg2[%c3, %c0_28, %c0_29] : memref<9x128x128xbf16, #tpu.memory_space<vmem>>, vector<1x128x128xbf16>
      %32 = vector.shape_cast %31 : vector<1x128x128xbf16> to vector<128x128xbf16>
      %cst_30 = arith.constant dense<0.000000e+00> : vector<26x128xf32>
      %33 = tpu.matmul %30, %32, %cst_30 {dimension_numbers = #tpu.dot_dimension_numbers<[1], [0], [0], [1], [0, 0, 1, 1], [], []>} : vector<26x128xbf16>, vector<128x128xbf16>, vector<26x128xf32> -> vector<26x128xf32>
      %34 = arith.addf %26, %33 : vector<26x128xf32>
      %c1_i32_31 = arith.constant 1 : i32
      %35 = arith.addi %arg5, %c1_i32_31 : i32
      %c0_32 = arith.constant 0 : index
      %36 = arith.index_cast %35 : i32 to index
      %c1_33 = arith.constant 1 : index
      %c0_34 = arith.constant 0 : index
      %37 = vector.load %arg1[%c0_32, %36, %c1_33, %c0_34] : memref<1x21x28x128xbf16, #tpu.memory_space<vmem>>, vector<1x1x26x128xbf16>
      %38 = vector.shape_cast %37 : vector<1x1x26x128xbf16> to vector<26x128xbf16>
      %c4 = arith.constant 4 : index
      %c0_35 = arith.constant 0 : index
      %c0_36 = arith.constant 0 : index
      %39 = vector.load %arg2[%c4, %c0_35, %c0_36] : memref<9x128x128xbf16, #tpu.memory_space<vmem>>, vector<1x128x128xbf16>
      %40 = vector.shape_cast %39 : vector<1x128x128xbf16> to vector<128x128xbf16>
      %cst_37 = arith.constant dense<0.000000e+00> : vector<26x128xf32>
      %41 = tpu.matmul %38, %40, %cst_37 {dimension_numbers = #tpu.dot_dimension_numbers<[1], [0], [0], [1], [0, 0, 1, 1], [], []>} : vector<26x128xbf16>, vector<128x128xbf16>, vector<26x128xf32> -> vector<26x128xf32>
      %42 = arith.addf %34, %41 : vector<26x128xf32>
      %c1_i32_38 = arith.constant 1 : i32
      %43 = arith.addi %arg5, %c1_i32_38 : i32
      %c0_39 = arith.constant 0 : index
      %44 = arith.index_cast %43 : i32 to index
      %c2_40 = arith.constant 2 : index
      %c0_41 = arith.constant 0 : index
      %45 = vector.load %arg1[%c0_39, %44, %c2_40, %c0_41] : memref<1x21x28x128xbf16, #tpu.memory_space<vmem>>, vector<1x1x26x128xbf16>
      %46 = vector.shape_cast %45 : vector<1x1x26x128xbf16> to vector<26x128xbf16>
      %c5 = arith.constant 5 : index
      %c0_42 = arith.constant 0 : index
      %c0_43 = arith.constant 0 : index
      %47 = vector.load %arg2[%c5, %c0_42, %c0_43] : memref<9x128x128xbf16, #tpu.memory_space<vmem>>, vector<1x128x128xbf16>
      %48 = vector.shape_cast %47 : vector<1x128x128xbf16> to vector<128x128xbf16>
      %cst_44 = arith.constant dense<0.000000e+00> : vector<26x128xf32>
      %49 = tpu.matmul %46, %48, %cst_44 {dimension_numbers = #tpu.dot_dimension_numbers<[1], [0], [0], [1], [0, 0, 1, 1], [], []>} : vector<26x128xbf16>, vector<128x128xbf16>, vector<26x128xf32> -> vector<26x128xf32>
      %50 = arith.addf %42, %49 : vector<26x128xf32>
      %c2_i32 = arith.constant 2 : i32
      %51 = arith.addi %arg5, %c2_i32 : i32
      %c0_45 = arith.constant 0 : index
      %52 = arith.index_cast %51 : i32 to index
      %c0_46 = arith.constant 0 : index
      %c0_47 = arith.constant 0 : index
      %53 = vector.load %arg1[%c0_45, %52, %c0_46, %c0_47] : memref<1x21x28x128xbf16, #tpu.memory_space<vmem>>, vector<1x1x26x128xbf16>
      %54 = vector.shape_cast %53 : vector<1x1x26x128xbf16> to vector<26x128xbf16>
      %c6 = arith.constant 6 : index
      %c0_48 = arith.constant 0 : index
      %c0_49 = arith.constant 0 : index
      %55 = vector.load %arg2[%c6, %c0_48, %c0_49] : memref<9x128x128xbf16, #tpu.memory_space<vmem>>, vector<1x128x128xbf16>
      %56 = vector.shape_cast %55 : vector<1x128x128xbf16> to vector<128x128xbf16>
      %cst_50 = arith.constant dense<0.000000e+00> : vector<26x128xf32>
      %57 = tpu.matmul %54, %56, %cst_50 {dimension_numbers = #tpu.dot_dimension_numbers<[1], [0], [0], [1], [0, 0, 1, 1], [], []>} : vector<26x128xbf16>, vector<128x128xbf16>, vector<26x128xf32> -> vector<26x128xf32>
      %58 = arith.addf %50, %57 : vector<26x128xf32>
      %c2_i32_51 = arith.constant 2 : i32
      %59 = arith.addi %arg5, %c2_i32_51 : i32
      %c0_52 = arith.constant 0 : index
      %60 = arith.index_cast %59 : i32 to index
      %c1_53 = arith.constant 1 : index
      %c0_54 = arith.constant 0 : index
      %61 = vector.load %arg1[%c0_52, %60, %c1_53, %c0_54] : memref<1x21x28x128xbf16, #tpu.memory_space<vmem>>, vector<1x1x26x128xbf16>
      %62 = vector.shape_cast %61 : vector<1x1x26x128xbf16> to vector<26x128xbf16>
      %c7 = arith.constant 7 : index
      %c0_55 = arith.constant 0 : index
      %c0_56 = arith.constant 0 : index
      %63 = vector.load %arg2[%c7, %c0_55, %c0_56] : memref<9x128x128xbf16, #tpu.memory_space<vmem>>, vector<1x128x128xbf16>
      %64 = vector.shape_cast %63 : vector<1x128x128xbf16> to vector<128x128xbf16>
      %cst_57 = arith.constant dense<0.000000e+00> : vector<26x128xf32>
      %65 = tpu.matmul %62, %64, %cst_57 {dimension_numbers = #tpu.dot_dimension_numbers<[1], [0], [0], [1], [0, 0, 1, 1], [], []>} : vector<26x128xbf16>, vector<128x128xbf16>, vector<26x128xf32> -> vector<26x128xf32>
      %66 = arith.addf %58, %65 : vector<26x128xf32>
      %c2_i32_58 = arith.constant 2 : i32
      %67 = arith.addi %arg5, %c2_i32_58 : i32
      %c0_59 = arith.constant 0 : index
      %68 = arith.index_cast %67 : i32 to index
      %c2_60 = arith.constant 2 : index
      %c0_61 = arith.constant 0 : index
      %69 = vector.load %arg1[%c0_59, %68, %c2_60, %c0_61] : memref<1x21x28x128xbf16, #tpu.memory_space<vmem>>, vector<1x1x26x128xbf16>
      %70 = vector.shape_cast %69 : vector<1x1x26x128xbf16> to vector<26x128xbf16>
      %c8 = arith.constant 8 : index
      %c0_62 = arith.constant 0 : index
      %c0_63 = arith.constant 0 : index
      %71 = vector.load %arg2[%c8, %c0_62, %c0_63] : memref<9x128x128xbf16, #tpu.memory_space<vmem>>, vector<1x128x128xbf16>
      %72 = vector.shape_cast %71 : vector<1x128x128xbf16> to vector<128x128xbf16>
      %cst_64 = arith.constant dense<0.000000e+00> : vector<26x128xf32>
      %73 = tpu.matmul %70, %72, %cst_64 {dimension_numbers = #tpu.dot_dimension_numbers<[1], [0], [0], [1], [0, 0, 1, 1], [], []>} : vector<26x128xbf16>, vector<128x128xbf16>, vector<26x128xf32> -> vector<26x128xf32>
      %74 = arith.addf %66, %73 : vector<26x128xf32>
      %75 = vector.broadcast %0 : vector<1x128xf32> to vector<26x128xf32>
      %76 = arith.addf %74, %75 : vector<26x128xf32>
      %cst_65 = arith.constant 0.000000e+00 : f32
      %77 = vector.broadcast %cst_65 : f32 to vector<26x128xf32>
      %78 = arith.maximumf %76, %77 : vector<26x128xf32>
      %79 = arith.truncf %78 : vector<26x128xf32> to vector<26x128xbf16>
      %c0_66 = arith.constant 0 : index
      %80 = arith.index_cast %arg5 : i32 to index
      %c0_67 = arith.constant 0 : index
      %c0_68 = arith.constant 0 : index
      %81 = vector.load %arg4[%c0_66, %80, %c0_67, %c0_68] : memref<1x19x26x128xbf16, #tpu.memory_space<vmem>>, vector<1x1x26x128xbf16>
      %82 = vector.shape_cast %81 : vector<1x1x26x128xbf16> to vector<26x128xbf16>
      %83 = vector.shape_cast %79 : vector<26x128xbf16> to vector<1x1x26x128xbf16>
      tpu.vector_store %arg4[%c0_66, %80, %c0_67, %c0_68], %83 {strides = array<i32>} : memref<1x19x26x128xbf16, #tpu.memory_space<vmem>>, vector<1x1x26x128xbf16>,
    }
    %c19_i32_1 = arith.constant 19 : i32
    return
  }
  func.func @transform_0(%arg0: i32) -> (i32, i32, i32, i32) {
    %c0_i32 = arith.constant 0 : i32
    %c0_i32_0 = arith.constant 0 : i32
    %c0_i32_1 = arith.constant 0 : i32
    %c0_i32_2 = arith.constant 0 : i32
    return %arg0, %c0_i32, %c0_i32_0, %c0_i32_1 : i32, i32, i32, i32
  }
  func.func @transform_1(%arg0: i32) -> (i32, i32, i32) {
    %c0_i32 = arith.constant 0 : i32
    %c0_i32_0 = arith.constant 0 : i32
    %c0_i32_1 = arith.constant 0 : i32
    %c0_i32_2 = arith.constant 0 : i32
    return %c0_i32, %c0_i32_0, %c0_i32_1 : i32, i32, i32
  }
  func.func @transform_2(%arg0: i32) -> (i32, i32) {
    %c0_i32 = arith.constant 0 : i32
    %c0_i32_0 = arith.constant 0 : i32
    %c0_i32_1 = arith.constant 0 : i32
    return %c0_i32, %c0_i32_0 : i32, i32
  }
  func.func @transform_3(%arg0: i32) -> (i32, i32, i32, i32) {
    %c0_i32 = arith.constant 0 : i32
    %c0_i32_0 = arith.constant 0 : i32
    %c0_i32_1 = arith.constant 0 : i32
    %c0_i32_2 = arith.constant 0 : i32
    return %arg0, %c0_i32, %c0_i32_0, %c0_i32_1 : i32, i32, i32, i32
  }
}

module attributes {stable_mosaic.version = 11 : i64} {
  func.func @_conv_bn_relu_kernel(%arg0: i32, %arg1: memref<1x9x15x128xbf16, #tpu.memory_space<vmem>>, %arg2: memref<9x128x256xbf16, #tpu.memory_space<vmem>>, %arg3: memref<1x256xf32, #tpu.memory_space<vmem>>, %arg4: memref<1x7x13x256xbf16, #tpu.memory_space<vmem>>) attributes {dimension_semantics = [#tpu.dimension_semantics<parallel>], iteration_bounds = array<i64: 2>, scalar_prefetch = 0 : i64, scratch_operands = 0 : i64, tpu.core_type = #tpu.core_type<tc>, window_params = [{transform_indices = @transform_0, window_bounds = array<i64: 1, 9, 15, 128>}, {pipeline_mode = #tpu.pipeline_mode<synchronous>, transform_indices = @transform_1, window_bounds = array<i64: 9, 128, 256>}, {pipeline_mode = #tpu.pipeline_mode<synchronous>, transform_indices = @transform_2, window_bounds = array<i64: 1, 256>}, {transform_indices = @transform_3, window_bounds = array<i64: 1, 7, 13, 256>}]} {
    %c0 = arith.constant 0 : index
    %c0_0 = arith.constant 0 : index
    %0 = vector.load %arg3[%c0, %c0_0] : memref<1x256xf32, #tpu.memory_space<vmem>>, vector<1x256xf32>
    %c0_i32 = arith.constant 0 : i32
    %c7_i32 = arith.constant 7 : i32
    %1 = arith.addi %c0_i32, %c7_i32 : i32
    %c1_i32 = arith.constant 1 : i32
    scf.for %arg5 = %c0_i32 to %1 step %c1_i32  : i32 {
      %cst = arith.constant 0.000000e+00 : f32
      %2 = vector.broadcast %cst : f32 to vector<13x256xf32>
      %c0_i32_2 = arith.constant 0 : i32
      %3 = arith.addi %arg5, %c0_i32_2 : i32
      %c0_3 = arith.constant 0 : index
      %4 = arith.index_cast %3 : i32 to index
      %c0_4 = arith.constant 0 : index
      %c0_5 = arith.constant 0 : index
      %5 = vector.load %arg1[%c0_3, %4, %c0_4, %c0_5] : memref<1x9x15x128xbf16, #tpu.memory_space<vmem>>, vector<1x1x13x128xbf16>
      %6 = vector.shape_cast %5 : vector<1x1x13x128xbf16> to vector<13x128xbf16>
      %c0_6 = arith.constant 0 : index
      %c0_7 = arith.constant 0 : index
      %c0_8 = arith.constant 0 : index
      %7 = vector.load %arg2[%c0_6, %c0_7, %c0_8] : memref<9x128x256xbf16, #tpu.memory_space<vmem>>, vector<1x128x256xbf16>
      %8 = vector.shape_cast %7 : vector<1x128x256xbf16> to vector<128x256xbf16>
      %cst_9 = arith.constant dense<0.000000e+00> : vector<13x256xf32>
      %9 = tpu.matmul %6, %8, %cst_9 {dimension_numbers = #tpu.dot_dimension_numbers<[1], [0], [0], [1], [0, 0, 1, 1], [], []>} : vector<13x128xbf16>, vector<128x256xbf16>, vector<13x256xf32> -> vector<13x256xf32>
      %10 = arith.addf %2, %9 : vector<13x256xf32>
      %c0_i32_10 = arith.constant 0 : i32
      %11 = arith.addi %arg5, %c0_i32_10 : i32
      %c0_11 = arith.constant 0 : index
      %12 = arith.index_cast %11 : i32 to index
      %c1 = arith.constant 1 : index
      %c0_12 = arith.constant 0 : index
      %13 = vector.load %arg1[%c0_11, %12, %c1, %c0_12] : memref<1x9x15x128xbf16, #tpu.memory_space<vmem>>, vector<1x1x13x128xbf16>
      %14 = vector.shape_cast %13 : vector<1x1x13x128xbf16> to vector<13x128xbf16>
      %c1_13 = arith.constant 1 : index
      %c0_14 = arith.constant 0 : index
      %c0_15 = arith.constant 0 : index
      %15 = vector.load %arg2[%c1_13, %c0_14, %c0_15] : memref<9x128x256xbf16, #tpu.memory_space<vmem>>, vector<1x128x256xbf16>
      %16 = vector.shape_cast %15 : vector<1x128x256xbf16> to vector<128x256xbf16>
      %cst_16 = arith.constant dense<0.000000e+00> : vector<13x256xf32>
      %17 = tpu.matmul %14, %16, %cst_16 {dimension_numbers = #tpu.dot_dimension_numbers<[1], [0], [0], [1], [0, 0, 1, 1], [], []>} : vector<13x128xbf16>, vector<128x256xbf16>, vector<13x256xf32> -> vector<13x256xf32>
      %18 = arith.addf %10, %17 : vector<13x256xf32>
      %c0_i32_17 = arith.constant 0 : i32
      %19 = arith.addi %arg5, %c0_i32_17 : i32
      %c0_18 = arith.constant 0 : index
      %20 = arith.index_cast %19 : i32 to index
      %c2 = arith.constant 2 : index
      %c0_19 = arith.constant 0 : index
      %21 = vector.load %arg1[%c0_18, %20, %c2, %c0_19] : memref<1x9x15x128xbf16, #tpu.memory_space<vmem>>, vector<1x1x13x128xbf16>
      %22 = vector.shape_cast %21 : vector<1x1x13x128xbf16> to vector<13x128xbf16>
      %c2_20 = arith.constant 2 : index
      %c0_21 = arith.constant 0 : index
      %c0_22 = arith.constant 0 : index
      %23 = vector.load %arg2[%c2_20, %c0_21, %c0_22] : memref<9x128x256xbf16, #tpu.memory_space<vmem>>, vector<1x128x256xbf16>
      %24 = vector.shape_cast %23 : vector<1x128x256xbf16> to vector<128x256xbf16>
      %cst_23 = arith.constant dense<0.000000e+00> : vector<13x256xf32>
      %25 = tpu.matmul %22, %24, %cst_23 {dimension_numbers = #tpu.dot_dimension_numbers<[1], [0], [0], [1], [0, 0, 1, 1], [], []>} : vector<13x128xbf16>, vector<128x256xbf16>, vector<13x256xf32> -> vector<13x256xf32>
      %26 = arith.addf %18, %25 : vector<13x256xf32>
      %c1_i32_24 = arith.constant 1 : i32
      %27 = arith.addi %arg5, %c1_i32_24 : i32
      %c0_25 = arith.constant 0 : index
      %28 = arith.index_cast %27 : i32 to index
      %c0_26 = arith.constant 0 : index
      %c0_27 = arith.constant 0 : index
      %29 = vector.load %arg1[%c0_25, %28, %c0_26, %c0_27] : memref<1x9x15x128xbf16, #tpu.memory_space<vmem>>, vector<1x1x13x128xbf16>
      %30 = vector.shape_cast %29 : vector<1x1x13x128xbf16> to vector<13x128xbf16>
      %c3 = arith.constant 3 : index
      %c0_28 = arith.constant 0 : index
      %c0_29 = arith.constant 0 : index
      %31 = vector.load %arg2[%c3, %c0_28, %c0_29] : memref<9x128x256xbf16, #tpu.memory_space<vmem>>, vector<1x128x256xbf16>
      %32 = vector.shape_cast %31 : vector<1x128x256xbf16> to vector<128x256xbf16>
      %cst_30 = arith.constant dense<0.000000e+00> : vector<13x256xf32>
      %33 = tpu.matmul %30, %32, %cst_30 {dimension_numbers = #tpu.dot_dimension_numbers<[1], [0], [0], [1], [0, 0, 1, 1], [], []>} : vector<13x128xbf16>, vector<128x256xbf16>, vector<13x256xf32> -> vector<13x256xf32>
      %34 = arith.addf %26, %33 : vector<13x256xf32>
      %c1_i32_31 = arith.constant 1 : i32
      %35 = arith.addi %arg5, %c1_i32_31 : i32
      %c0_32 = arith.constant 0 : index
      %36 = arith.index_cast %35 : i32 to index
      %c1_33 = arith.constant 1 : index
      %c0_34 = arith.constant 0 : index
      %37 = vector.load %arg1[%c0_32, %36, %c1_33, %c0_34] : memref<1x9x15x128xbf16, #tpu.memory_space<vmem>>, vector<1x1x13x128xbf16>
      %38 = vector.shape_cast %37 : vector<1x1x13x128xbf16> to vector<13x128xbf16>
      %c4 = arith.constant 4 : index
      %c0_35 = arith.constant 0 : index
      %c0_36 = arith.constant 0 : index
      %39 = vector.load %arg2[%c4, %c0_35, %c0_36] : memref<9x128x256xbf16, #tpu.memory_space<vmem>>, vector<1x128x256xbf16>
      %40 = vector.shape_cast %39 : vector<1x128x256xbf16> to vector<128x256xbf16>
      %cst_37 = arith.constant dense<0.000000e+00> : vector<13x256xf32>
      %41 = tpu.matmul %38, %40, %cst_37 {dimension_numbers = #tpu.dot_dimension_numbers<[1], [0], [0], [1], [0, 0, 1, 1], [], []>} : vector<13x128xbf16>, vector<128x256xbf16>, vector<13x256xf32> -> vector<13x256xf32>
      %42 = arith.addf %34, %41 : vector<13x256xf32>
      %c1_i32_38 = arith.constant 1 : i32
      %43 = arith.addi %arg5, %c1_i32_38 : i32
      %c0_39 = arith.constant 0 : index
      %44 = arith.index_cast %43 : i32 to index
      %c2_40 = arith.constant 2 : index
      %c0_41 = arith.constant 0 : index
      %45 = vector.load %arg1[%c0_39, %44, %c2_40, %c0_41] : memref<1x9x15x128xbf16, #tpu.memory_space<vmem>>, vector<1x1x13x128xbf16>
      %46 = vector.shape_cast %45 : vector<1x1x13x128xbf16> to vector<13x128xbf16>
      %c5 = arith.constant 5 : index
      %c0_42 = arith.constant 0 : index
      %c0_43 = arith.constant 0 : index
      %47 = vector.load %arg2[%c5, %c0_42, %c0_43] : memref<9x128x256xbf16, #tpu.memory_space<vmem>>, vector<1x128x256xbf16>
      %48 = vector.shape_cast %47 : vector<1x128x256xbf16> to vector<128x256xbf16>
      %cst_44 = arith.constant dense<0.000000e+00> : vector<13x256xf32>
      %49 = tpu.matmul %46, %48, %cst_44 {dimension_numbers = #tpu.dot_dimension_numbers<[1], [0], [0], [1], [0, 0, 1, 1], [], []>} : vector<13x128xbf16>, vector<128x256xbf16>, vector<13x256xf32> -> vector<13x256xf32>
      %50 = arith.addf %42, %49 : vector<13x256xf32>
      %c2_i32 = arith.constant 2 : i32
      %51 = arith.addi %arg5, %c2_i32 : i32
      %c0_45 = arith.constant 0 : index
      %52 = arith.index_cast %51 : i32 to index
      %c0_46 = arith.constant 0 : index
      %c0_47 = arith.constant 0 : index
      %53 = vector.load %arg1[%c0_45, %52, %c0_46, %c0_47] : memref<1x9x15x128xbf16, #tpu.memory_space<vmem>>, vector<1x1x13x128xbf16>
      %54 = vector.shape_cast %53 : vector<1x1x13x128xbf16> to vector<13x128xbf16>
      %c6 = arith.constant 6 : index
      %c0_48 = arith.constant 0 : index
      %c0_49 = arith.constant 0 : index
      %55 = vector.load %arg2[%c6, %c0_48, %c0_49] : memref<9x128x256xbf16, #tpu.memory_space<vmem>>, vector<1x128x256xbf16>
      %56 = vector.shape_cast %55 : vector<1x128x256xbf16> to vector<128x256xbf16>
      %cst_50 = arith.constant dense<0.000000e+00> : vector<13x256xf32>
      %57 = tpu.matmul %54, %56, %cst_50 {dimension_numbers = #tpu.dot_dimension_numbers<[1], [0], [0], [1], [0, 0, 1, 1], [], []>} : vector<13x128xbf16>, vector<128x256xbf16>, vector<13x256xf32> -> vector<13x256xf32>
      %58 = arith.addf %50, %57 : vector<13x256xf32>
      %c2_i32_51 = arith.constant 2 : i32
      %59 = arith.addi %arg5, %c2_i32_51 : i32
      %c0_52 = arith.constant 0 : index
      %60 = arith.index_cast %59 : i32 to index
      %c1_53 = arith.constant 1 : index
      %c0_54 = arith.constant 0 : index
      %61 = vector.load %arg1[%c0_52, %60, %c1_53, %c0_54] : memref<1x9x15x128xbf16, #tpu.memory_space<vmem>>, vector<1x1x13x128xbf16>
      %62 = vector.shape_cast %61 : vector<1x1x13x128xbf16> to vector<13x128xbf16>
      %c7 = arith.constant 7 : index
      %c0_55 = arith.constant 0 : index
      %c0_56 = arith.constant 0 : index
      %63 = vector.load %arg2[%c7, %c0_55, %c0_56] : memref<9x128x256xbf16, #tpu.memory_space<vmem>>, vector<1x128x256xbf16>
      %64 = vector.shape_cast %63 : vector<1x128x256xbf16> to vector<128x256xbf16>
      %cst_57 = arith.constant dense<0.000000e+00> : vector<13x256xf32>
      %65 = tpu.matmul %62, %64, %cst_57 {dimension_numbers = #tpu.dot_dimension_numbers<[1], [0], [0], [1], [0, 0, 1, 1], [], []>} : vector<13x128xbf16>, vector<128x256xbf16>, vector<13x256xf32> -> vector<13x256xf32>
      %66 = arith.addf %58, %65 : vector<13x256xf32>
      %c2_i32_58 = arith.constant 2 : i32
      %67 = arith.addi %arg5, %c2_i32_58 : i32
      %c0_59 = arith.constant 0 : index
      %68 = arith.index_cast %67 : i32 to index
      %c2_60 = arith.constant 2 : index
      %c0_61 = arith.constant 0 : index
      %69 = vector.load %arg1[%c0_59, %68, %c2_60, %c0_61] : memref<1x9x15x128xbf16, #tpu.memory_space<vmem>>, vector<1x1x13x128xbf16>
      %70 = vector.shape_cast %69 : vector<1x1x13x128xbf16> to vector<13x128xbf16>
      %c8 = arith.constant 8 : index
      %c0_62 = arith.constant 0 : index
      %c0_63 = arith.constant 0 : index
      %71 = vector.load %arg2[%c8, %c0_62, %c0_63] : memref<9x128x256xbf16, #tpu.memory_space<vmem>>, vector<1x128x256xbf16>
      %72 = vector.shape_cast %71 : vector<1x128x256xbf16> to vector<128x256xbf16>
      %cst_64 = arith.constant dense<0.000000e+00> : vector<13x256xf32>
      %73 = tpu.matmul %70, %72, %cst_64 {dimension_numbers = #tpu.dot_dimension_numbers<[1], [0], [0], [1], [0, 0, 1, 1], [], []>} : vector<13x128xbf16>, vector<128x256xbf16>, vector<13x256xf32> -> vector<13x256xf32>
      %74 = arith.addf %66, %73 : vector<13x256xf32>
      %75 = vector.broadcast %0 : vector<1x256xf32> to vector<13x256xf32>
      %76 = arith.addf %74, %75 : vector<13x256xf32>
      %cst_65 = arith.constant 0.000000e+00 : f32
      %77 = vector.broadcast %cst_65 : f32 to vector<13x256xf32>
      %78 = arith.maximumf %76, %77 : vector<13x256xf32>
      %79 = arith.truncf %78 : vector<13x256xf32> to vector<13x256xbf16>
      %c0_66 = arith.constant 0 : index
      %80 = arith.index_cast %arg5 : i32 to index
      %c0_67 = arith.constant 0 : index
      %c0_68 = arith.constant 0 : index
      %81 = vector.load %arg4[%c0_66, %80, %c0_67, %c0_68] : memref<1x7x13x256xbf16, #tpu.memory_space<vmem>>, vector<1x1x13x256xbf16>
      %82 = vector.shape_cast %81 : vector<1x1x13x256xbf16> to vector<13x256xbf16>
      %83 = vector.shape_cast %79 : vector<13x256xbf16> to vector<1x1x13x256xbf16>
      tpu.vector_store %arg4[%c0_66, %80, %c0_67, %c0_68], %83 {strides = array<i32>} : memref<1x7x13x256xbf16, #tpu.memory_space<vmem>>, vector<1x1x13x256xbf16>,
    }
    %c7_i32_1 = arith.constant 7 : i32
    return
  }
  func.func @transform_0(%arg0: i32) -> (i32, i32, i32, i32) {
    %c0_i32 = arith.constant 0 : i32
    %c0_i32_0 = arith.constant 0 : i32
    %c0_i32_1 = arith.constant 0 : i32
    %c0_i32_2 = arith.constant 0 : i32
    return %arg0, %c0_i32, %c0_i32_0, %c0_i32_1 : i32, i32, i32, i32
  }
  func.func @transform_1(%arg0: i32) -> (i32, i32, i32) {
    %c0_i32 = arith.constant 0 : i32
    %c0_i32_0 = arith.constant 0 : i32
    %c0_i32_1 = arith.constant 0 : i32
    %c0_i32_2 = arith.constant 0 : i32
    return %c0_i32, %c0_i32_0, %c0_i32_1 : i32, i32, i32
  }
  func.func @transform_2(%arg0: i32) -> (i32, i32) {
    %c0_i32 = arith.constant 0 : i32
    %c0_i32_0 = arith.constant 0 : i32
    %c0_i32_1 = arith.constant 0 : i32
    return %c0_i32, %c0_i32_0 : i32, i32
  }
  func.func @transform_3(%arg0: i32) -> (i32, i32, i32, i32) {
    %c0_i32 = arith.constant 0 : i32
    %c0_i32_0 = arith.constant 0 : i32
    %c0_i32_1 = arith.constant 0 : i32
    %c0_i32_2 = arith.constant 0 : i32
    return %arg0, %c0_i32, %c0_i32_0, %c0_i32_1 : i32, i32, i32, i32
  }
}

module attributes {stable_mosaic.version = 11 : i64} {
  func.func @_conv_bn_relu_kernel(%arg0: i32, %arg1: memref<1x7x15x256xbf16, #tpu.memory_space<vmem>>, %arg2: memref<9x256x256xbf16, #tpu.memory_space<vmem>>, %arg3: memref<1x256xf32, #tpu.memory_space<vmem>>, %arg4: memref<1x5x13x256xbf16, #tpu.memory_space<vmem>>) attributes {dimension_semantics = [#tpu.dimension_semantics<parallel>], iteration_bounds = array<i64: 2>, scalar_prefetch = 0 : i64, scratch_operands = 0 : i64, tpu.core_type = #tpu.core_type<tc>, window_params = [{transform_indices = @transform_0, window_bounds = array<i64: 1, 7, 15, 256>}, {pipeline_mode = #tpu.pipeline_mode<synchronous>, transform_indices = @transform_1, window_bounds = array<i64: 9, 256, 256>}, {pipeline_mode = #tpu.pipeline_mode<synchronous>, transform_indices = @transform_2, window_bounds = array<i64: 1, 256>}, {transform_indices = @transform_3, window_bounds = array<i64: 1, 5, 13, 256>}]} {
    %c0 = arith.constant 0 : index
    %c0_0 = arith.constant 0 : index
    %0 = vector.load %arg3[%c0, %c0_0] : memref<1x256xf32, #tpu.memory_space<vmem>>, vector<1x256xf32>
    %c0_i32 = arith.constant 0 : i32
    %c5_i32 = arith.constant 5 : i32
    %1 = arith.addi %c0_i32, %c5_i32 : i32
    %c1_i32 = arith.constant 1 : i32
    scf.for %arg5 = %c0_i32 to %1 step %c1_i32  : i32 {
      %cst = arith.constant 0.000000e+00 : f32
      %2 = vector.broadcast %cst : f32 to vector<13x256xf32>
      %c0_i32_2 = arith.constant 0 : i32
      %3 = arith.addi %arg5, %c0_i32_2 : i32
      %c0_3 = arith.constant 0 : index
      %4 = arith.index_cast %3 : i32 to index
      %c0_4 = arith.constant 0 : index
      %c0_5 = arith.constant 0 : index
      %5 = vector.load %arg1[%c0_3, %4, %c0_4, %c0_5] : memref<1x7x15x256xbf16, #tpu.memory_space<vmem>>, vector<1x1x13x256xbf16>
      %6 = vector.shape_cast %5 : vector<1x1x13x256xbf16> to vector<13x256xbf16>
      %c0_6 = arith.constant 0 : index
      %c0_7 = arith.constant 0 : index
      %c0_8 = arith.constant 0 : index
      %7 = vector.load %arg2[%c0_6, %c0_7, %c0_8] : memref<9x256x256xbf16, #tpu.memory_space<vmem>>, vector<1x256x256xbf16>
      %8 = vector.shape_cast %7 : vector<1x256x256xbf16> to vector<256x256xbf16>
      %cst_9 = arith.constant dense<0.000000e+00> : vector<13x256xf32>
      %9 = tpu.matmul %6, %8, %cst_9 {dimension_numbers = #tpu.dot_dimension_numbers<[1], [0], [0], [1], [0, 0, 1, 1], [], []>} : vector<13x256xbf16>, vector<256x256xbf16>, vector<13x256xf32> -> vector<13x256xf32>
      %10 = arith.addf %2, %9 : vector<13x256xf32>
      %c0_i32_10 = arith.constant 0 : i32
      %11 = arith.addi %arg5, %c0_i32_10 : i32
      %c0_11 = arith.constant 0 : index
      %12 = arith.index_cast %11 : i32 to index
      %c1 = arith.constant 1 : index
      %c0_12 = arith.constant 0 : index
      %13 = vector.load %arg1[%c0_11, %12, %c1, %c0_12] : memref<1x7x15x256xbf16, #tpu.memory_space<vmem>>, vector<1x1x13x256xbf16>
      %14 = vector.shape_cast %13 : vector<1x1x13x256xbf16> to vector<13x256xbf16>
      %c1_13 = arith.constant 1 : index
      %c0_14 = arith.constant 0 : index
      %c0_15 = arith.constant 0 : index
      %15 = vector.load %arg2[%c1_13, %c0_14, %c0_15] : memref<9x256x256xbf16, #tpu.memory_space<vmem>>, vector<1x256x256xbf16>
      %16 = vector.shape_cast %15 : vector<1x256x256xbf16> to vector<256x256xbf16>
      %cst_16 = arith.constant dense<0.000000e+00> : vector<13x256xf32>
      %17 = tpu.matmul %14, %16, %cst_16 {dimension_numbers = #tpu.dot_dimension_numbers<[1], [0], [0], [1], [0, 0, 1, 1], [], []>} : vector<13x256xbf16>, vector<256x256xbf16>, vector<13x256xf32> -> vector<13x256xf32>
      %18 = arith.addf %10, %17 : vector<13x256xf32>
      %c0_i32_17 = arith.constant 0 : i32
      %19 = arith.addi %arg5, %c0_i32_17 : i32
      %c0_18 = arith.constant 0 : index
      %20 = arith.index_cast %19 : i32 to index
      %c2 = arith.constant 2 : index
      %c0_19 = arith.constant 0 : index
      %21 = vector.load %arg1[%c0_18, %20, %c2, %c0_19] : memref<1x7x15x256xbf16, #tpu.memory_space<vmem>>, vector<1x1x13x256xbf16>
      %22 = vector.shape_cast %21 : vector<1x1x13x256xbf16> to vector<13x256xbf16>
      %c2_20 = arith.constant 2 : index
      %c0_21 = arith.constant 0 : index
      %c0_22 = arith.constant 0 : index
      %23 = vector.load %arg2[%c2_20, %c0_21, %c0_22] : memref<9x256x256xbf16, #tpu.memory_space<vmem>>, vector<1x256x256xbf16>
      %24 = vector.shape_cast %23 : vector<1x256x256xbf16> to vector<256x256xbf16>
      %cst_23 = arith.constant dense<0.000000e+00> : vector<13x256xf32>
      %25 = tpu.matmul %22, %24, %cst_23 {dimension_numbers = #tpu.dot_dimension_numbers<[1], [0], [0], [1], [0, 0, 1, 1], [], []>} : vector<13x256xbf16>, vector<256x256xbf16>, vector<13x256xf32> -> vector<13x256xf32>
      %26 = arith.addf %18, %25 : vector<13x256xf32>
      %c1_i32_24 = arith.constant 1 : i32
      %27 = arith.addi %arg5, %c1_i32_24 : i32
      %c0_25 = arith.constant 0 : index
      %28 = arith.index_cast %27 : i32 to index
      %c0_26 = arith.constant 0 : index
      %c0_27 = arith.constant 0 : index
      %29 = vector.load %arg1[%c0_25, %28, %c0_26, %c0_27] : memref<1x7x15x256xbf16, #tpu.memory_space<vmem>>, vector<1x1x13x256xbf16>
      %30 = vector.shape_cast %29 : vector<1x1x13x256xbf16> to vector<13x256xbf16>
      %c3 = arith.constant 3 : index
      %c0_28 = arith.constant 0 : index
      %c0_29 = arith.constant 0 : index
      %31 = vector.load %arg2[%c3, %c0_28, %c0_29] : memref<9x256x256xbf16, #tpu.memory_space<vmem>>, vector<1x256x256xbf16>
      %32 = vector.shape_cast %31 : vector<1x256x256xbf16> to vector<256x256xbf16>
      %cst_30 = arith.constant dense<0.000000e+00> : vector<13x256xf32>
      %33 = tpu.matmul %30, %32, %cst_30 {dimension_numbers = #tpu.dot_dimension_numbers<[1], [0], [0], [1], [0, 0, 1, 1], [], []>} : vector<13x256xbf16>, vector<256x256xbf16>, vector<13x256xf32> -> vector<13x256xf32>
      %34 = arith.addf %26, %33 : vector<13x256xf32>
      %c1_i32_31 = arith.constant 1 : i32
      %35 = arith.addi %arg5, %c1_i32_31 : i32
      %c0_32 = arith.constant 0 : index
      %36 = arith.index_cast %35 : i32 to index
      %c1_33 = arith.constant 1 : index
      %c0_34 = arith.constant 0 : index
      %37 = vector.load %arg1[%c0_32, %36, %c1_33, %c0_34] : memref<1x7x15x256xbf16, #tpu.memory_space<vmem>>, vector<1x1x13x256xbf16>
      %38 = vector.shape_cast %37 : vector<1x1x13x256xbf16> to vector<13x256xbf16>
      %c4 = arith.constant 4 : index
      %c0_35 = arith.constant 0 : index
      %c0_36 = arith.constant 0 : index
      %39 = vector.load %arg2[%c4, %c0_35, %c0_36] : memref<9x256x256xbf16, #tpu.memory_space<vmem>>, vector<1x256x256xbf16>
      %40 = vector.shape_cast %39 : vector<1x256x256xbf16> to vector<256x256xbf16>
      %cst_37 = arith.constant dense<0.000000e+00> : vector<13x256xf32>
      %41 = tpu.matmul %38, %40, %cst_37 {dimension_numbers = #tpu.dot_dimension_numbers<[1], [0], [0], [1], [0, 0, 1, 1], [], []>} : vector<13x256xbf16>, vector<256x256xbf16>, vector<13x256xf32> -> vector<13x256xf32>
      %42 = arith.addf %34, %41 : vector<13x256xf32>
      %c1_i32_38 = arith.constant 1 : i32
      %43 = arith.addi %arg5, %c1_i32_38 : i32
      %c0_39 = arith.constant 0 : index
      %44 = arith.index_cast %43 : i32 to index
      %c2_40 = arith.constant 2 : index
      %c0_41 = arith.constant 0 : index
      %45 = vector.load %arg1[%c0_39, %44, %c2_40, %c0_41] : memref<1x7x15x256xbf16, #tpu.memory_space<vmem>>, vector<1x1x13x256xbf16>
      %46 = vector.shape_cast %45 : vector<1x1x13x256xbf16> to vector<13x256xbf16>
      %c5 = arith.constant 5 : index
      %c0_42 = arith.constant 0 : index
      %c0_43 = arith.constant 0 : index
      %47 = vector.load %arg2[%c5, %c0_42, %c0_43] : memref<9x256x256xbf16, #tpu.memory_space<vmem>>, vector<1x256x256xbf16>
      %48 = vector.shape_cast %47 : vector<1x256x256xbf16> to vector<256x256xbf16>
      %cst_44 = arith.constant dense<0.000000e+00> : vector<13x256xf32>
      %49 = tpu.matmul %46, %48, %cst_44 {dimension_numbers = #tpu.dot_dimension_numbers<[1], [0], [0], [1], [0, 0, 1, 1], [], []>} : vector<13x256xbf16>, vector<256x256xbf16>, vector<13x256xf32> -> vector<13x256xf32>
      %50 = arith.addf %42, %49 : vector<13x256xf32>
      %c2_i32 = arith.constant 2 : i32
      %51 = arith.addi %arg5, %c2_i32 : i32
      %c0_45 = arith.constant 0 : index
      %52 = arith.index_cast %51 : i32 to index
      %c0_46 = arith.constant 0 : index
      %c0_47 = arith.constant 0 : index
      %53 = vector.load %arg1[%c0_45, %52, %c0_46, %c0_47] : memref<1x7x15x256xbf16, #tpu.memory_space<vmem>>, vector<1x1x13x256xbf16>
      %54 = vector.shape_cast %53 : vector<1x1x13x256xbf16> to vector<13x256xbf16>
      %c6 = arith.constant 6 : index
      %c0_48 = arith.constant 0 : index
      %c0_49 = arith.constant 0 : index
      %55 = vector.load %arg2[%c6, %c0_48, %c0_49] : memref<9x256x256xbf16, #tpu.memory_space<vmem>>, vector<1x256x256xbf16>
      %56 = vector.shape_cast %55 : vector<1x256x256xbf16> to vector<256x256xbf16>
      %cst_50 = arith.constant dense<0.000000e+00> : vector<13x256xf32>
      %57 = tpu.matmul %54, %56, %cst_50 {dimension_numbers = #tpu.dot_dimension_numbers<[1], [0], [0], [1], [0, 0, 1, 1], [], []>} : vector<13x256xbf16>, vector<256x256xbf16>, vector<13x256xf32> -> vector<13x256xf32>
      %58 = arith.addf %50, %57 : vector<13x256xf32>
      %c2_i32_51 = arith.constant 2 : i32
      %59 = arith.addi %arg5, %c2_i32_51 : i32
      %c0_52 = arith.constant 0 : index
      %60 = arith.index_cast %59 : i32 to index
      %c1_53 = arith.constant 1 : index
      %c0_54 = arith.constant 0 : index
      %61 = vector.load %arg1[%c0_52, %60, %c1_53, %c0_54] : memref<1x7x15x256xbf16, #tpu.memory_space<vmem>>, vector<1x1x13x256xbf16>
      %62 = vector.shape_cast %61 : vector<1x1x13x256xbf16> to vector<13x256xbf16>
      %c7 = arith.constant 7 : index
      %c0_55 = arith.constant 0 : index
      %c0_56 = arith.constant 0 : index
      %63 = vector.load %arg2[%c7, %c0_55, %c0_56] : memref<9x256x256xbf16, #tpu.memory_space<vmem>>, vector<1x256x256xbf16>
      %64 = vector.shape_cast %63 : vector<1x256x256xbf16> to vector<256x256xbf16>
      %cst_57 = arith.constant dense<0.000000e+00> : vector<13x256xf32>
      %65 = tpu.matmul %62, %64, %cst_57 {dimension_numbers = #tpu.dot_dimension_numbers<[1], [0], [0], [1], [0, 0, 1, 1], [], []>} : vector<13x256xbf16>, vector<256x256xbf16>, vector<13x256xf32> -> vector<13x256xf32>
      %66 = arith.addf %58, %65 : vector<13x256xf32>
      %c2_i32_58 = arith.constant 2 : i32
      %67 = arith.addi %arg5, %c2_i32_58 : i32
      %c0_59 = arith.constant 0 : index
      %68 = arith.index_cast %67 : i32 to index
      %c2_60 = arith.constant 2 : index
      %c0_61 = arith.constant 0 : index
      %69 = vector.load %arg1[%c0_59, %68, %c2_60, %c0_61] : memref<1x7x15x256xbf16, #tpu.memory_space<vmem>>, vector<1x1x13x256xbf16>
      %70 = vector.shape_cast %69 : vector<1x1x13x256xbf16> to vector<13x256xbf16>
      %c8 = arith.constant 8 : index
      %c0_62 = arith.constant 0 : index
      %c0_63 = arith.constant 0 : index
      %71 = vector.load %arg2[%c8, %c0_62, %c0_63] : memref<9x256x256xbf16, #tpu.memory_space<vmem>>, vector<1x256x256xbf16>
      %72 = vector.shape_cast %71 : vector<1x256x256xbf16> to vector<256x256xbf16>
      %cst_64 = arith.constant dense<0.000000e+00> : vector<13x256xf32>
      %73 = tpu.matmul %70, %72, %cst_64 {dimension_numbers = #tpu.dot_dimension_numbers<[1], [0], [0], [1], [0, 0, 1, 1], [], []>} : vector<13x256xbf16>, vector<256x256xbf16>, vector<13x256xf32> -> vector<13x256xf32>
      %74 = arith.addf %66, %73 : vector<13x256xf32>
      %75 = vector.broadcast %0 : vector<1x256xf32> to vector<13x256xf32>
      %76 = arith.addf %74, %75 : vector<13x256xf32>
      %cst_65 = arith.constant 0.000000e+00 : f32
      %77 = vector.broadcast %cst_65 : f32 to vector<13x256xf32>
      %78 = arith.maximumf %76, %77 : vector<13x256xf32>
      %79 = arith.truncf %78 : vector<13x256xf32> to vector<13x256xbf16>
      %c0_66 = arith.constant 0 : index
      %80 = arith.index_cast %arg5 : i32 to index
      %c0_67 = arith.constant 0 : index
      %c0_68 = arith.constant 0 : index
      %81 = vector.load %arg4[%c0_66, %80, %c0_67, %c0_68] : memref<1x5x13x256xbf16, #tpu.memory_space<vmem>>, vector<1x1x13x256xbf16>
      %82 = vector.shape_cast %81 : vector<1x1x13x256xbf16> to vector<13x256xbf16>
      %83 = vector.shape_cast %79 : vector<13x256xbf16> to vector<1x1x13x256xbf16>
      tpu.vector_store %arg4[%c0_66, %80, %c0_67, %c0_68], %83 {strides = array<i32>} : memref<1x5x13x256xbf16, #tpu.memory_space<vmem>>, vector<1x1x13x256xbf16>,
    }
    %c5_i32_1 = arith.constant 5 : i32
    return
  }
  func.func @transform_0(%arg0: i32) -> (i32, i32, i32, i32) {
    %c0_i32 = arith.constant 0 : i32
    %c0_i32_0 = arith.constant 0 : i32
    %c0_i32_1 = arith.constant 0 : i32
    %c0_i32_2 = arith.constant 0 : i32
    return %arg0, %c0_i32, %c0_i32_0, %c0_i32_1 : i32, i32, i32, i32
  }
  func.func @transform_1(%arg0: i32) -> (i32, i32, i32) {
    %c0_i32 = arith.constant 0 : i32
    %c0_i32_0 = arith.constant 0 : i32
    %c0_i32_1 = arith.constant 0 : i32
    %c0_i32_2 = arith.constant 0 : i32
    return %c0_i32, %c0_i32_0, %c0_i32_1 : i32, i32, i32
  }
  func.func @transform_2(%arg0: i32) -> (i32, i32) {
    %c0_i32 = arith.constant 0 : i32
    %c0_i32_0 = arith.constant 0 : i32
    %c0_i32_1 = arith.constant 0 : i32
    return %c0_i32, %c0_i32_0 : i32, i32
  }
  func.func @transform_3(%arg0: i32) -> (i32, i32, i32, i32) {
    %c0_i32 = arith.constant 0 : i32
    %c0_i32_0 = arith.constant 0 : i32
    %c0_i32_1 = arith.constant 0 : i32
    %c0_i32_2 = arith.constant 0 : i32
    return %arg0, %c0_i32, %c0_i32_0, %c0_i32_1 : i32, i32, i32, i32
  }
}

module attributes {stable_mosaic.version = 11 : i64} {
  func.func @_head_kernel(%arg0: memref<24x256xbf16, #tpu.memory_space<vmem>>, %arg1: memref<256x78xbf16, #tpu.memory_space<vmem>>, %arg2: memref<1x78xf32, #tpu.memory_space<vmem>>, %arg3: memref<24x78xf32, #tpu.memory_space<vmem>>) attributes {dimension_semantics = [], scalar_prefetch = 0 : i64, scratch_operands = 0 : i64, tpu.core_type = #tpu.core_type<tc>} {
    %c0 = arith.constant 0 : index
    %c0_0 = arith.constant 0 : index
    %0 = vector.load %arg0[%c0, %c0_0] : memref<24x256xbf16, #tpu.memory_space<vmem>>, vector<24x256xbf16>
    %c0_1 = arith.constant 0 : index
    %c0_2 = arith.constant 0 : index
    %1 = vector.load %arg1[%c0_1, %c0_2] : memref<256x78xbf16, #tpu.memory_space<vmem>>, vector<256x78xbf16>
    %cst = arith.constant dense<0.000000e+00> : vector<24x78xf32>
    %2 = tpu.matmul %0, %1, %cst {dimension_numbers = #tpu.dot_dimension_numbers<[1], [0], [0], [1], [0, 0, 1, 1], [], []>} : vector<24x256xbf16>, vector<256x78xbf16>, vector<24x78xf32> -> vector<24x78xf32>
    %c0_3 = arith.constant 0 : index
    %c0_4 = arith.constant 0 : index
    %3 = vector.load %arg2[%c0_3, %c0_4] : memref<1x78xf32, #tpu.memory_space<vmem>>, vector<1x78xf32>
    %4 = vector.broadcast %3 : vector<1x78xf32> to vector<24x78xf32>
    %5 = arith.addf %2, %4 : vector<24x78xf32>
    %cst_5 = arith.constant dense<0xFF800000> : vector<24xf32>
    %6 = vector.multi_reduction <maximumf>, %5, %cst_5 [1] : vector<24x78xf32> to vector<24xf32>
    %7 = vector.shape_cast %6 : vector<24xf32> to vector<24x1xf32>
    %8 = vector.broadcast %7 : vector<24x1xf32> to vector<24x78xf32>
    %9 = arith.subf %5, %8 : vector<24x78xf32>
    %10 = math.exp %9 : vector<24x78xf32>
    %cst_6 = arith.constant dense<0.000000e+00> : vector<24xf32>
    %11 = vector.multi_reduction <add>, %10, %cst_6 [1] : vector<24x78xf32> to vector<24xf32>
    %12 = vector.shape_cast %11 : vector<24xf32> to vector<24x1xf32>
    %13 = math.log %12 : vector<24x1xf32>
    %14 = vector.broadcast %13 : vector<24x1xf32> to vector<24x78xf32>
    %15 = arith.subf %9, %14 : vector<24x78xf32>
    %c0_7 = arith.constant 0 : index
    %c0_8 = arith.constant 0 : index
    %16 = vector.load %arg3[%c0_7, %c0_8] : memref<24x78xf32, #tpu.memory_space<vmem>>, vector<24x78xf32>
    tpu.vector_store %arg3[%c0_7, %c0_8], %15 {strides = array<i32>} : memref<24x78xf32, #tpu.memory_space<vmem>>, vector<24x78xf32>,
    return
  }
}

</mosaic_0001>

<bundles_post_ra>
// kernel: mynet1_forward.10
= control target key start
LH: loop header
LB: loop body
LE: loop exit
PB: predicated region body
PF: predicated region fallthrough
CT: control target
= control target key end

     0   :  { %s1850_s12 = smov 0   ;;  %s2124_s0 = inlined_call_operand.vmem [shape: bf16[2,52,54,32], index: 0, kind: input, shape index: {}]   ;;  %s2125_s1 = inlined_call_operand.vmem [shape: bf16[9,32,32], index: 1, kind: input, shape index: {}]   ;;  %s2126_s2 = inlined_call_operand.vmem [shape: f32[1,32], index: 2, kind: input, shape index: {}]   ;;  %s2127_s3 = inlined_call_operand.vmem [shape: bf16[2,50,52,32], index: 3, kind: output, shape index: {}]  }
   0x1 LB: > { %s1412_s13 = sadd.s32 4294967295, %s1824_s12   ;;  %p1416_p0 = scmp.ge.s32.totalorder %s1824_s12, 1  ;;  %s1824_s12 = sphi %s1850_s12, %s13_s12  }
   0x2   : > { %p137_p1 = scmp.lt.s32.totalorder %s1824_s12, 3 }
   0x4   : > { %p138_p2 = pnand %p1416_p0, %p137_p1 }
   0x5   : > { %p161_p3 = scmp.lt.s32.totalorder (!%p138_p2), %s1412_s13, 1  ;;  %v1861_v0 = vld [vmem:[%s2126_s2] ss:$0 sm:$0xff] (!%p138_p2)  ;;  %s1873_s24 = smov (!%p138_p2), 0  }
   0x6   : > { %141 = sbr.rel (%p138_p2) target bundleno = 328 (0x148), region = 32 }
   0xd   : > { %s2129_s13 = smov (!%p161_p3, %s1412_s13), 1 }
   0xe   : > { %s1760_s16 = smul.u32 1456, %s2129_s13 }
   0xf   : > { %s1761_s17 = smul.u32 1400, %s2129_s13 }
  0x10   : > { %s1866_s20 = scalar_lea.vmem %s2124_s0, %s1760_s16 }
  0x11   : > { %s1871_s23 = scalar_lea.vmem %s2127_s3, %s1761_s17 }
  0x12 LB: >> { %v1778_v1 = vld [vmem:[%s2125_s1 + $0x10] sm:$0xff]   ;;  %v1884_v2 = vld [vmem:[%s2125_s1 + $0x40] sm:$0xff]   ;;  %v1780_v3 = vld [vmem:[%s2125_s1 + $0x18] sm:$0xff]   ;;  %s1553_s4 = smul.u32 28, %s1828_s24  ;;  %vm217_vm0 = vsmask.f32 7424  ;;  %s1828_s24 = sphi %s1873_s24, %s178_s24  }
  0x13   : >> { %1616 = vmatprep.subr.bf16.mxu1 %v1778_v1  ;;  %1664 = vmatprep.subr.bf16.mxu0 %v1884_v2  ;;  %v1894_v4 = vld [vmem:[%s2125_s1 + $0x48] sm:$0xff]   ;;  %v1784_v9 = vld [vmem:[%s2125_s1] sm:$0xff]   ;;  %vm261_vm1 = vcmask 261120   ;;  %v1789_v32 = vld [vmem:[%s2125_s1 + $0x50] sm:$0xff]   ;;  %vm435_vm2 = vcmask 1046528   ;;  %vm1333_vm3 = vcmask 257024  }
  0x14   : >> { %1617 = vmatpush3.bf16.msra.mxu1 %v1778_v1  ;;  %1665 = vmatpush3.bf16.msra.mxu0 %v1884_v2  ;;  %s1900_s7 = scalar_lea.vmem %s1866_s20, %s1553_s4  ;;  %v1791_v38 = vld [vmem:[%s2125_s1 + $0x8] sm:$0xff]   ;;  %v1792_v44 = vld [vmem:[%s2125_s1 + $0x58] sm:$0xff]   ;;  %v1794_v49 = vld [vmem:[%s2125_s1 + $0x20] sm:$0xff]   ;;  %vm1340_vm4 = vcmask 254976   ;;  %s178_s24 = sadd.s32 1, %s1828_s24  }
  0x15   : >> { %1618 = vmatprep.subr.bf16.mxu1 %v1780_v3  ;;  %1666 = vmatprep.subr.bf16.mxu0 %v1894_v4  ;;  %v182_v5 = vld [vmem:[%s1900_s7] sm:$0xf]  ;;  %v1905_v6 = vld [vmem:[%s1900_s7 + $0x4] sm:$0xf]  ;;  %v1911_v8 = vld [vmem:[%s1900_s7 + $0x8] sm:$0xff]   ;;  %p175_p4 = scmp.ge.s32.totalorder %s178_s24, 50  }
  0x16   : >> { %v1908_v7 = vcombine.low %v182_v5, %v1905_v6  ;;  %v1452_v10 = vld [vmem:[%s1900_s7 + $0x1c] sm:$0xf]  ;;  %v1453_v11 = vld [vmem:[%s1900_s7 + $0x20] sm:$0xf]  ;;  %v226_v14 = vshll.u32 %v1911_v8, 16  ;;  %v230_v15 = vshrl.u32 %v1911_v8, 16 }
  0x17   : >> { %v1923_v16 = vcombine.low %v1452_v10, %v1453_v11  ;;  %v1926_v17 = vld [vmem:[%s1900_s7 + $0x24] sm:$0xff]   ;;  %v1929_v20 = vld [vmem:[%s1900_s7 + $0x10] sm:$0xff]   ;;  %v1948_v37 = vld [vmem:[%s1900_s7 + $0x18] ss:$0 sps:$4 sm:$0x77]  }
  0x18   : >> { %1619 = vmatpush3.bf16.msra.mxu1 %v1780_v3  ;;  %1667 = vmatpush3.bf16.msra.mxu0 %v1894_v4  ;;  %v219_v12 = vshrl.u32 %v1908_v7, 16  ;;  %v221_v13 = vshll.u32 %v1908_v7, 16  ;;  %v228_v19 = vrot.slane %v226_v14, 1  ;;  %v1932_v21 = vld [vmem:[%s1900_s7 + $0x2c] sm:$0xff]   ;;  %v682_v24 = vshll.u32 %v1926_v17, 16  ;;  %v1795_v57 = vld [vmem:[%s2125_s1 + $0x60] sm:$0xff]  }
  0x19   : >> { %1628 = vmatprep.subr.bf16.mxu1 %v1784_v9  ;;  %v676_v22 = vshrl.u32 %v1923_v16, 16  ;;  %v678_v23 = vshll.u32 %v1923_v16, 16  ;;  %v686_v25 = vshrl.u32 %v1926_v17, 16  ;;  %v234_v28 = vshll.u32 %v1929_v20, 16  ;;  %1676 = vmatprep.subr.bf16.mxu0 %v1789_v32  ;;  %v1485_v48 = vld [vmem:[%s1900_s7 + $0x1c] sm:$0xe] }
  0x1a   : >> { %v223_v18 = vrot.slane %v221_v13, 1  ;;  %v232_v27 = vor.u32 %v230_v15, %v228_v19  ;;  %v689_v29 = vshll.u32 %v1932_v21, 16  ;;  %v684_v31 = vrot.slane %v682_v24, 1  ;;  %v1973_v55 = vld [vmem:[%s1900_s7 + $0x34] ss:$0 sps:$4 sm:$0x77]  }
  0x1b   : >> { %v680_v30 = vrot.slane %v678_v23, 1  ;;  %v238_v33 = vshrl.u32 %v1929_v20, 16  ;;  %v236_v35 = vrot.slane %v234_v28, 1  ;;  %v242_v43 = vshll.u32 %v1948_v37, 16  ;;  %v1798_v62 = vld [vmem:[%s2125_s1 + $0x68] sm:$0xff]   ;;  %v1804_v10 = vld [vmem:[%s2125_s1 + $0x70] sm:$0xff]  }
  0x1c   : >> { %v224_v26 = vor.u32 %v223_v18, %v219_v12  ;;  %v1945_v36 = vrot.slane %v689_v29, 1  ;;  %v688_v40 = vor.u32 %v686_v25, %v684_v31  ;;  %v246_v47 = vshrl.u32 %v1948_v37, 16  ;;  %v426_v63 = vld [vmem:[%s1900_s7] sm:$0xe]  ;;  %v1797_v3 = vld [vmem:[%s2125_s1 + $0x28] sm:$0xff]   ;;  %v1803_v12 = vld [vmem:[%s2125_s1 + $0x30] sm:$0xff]  }
  0x1d   : >> { %v681_v39 = vor.u32 %v680_v30, %v676_v22  ;;  %v237_v41 = vsel %vm217_vm0, %v232_v27, %v236_v35  ;;  %v240_v42 = vor.u32 %v238_v33, %v236_v35  ;;  %v244_v50 = vrot.slane %v242_v43, 1  ;;  %v1799_v14 = vld [vmem:[%s1900_s7 + $0x18] ss:$0 sps:$4 sm:$0x33]   ;;  %v2026_v23 = vld [vmem:[%s1900_s7 + $0x48] sm:$0xff]  }
  0x1e   : >> { %v229_v34 = vsel %vm217_vm0, %v224_v26, %v228_v19  ;;  %v692_v46 = vsel %vm217_vm0, %v688_v40, %v1945_v36  ;;  %v1490_v51 = vcombine.low %v1485_v48, %v1453_v11  ;;  %v809_v52 = vrot.slane %v1926_v17, 1  ;;  %v2022_v19 = vld [vmem:[%s1900_s7 + $0x40] sm:$0xff]   ;;  %v1808_v24 = vld [vmem:[%s2125_s1 + $0x78] sm:$0xff]   ;;  %v1810_v33 = vld [vmem:[%s1900_s7 + $0x50] ss:$0 sps:$4 sm:$0x77]  }
  0x1f   : >> { %1620 = vmatprep.mubr.msk.bf16.mxu1 %vm261_vm1, %v229_v34  ;;  %v685_v45 = vsel %vm217_vm0, %v681_v39, %v684_v31  ;;  %v245_v53 = vsel %vm217_vm0, %v240_v42, %v244_v50  ;;  %v248_v56 = vor.u32 %v246_v47, %v244_v50  ;;  %v811_v59 = vrot.slane %v1932_v21, 1  ;;  %v1807_v29 = vld [vmem:[%s2125_s1 + $0x38] sm:$0xff]   ;;  %v1806_v34 = vld [vmem:[%s1900_s7 + $0x50] ss:$0 sps:$4 sm:$0x33]   ;;  %v1811_v48 = vld [vmem:[%s2125_s1 + $0x88] sm:$0xff]  }
  0x20   : >> { %1621 = vmatmul.mubr.msk.bf16.vlgmr.msra.gmra.mrb[0].mxu1 %vm261_vm1, %v237_v41  ;;  %1668 = vmatprep.mubr.msk.bf16.mxu0 %vm261_vm1, %v685_v45  ;;  %v808_v54 = vrot.slane %v1490_v51, 1  ;;  %v813_v60 = vrot.slane %v1973_v55, 1  ;;  %v1445_v5 = vcombine.low %v426_v63, %v1905_v6  ;;  %v437_v11 = vrot.slane %v1911_v8, 1  ;;  %v1530_v45 = vld [vmem:[%s1900_s7 + $0x38] sm:$0xe] }
  0x21   : >> { %1629 = vmatpush3.bf16.msra.mxu1 %v1784_v9  ;;  %1669 = vmatmul.mubr.msk.bf16.vlgmr.msra.gmra.mrb[0].mxu0 %vm261_vm1, %v692_v46  ;;  %v812_v61 = vsel %vm435_vm2, %v809_v52, %v811_v59  ;;  %v2002_v9 = vld [vmem:[%s1900_s7 + $0x3c] sm:$0xf]  ;;  %v439_v18 = vrot.slane %v1929_v20, 1  ;;  %v441_v22 = vrot.slane %v1948_v37, 1  ;;  %v1054_v27 = vshll.u32 %v2022_v19, 16 }
  0x22   : >> { %1630 = vmatprep.subr.bf16.mxu1 %v1791_v38  ;;  %1677 = vmatpush3.bf16.msra.mxu0 %v1789_v32  ;;  %v810_v58 = vsel %vm435_vm2, %v808_v54, %v809_v52  ;;  %v814_v1 = vsel %vm435_vm2, %v811_v59, %v813_v60  ;;  %v436_v6 = vrot.slane %v1445_v5, 1  ;;  %v1809_v32 = vld [vmem:[%s2125_s1 + $0x80] sm:$0xff]   ;;  %v1061_v35 = vshll.u32 %v2026_v23, 16 }
  0x23   : >> { %1624 = vmatprep.mubr.msk.bf16.mxu1 %vm261_vm1, %v245_v53  ;;  %1678 = vmatprep.subr.bf16.mxu0 %v1792_v44  ;;  %v440_v28 = vsel %vm435_vm2, %v437_v11, %v439_v18  ;;  %v1056_v31 = vrot.slane %v1054_v27, 1  ;;  %v1058_v37 = vshrl.u32 %v2022_v19, 16  ;;  %v1065_v39 = vshrl.u32 %v2026_v23, 16 }
  0x24   : >> { %1680 = vmatprep.mubr.msk.bf16.mxu0 %vm261_vm1, %v810_v58  ;;  %v438_v15 = vsel %vm435_vm2, %v436_v6, %v437_v11  ;;  %v1069_v40 = vshll.u32 %v1810_v33, 16  ;;  %v1063_v41 = vrot.slane %v1061_v35, 1  ;;  %v1073_v50 = vshrl.u32 %v1810_v33, 16  ;;  %v1812_v58 = vld [vmem:[%s1900_s7 + $0x34] ss:$0 sps:$4 sm:$0x33]  }
  0x25   : >> { %1631 = vmatpush3.bf16.msra.mxu1 %v1791_v38  ;;  %v1060_v42 = vor.u32 %v1058_v37, %v1056_v31  ;;  %v693_v51 = vshrl.u32 %v1932_v21, 16  ;;  %v697_v52 = vshll.u32 %v1973_v55, 16  ;;  %v1181_v53 = vrot.slane %v2022_v19, 1 }
  0x26   : >> { %1640 = vmatprep.subr.bf16.mxu1 %v1794_v49  ;;  %1679 = vmatpush3.bf16.msra.mxu0 %v1792_v44  ;;  %v1067_v43 = vor.u32 %v1065_v39, %v1063_v41  ;;  %v1071_v44 = vrot.slane %v1069_v40, 1 }
  0x27   : >> { %1688 = vmatprep.subr.bf16.mxu0 %v1795_v57  ;;  %v1064_v46 = vsel %vm217_vm0, %v1060_v42, %v1063_v41 }
  0x28   : >> { %1625 = vmatmul.mubr.msk.bf16.gmra.mrb[4].mxu1 %vm261_vm1, %v248_v56  ;;  %v1072_v47 = vsel %vm217_vm0, %v1067_v43, %v1071_v44  ;;  %v1075_v54 = vor.u32 %v1073_v50, %v1071_v44  ;;  %v695_v56 = vor.u32 %v693_v51, %v1945_v36  ;;  %v1185_v36 = vrot.slane %v1810_v33, 1 }
  0x29   : >> { %1632 = vmatprep.mubr.msk.bf16.mxu1 %vm261_vm1, %v1908_v7  ;;  %v1497_v7 = vld [vmem:[%s1900_s7 + $0x38] sm:$0xf]  ;;  %s2099_s7 = scalar_lea.vmem %s1871_s23, %s1553_s4 }
  0x2a   : >> { %v1508_v13 = vcombine.low %v1497_v7, %v2002_v9 }
  0x2c   : >> { %v1048_v25 = vshrl.u32 %v1508_v13, 16 }
  0x2d   : >> { %1681 = vmatmul.mubr.msk.bf16.vlgmr.msra.gmra.mrb[0].mxu0 %vm261_vm1, %v812_v61 }
  0x2e   : >> { %1689 = vmatpush3.bf16.msra.mxu0 %v1795_v57  ;;  %1684 = vmatprep.mubr.msk.bf16.mxu0 %vm261_vm1, %v814_v1  ;;  %v699_v57 = vrot.slane %v697_v52, 1 }
  0x2f   : >> { %1690 = vmatprep.subr.bf16.mxu0 %v1798_v62 }
  0x30   : >> { %1633 = vmatmul.mubr.msk.bf16.vlgmr.msra.gmra.mrb[0].mxu1 %vm261_vm1, %v1911_v8  ;;  %v1050_v8 = vshll.u32 %v1508_v13, 16 }
  0x31   : >> { %1641 = vmatpush3.bf16.msra.mxu1 %v1794_v49  ;;  %1636 = vmatprep.mubr.msk.bf16.mxu1 %vm261_vm1, %v1929_v20  ;;  %v442_v20 = vsel %vm435_vm2, %v439_v18, %v441_v22  ;;  %v1535_v49 = vcombine.low %v1530_v45, %v2002_v9 }
  0x32   : >> { %1642 = vmatprep.subr.bf16.mxu1 %v1797_v3  ;;  %1691 = vmatpush3.bf16.msra.mxu0 %v1798_v62  ;;  %v1052_v26 = vrot.slane %v1050_v8, 1 }
  0x33   : >> { %1700 = vmatprep.subr.bf16.mxu0 %v1804_v10 }
  0x34   : >> { %v1053_v30 = vor.u32 %v1052_v26, %v1048_v25 }
  0x35   : >> { %1643 = vmatpush3.bf16.msra.mxu1 %v1797_v3  ;;  %1685 = vmatmul.mubr.msk.bf16.gmra.mrb[4].mxu0 %vm261_vm1, %v813_v60 }
  0x36   : >> { %1652 = vmatprep.subr.bf16.mxu1 %v1803_v12  ;;  %1692 = vmatprep.mubr.msk.bf16.mxu0 %vm261_vm1, %v1508_v13  ;;  %v1057_v38 = vsel %vm217_vm0, %v1053_v30, %v1056_v31 }
  0x38   : >> { %1637 = vmatmul.mubr.msk.bf16.gmra.mrb[8].mxu1 %vm261_vm1, %v1799_v14 }
  0x39   : >> { %1644 = vmatprep.mubr.msk.bf16.mxu1 %vm261_vm1, %v438_v15 }
  0x3d   : >> { %1693 = vmatmul.mubr.msk.bf16.vlgmr.msra.gmra.mrb[0].mxu0 %vm261_vm1, %v2022_v19 }
  0x3e   : >> { %1701 = vmatpush3.bf16.msra.mxu0 %v1804_v10  ;;  %1696 = vmatprep.mubr.msk.bf16.mxu0 %vm261_vm1, %v2026_v23 }
  0x3f   : >> { %1702 = vmatprep.subr.bf16.mxu0 %v1808_v24 }
  0x40   : >> { %1645 = vmatmul.mubr.msk.bf16.vlgmr.msra.gmra.mrb[0].mxu1 %vm261_vm1, %v440_v28 }
  0x41   : >> { %1653 = vmatpush3.bf16.msra.mxu1 %v1803_v12  ;;  %1648 = vmatprep.mubr.msk.bf16.mxu1 %vm261_vm1, %v442_v20 }
  0x42   : >> { %1654 = vmatprep.subr.bf16.mxu1 %v1807_v29  ;;  %1703 = vmatpush3.bf16.msra.mxu0 %v1808_v24 }
  0x43   : >> { %1712 = vmatprep.subr.bf16.mxu0 %v1809_v32 }
  0x45   : >> { %1655 = vmatpush3.bf16.msra.mxu1 %v1807_v29  ;;  %1697 = vmatmul.mubr.msk.bf16.gmra.mrb[8].mxu0 %vm261_vm1, %v1806_v34 }
  0x46   : >> { %1724 = vmatprep.subr.bf16.mxu1 %v1884_v2  ;;  %1704 = vmatprep.mubr.msk.bf16.mxu0 %vm261_vm1, %v1057_v38 }
  0x48   : >> { %1649 = vmatmul.mubr.msk.bf16.gmra.mrb[12].mxu1 %vm261_vm1, %v441_v22 }
  0x49   : >> { %1656 = vmatprep.mubr.msk.bf16.mxu1 %vm261_vm1, %v1923_v16  ;;  %v1180_v16 = vrot.slane %v1535_v49, 1 }
  0x4b   : >> { %v1182_v59 = vsel %vm435_vm2, %v1180_v16, %v1181_v53 }
  0x4d   : >> { %1705 = vmatmul.mubr.msk.bf16.vlgmr.msra.gmra.mrb[0].mxu0 %vm261_vm1, %v1064_v46 }
  0x4e   : >> { %1713 = vmatpush3.bf16.msra.mxu0 %v1809_v32  ;;  %1708 = vmatprep.mubr.msk.bf16.mxu0 %vm261_vm1, %v1072_v47 }
  0x4f   : >> { %1714 = vmatprep.subr.bf16.mxu0 %v1811_v48 }
  0x50   : >> { %1657 = vmatmul.mubr.msk.bf16.vlgmr.msra.gmra.mrb[0].mxu1 %vm261_vm1, %v1926_v17  ;;  %v700_v17 = vsel %vm217_vm0, %v695_v56, %v699_v57 }
  0x51   : >> { %1726 = vmatpush3.bf16.msra.mxu1 %v1884_v2  ;;  %1660 = vmatprep.mubr.msk.bf16.mxu1 %vm261_vm1, %v1932_v21  ;;  %v1183_v2 = vrot.slane %v2026_v23, 1  ;;  %v701_v21 = vshrl.u32 %v1973_v55, 16 }
  0x52   : >> { %1725 = vmatprep.subr.bf16.mxu1 %v1894_v4  ;;  %1715 = vmatpush3.bf16.msra.mxu0 %v1811_v48 }
  0x53   : >> { %v1184_v60 = vsel %vm435_vm2, %v1181_v53, %v1183_v2  ;;  %v703_v61 = vor.u32 %v701_v21, %v699_v57 }
  0x55   : >> { %1727 = vmatpush3.bf16.msra.mxu1 %v1894_v4  ;;  %1709 = vmatmul.mubr.msk.bf16.gmra.mrb[12].mxu0 %vm261_vm1, %v1075_v54  ;;  %v1186_v4 = vsel %vm435_vm2, %v1183_v2, %v1185_v36 }
  0x56   : >> { %1716 = vmatprep.mubr.msk.bf16.mxu0 %vm261_vm1, %v1182_v59 }
  0x58   : >> { %1661 = vmatmul.mubr.msk.bf16.gmra.mrb[16].mxu1 %vm261_vm1, %v1812_v58 }
  0x59   : >> { %1672 = vmatprep.mubr.msk.bf16.mxu1 %vm261_vm1, %v700_v17 }
  0x5d   : >> { %1717 = vmatmul.mubr.msk.bf16.vlgmr.msra.gmra.mrb[0].mxu0 %vm261_vm1, %v1184_v60 }
  0x5e   : >> { %1720 = vmatprep.mubr.msk.bf16.mxu0 %vm261_vm1, %v1186_v4 }
  0x60   : >> { %1673 = vmatmul.mubr.msk.bf16.vlgmr.msra.gmra.mrb[20].mxu1 %vm261_vm1, %v703_v61 }
  0x65   : >> { %1721 = vmatmul.mubr.msk.bf16.gmra.mrb[16].mxu0 %vm261_vm1, %v1185_v36 }
  0xfb   : >> { %v1626_v62 = vpop.f32.mrb[4].mxu1 }
  0xfc   : >> { %v324_v63 = vpop.f32.mrb[5].mxu1 }
  0xfd   : >> { %v1627_v1 = vpop.f32.mrb[6].mxu1 }
  0xfe   : >> { %v327_v55 = vpop.f32.mrb[7].mxu1 }
 0x108   : >> { %v1686_v3 = vpop.f32.mrb[4].mxu0 }
 0x109   : >> { %v889_v5 = vpop.f32.mrb[5].mxu0 }
 0x10a   : >> { %v1687_v7 = vpop.f32.mrb[6].mxu0 }
 0x10b   : >> { %v1638_v9 = vpop.f32.mrb[8].mxu1  ;;  %v892_v6 = vpop.f32.mrb[7].mxu0 }
 0x10c   : >> { %v421_v10 = vadd.f32 %v1638_v9, %v1626_v62  ;;  %v412_v11 = vpop.f32.mrb[9].mxu1 }
 0x10d   : >> { %v413_v12 = vadd.f32 %v412_v11, %v324_v63  ;;  %v1639_v13 = vpop.f32.mrb[10].mxu1 }
 0x10e   : >> { %v415_v14 = vpop.f32.mrb[11].mxu1 }
 0x10f   : >> { %v416_v15 = vadd.f32 %v415_v14, %v327_v55 }
 0x118   : >> { %v1698_v8 = vpop.f32.mrb[8].mxu0 }
 0x119   : >> { %v1018_v18 = vpop.f32.mrb[9].mxu0 }
 0x11a   : >> { %v1699_v19 = vpop.f32.mrb[10].mxu0 }
 0x11b   : >> { %v1650_v22 = vpop.f32.mrb[12].mxu1  ;;  %v1021_v24 = vpop.f32.mrb[11].mxu0 }
 0x11c   : >> { %v537_v23 = vadd.f32 %v1650_v22, %v421_v10  ;;  %v517_v25 = vpop.f32.mrb[13].mxu1 }
 0x11d   : >> { %v535_v26 = vadd.f32 %v517_v25, %v413_v12  ;;  %v1651_v27 = vpop.f32.mrb[14].mxu1 }
 0x11e   : >> { %v520_v28 = vpop.f32.mrb[15].mxu1 }
 0x11f   : >> { %v536_v20 = vadd.f32 %v520_v28, %v416_v15 }
 0x123   : >> { %v1658_v29 = vpop.f32.mrb[0].mxu1 }
 0x124   : >> { %v630_v30 = vpop.f32.mrb[1].mxu1 }
 0x125   : >> { %v1659_v31 = vpop.f32.mrb[2].mxu1 }
 0x126   : >> { %v633_v32 = vpop.f32.mrb[3].mxu1 }
 0x128   : >> { %v1710_v33 = vpop.f32.mrb[12].mxu0 }
 0x129   : >> { %v1150_v34 = vpop.f32.mrb[13].mxu0 }
 0x12a   : >> { %v1711_v35 = vpop.f32.mrb[14].mxu0 }
 0x12b   : >> { %v1662_v37 = vpop.f32.mrb[16].mxu1  ;;  %v1153_v39 = vpop.f32.mrb[15].mxu0 }
 0x12c   : >> { %v666_v38 = vadd.f32 %v1662_v37, %v537_v23  ;;  %v646_v40 = vpop.f32.mrb[17].mxu1 }
 0x12d   : >> { %v664_v41 = vadd.f32 %v646_v40, %v535_v26  ;;  %v1663_v42 = vpop.f32.mrb[18].mxu1 }
 0x12e   : >> { %v649_v43 = vpop.f32.mrb[19].mxu1 }
 0x12f   : >> { %v665_v44 = vadd.f32 %v649_v43, %v536_v20 }
 0x130   : >> { %v1718_v45 = vpop.f32.mrb[0].mxu0 }
 0x131   : >> { %v1728_v46 = vadd.f32 %v1718_v45, %v1658_v29  ;;  %v1245_v47 = vpop.f32.mrb[1].mxu0 }
 0x132   : >> { %v1729_v48 = vadd.f32 %v1245_v47, %v630_v30  ;;  %v1719_v49 = vpop.f32.mrb[2].mxu0 }
 0x133   : >> { %v1674_v50 = vpop.f32.mrb[20].mxu1  ;;  %v1290_v51 = vadd.f32 %v1728_v46, %v1861_v0  ;;  %v1730_v52 = vadd.f32 %v1719_v49, %v1659_v31  ;;  %v1248_v16 = vpop.f32.mrb[3].mxu0 }
 0x134   : >> { %v798_v53 = vadd.f32 %v1674_v50, %v666_v38  ;;  %v778_v54 = vpop.f32.mrb[21].mxu1  ;;  %v1288_v56 = vadd.f32 %v1729_v48, %v1861_v0  ;;  %v1731_v57 = vadd.f32 %v1248_v16, %v633_v32 }
 0x135   : >> { %v796_v58 = vadd.f32 %v778_v54, %v664_v41  ;;  %v1675_v59 = vpop.f32.mrb[22].mxu1  ;;  %v1297_v17 = vmax.f32 %v1290_v51, 0.0  ;;  %v1291_v2 = vadd.f32 %v1730_v52, %v1861_v0 }
 0x136   : >> { %v909_v21 = vadd.f32 %v1686_v3, %v798_v53  ;;  %v781_v36 = vpop.f32.mrb[23].mxu1  ;;  %v1295_v60 = vmax.f32 %v1288_v56, 0.0  ;;  %v1289_v61 = vadd.f32 %v1731_v57, %v1861_v0 }
 0x137   : >> { %v907_v4 = vadd.f32 %v889_v5, %v796_v58  ;;  %v797_v62 = vadd.f32 %v781_v36, %v665_v44  ;;  %v1556_v63 = vpack.c.bf16 %v1297_v17, %v1297_v17  ;;  %v1298_v1 = vmax.f32 %v1291_v2, 0.0 }
 0x138   : >> { %v1038_v55 = vadd.f32 %v1698_v8, %v909_v21  ;;  %v1554_v7 = vpack.c.bf16 %v1295_v60, %v1295_v60  ;;  %v1296_v9 = vmax.f32 %v1289_v61, 0.0  ;;  %v1722_v3 = vpop.f32.mrb[16].mxu0 }
 0x139   : >> { %v908_v10 = vadd.f32 %v892_v6, %v797_v62  ;;  %v1036_v11 = vadd.f32 %v1018_v18, %v907_v4  ;;  %1336 = vst.msk [vmem:[%s2099_s7 + $0x8] sm:$0xf] %vm1333_vm3, %v1556_v63  ;;  %v1557_v12 = vpack.c.bf16 %v1298_v1, %v1298_v1  ;;  %v1261_v14 = vpop.f32.mrb[17].mxu0 }
 0x13a   : >> { %v1170_v13 = vadd.f32 %v1710_v33, %v1038_v55  ;;  %1334 = vst.msk [vmem:[%s2099_s7] sm:$0xf] %vm1333_vm3, %v1554_v7  ;;  %v1555_v15 = vpack.c.bf16 %v1296_v9, %v1296_v9  ;;  %v1723_v19 = vpop.f32.mrb[18].mxu0 }
 0x13b   : >> { %v1168_v5 = vadd.f32 %v1150_v34, %v1036_v11  ;;  %v1037_v22 = vadd.f32 %v1021_v24, %v908_v10  ;;  %1337 = vst.msk [vmem:[%s2099_s7 + $0xc] sm:$0xf] %vm1333_vm3, %v1557_v12  ;;  %v1264_v23 = vpop.f32.mrb[19].mxu0 }
 0x13c   : >> { %v1281_v8 = vadd.f32 %v1722_v3, %v1170_v13  ;;  %1335 = vst.msk [vmem:[%s2099_s7 + $0x4] sm:$0xf] %vm1333_vm3, %v1555_v15 }
 0x13d   : >> { %v1279_v6 = vadd.f32 %v1261_v14, %v1168_v5  ;;  %v1169_v18 = vadd.f32 %v1153_v39, %v1037_v22 }
 0x13e   : >> { %v1294_v25 = vadd.f32 %v1861_v0, %v1281_v8 }
 0x13f   : >> { %v1292_v26 = vadd.f32 %v1861_v0, %v1279_v6  ;;  %v1280_v27 = vadd.f32 %v1264_v23, %v1169_v18 }
 0x140   : >> { %v1301_v28 = vmax.f32 %v1294_v25, 0.0 }
 0x141   : >> { %v1299_v20 = vmax.f32 %v1292_v26, 0.0  ;;  %v1293_v24 = vadd.f32 %v1861_v0, %v1280_v27  ;;  %177 = sbr.rel (!%p175_p4) target bundleno = 18 (0x12), region = 81 }
 0x142   : >> { %v1560_v29 = vpack.c.bf16 %v1301_v28, %v1301_v28 }
 0x143   : >> { %v1558_v30 = vpack.c.bf16 %v1299_v20, %v1299_v20  ;;  %v1300_v31 = vmax.f32 %v1293_v24, 0.0 }
 0x144   : >> { %1341 = vst.msk [vmem:[%s2099_s7 + $0x18] sm:$0x3] %vm1340_vm4, %v1560_v29 }
 0x145   : >> { %1338 = vst.msk [vmem:[%s2099_s7 + $0x10] sm:$0xf] %vm1333_vm3, %v1558_v30  ;;  %v1559_v32 = vpack.c.bf16 %v1300_v31, %v1300_v31 }
 0x147   : >> { %1339 = vst.msk [vmem:[%s2099_s7 + $0x14] sm:$0xf] %vm1333_vm3, %v1559_v32 }
 0x148 PF: > { %s13_s12 = sadd.s32 1, %s1824_s12  }
 0x149   : > { %p10_p5 = scmp.ge.s32.totalorder %s13_s12, 4  }
 0x14b   :  { %12 = sbr.rel (!%p10_p5) target bundleno = 1 (0x1), region = 92 }

// kernel: mynet1_forward.9
= control target key start
LH: loop header
LB: loop body
LE: loop exit
PB: predicated region body
PF: predicated region fallthrough
CT: control target
= control target key end

     0   :  { %s3875_s12 = smov 0   ;;  %s4769_s0 = inlined_call_operand.vmem [shape: bf16[2,56,56,3], index: 0, kind: input, shape index: {}]   ;;  %s4770_s1 = inlined_call_operand.vmem [shape: bf16[25,3,32], index: 1, kind: input, shape index: {}]   ;;  %s4771_s2 = inlined_call_operand.vmem [shape: f32[1,32], index: 2, kind: input, shape index: {}]   ;;  %s4772_s3 = inlined_call_operand.vmem [shape: bf16[2,52,52,32], index: 3, kind: output, shape index: {}]  }
   0x1 LB: > { %s3068_s13 = sadd.s32 4294967295, %s3848_s12   ;;  %p3072_p0 = scmp.ge.s32.totalorder %s3848_s12, 1  ;;  %s3848_s12 = sphi %s3875_s12, %s13_s12  }
   0x2   : > { %p137_p1 = scmp.lt.s32.totalorder %s3848_s12, 3 }
   0x4   : > { %p138_p2 = pnand %p3072_p0, %p137_p1 }
   0x5   : > { %p161_p3 = scmp.lt.s32.totalorder (!%p138_p2), %s3068_s13, 1  ;;  %v3886_v0 = vld [vmem:[%s4771_s2] ss:$0 sm:$0xff] (!%p138_p2)  ;;  %s3898_s24 = smov (!%p138_p2), 0  }
   0x6   : > { %141 = sbr.rel (%p138_p2) target bundleno = 474 (0x1da), region = 32  ;;  %4793 = vst [vmem:[#allocation2_spill] sm:$0xff] (!%p138_p2), %v3886_v0 }
   0xd   : > { %s4819_s13 = smov (!%p161_p3, %s3068_s13), 1 }
   0xe   : > { %s3777_s16 = smul.u32 1568, %s4819_s13 }
   0xf   : > { %s3778_s17 = smul.u32 1456, %s4819_s13 }
  0x10   : > { %s3891_s20 = scalar_lea.vmem %s4769_s0, %s3777_s16 }
  0x11   : > { %s3896_s23 = scalar_lea.vmem %s4772_s3, %s3778_s17 }
  0x12 LB: >> { %vm256_vm0 = vcmask 1040384   ;;  %vm257_vm1 = vcmask 1041408   ;;  %v3176_v1 = vld [vmem:[%s4770_s1 + $0x18] sm:$0x3]  ;;  %v3854_v2 = vmov 65535   ;;  %s3295_s29 = smul.u32 28, %s3852_s24  ;;  %s3852_s24 = sphi %s3898_s24, %s178_s24  }
  0x13   : >> { %v258_v3 = vsel %vm256_vm0, 4294967295, %v3854_v2  ;;  %v3076_v4 = vld [vmem:[%s4770_s1 + $0x2] sm:$0x3]  ;;  %v189_v6 = vld [vmem:[%s4770_s1] sm:$0x3]  ;;  %vm243_vm3 = vcmask 23552  }
  0x14   : >> { %v3909_v5 = vsel %vm257_vm1, %v258_v3, 0  ;;  %v3183_v7 = vld [vmem:[%s4770_s1 + $0x1a] sm:$0x3]  ;;  %s3929_s7 = scalar_lea.vmem %s3891_s20, %s3295_s29  ;;  %vm211_vm2 = vsmask.f32 7424  ;;  %vm412_vm4 = vcmask 1046528  }
  0x15   : >> { %v3919_v8 = vand.u32 %v3176_v1, %v3909_v5  ;;  %v261_v9 = vand.u32 %v3076_v4, %v3909_v5  ;;  %v3923_v10 = vand.u32 %v3909_v5, %v189_v6  ;;  %v1656_v11 = vand.u32 %v3183_v7, %v3909_v5  ;;  %v3933_v12 = vld [vmem:[%s3929_s7 + $0x3c] sm:$0xf]  ;;  %v3940_v14 = vld [vmem:[%s3929_s7 + $0x40] sm:$0xff]   ;;  %v3175_v15 = vld [vmem:[%s3929_s7 + $0x38] sm:$0xe]  ;;  %s178_s24 = sadd.s32 1, %s3852_s24  }
  0x16   : >> { %v3190_v13 = vld [vmem:[%s4770_s1 + $0x1c] sm:$0x3]  ;;  %v3177_v16 = vcombine.low %v3175_v15, %v3933_v12  ;;  %v3945_v17 = vld [vmem:[%s3929_s7 + $0x48] sm:$0xff]   ;;  %v182_v18 = vld [vmem:[%s3929_s7] sm:$0xf]  ;;  %v1520_v19 = vrot.slane %v3940_v14, 1 }
  0x17   : >> { %4794 = vst [vmem:[#allocation3_spill] sm:$0xff] %v3919_v8  ;;  %3549 = vmatprep.subr.bf16.mxu0 %v3919_v8  ;;  %3429 = vmatprep.subr.bf16.mxu1 %v261_v9  ;;  %v3951_v20 = vld [vmem:[%s3929_s7 + $0x4] sm:$0xf]  ;;  %v3954_v21 = vld [vmem:[%s3929_s7 + $0x8] sm:$0xff]   ;;  %v4773_v23 = vrot.slane %v3945_v17, 1  ;;  %v3963_v27 = vld [vmem:[%s3929_s7 + $0x10] sm:$0xff]   ;;  %v3966_v28 = vand.u32 %v3190_v13, %v3909_v5 }
  0x18   : >> { %3550 = vmatpush3.bf16.msra.mxu0 %v3919_v8  ;;  %3430 = vmatpush3.bf16.msra.mxu1 %v261_v9  ;;  %v1519_v22 = vrot.slane %v3177_v16, 1  ;;  %v3958_v24 = vcombine.low %v182_v18, %v3951_v20  ;;  %v220_v25 = vshll.u32 %v3954_v21, 16  ;;  %v224_v26 = vshrl.u32 %v3954_v21, 16  ;;  %v3979_v35 = vld [vmem:[%s3929_s7 + $0x18] ss:$0 sps:$4 sm:$0x77]  }
  0x19   : >> { %3439 = vmatprep.subr.bf16.mxu1 %v3923_v10  ;;  %3559 = vmatprep.subr.bf16.mxu0 %v1656_v11  ;;  %v1523_v30 = vsel %vm412_vm4, %v1520_v19, %v4773_v23  ;;  %v228_v34 = vshll.u32 %v3963_v27, 16  ;;  %v1405_v36 = vshll.u32 %v3940_v14, 16  ;;  %v232_v38 = vshrl.u32 %v3963_v27, 16  ;;  %v3090_v44 = vld [vmem:[%s4770_s1 + $0x4] sm:$0x3]  ;;  %p175_p4 = scmp.ge.s32.totalorder %s178_s24, 52  }
  0x1a   : >> { %v1521_v29 = vsel %vm412_vm4, %v1519_v22, %v1520_v19  ;;  %v213_v31 = vshrl.u32 %v3958_v24, 16  ;;  %v215_v32 = vshll.u32 %v3958_v24, 16  ;;  %v222_v33 = vrot.slane %v220_v25, 1  ;;  %v3994_v45 = vld [vmem:[%s3929_s7 + $0x50] ss:$0 sps:$4 sm:$0xff]  }
  0x1b   : >> { %3551 = vmatprep.mubr.msk.bf16.mxu0 %vm243_vm3, %v1521_v29  ;;  %v4787_v39 = vshrl.u32 %v3940_v14, 16  ;;  %v1619_v40 = vshrl.u32 %v3177_v16, 16  ;;  %v230_v42 = vrot.slane %v228_v34, 1  ;;  %v236_v43 = vshll.u32 %v3979_v35, 16  ;;  %v3189_v2 = vld [vmem:[%s3929_s7 + $0x38] sm:$0xc] }
  0x1c   : >> { %3552 = vmatmul.mubr.msk.bf16.vlgmr.msra.gmra.mrb[0].mxu0 %vm243_vm3, %v1523_v30  ;;  %v217_v37 = vrot.slane %v215_v32, 1  ;;  %v226_v41 = vor.u32 %v224_v26, %v222_v33  ;;  %vm512_vm5 = vsmask.f32 6400  ;;  %v1622_v48 = vshll.u32 %v3177_v16, 16  ;;  %v3203_v3 = vld [vmem:[%s4770_s1 + $0x1e] sm:$0x3] }
  0x1d   : >> { %3560 = vmatpush3.bf16.msra.mxu0 %v1656_v11  ;;  %v1621_v47 = vrot.slane %v1619_v40, 1  ;;  %v234_v50 = vor.u32 %v232_v38, %v230_v42  ;;  %v238_v51 = vrot.slane %v236_v43, 1  ;;  %v1626_v52 = vrot.slane %v4787_v39, 1  ;;  %v3096_v32 = vld [vmem:[%s4770_s1 + $0x6] sm:$0x3] }
  0x1e   : >> { %v218_v46 = vor.u32 %v217_v37, %v213_v31  ;;  %3569 = vmatprep.subr.bf16.mxu0 %v3966_v28  ;;  %v231_v49 = vsel %vm211_vm2, %v226_v41, %v230_v42  ;;  %v1624_v54 = vrot.slane %v1622_v48, 2  ;;  %v1627_v55 = vrot.slane %v1405_v36, 2  ;;  %v406_v31 = vld [vmem:[%s3929_s7] sm:$0xe]  ;;  %v3219_v41 = vld [vmem:[%s3929_s7 + $0x54] sm:$0xe] }
  0x1f   : >> { %v433_v56 = vand.u32 %v3090_v44, %v3909_v5  ;;  %v239_v57 = vsel %vm211_vm2, %v234_v50, %v238_v51  ;;  %v4785_v58 = vshll.u32 %v3945_v17, 16  ;;  %v4781_v59 = vshrl.u32 %v3945_v17, 16  ;;  %v3213_v42 = vld [vmem:[%s4770_s1 + $0x20] sm:$0x3] }
  0x20   : >> { %v223_v53 = vsel %vm211_vm2, %v218_v46, %v222_v33  ;;  %v1635_v60 = vshrl.u32 %v3994_v45, 16  ;;  %v1625_v61 = vor.u32 %v1624_v54, %v1621_v47  ;;  %v1628_v62 = vor.u32 %v1627_v55, %v1626_v52  ;;  %v4061_v46 = vld [vmem:[%s3929_s7 + $0x5c] sm:$0xff]   ;;  %v3805_v48 = vld [vmem:[%s3929_s7 + $0x18] ss:$0 sps:$4 sm:$0x33]  }
  0x21   : >> { %3431 = vmatprep.mubr.msk.bf16.mxu1 %vm243_vm3, %v223_v53  ;;  %v240_v63 = vshrl.u32 %v3979_v35, 16  ;;  %v1638_v1 = vshll.u32 %v3994_v45, 16  ;;  %v1630_v4 = vrot.slane %v4781_v59, 1  ;;  %v1631_v6 = vrot.slane %v4785_v58, 2 }
  0x22   : >> { %3432 = vmatmul.mubr.msk.bf16.vlgmr.msra.gmra.mrb[0].mxu1 %vm243_vm3, %v231_v49  ;;  %v1637_v7 = vrot.slane %v1635_v60, 1  ;;  %v1629_v9 = vsel %vm512_vm5, %v1625_v61, %v1628_v62  ;;  %v1872_v18 = vand.u32 %v3203_v3, %v3909_v5  ;;  %v1736_v30 = vrot.slane %v3940_v14, 2  ;;  %v3196_v3 = vld [vmem:[%s3929_s7 + $0x54] sm:$0xf] }
  0x23   : >> { %3440 = vmatpush3.bf16.msra.mxu1 %v3923_v10  ;;  %3435 = vmatprep.mubr.msk.bf16.mxu1 %vm243_vm3, %v239_v57  ;;  %v1640_v11 = vrot.slane %v1638_v1, 2  ;;  %v1632_v13 = vor.u32 %v1631_v6, %v1630_v4  ;;  %v242_v15 = vor.u32 %v240_v63, %v238_v51  ;;  %v3191_v10 = vcombine.low %v3189_v2, %v3933_v12  ;;  %v4086_v57 = vld [vmem:[%s3929_s7 + $0x64] sm:$0xff]   ;;  %v4350_v39 = vld [vmem:[%s3929_s7 + $0x50] ss:$0 sps:$4 sm:$0x77]  }
  0x24   : >> { %3449 = vmatprep.subr.bf16.mxu1 %v433_v56  ;;  %3561 = vmatprep.mubr.msk.bf16.mxu0 %vm243_vm3, %v1629_v9  ;;  %vm630_vm6 = vcmask 1045504   ;;  %v4045_v37 = vand.u32 %v3096_v32, %v3909_v5  ;;  %v1740_v40 = vrot.slane %v3994_v45, 2  ;;  %v414_v44 = vrot.slane %v3954_v21, 1  ;;  %v4065_v45 = vld [vmem:[%s3929_s7 + $0x58] sm:$0xf] }
  0x25   : >> { %v1641_v16 = vor.u32 %v1640_v11, %v1637_v7  ;;  %v1633_v19 = vsel %vm512_vm5, %v1628_v62, %v1632_v13  ;;  %v1735_v29 = vrot.slane %v3191_v10, 2  ;;  %v4070_v50 = vcombine.low %v3219_v41, %v4065_v45  ;;  %v4093_v62 = vld [vmem:[%s3929_s7 + $0x6c] ss:$0 sps:$4 sm:$0xff]   ;;  %v3102_v11 = vld [vmem:[%s4770_s1 + $0x8] sm:$0x3] }
  0x26   : >> { %v4073_v51 = vand.u32 %v3213_v42, %v3909_v5  ;;  %v1961_v52 = vshrl.u32 %v4061_v46, 16  ;;  %v522_v53 = vrot.slane %v220_v25, 2  ;;  %v4080_v54 = vrot.slane %v228_v34, 2 }
  0x27   : >> { %v1642_v22 = vsel %vm512_vm5, %v1632_v13, %v1641_v16  ;;  %v1737_v33 = vsel %vm630_vm6, %v1735_v29, %v1736_v30  ;;  %v1957_v55 = vshll.u32 %v4061_v46, 16  ;;  %v2171_v60 = vshrl.u32 %v4070_v50, 16 }
  0x28   : >> { %3562 = vmatmul.mubr.msk.bf16.vlgmr.msra.gmra.mrb[0].mxu0 %vm243_vm3, %v1633_v19  ;;  %v2174_v61 = vshll.u32 %v4070_v50, 16  ;;  %v2178_v25 = vrot.slane %v1961_v52, 1  ;;  %v4097_v34 = vrot.slane %v232_v38, 1  ;;  %v416_v63 = vrot.slane %v3963_v27, 1 }
  0x29   : >> { %3565 = vmatprep.mubr.msk.bf16.mxu0 %vm243_vm3, %v1642_v22  ;;  %3570 = vmatpush3.bf16.msra.mxu0 %v3966_v28  ;;  %v3091_v28 = vcombine.low %v406_v31, %v3951_v20  ;;  %v418_v1 = vrot.slane %v3979_v35, 1  ;;  %v2179_v2 = vrot.slane %v1957_v55, 2  ;;  %v1968_v38 = vshrl.u32 %v4086_v57, 16  ;;  %v3233_v22 = vld [vmem:[%s3929_s7 + $0x54] sm:$0xc] }
  0x2a   : >> { %3436 = vmatmul.mubr.msk.bf16.gmra.mrb[4].mxu1 %vm243_vm3, %v242_v15  ;;  %3579 = vmatprep.subr.bf16.mxu0 %v1872_v18  ;;  %v2173_v6 = vrot.slane %v2171_v60, 1  ;;  %v2176_v7 = vrot.slane %v2174_v61, 2  ;;  %v1964_v13 = vshll.u32 %v4086_v57, 16  ;;  %v2187_v19 = vshrl.u32 %v4093_v62, 16  ;;  %v3220_v61 = vld [vmem:[%s4770_s1 + $0x22] sm:$0x3] }
  0x2b   : >> { %3441 = vmatprep.mubr.msk.bf16.mxu1 %vm243_vm3, %v3958_v24  ;;  %v1738_v24 = vrot.slane %v3945_v17, 2  ;;  %v413_v43 = vrot.slane %v3091_v28, 1  ;;  %v514_v4 = vshrl.u32 %v3091_v28, 16  ;;  %v517_v9 = vshll.u32 %v3091_v28, 16 }
  0x2c   : >> { %v4113_v15 = vor.u32 %v2179_v2, %v2178_v25  ;;  %v2182_v10 = vrot.slane %v1968_v38, 1  ;;  %v4123_v29 = vcombine.low %v3196_v3, %v4065_v45  ;;  %v2190_v31 = vshll.u32 %v4093_v62, 16  ;;  %v4154_v25 = vld [vmem:[%s3929_s7 + $0x2c] sm:$0xff]  }
  0x2d   : >> { %v1739_v47 = vsel %vm630_vm6, %v1736_v30, %v1738_v24  ;;  %v1741_v49 = vsel %vm630_vm6, %v1738_v24, %v1740_v40  ;;  %v2183_v30 = vrot.slane %v1964_v13, 2  ;;  %v417_v32 = vsel %vm412_vm4, %v414_v44, %v416_v63  ;;  %v3811_v35 = vld [vmem:[%s3929_s7 + $0x6c] ss:$0 sps:$4 sm:$0x33]  }
  0x2e   : >> { %v2189_v24 = vrot.slane %v2187_v19, 1  ;;  %v516_v41 = vrot.slane %v514_v4, 1  ;;  %v519_v42 = vrot.slane %v517_v9, 2  ;;  %v1951_v3 = vshrl.u32 %v4123_v29, 16  ;;  %v4165_v4 = vld [vmem:[%s3929_s7 + $0x20] sm:$0xf] }
  0x2f   : >> { %vm2983_vm7 = vcmask 257024   ;;  %vm2990_vm8 = vcmask 254976  }
  0x30   : >> { %3566 = vmatmul.mubr.msk.bf16.gmra.mrb[4].mxu0 %vm243_vm3, %v1641_v16  ;;  %v4116_v16 = vld [vmem:[%s3929_s7 + $0x18] ss:$0 sps:$4 sm:$0xff]  }
  0x31   : >> { %3571 = vmatprep.mubr.msk.bf16.mxu0 %vm243_vm3, %v1737_v33  ;;  %v521_v33 = vrot.slane %v224_v26, 1  ;;  %v4141_v26 = vand.u32 %v3102_v11, %v3909_v5  ;;  %v530_v60 = vshrl.u32 %v4116_v16, 16 }
  0x32   : >> { %3442 = vmatmul.mubr.msk.bf16.vlgmr.msra.gmra.mrb[0].mxu1 %vm243_vm3, %v3954_v21 }
  0x33   : >> { %3450 = vmatpush3.bf16.msra.mxu1 %v433_v56  ;;  %3445 = vmatprep.mubr.msk.bf16.mxu1 %vm243_vm3, %v3963_v27  ;;  %v415_v56 = vsel %vm412_vm4, %v413_v43, %v414_v44  ;;  %v1953_v43 = vshll.u32 %v4123_v29, 16  ;;  %v419_v44 = vsel %vm412_vm4, %v416_v63, %v418_v1  ;;  %v4156_v63 = vor.u32 %v2183_v30, %v2182_v10  ;;  %v4173_v10 = vld [vmem:[%s3929_s7 + $0x24] sm:$0xff]  }
  0x34   : >> { %3459 = vmatprep.subr.bf16.mxu1 %v4045_v37  ;;  %v4161_v2 = vor.u32 %v522_v53, %v521_v33  ;;  %v4191_v30 = vand.u32 %v3220_v61, %v3909_v5  ;;  %v4196_v33 = vld [vmem:[%s3929_s7 + $0x34] ss:$0 sps:$4 sm:$0xff]  }
  0x35   : >> { %v1955_v9 = vrot.slane %v1953_v43, 1 }
  0x38   : >> { %3572 = vmatmul.mubr.msk.bf16.vlgmr.msra.gmra.mrb[0].mxu0 %vm243_vm3, %v1739_v47  ;;  %v2192_v47 = vrot.slane %v2190_v31, 2  ;;  %v4780_v31 = vshll.u32 %v4173_v10, 16 }
  0x39   : >> { %3575 = vmatprep.mubr.msk.bf16.mxu0 %vm243_vm3, %v1741_v49  ;;  %3580 = vmatpush3.bf16.msra.mxu0 %v1872_v18  ;;  %v2177_v18 = vor.u32 %v2176_v7, %v2173_v6  ;;  %v3235_v49 = vcombine.low %v3233_v22, %v4065_v45  ;;  %v520_v7 = vor.u32 %v519_v42, %v516_v41  ;;  %v4776_v22 = vrot.slane %v4086_v57, 2 }
  0x3a   : >> { %3446 = vmatmul.mubr.msk.bf16.gmra.mrb[8].mxu1 %vm243_vm3, %v3805_v48  ;;  %3589 = vmatprep.subr.bf16.mxu0 %v4073_v51  ;;  %v3131_v48 = vld [vmem:[%s3929_s7 + $0x1c] sm:$0xe]  ;;  %v4158_v45 = vor.u32 %v2192_v47, %v2189_v24  ;;  %v4779_v24 = vshll.u32 %v4154_v25, 16  ;;  %v532_v47 = vrot.slane %v530_v60, 1  ;;  %v1075_v23 = vrot.slane %v4780_v31, 2 }
  0x3b   : >> { %3451 = vmatprep.mubr.msk.bf16.mxu1 %vm243_vm3, %v415_v56  ;;  %v4133_v28 = vsel %vm512_vm5, %v2177_v18, %v4113_v15  ;;  %v4775_v56 = vrot.slane %v4061_v46, 2  ;;  %v2287_v6 = vrot.slane %v3235_v49, 2  ;;  %v4170_v11 = vcombine.low %v3131_v48, %v4165_v4  ;;  %v624_v18 = vld [vmem:[%s3929_s7] sm:$0xc] }
  0x3c   : >> { %v4178_v53 = vsel %vm512_vm5, %v4156_v63, %v4158_v45  ;;  %v524_v61 = vsel %vm512_vm5, %v520_v7, %v4161_v2  ;;  %v1079_v60 = vrot.slane %v4779_v24, 2  ;;  %v1083_v7 = vshrl.u32 %v4196_v33, 16 }
  0x3d   : >> { %v4186_v19 = vsel %vm630_vm6, %v2287_v6, %v4775_v56  ;;  %v1067_v43 = vshrl.u32 %v4170_v11, 16  ;;  %v1070_v48 = vshll.u32 %v4170_v11, 16 }
  0x3e   : >> { %v1085_v24 = vrot.slane %v1083_v7, 1  ;;  %v4283_v7 = vld [vmem:[%s3929_s7 + $0x80] sm:$0xff]  }
  0x3f   : >> { %v1069_v6 = vrot.slane %v1067_v43, 1  ;;  %v1072_v56 = vrot.slane %v1070_v48, 2  ;;  %v1086_v43 = vshll.u32 %v4196_v33, 16  ;;  %v527_v48 = vor.u32 %v4080_v54, %v4097_v34 }
  0x40   : >> { %3576 = vmatmul.mubr.msk.bf16.gmra.mrb[8].mxu0 %vm243_vm3, %v1740_v40  ;;  %v533_v40 = vshll.u32 %v4116_v16, 16 }
  0x41   : >> { %3581 = vmatprep.mubr.msk.bf16.mxu0 %vm243_vm3, %v4123_v29  ;;  %v4774_v29 = vrot.slane %v4093_v62, 2  ;;  %v1088_v31 = vrot.slane %v1086_v43, 2 }
  0x42   : >> { %3452 = vmatmul.mubr.msk.bf16.vlgmr.msra.gmra.mrb[0].mxu1 %vm243_vm3, %v417_v32  ;;  %v4778_v32 = vshrl.u32 %v4173_v10, 16 }
  0x43   : >> { %3460 = vmatpush3.bf16.msra.mxu1 %v4045_v37  ;;  %3455 = vmatprep.mubr.msk.bf16.mxu1 %vm243_vm3, %v419_v44  ;;  %v4777_v37 = vshrl.u32 %v4154_v25, 16  ;;  %v4206_v42 = vsel %vm630_vm6, %v4776_v22, %v4774_v29  ;;  %v535_v44 = vrot.slane %v533_v40, 2  ;;  %v3103_v40 = vcombine.low %v624_v18, %v3951_v20  ;;  %v4225_v29 = vld [vmem:[%s3929_s7 + $0x6c] ss:$0 sps:$4 sm:$0x77]  }
  0x44   : >> { %3469 = vmatprep.subr.bf16.mxu1 %v4141_v26  ;;  %v1074_v49 = vrot.slane %v4778_v32, 1  ;;  %v1956_v22 = vor.u32 %v1955_v9, %v1951_v3  ;;  %v3145_v18 = vld [vmem:[%s3929_s7 + $0x1c] sm:$0xc]  ;;  %v1073_v32 = vor.u32 %v1072_v56, %v1069_v6  ;;  %v3115_v3 = vld [vmem:[%s4770_s1 + $0xa] sm:$0x3]  ;;  %v1972_v54 = vshll.u32 %v4225_v29, 16 }
  0x45   : >> { %v1078_v41 = vrot.slane %v4777_v37, 1  ;;  %v1959_v37 = vrot.slane %v1957_v55, 1  ;;  %v4240_v59 = vor.u32 %v535_v44, %v532_v47  ;;  %v4784_v55 = vrot.slane %v3954_v21, 2 }
  0x46   : >> { %v4255_v56 = vor.u32 %v1088_v31, %v1085_v24  ;;  %v3147_v9 = vcombine.low %v3145_v18, %v4165_v4  ;;  %v631_v47 = vrot.slane %v3103_v40, 2  ;;  %v1184_v44 = vrot.slane %v4173_v10, 2  ;;  %v3263_v40 = vld [vmem:[%s3929_s7 + $0x70] sm:$0xe]  ;;  %v4297_v18 = vld [vmem:[%s3929_s7 + $0x78] sm:$0xff]  }
  0x47   : >> { %v1080_v20 = vor.u32 %v1079_v60, %v1078_v41  ;;  %v1963_v41 = vor.u32 %v1961_v52, %v1959_v37  ;;  %v4272_v52 = vand.u32 %v3115_v3, %v3909_v5  ;;  %v1186_v24 = vrot.slane %v4154_v25, 2 }
  0x48   : >> { %3582 = vmatmul.mubr.msk.bf16.vlgmr.msra.gmra.mrb[0].mxu0 %vm243_vm3, %v4061_v46  ;;  %v1183_v31 = vrot.slane %v3147_v9, 2  ;;  %v1974_v6 = vrot.slane %v1972_v54, 1  ;;  %v1976_v60 = vshrl.u32 %v4225_v29, 16  ;;  %v2071_v3 = vrot.slane %v4070_v50, 1  ;;  %v4308_v54 = vld [vmem:[%s3929_s7 + $0x74] sm:$0xf] }
  0x49   : >> { %3585 = vmatprep.mubr.msk.bf16.mxu0 %vm243_vm3, %v4086_v57  ;;  %3590 = vmatpush3.bf16.msra.mxu0 %v4073_v51  ;;  %v1076_v51 = vor.u32 %v1075_v23, %v1074_v49  ;;  %v528_v49 = vsel %vm512_vm5, %v4161_v2, %v527_v48  ;;  %v4783_v9 = vshrl.u32 %v4283_v7, 16 }
  0x4a   : >> { %3456 = vmatmul.mubr.msk.bf16.gmra.mrb[12].mxu1 %vm243_vm3, %v418_v1  ;;  %3599 = vmatprep.subr.bf16.mxu0 %v4191_v30  ;;  %v1966_v1 = vrot.slane %v1964_v13, 1  ;;  %v1960_v13 = vsel %vm211_vm2, %v1956_v22, %v1959_v37  ;;  %v537_v22 = vsel %vm512_vm5, %v527_v48, %v4240_v59  ;;  %v4286_v43 = vsel %vm630_vm6, %v1183_v31, %v1184_v44 }
  0x4b   : >> { %3461 = vmatprep.mubr.msk.bf16.mxu1 %vm243_vm3, %v524_v61  ;;  %v4246_v23 = vsel %vm512_vm5, %v1076_v51, %v1080_v20  ;;  %v4253_v34 = vsel %vm512_vm5, %v1073_v32, %v1076_v51  ;;  %v4266_v32 = vsel %vm512_vm5, %v1080_v20, %v4255_v56  ;;  %v3152_v61 = vld [vmem:[%s3929_s7 + $0x38] sm:$0xf]  ;;  %v633_v20 = vsel %vm630_vm6, %v631_v47, %v4784_v55 }
  0x4c   : >> { %v1970_v2 = vor.u32 %v1968_v38, %v1966_v1  ;;  %v1967_v51 = vsel %vm211_vm2, %v1963_v41, %v1966_v1  ;;  %v3227_v38 = vld [vmem:[%s4770_s1 + $0x24] sm:$0x3]  ;;  %v4300_v48 = vsel %vm630_vm6, %v1184_v44, %v1186_v24  ;;  %v4316_v41 = vcombine.low %v3263_v40, %v4308_v54 }
  0x4d   : >> { %v4786_v47 = vshrl.u32 %v4297_v18, 16  ;;  %v2734_v31 = vrot.slane %v4783_v9, 1 }
  0x4e   : >> { %v1975_v44 = vsel %vm211_vm2, %v1970_v2, %v1974_v6  ;;  %v2726_v40 = vshll.u32 %v4316_v41, 16 }
  0x50   : >> { %3586 = vmatmul.mubr.msk.bf16.gmra.mrb[12].mxu0 %vm243_vm3, %v3811_v35  ;;  %v4782_v35 = vrot.slane %v4196_v33, 2  ;;  %v2728_v37 = vrot.slane %v2726_v40, 2 }
  0x51   : >> { %3591 = vmatprep.mubr.msk.bf16.mxu0 %vm243_vm3, %v1960_v13  ;;  %v4312_v13 = vcombine.low %v3152_v61, %v3933_v12  ;;  %v4788_v12 = vshll.u32 %v4283_v7, 16  ;;  %v2723_v61 = vshrl.u32 %v4316_v41, 16 }
  0x52   : >> { %3462 = vmatmul.mubr.msk.bf16.vlgmr.msra.gmra.mrb[0].mxu1 %vm243_vm3, %v528_v49  ;;  %v4323_v50 = vsel %vm630_vm6, %v1186_v24, %v4782_v35  ;;  %v4327_v49 = vand.u32 %v3227_v38, %v3909_v5  ;;  %v2730_v24 = vrot.slane %v4786_v47, 1  ;;  %v2072_v38 = vrot.slane %v4061_v46, 1 }
  0x53   : >> { %3470 = vmatpush3.bf16.msra.mxu1 %v4141_v26  ;;  %3465 = vmatprep.mubr.msk.bf16.mxu1 %vm243_vm3, %v537_v22  ;;  %v4789_v26 = vshll.u32 %v4297_v18, 16  ;;  %v4333_v22 = vld [vmem:[%s3929_s7 + $0x88] ss:$0 sps:$4 sm:$0xff]   ;;  %v2735_v35 = vrot.slane %v4788_v12, 2  ;;  %v1399_v1 = vshrl.u32 %v4312_v13, 16  ;;  %v1401_v9 = vshll.u32 %v4312_v13, 16 }
  0x54   : >> { %3479 = vmatprep.subr.bf16.mxu1 %v4272_v52  ;;  %v2725_v55 = vrot.slane %v2723_v61, 1  ;;  %v1407_v47 = vrot.slane %v1405_v36, 1  ;;  %v2739_v0 = vshrl.u32 %v4333_v22, 16  ;;  %v2742_v8 = vshll.u32 %v4333_v22, 16 }
  0x55   : >> { %v2731_v2 = vrot.slane %v4789_v26, 2  ;;  %v2736_v12 = vor.u32 %v2735_v35, %v2734_v31  ;;  %v1403_v26 = vrot.slane %v1401_v9, 1  ;;  %v4795_v36 = vshrl.u32 %v3940_v14, 16 }
  0x56   : >> { %v2729_v61 = vor.u32 %v2728_v37, %v2725_v55  ;;  %v2741_v31 = vrot.slane %v2739_v0, 1  ;;  %v4797_v14 = vshrl.u32 %v3945_v17, 16 }
  0x57   : >> { %v2732_v58 = vor.u32 %v2731_v2, %v2730_v24  ;;  %v1411_v40 = vor.u32 %v4795_v36, %v1407_v47  ;;  %v1404_v9 = vor.u32 %v1403_v26, %v1399_v1  ;;  %v2744_v2 = vrot.slane %v2742_v8, 2 }
  0x58   : >> { %3592 = vmatmul.mubr.msk.bf16.vlgmr.msra.gmra.mrb[0].mxu0 %vm243_vm3, %v1967_v51  ;;  %v1978_v51 = vor.u32 %v1976_v60, %v1974_v6  ;;  %v1420_v6 = vshll.u32 %v4350_v39, 16  ;;  %v3125_v60 = vld [vmem:[%s4770_s1 + $0xc] sm:$0x3]  ;;  %v2073_v1 = vsel %vm412_vm4, %v2071_v3, %v2072_v38  ;;  %v4798_v36 = vrot.slane %v3963_v27, 2 }
  0x59   : >> { %3595 = vmatprep.mubr.msk.bf16.mxu0 %vm243_vm3, %v1975_v44  ;;  %3600 = vmatpush3.bf16.msra.mxu0 %v4191_v30  ;;  %v4796_v44 = vshll.u32 %v3945_v17, 16  ;;  %v3277_v30 = vld [vmem:[%s3929_s7 + $0x70] sm:$0xc]  ;;  %v4366_v35 = vsel %vm512_vm5, %v2732_v58, %v2736_v12  ;;  %v4383_v0 = vor.u32 %v2744_v2, %v2741_v31  ;;  %v4800_v3 = vrot.slane %v4116_v16, 2  ;;  %v3247_v16 = vld [vmem:[%s4770_s1 + $0x28] sm:$0x3] }
  0x5a   : >> { %3466 = vmatmul.mubr.msk.bf16.gmra.mrb[16].mxu1 %vm243_vm3, %v4240_v59  ;;  %3609 = vmatprep.subr.bf16.mxu0 %v4327_v49  ;;  %v4369_v59 = vsel %vm512_vm5, %v2729_v61, %v2732_v58  ;;  %v3279_v8 = vcombine.low %v3277_v30, %v4308_v54  ;;  %v2840_v58 = vrot.slane %v4297_v18, 2  ;;  %v4388_v26 = vrot.slane %v1420_v6, 1  ;;  %v3108_v6 = vld [vmem:[%s3929_s7 + $0x1c] sm:$0xf] }
  0x5b   : >> { %v1414_v24 = vrot.slane %v4796_v44, 1  ;;  %3471 = vmatprep.mubr.msk.bf16.mxu1 %vm243_vm3, %v633_v20  ;;  %v4381_v20 = vsel %vm211_vm2, %v1404_v9, %v1407_v47  ;;  %v2842_v61 = vrot.slane %v4283_v7, 2  ;;  %v4398_v47 = vsel %vm512_vm5, %v2736_v12, %v4383_v0 }
  0x5c   : >> { %v4801_v30 = vmov %v4798_v36  ;;  %v888_v31 = vand.u32 %v3125_v60, %v3909_v5  ;;  %v2074_v12 = vrot.slane %v4086_v57, 1  ;;  %v2076_v27 = vrot.slane %v4225_v29, 1 }
  0x5d   : >> { %v4372_v55 = vsel %vm211_vm2, %v1411_v40, %v1414_v24  ;;  %v1418_v37 = vor.u32 %v4797_v14, %v1414_v24  ;;  %v4799_v40 = vrot.slane %v3954_v21, 2  ;;  %v2839_v24 = vrot.slane %v3279_v8, 2 }
  0x5e   : >> { %v637_v9 = vsel %vm630_vm6, %v4801_v30, %v4800_v3  ;;  %v4412_v2 = vsel %vm630_vm6, %v2840_v58, %v2842_v61  ;;  %v2844_v14 = vrot.slane %v4333_v22, 2  ;;  %v2075_v8 = vsel %vm412_vm4, %v2072_v38, %v2074_v12  ;;  %v3819_v30 = vld [vmem:[%s3929_s7 + $0x34] ss:$0 sps:$4 sm:$0x33]  }
  0x5f   : >> { %v635_v44 = vsel %vm630_vm6, %v4799_v40, %v4798_v36  ;;  %v4409_v21 = vsel %vm211_vm2, %v1418_v37, %v4388_v26  ;;  %v3234_v37 = vld [vmem:[%s4770_s1 + $0x26] sm:$0x3]  ;;  %v2077_v29 = vsel %vm412_vm4, %v2074_v12, %v2076_v27 }
  0x60   : >> { %3596 = vmatmul.mubr.msk.bf16.gmra.mrb[16].mxu0 %vm243_vm3, %v1978_v51  ;;  %v4417_v51 = vsel %vm630_vm6, %v2839_v24, %v2840_v58  ;;  %v4431_v60 = vsel %vm630_vm6, %v2842_v61, %v2844_v14  ;;  %v2307_v58 = vand.u32 %v3234_v37, %v3909_v5 }
  0x61   : >> { %3601 = vmatprep.mubr.msk.bf16.mxu0 %vm243_vm3, %v2073_v1  ;;  %v4802_v1 = vmov %v4800_v3  ;;  %v4461_v3 = vld [vmem:[%s3929_s7 + $0x34] ss:$0 sps:$4 sm:$0x77]  }
  0x62   : >> { %3472 = vmatmul.mubr.msk.bf16.vlgmr.msra.gmra.mrb[0].mxu1 %vm243_vm3, %v635_v44  ;;  %v4803_v44 = vshll.u32 %v4173_v10, 16  ;;  %v868_v12 = vshll.u32 %v4461_v3, 16 }
  0x63   : >> { %3480 = vmatpush3.bf16.msra.mxu1 %v4272_v52  ;;  %3475 = vmatprep.mubr.msk.bf16.mxu1 %vm243_vm3, %v637_v9  ;;  %v3116_v52 = vcombine.low %v3108_v6, %v4165_v4  ;;  %v3132_v4 = vld [vmem:[%s4770_s1 + $0xe] sm:$0x3]  ;;  %v2424_v9 = vand.u32 %v3247_v16, %v3909_v5  ;;  %v4806_v6 = vshrl.u32 %v4154_v25, 16 }
  0x64   : >> { %3489 = vmatprep.subr.bf16.mxu1 %v888_v31  ;;  %v855_v24 = vrot.slane %v4803_v44, 1 }
  0x65   : >> { %v849_v38 = vshll.u32 %v3116_v52, 16  ;;  %v847_v61 = vshrl.u32 %v3116_v52, 16 }
  0x67   : >> { %v851_v36 = vrot.slane %v849_v38, 1  ;;  %v872_v38 = vshrl.u32 %v4461_v3, 16 }
  0x68   : >> { %3602 = vmatmul.mubr.msk.bf16.vlgmr.msra.gmra.mrb[0].mxu0 %vm243_vm3, %v2075_v8 }
  0x69   : >> { %3605 = vmatprep.mubr.msk.bf16.mxu0 %vm243_vm3, %v2077_v29  ;;  %3610 = vmatpush3.bf16.msra.mxu0 %v4327_v49  ;;  %v987_v49 = vand.u32 %v3132_v4, %v3909_v5  ;;  %v852_v40 = vor.u32 %v851_v36, %v847_v61  ;;  %v870_v29 = vrot.slane %v868_v12, 1  ;;  %v3257_v4 = vld [vmem:[%s4770_s1 + $0x2a] sm:$0x3]  ;;  %v968_v61 = vrot.slane %v4173_v10, 1 }
  0x6a   : >> { %3476 = vmatmul.mubr.msk.bf16.gmra.mrb[20].mxu1 %vm243_vm3, %v4802_v1  ;;  %3619 = vmatprep.subr.bf16.mxu0 %v2307_v58  ;;  %v4807_v36 = vrot.slane %v4086_v57, 2  ;;  %v972_v57 = vrot.slane %v4461_v3, 1 }
  0x6b   : >> { %3481 = vmatprep.mubr.msk.bf16.mxu1 %vm243_vm3, %v3116_v52 }
  0x70   : >> { %3606 = vmatmul.mubr.msk.bf16.gmra.mrb[20].mxu0 %vm243_vm3, %v2076_v27  ;;  %v4804_v27 = vshll.u32 %v4154_v25, 16 }
  0x71   : >> { %3611 = vmatprep.mubr.msk.bf16.mxu0 %vm243_vm3, %v4133_v28  ;;  %v2185_v28 = vsel %vm512_vm5, %v4113_v15, %v4156_v63  ;;  %v4805_v15 = vshrl.u32 %v4173_v10, 16 }
  0x72   : >> { %3482 = vmatmul.mubr.msk.bf16.vlgmr.msra.gmra.mrb[0].mxu1 %vm243_vm3, %v4173_v10  ;;  %v862_v37 = vrot.slane %v4804_v27, 1  ;;  %v4810_v27 = vshll.u32 %v4297_v18, 16 }
  0x73   : >> { %3490 = vmatpush3.bf16.msra.mxu1 %v888_v31  ;;  %3485 = vmatprep.mubr.msk.bf16.mxu1 %vm243_vm3, %v4154_v25  ;;  %v856_v31 = vsel %vm211_vm2, %v852_v40, %v855_v24  ;;  %v859_v63 = vor.u32 %v4805_v15, %v855_v24  ;;  %v874_v40 = vor.u32 %v872_v38, %v870_v29  ;;  %v3146_v24 = vld [vmem:[%s4770_s1 + $0x12] sm:$0x3]  ;;  %v3830_v15 = vld [vmem:[%s3929_s7 + $0x88] ss:$0 sps:$4 sm:$0x77]  }
  0x74   : >> { %3499 = vmatprep.subr.bf16.mxu1 %v987_v49  ;;  %v866_v8 = vor.u32 %v4806_v6, %v862_v37  ;;  %v3159_v6 = vld [vmem:[%s4770_s1 + $0x14] sm:$0x3] }
  0x76   : >> { %v871_v52 = vsel %vm211_vm2, %v866_v8, %v870_v29  ;;  %v2524_v29 = vshll.u32 %v3830_v15, 16 }
  0x78   : >> { %3612 = vmatmul.mubr.msk.bf16.vlgmr.msra.gmra.mrb[0].mxu0 %vm243_vm3, %v2185_v28 }
  0x79   : >> { %3615 = vmatprep.mubr.msk.bf16.mxu0 %vm243_vm3, %v4178_v53  ;;  %3620 = vmatpush3.bf16.msra.mxu0 %v2307_v58  ;;  %v3139_v53 = vld [vmem:[%s4770_s1 + $0x10] sm:$0x3]  ;;  %v863_v58 = vsel %vm211_vm2, %v859_v63, %v862_v37  ;;  %v2511_v37 = vrot.slane %v4810_v27, 1  ;;  %v3827_v63 = vld [vmem:[%s3929_s7 + $0x88] ss:$0 sps:$4 sm:$0x33]  }
  0x7a   : >> { %3486 = vmatmul.mubr.msk.bf16.gmra.mrb[24].mxu1 %vm243_vm3, %v3819_v30  ;;  %3629 = vmatprep.subr.bf16.mxu0 %v2424_v9  ;;  %v1104_v1 = vand.u32 %v3139_v53, %v3909_v5  ;;  %v4811_v53 = vshll.u32 %v4283_v7, 16 }
  0x7b   : >> { %3491 = vmatprep.mubr.msk.bf16.mxu1 %vm243_vm3, %v856_v31 }
  0x80   : >> { %3616 = vmatmul.mubr.msk.bf16.gmra.mrb[24].mxu0 %vm243_vm3, %v4158_v45  ;;  %v967_v45 = vrot.slane %v4170_v11, 1  ;;  %v3240_v11 = vld [vmem:[%s3929_s7 + $0x70] sm:$0xf] }
  0x81   : >> { %3621 = vmatprep.mubr.msk.bf16.mxu0 %vm243_vm3, %v4186_v19  ;;  %v4808_v19 = vrot.slane %v4061_v46, 2  ;;  %v970_v46 = vrot.slane %v4154_v25, 1  ;;  %v3248_v10 = vcombine.low %v3240_v11, %v4308_v54 }
  0x82   : >> { %3492 = vmatmul.mubr.msk.bf16.vlgmr.msra.gmra.mrb[0].mxu1 %vm243_vm3, %v863_v58  ;;  %v969_v44 = vsel %vm412_vm4, %v967_v45, %v968_v61  ;;  %v2518_v58 = vrot.slane %v4811_v53, 1  ;;  %v2526_v45 = vrot.slane %v2524_v29, 1 }
  0x83   : >> { %3500 = vmatpush3.bf16.msra.mxu1 %v987_v49  ;;  %3495 = vmatprep.mubr.msk.bf16.mxu1 %vm243_vm3, %v871_v52  ;;  %v2291_v16 = vsel %vm630_vm6, %v4808_v19, %v4807_v36  ;;  %v2544_v49 = vand.u32 %v3257_v4, %v3909_v5  ;;  %v971_v28 = vsel %vm412_vm4, %v968_v61, %v970_v46  ;;  %v2505_v25 = vshll.u32 %v3248_v10, 16  ;;  %v3271_v61 = vld [vmem:[%s4770_s1 + $0x2e] sm:$0x3] }
  0x84   : >> { %3509 = vmatprep.subr.bf16.mxu1 %v1104_v1  ;;  %v973_v30 = vsel %vm412_vm4, %v970_v46, %v972_v57  ;;  %v2503_v54 = vshrl.u32 %v3248_v10, 16  ;;  %v1320_v52 = vand.u32 %v3159_v6, %v3909_v5 }
  0x85   : >> { %v2507_v3 = vrot.slane %v2505_v25, 1 }
  0x87   : >> { %v2508_v12 = vor.u32 %v2507_v3, %v2503_v54 }
  0x88   : >> { %3622 = vmatmul.mubr.msk.bf16.vlgmr.msra.gmra.mrb[0].mxu0 %vm243_vm3, %v2291_v16  ;;  %v2760_v16 = vand.u32 %v3271_v61, %v3909_v5 }
  0x89   : >> { %3625 = vmatprep.mubr.msk.bf16.mxu0 %vm243_vm3, %v4206_v42  ;;  %3630 = vmatpush3.bf16.msra.mxu0 %v2424_v9  ;;  %v4809_v42 = vrot.slane %v4093_v62, 2  ;;  %v1203_v9 = vand.u32 %v3146_v24, %v3909_v5  ;;  %v3264_v62 = vld [vmem:[%s4770_s1 + $0x2c] sm:$0x3]  ;;  %v2512_v8 = vsel %vm211_vm2, %v2508_v12, %v2511_v37 }
  0x8a   : >> { %3496 = vmatmul.mubr.msk.bf16.gmra.mrb[28].mxu1 %vm243_vm3, %v874_v40  ;;  %3639 = vmatprep.subr.bf16.mxu0 %v2544_v49  ;;  %v2643_v31 = vand.u32 %v3264_v62, %v3909_v5  ;;  %v2624_v40 = vrot.slane %v4297_v18, 1 }
  0x8b   : >> { %3501 = vmatprep.mubr.msk.bf16.mxu1 %vm243_vm3, %v969_v44  ;;  %v3169_v44 = vld [vmem:[%s4770_s1 + $0x16] sm:$0x3] }
  0x8c   : >> { %v1440_v46 = vand.u32 %v3169_v44, %v3909_v5 }
  0x90   : >> { %3626 = vmatmul.mubr.msk.bf16.gmra.mrb[28].mxu0 %vm243_vm3, %v4809_v42 }
  0x91   : >> { %3631 = vmatprep.mubr.msk.bf16.mxu0 %vm243_vm3, %v3248_v10  ;;  %v4815_v10 = vld [vmem:[#allocation3_spill] sm:$0xff] }
  0x92   : >> { %3502 = vmatmul.mubr.msk.bf16.vlgmr.msra.gmra.mrb[0].mxu1 %vm243_vm3, %v971_v28 }
  0x93   : >> { %3510 = vmatpush3.bf16.msra.mxu1 %v1104_v1  ;;  %3505 = vmatprep.mubr.msk.bf16.mxu1 %vm243_vm3, %v973_v30  ;;  %v4812_v1 = vshrl.u32 %v4297_v18, 16 }
  0x94   : >> { %3519 = vmatprep.subr.bf16.mxu1 %v1203_v9 }
  0x95   : >> { %v2515_v38 = vor.u32 %v4812_v1, %v2511_v37 }
  0x97   : >> { %v2519_v36 = vsel %vm211_vm2, %v2515_v38, %v2518_v58 }
  0x98   : >> { %3632 = vmatmul.mubr.msk.bf16.vlgmr.msra.gmra.mrb[0].mxu0 %vm243_vm3, %v4297_v18  ;;  %v2628_v18 = vrot.slane %v3830_v15, 1 }
  0x99   : >> { %3635 = vmatprep.mubr.msk.bf16.mxu0 %vm243_vm3, %v4283_v7  ;;  %3640 = vmatpush3.bf16.msra.mxu0 %v2544_v49 }
  0x9a   : >> { %3506 = vmatmul.mubr.msk.bf16.gmra.mrb[32].mxu1 %vm243_vm3, %v972_v57  ;;  %3649 = vmatprep.subr.bf16.mxu0 %v2643_v31 }
  0x9b   : >> { %3511 = vmatprep.mubr.msk.bf16.mxu1 %vm243_vm3, %v4253_v34  ;;  %v4813_v34 = vshrl.u32 %v4283_v7, 16 }
  0x9d   : >> { %v2522_v4 = vor.u32 %v4813_v34, %v2518_v58 }
  0x9f   : >> { %v2527_v19 = vsel %vm211_vm2, %v2522_v4, %v2526_v45 }
  0xa0   : >> { %3636 = vmatmul.mubr.msk.bf16.gmra.mrb[32].mxu0 %vm243_vm3, %v3827_v63 }
  0xa1   : >> { %3641 = vmatprep.mubr.msk.bf16.mxu0 %vm243_vm3, %v2512_v8 }
  0xa2   : >> { %3512 = vmatmul.mubr.msk.bf16.vlgmr.msra.gmra.mrb[0].mxu1 %vm243_vm3, %v4246_v23  ;;  %v2528_v23 = vshrl.u32 %v3830_v15, 16 }
  0xa3   : >> { %3520 = vmatpush3.bf16.msra.mxu1 %v1203_v9  ;;  %3515 = vmatprep.mubr.msk.bf16.mxu1 %vm243_vm3, %v4266_v32  ;;  %v2623_v32 = vrot.slane %v4316_v41, 1 }
  0xa4   : >> { %3529 = vmatprep.subr.bf16.mxu1 %v1320_v52  ;;  %v2530_v49 = vor.u32 %v2528_v23, %v2526_v45 }
  0xa5   : >> { %v2625_v11 = vsel %vm412_vm4, %v2623_v32, %v2624_v40 }
  0xa8   : >> { %3642 = vmatmul.mubr.msk.bf16.vlgmr.msra.gmra.mrb[0].mxu0 %vm243_vm3, %v2519_v36 }
  0xa9   : >> { %3645 = vmatprep.mubr.msk.bf16.mxu0 %vm243_vm3, %v2527_v19  ;;  %3650 = vmatpush3.bf16.msra.mxu0 %v2643_v31 }
  0xaa   : >> { %3516 = vmatmul.mubr.msk.bf16.gmra.mrb[36].mxu1 %vm243_vm3, %v4255_v56  ;;  %3659 = vmatprep.subr.bf16.mxu0 %v2760_v16  ;;  %v2626_v56 = vrot.slane %v4283_v7, 1 }
  0xab   : >> { %3521 = vmatprep.mubr.msk.bf16.mxu1 %vm243_vm3, %v4286_v43  ;;  %v3278_v43 = vld [vmem:[%s4770_s1 + $0x30] sm:$0x3] }
  0xac   : >> { %v2627_v41 = vsel %vm412_vm4, %v2624_v40, %v2626_v56  ;;  %v2629_v57 = vsel %vm412_vm4, %v2626_v56, %v2628_v18  ;;  %v2859_v7 = vand.u32 %v3278_v43, %v3909_v5  ;;  %v3837_v5 = vld [vmem:[%s3929_s7 + $0x48] sm:$0xff]  }
  0xb0   : >> { %3646 = vmatmul.mubr.msk.bf16.gmra.mrb[36].mxu0 %vm243_vm3, %v2530_v49 }
  0xb1   : >> { %3651 = vmatprep.mubr.msk.bf16.mxu0 %vm243_vm3, %v2625_v11 }
  0xb2   : >> { %3522 = vmatmul.mubr.msk.bf16.vlgmr.msra.gmra.mrb[0].mxu1 %vm243_vm3, %v4300_v48  ;;  %v4814_v48 = vrot.slane %v4196_v33, 2  ;;  %v3832_v33 = vld [vmem:[%s3929_s7 + $0x50] ss:$0 sps:$4 sm:$0x33]  }
  0xb3   : >> { %3530 = vmatpush3.bf16.msra.mxu1 %v1320_v52  ;;  %3525 = vmatprep.mubr.msk.bf16.mxu1 %vm243_vm3, %v4323_v50  ;;  %v3836_v50 = vld [vmem:[%s3929_s7 + $0x40] sm:$0xff]   ;;  %s4711_s7 = scalar_lea.vmem %s3896_s23, %s3295_s29 }
  0xb4   : >> { %3539 = vmatprep.subr.bf16.mxu1 %v1440_v46 }
  0xb8   : >> { %3652 = vmatmul.mubr.msk.bf16.vlgmr.msra.gmra.mrb[0].mxu0 %vm243_vm3, %v2627_v41 }
  0xb9   : >> { %3655 = vmatprep.mubr.msk.bf16.mxu0 %vm243_vm3, %v2629_v57  ;;  %3660 = vmatpush3.bf16.msra.mxu0 %v2760_v16 }
  0xba   : >> { %3526 = vmatmul.mubr.msk.bf16.gmra.mrb[40].mxu1 %vm243_vm3, %v4814_v48  ;;  %3669 = vmatprep.subr.bf16.mxu0 %v2859_v7 }
  0xbb   : >> { %3531 = vmatprep.mubr.msk.bf16.mxu1 %vm243_vm3, %v4312_v13  ;;  %v1424_v13 = vshrl.u32 %v4350_v39, 16 }
  0xc0   : >> { %3656 = vmatmul.mubr.msk.bf16.gmra.mrb[40].mxu0 %vm243_vm3, %v2628_v18 }
  0xc1   : >> { %3661 = vmatprep.mubr.msk.bf16.mxu0 %vm243_vm3, %v4369_v59  ;;  %v1426_v59 = vor.u32 %v1424_v13, %v4388_v26 }
  0xc2   : >> { %3532 = vmatmul.mubr.msk.bf16.vlgmr.msra.gmra.mrb[0].mxu1 %vm243_vm3, %v3836_v50 }
  0xc3   : >> { %3540 = vmatpush3.bf16.msra.mxu1 %v1440_v46  ;;  %3535 = vmatprep.mubr.msk.bf16.mxu1 %vm243_vm3, %v3837_v5 }
  0xc4   : >> { %3679 = vmatprep.subr.bf16.mxu1 %v4815_v10 }
  0xc8   : >> { %3662 = vmatmul.mubr.msk.bf16.vlgmr.msra.gmra.mrb[0].mxu0 %vm243_vm3, %v4366_v35  ;;  %v1524_v35 = vrot.slane %v4350_v39, 1 }
  0xc9   : >> { %3665 = vmatprep.mubr.msk.bf16.mxu0 %vm243_vm3, %v4398_v47  ;;  %3670 = vmatpush3.bf16.msra.mxu0 %v2859_v7 }
  0xca   : >> { %3536 = vmatmul.mubr.msk.bf16.gmra.mrb[44].mxu1 %vm243_vm3, %v3832_v33 }
  0xcb   : >> { %3541 = vmatprep.mubr.msk.bf16.mxu1 %vm243_vm3, %v4381_v20  ;;  %v4816_v20 = vrot.slane %v3945_v17, 1 }
  0xd0   : >> { %3666 = vmatmul.mubr.msk.bf16.gmra.mrb[44].mxu0 %vm243_vm3, %v4383_v0  ;;  %v1525_v0 = vsel %vm412_vm4, %v4816_v20, %v1524_v35 }
  0xd1   : >> { %3671 = vmatprep.mubr.msk.bf16.mxu0 %vm243_vm3, %v4417_v51 }
  0xd2   : >> { %3542 = vmatmul.mubr.msk.bf16.vlgmr.msra.gmra.mrb[0].mxu1 %vm243_vm3, %v4372_v55 }
  0xd3   : >> { %3680 = vmatpush3.bf16.msra.mxu1 %v4815_v10  ;;  %3545 = vmatprep.mubr.msk.bf16.mxu1 %vm243_vm3, %v4409_v21 }
  0xd8   : >> { %3672 = vmatmul.mubr.msk.bf16.vlgmr.msra.gmra.mrb[0].mxu0 %vm243_vm3, %v4412_v2 }
  0xd9   : >> { %3675 = vmatprep.mubr.msk.bf16.mxu0 %vm243_vm3, %v4431_v60 }
  0xda   : >> { %3546 = vmatmul.mubr.msk.bf16.gmra.mrb[48].mxu1 %vm243_vm3, %v1426_v59 }
  0xdb   : >> { %3555 = vmatprep.mubr.msk.bf16.mxu1 %vm243_vm3, %v1525_v0 }
  0xe0   : >> { %3676 = vmatmul.mubr.msk.bf16.gmra.mrb[48].mxu0 %vm243_vm3, %v2844_v14 }
  0xe2   : >> { %3556 = vmatmul.mubr.msk.bf16.vlgmr.msra.gmra.mrb[52].mxu1 %vm243_vm3, %v1524_v35 }
  0xfd   : >> { %v3437_v39 = vpop.f32.mrb[4].mxu1 }
  0xfe   : >> { %v313_v55 = vpop.f32.mrb[5].mxu1 }
  0xff   : >> { %v3438_v26 = vpop.f32.mrb[6].mxu1 }
 0x100   : >> { %v316_v47 = vpop.f32.mrb[7].mxu1 }
 0x103   : >> { %v4639_v17 = vpop.f32.mrb[4].mxu0 }
 0x104   : >> { %v4641_v21 = vpop.f32.mrb[5].mxu0 }
 0x105   : >> { %v3568_v2 = vpop.f32.mrb[6].mxu0 }
 0x106   : >> { %v4643_v51 = vpop.f32.mrb[7].mxu0 }
 0x10d   : >> { %v3447_v60 = vpop.f32.mrb[8].mxu1 }
 0x10e   : >> { %v401_v24 = vadd.f32 %v3447_v60, %v3437_v39  ;;  %v392_v28 = vpop.f32.mrb[9].mxu1 }
 0x10f   : >> { %v393_v42 = vadd.f32 %v392_v28, %v313_v55  ;;  %v3448_v22 = vpop.f32.mrb[10].mxu1 }
 0x110   : >> { %v395_v30 = vpop.f32.mrb[11].mxu1 }
 0x111   : >> { %v396_v14 = vadd.f32 %v395_v30, %v316_v47 }
 0x113   : >> { %v4645_v9 = vpop.f32.mrb[8].mxu0 }
 0x114   : >> { %v4647_v25 = vpop.f32.mrb[9].mxu0 }
 0x115   : >> { %v3578_v62 = vpop.f32.mrb[10].mxu0 }
 0x116   : >> { %v4649_v54 = vpop.f32.mrb[11].mxu0 }
 0x11d   : >> { %v3457_v3 = vpop.f32.mrb[12].mxu1 }
 0x11e   : >> { %v505_v31 = vadd.f32 %v3457_v3, %v401_v24  ;;  %v485_v12 = vpop.f32.mrb[13].mxu1 }
 0x11f   : >> { %v503_v27 = vadd.f32 %v485_v12, %v393_v42  ;;  %v3458_v37 = vpop.f32.mrb[14].mxu1 }
 0x120   : >> { %v488_v15 = vpop.f32.mrb[15].mxu1 }
 0x121   : >> { %v504_v63 = vadd.f32 %v488_v15, %v396_v14 }
 0x123   : >> { %v4651_v6 = vpop.f32.mrb[12].mxu0 }
 0x124   : >> { %v4653_v8 = vpop.f32.mrb[13].mxu0 }
 0x125   : >> { %v3588_v29 = vpop.f32.mrb[14].mxu0 }
 0x126   : >> { %v4655_v53 = vpop.f32.mrb[15].mxu0 }
 0x12d   : >> { %v3467_v58 = vpop.f32.mrb[16].mxu1 }
 0x12e   : >> { %v623_v52 = vadd.f32 %v3467_v58, %v505_v31  ;;  %v603_v1 = vpop.f32.mrb[17].mxu1 }
 0x12f   : >> { %v621_v38 = vadd.f32 %v603_v1, %v503_v27  ;;  %v3468_v34 = vpop.f32.mrb[18].mxu1 }
 0x130   : >> { %v606_v4 = vpop.f32.mrb[19].mxu1 }
 0x131   : >> { %v622_v45 = vadd.f32 %v606_v4, %v504_v63 }
 0x133   : >> { %v4657_v61 = vpop.f32.mrb[16].mxu0 }
 0x134   : >> { %v4659_v36 = vpop.f32.mrb[17].mxu0 }
 0x135   : >> { %v3598_v19 = vpop.f32.mrb[18].mxu0 }
 0x136   : >> { %v4661_v16 = vpop.f32.mrb[19].mxu0 }
 0x13d   : >> { %v3477_v23 = vpop.f32.mrb[20].mxu1 }
 0x13e   : >> { %v723_v32 = vadd.f32 %v3477_v23, %v623_v52  ;;  %v703_v40 = vpop.f32.mrb[21].mxu1 }
 0x13f   : >> { %v721_v49 = vadd.f32 %v703_v40, %v621_v38  ;;  %v3478_v44 = vpop.f32.mrb[22].mxu1 }
 0x140   : >> { %v706_v11 = vpop.f32.mrb[23].mxu1 }
 0x141   : >> { %v722_v46 = vadd.f32 %v706_v11, %v622_v45 }
 0x143   : >> { %v4663_v56 = vpop.f32.mrb[20].mxu0 }
 0x144   : >> { %v4665_v18 = vpop.f32.mrb[21].mxu0 }
 0x145   : >> { %v3608_v43 = vpop.f32.mrb[22].mxu0 }
 0x146   : >> { %v4667_v41 = vpop.f32.mrb[23].mxu0 }
 0x14d   : >> { %v3487_v57 = vpop.f32.mrb[24].mxu1 }
 0x14e   : >> { %v840_v7 = vadd.f32 %v3487_v57, %v723_v32  ;;  %v820_v48 = vpop.f32.mrb[25].mxu1 }
 0x14f   : >> { %v838_v50 = vadd.f32 %v820_v48, %v721_v49  ;;  %v3488_v5 = vpop.f32.mrb[26].mxu1 }
 0x150   : >> { %v823_v10 = vpop.f32.mrb[27].mxu1 }
 0x151   : >> { %v839_v33 = vadd.f32 %v823_v10, %v722_v46 }
 0x153   : >> { %v4669_v13 = vpop.f32.mrb[24].mxu0 }
 0x154   : >> { %v4671_v35 = vpop.f32.mrb[25].mxu0 }
 0x155   : >> { %v3618_v59 = vpop.f32.mrb[26].mxu0 }
 0x156   : >> { %v4673_v20 = vpop.f32.mrb[27].mxu0 }
 0x15d   : >> { %v3497_v0 = vpop.f32.mrb[28].mxu1 }
 0x15e   : >> { %v960_v39 = vadd.f32 %v3497_v0, %v840_v7  ;;  %v940_v55 = vpop.f32.mrb[29].mxu1 }
 0x15f   : >> { %v958_v26 = vadd.f32 %v940_v55, %v838_v50  ;;  %v3498_v47 = vpop.f32.mrb[30].mxu1 }
 0x160   : >> { %v943_v2 = vpop.f32.mrb[31].mxu1 }
 0x161   : >> { %v959_v60 = vadd.f32 %v943_v2, %v839_v33 }
 0x163   : >> { %v4675_v24 = vpop.f32.mrb[28].mxu0 }
 0x164   : >> { %v4677_v28 = vpop.f32.mrb[29].mxu0 }
 0x165   : >> { %v3628_v42 = vpop.f32.mrb[30].mxu0 }
 0x166   : >> { %v4679_v22 = vpop.f32.mrb[31].mxu0 }
 0x16d   : >> { %v3507_v30 = vpop.f32.mrb[32].mxu1 }
 0x16e   : >> { %v1059_v14 = vadd.f32 %v3507_v30, %v960_v39  ;;  %v1039_v62 = vpop.f32.mrb[33].mxu1 }
 0x16f   : >> { %v1057_v3 = vadd.f32 %v1039_v62, %v958_v26  ;;  %v3508_v31 = vpop.f32.mrb[34].mxu1 }
 0x170   : >> { %v1042_v12 = vpop.f32.mrb[35].mxu1 }
 0x171   : >> { %v1058_v27 = vadd.f32 %v1042_v12, %v959_v60 }
 0x173   : >> { %v4681_v37 = vpop.f32.mrb[32].mxu0 }
 0x174   : >> { %v4683_v15 = vpop.f32.mrb[33].mxu0 }
 0x175   : >> { %v3638_v63 = vpop.f32.mrb[34].mxu0 }
 0x176   : >> { %v4685_v29 = vpop.f32.mrb[35].mxu0 }
 0x17d   : >> { %v3517_v58 = vpop.f32.mrb[36].mxu1 }
 0x17e   : >> { %v1176_v52 = vadd.f32 %v3517_v58, %v1059_v14  ;;  %v1156_v1 = vpop.f32.mrb[37].mxu1 }
 0x17f   : >> { %v1174_v38 = vadd.f32 %v1156_v1, %v1057_v3  ;;  %v3518_v34 = vpop.f32.mrb[38].mxu1 }
 0x180   : >> { %v1159_v4 = vpop.f32.mrb[39].mxu1  ;;  %v4817_v34 = vld [vmem:[#allocation2_spill] sm:$0xff] }
 0x181   : >> { %v1175_v45 = vadd.f32 %v1159_v4, %v1058_v27 }
 0x183   : >> { %v4687_v19 = vpop.f32.mrb[36].mxu0 }
 0x184   : >> { %v4689_v23 = vpop.f32.mrb[37].mxu0 }
 0x185   : >> { %v3648_v32 = vpop.f32.mrb[38].mxu0 }
 0x186   : >> { %v4691_v40 = vpop.f32.mrb[39].mxu0 }
 0x18d   : >> { %v3527_v49 = vpop.f32.mrb[40].mxu1 }
 0x18e   : >> { %v1275_v44 = vadd.f32 %v3527_v49, %v1176_v52  ;;  %v1255_v11 = vpop.f32.mrb[41].mxu1 }
 0x18f   : >> { %v1273_v46 = vadd.f32 %v1255_v11, %v1174_v38  ;;  %v3528_v43 = vpop.f32.mrb[42].mxu1 }
 0x190   : >> { %v1258_v57 = vpop.f32.mrb[43].mxu1 }
 0x191   : >> { %v1274_v7 = vadd.f32 %v1258_v57, %v1175_v45 }
 0x193   : >> { %v4693_v48 = vpop.f32.mrb[40].mxu0 }
 0x194   : >> { %v4695_v50 = vpop.f32.mrb[41].mxu0 }
 0x195   : >> { %v3658_v5 = vpop.f32.mrb[42].mxu0 }
 0x196   : >> { %v4697_v10 = vpop.f32.mrb[43].mxu0 }
 0x19d   : >> { %v3537_v33 = vpop.f32.mrb[44].mxu1 }
 0x19e   : >> { %v1392_v59 = vadd.f32 %v3537_v33, %v1275_v44  ;;  %v1372_v0 = vpop.f32.mrb[45].mxu1 }
 0x19f   : >> { %v1390_v39 = vadd.f32 %v1372_v0, %v1273_v46  ;;  %v3538_v55 = vpop.f32.mrb[46].mxu1 }
 0x1a0   : >> { %v1375_v26 = vpop.f32.mrb[47].mxu1 }
 0x1a1   : >> { %v1391_v47 = vadd.f32 %v1375_v26, %v1274_v7 }
 0x1a3   : >> { %v4699_v2 = vpop.f32.mrb[44].mxu0 }
 0x1a4   : >> { %v4701_v60 = vpop.f32.mrb[45].mxu0 }
 0x1a5   : >> { %v3543_v42 = vpop.f32.mrb[0].mxu1  ;;  %v3668_v30 = vpop.f32.mrb[46].mxu0 }
 0x1a6   : >> { %v1476_v14 = vpop.f32.mrb[1].mxu1  ;;  %v4703_v62 = vpop.f32.mrb[47].mxu0 }
 0x1a7   : >> { %v3544_v3 = vpop.f32.mrb[2].mxu1 }
 0x1a8   : >> { %v1479_v31 = vpop.f32.mrb[3].mxu1 }
 0x1ab   : >> { %v3673_v12 = vpop.f32.mrb[0].mxu0 }
 0x1ac   : >> { %v3681_v27 = vadd.f32 %v3673_v12, %v3543_v42  ;;  %v2895_v63 = vpop.f32.mrb[1].mxu0 }
 0x1ad   : >> { %v3547_v58 = vpop.f32.mrb[48].mxu1  ;;  %v3682_v52 = vadd.f32 %v2895_v63, %v1476_v14  ;;  %v3674_v1 = vpop.f32.mrb[2].mxu0 }
 0x1ae   : >> { %v1512_v38 = vadd.f32 %v3547_v58, %v1392_v59  ;;  %v2940_v4 = vadd.f32 %v3681_v27, %v4817_v34  ;;  %v1492_v45 = vpop.f32.mrb[49].mxu1  ;;  %v3683_v32 = vadd.f32 %v3674_v1, %v3544_v3  ;;  %v2898_v49 = vpop.f32.mrb[3].mxu0 }
 0x1af   : >> { %v1510_v44 = vadd.f32 %v1492_v45, %v1390_v39  ;;  %v2938_v11 = vadd.f32 %v3682_v52, %v4817_v34  ;;  %v3548_v46 = vpop.f32.mrb[50].mxu1  ;;  %v3684_v43 = vadd.f32 %v2898_v49, %v1479_v31 }
 0x1b0   : >> { %v2947_v57 = vmax.f32 %v2940_v4, 0.0  ;;  %v2941_v7 = vadd.f32 %v3683_v32, %v4817_v34  ;;  %v1495_v5 = vpop.f32.mrb[51].mxu1 }
 0x1b1   : >> { %v2945_v33 = vmax.f32 %v2938_v11, 0.0  ;;  %v1511_v59 = vadd.f32 %v1495_v5, %v1391_v47  ;;  %v2939_v0 = vadd.f32 %v3684_v43, %v4817_v34 }
 0x1b2   : >> { %v3298_v39 = vpack.c.bf16 %v2947_v57, %v2947_v57  ;;  %v2948_v55 = vmax.f32 %v2941_v7, 0.0 }
 0x1b3   : >> { %v3296_v26 = vpack.c.bf16 %v2945_v33, %v2945_v33  ;;  %v2946_v42 = vmax.f32 %v2939_v0, 0.0  ;;  %v3677_v30 = vpop.f32.mrb[48].mxu0 }
 0x1b4   : >> { %2986 = vst.msk [vmem:[%s4711_s7 + $0x8] sm:$0xf] %vm2983_vm7, %v3298_v39  ;;  %v3299_v14 = vpack.c.bf16 %v2948_v55, %v2948_v55  ;;  %v2911_v3 = vpop.f32.mrb[49].mxu0 }
 0x1b5   : >> { %2984 = vst.msk [vmem:[%s4711_s7] sm:$0xf] %vm2983_vm7, %v3296_v26  ;;  %v3297_v31 = vpack.c.bf16 %v2946_v42, %v2946_v42  ;;  %v3557_v12 = vpop.f32.mrb[52].mxu1  ;;  %v3678_v27 = vpop.f32.mrb[50].mxu0 }
 0x1b6   : >> { %2987 = vst.msk [vmem:[%s4711_s7 + $0xc] sm:$0xf] %vm2983_vm7, %v3299_v14  ;;  %v1611_v47 = vadd.f32 %v3557_v12, %v1512_v38  ;;  %v1591_v63 = vpop.f32.mrb[53].mxu1  ;;  %v2914_v58 = vpop.f32.mrb[51].mxu0 }
 0x1b7   : >> { %2985 = vst.msk [vmem:[%s4711_s7 + $0x4] sm:$0xf] %vm2983_vm7, %v3297_v31  ;;  %v1609_v52 = vadd.f32 %v1591_v63, %v1510_v44  ;;  %v3558_v1 = vpop.f32.mrb[54].mxu1 }
 0x1b8   : >> { %v1728_v4 = vadd.f32 %v4639_v17, %v1611_v47  ;;  %v1594_v45 = vpop.f32.mrb[55].mxu1 }
 0x1b9   : >> { %v1726_v32 = vadd.f32 %v4641_v21, %v1609_v52  ;;  %v1610_v49 = vadd.f32 %v1594_v45, %v1511_v59 }
 0x1ba   : >> { %v1827_v11 = vadd.f32 %v4645_v9, %v1728_v4 }
 0x1bb   : >> { %v1825_v46 = vadd.f32 %v4647_v25, %v1726_v32  ;;  %v1727_v43 = vadd.f32 %v4643_v51, %v1610_v49 }
 0x1bc   : >> { %v1944_v38 = vadd.f32 %v4651_v6, %v1827_v11 }
 0x1bd   : >> { %v1942_v57 = vadd.f32 %v4653_v8, %v1825_v46  ;;  %v1826_v7 = vadd.f32 %v4649_v54, %v1727_v43 }
 0x1be   : >> { %v2064_v44 = vadd.f32 %v4657_v61, %v1944_v38 }
 0x1bf   : >> { %v2062_v17 = vadd.f32 %v4659_v36, %v1942_v57  ;;  %v1943_v5 = vadd.f32 %v4655_v53, %v1826_v7 }
 0x1c0   : >> { %v2163_v21 = vadd.f32 %v4663_v56, %v2064_v44 }
 0x1c1   : >> { %v2161_v9 = vadd.f32 %v4665_v18, %v2062_v17  ;;  %v2063_v25 = vadd.f32 %v4661_v16, %v1943_v5 }
 0x1c2   : >> { %v2280_v51 = vadd.f32 %v4669_v13, %v2163_v21 }
 0x1c3   : >> { %v2162_v6 = vadd.f32 %v4667_v41, %v2063_v25  ;;  %v2278_v8 = vadd.f32 %v4671_v35, %v2161_v9 }
 0x1c4   : >> { %v2379_v54 = vadd.f32 %v4675_v24, %v2280_v51 }
 0x1c5   : >> { %v2377_v61 = vadd.f32 %v4677_v28, %v2278_v8  ;;  %v2279_v36 = vadd.f32 %v4673_v20, %v2162_v6 }
 0x1c6   : >> { %v2496_v53 = vadd.f32 %v4681_v37, %v2379_v54 }
 0x1c7   : >> { %v2494_v56 = vadd.f32 %v4683_v15, %v2377_v61  ;;  %v2378_v18 = vadd.f32 %v4679_v22, %v2279_v36 }
 0x1c8   : >> { %v2616_v16 = vadd.f32 %v4687_v19, %v2496_v53 }
 0x1c9   : >> { %v2614_v13 = vadd.f32 %v4689_v23, %v2494_v56  ;;  %v2495_v41 = vadd.f32 %v4685_v29, %v2378_v18 }
 0x1ca   : >> { %v2715_v35 = vadd.f32 %v4693_v48, %v2616_v16 }
 0x1cb   : >> { %v2713_v24 = vadd.f32 %v4695_v50, %v2614_v13  ;;  %v2615_v28 = vadd.f32 %v4691_v40, %v2495_v41 }
 0x1cc   : >> { %v2832_v20 = vadd.f32 %v4699_v2, %v2715_v35 }
 0x1cd   : >> { %v2830_v37 = vadd.f32 %v4701_v60, %v2713_v24  ;;  %v2714_v22 = vadd.f32 %v4697_v10, %v2615_v28 }
 0x1ce   : >> { %v2931_v15 = vadd.f32 %v3677_v30, %v2832_v20 }
 0x1cf   : >> { %v2929_v19 = vadd.f32 %v2911_v3, %v2830_v37  ;;  %v2831_v23 = vadd.f32 %v4703_v62, %v2714_v22 }
 0x1d0   : >> { %v2944_v29 = vadd.f32 %v4817_v34, %v2931_v15 }
 0x1d1   : >> { %v2942_v48 = vadd.f32 %v4817_v34, %v2929_v19  ;;  %v2930_v50 = vadd.f32 %v2914_v58, %v2831_v23 }
 0x1d2   : >> { %v2951_v33 = vmax.f32 %v2944_v29, 0.0 }
 0x1d3   : >> { %v2949_v40 = vmax.f32 %v2942_v48, 0.0  ;;  %v2943_v2 = vadd.f32 %v4817_v34, %v2930_v50  ;;  %177 = sbr.rel (!%p175_p4) target bundleno = 18 (0x12), region = 99 }
 0x1d4   : >> { %v3302_v59 = vpack.c.bf16 %v2951_v33, %v2951_v33 }
 0x1d5   : >> { %v3300_v60 = vpack.c.bf16 %v2949_v40, %v2949_v40  ;;  %v2950_v0 = vmax.f32 %v2943_v2, 0.0 }
 0x1d6   : >> { %2991 = vst.msk [vmem:[%s4711_s7 + $0x18] sm:$0x3] %vm2990_vm8, %v3302_v59 }
 0x1d7   : >> { %2988 = vst.msk [vmem:[%s4711_s7 + $0x10] sm:$0xf] %vm2983_vm7, %v3300_v60  ;;  %v3301_v10 = vpack.c.bf16 %v2950_v0, %v2950_v0 }
 0x1d9   : >> { %2989 = vst.msk [vmem:[%s4711_s7 + $0x14] sm:$0xf] %vm2983_vm7, %v3301_v10 }
 0x1da PF: > { %s13_s12 = sadd.s32 1, %s3848_s12  }
 0x1db   : > { %p10_p5 = scmp.ge.s32.totalorder %s13_s12, 4  }
 0x1dd   :  { %12 = sbr.rel (!%p10_p5) target bundleno = 1 (0x1), region = 110 }

// kernel: mynet1_forward.11
= control target key start
LH: loop header
LB: loop body
LE: loop exit
PB: predicated region body
PF: predicated region fallthrough
CT: control target
= control target key end

     0   :  { %s1850_s12 = smov 0   ;;  %s2124_s0 = inlined_call_operand.vmem [shape: bf16[2,50,54,32], index: 0, kind: input, shape index: {}]   ;;  %s2125_s1 = inlined_call_operand.vmem [shape: bf16[9,32,64], index: 1, kind: input, shape index: {}]   ;;  %s2126_s2 = inlined_call_operand.vmem [shape: f32[1,64], index: 2, kind: input, shape index: {}]   ;;  %s2127_s3 = inlined_call_operand.vmem [shape: bf16[2,48,52,64], index: 3, kind: output, shape index: {}]  }
   0x1 LB: > { %s1412_s13 = sadd.s32 4294967295, %s1824_s12   ;;  %p1416_p0 = scmp.ge.s32.totalorder %s1824_s12, 1  ;;  %s1824_s12 = sphi %s1850_s12, %s13_s12  }
   0x2   : > { %p137_p1 = scmp.lt.s32.totalorder %s1824_s12, 3 }
   0x4   : > { %p138_p2 = pnand %p1416_p0, %p137_p1 }
   0x5   : > { %p161_p3 = scmp.lt.s32.totalorder (!%p138_p2), %s1412_s13, 1  ;;  %v1861_v0 = vld [vmem:[%s2126_s2] ss:$0 sm:$0xff] (!%p138_p2)  ;;  %s1873_s24 = smov (!%p138_p2), 0  }
   0x6   : > { %141 = sbr.rel (%p138_p2) target bundleno = 328 (0x148), region = 32 }
   0xd   : > { %s2129_s13 = smov (!%p161_p3, %s1412_s13), 1 }
   0xe   : > { %s1760_s16 = smul.u32 1400, %s2129_s13 }
   0xf   : > { %s1761_s17 = smul.u32 1344, %s2129_s13 }
  0x10   : > { %s1866_s20 = scalar_lea.vmem %s2124_s0, %s1760_s16 }
  0x11   : > { %s1871_s23 = scalar_lea.vmem %s2127_s3, %s1761_s17 }
  0x12 LB: >> { %v1778_v1 = vld [vmem:[%s2125_s1 + $0x10] sm:$0xff]   ;;  %v1884_v2 = vld [vmem:[%s2125_s1 + $0x40] sm:$0xff]   ;;  %v1780_v3 = vld [vmem:[%s2125_s1 + $0x18] sm:$0xff]   ;;  %s1553_s4 = smul.u32 28, %s1828_s24  ;;  %vm217_vm0 = vsmask.f32 7424  ;;  %s1828_s24 = sphi %s1873_s24, %s178_s24  }
  0x13   : >> { %1616 = vmatprep.subr.bf16.mxu1 %v1778_v1  ;;  %1664 = vmatprep.subr.bf16.mxu0 %v1884_v2  ;;  %v1894_v4 = vld [vmem:[%s2125_s1 + $0x48] sm:$0xff]   ;;  %v1784_v9 = vld [vmem:[%s2125_s1] sm:$0xff]   ;;  %vm261_vm1 = vcmask 261120   ;;  %v1789_v32 = vld [vmem:[%s2125_s1 + $0x50] sm:$0xff]   ;;  %vm435_vm2 = vcmask 1046528   ;;  %vm1333_vm3 = vcmask 519168  }
  0x14   : >> { %1617 = vmatpush3.bf16.msra.mxu1 %v1778_v1  ;;  %1665 = vmatpush3.bf16.msra.mxu0 %v1884_v2  ;;  %s1900_s7 = scalar_lea.vmem %s1866_s20, %s1553_s4  ;;  %v1791_v38 = vld [vmem:[%s2125_s1 + $0x8] sm:$0xff]   ;;  %v1792_v44 = vld [vmem:[%s2125_s1 + $0x58] sm:$0xff]   ;;  %v1794_v49 = vld [vmem:[%s2125_s1 + $0x20] sm:$0xff]   ;;  %vm1340_vm4 = vcmask 517120   ;;  %s178_s24 = sadd.s32 1, %s1828_s24  }
  0x15   : >> { %1618 = vmatprep.subr.bf16.mxu1 %v1780_v3  ;;  %1666 = vmatprep.subr.bf16.mxu0 %v1894_v4  ;;  %v182_v5 = vld [vmem:[%s1900_s7] sm:$0xf]  ;;  %v1905_v6 = vld [vmem:[%s1900_s7 + $0x4] sm:$0xf]  ;;  %v1911_v8 = vld [vmem:[%s1900_s7 + $0x8] sm:$0xff]   ;;  %p175_p4 = scmp.ge.s32.totalorder %s178_s24, 48  }
  0x16   : >> { %v1908_v7 = vcombine.low %v182_v5, %v1905_v6  ;;  %v1452_v10 = vld [vmem:[%s1900_s7 + $0x1c] sm:$0xf]  ;;  %v1453_v11 = vld [vmem:[%s1900_s7 + $0x20] sm:$0xf]  ;;  %v226_v14 = vshll.u32 %v1911_v8, 16  ;;  %v230_v15 = vshrl.u32 %v1911_v8, 16 }
  0x17   : >> { %v1923_v16 = vcombine.low %v1452_v10, %v1453_v11  ;;  %v1926_v17 = vld [vmem:[%s1900_s7 + $0x24] sm:$0xff]   ;;  %v1929_v20 = vld [vmem:[%s1900_s7 + $0x10] sm:$0xff]   ;;  %v1948_v37 = vld [vmem:[%s1900_s7 + $0x18] ss:$0 sps:$4 sm:$0x77]  }
  0x18   : >> { %1619 = vmatpush3.bf16.msra.mxu1 %v1780_v3  ;;  %1667 = vmatpush3.bf16.msra.mxu0 %v1894_v4  ;;  %v219_v12 = vshrl.u32 %v1908_v7, 16  ;;  %v221_v13 = vshll.u32 %v1908_v7, 16  ;;  %v228_v19 = vrot.slane %v226_v14, 1  ;;  %v1932_v21 = vld [vmem:[%s1900_s7 + $0x2c] sm:$0xff]   ;;  %v682_v24 = vshll.u32 %v1926_v17, 16  ;;  %v1795_v57 = vld [vmem:[%s2125_s1 + $0x60] sm:$0xff]  }
  0x19   : >> { %1628 = vmatprep.subr.bf16.mxu1 %v1784_v9  ;;  %v676_v22 = vshrl.u32 %v1923_v16, 16  ;;  %v678_v23 = vshll.u32 %v1923_v16, 16  ;;  %v686_v25 = vshrl.u32 %v1926_v17, 16  ;;  %v234_v28 = vshll.u32 %v1929_v20, 16  ;;  %1676 = vmatprep.subr.bf16.mxu0 %v1789_v32  ;;  %v1485_v48 = vld [vmem:[%s1900_s7 + $0x1c] sm:$0xe] }
  0x1a   : >> { %v223_v18 = vrot.slane %v221_v13, 1  ;;  %v232_v27 = vor.u32 %v230_v15, %v228_v19  ;;  %v689_v29 = vshll.u32 %v1932_v21, 16  ;;  %v684_v31 = vrot.slane %v682_v24, 1  ;;  %v1973_v55 = vld [vmem:[%s1900_s7 + $0x34] ss:$0 sps:$4 sm:$0x77]  }
  0x1b   : >> { %v680_v30 = vrot.slane %v678_v23, 1  ;;  %v238_v33 = vshrl.u32 %v1929_v20, 16  ;;  %v236_v35 = vrot.slane %v234_v28, 1  ;;  %v242_v43 = vshll.u32 %v1948_v37, 16  ;;  %v1798_v62 = vld [vmem:[%s2125_s1 + $0x68] sm:$0xff]   ;;  %v1804_v10 = vld [vmem:[%s2125_s1 + $0x70] sm:$0xff]  }
  0x1c   : >> { %v224_v26 = vor.u32 %v223_v18, %v219_v12  ;;  %v1945_v36 = vrot.slane %v689_v29, 1  ;;  %v688_v40 = vor.u32 %v686_v25, %v684_v31  ;;  %v246_v47 = vshrl.u32 %v1948_v37, 16  ;;  %v426_v63 = vld [vmem:[%s1900_s7] sm:$0xe]  ;;  %v1797_v3 = vld [vmem:[%s2125_s1 + $0x28] sm:$0xff]   ;;  %v1803_v12 = vld [vmem:[%s2125_s1 + $0x30] sm:$0xff]  }
  0x1d   : >> { %v681_v39 = vor.u32 %v680_v30, %v676_v22  ;;  %v237_v41 = vsel %vm217_vm0, %v232_v27, %v236_v35  ;;  %v240_v42 = vor.u32 %v238_v33, %v236_v35  ;;  %v244_v50 = vrot.slane %v242_v43, 1  ;;  %v1799_v14 = vld [vmem:[%s1900_s7 + $0x18] ss:$0 sps:$4 sm:$0x33]   ;;  %v2026_v23 = vld [vmem:[%s1900_s7 + $0x48] sm:$0xff]  }
  0x1e   : >> { %v229_v34 = vsel %vm217_vm0, %v224_v26, %v228_v19  ;;  %v692_v46 = vsel %vm217_vm0, %v688_v40, %v1945_v36  ;;  %v1490_v51 = vcombine.low %v1485_v48, %v1453_v11  ;;  %v809_v52 = vrot.slane %v1926_v17, 1  ;;  %v2022_v19 = vld [vmem:[%s1900_s7 + $0x40] sm:$0xff]   ;;  %v1808_v24 = vld [vmem:[%s2125_s1 + $0x78] sm:$0xff]   ;;  %v1810_v33 = vld [vmem:[%s1900_s7 + $0x50] ss:$0 sps:$4 sm:$0x77]  }
  0x1f   : >> { %1620 = vmatprep.mubr.msk.bf16.mxu1 %vm261_vm1, %v229_v34  ;;  %v685_v45 = vsel %vm217_vm0, %v681_v39, %v684_v31  ;;  %v245_v53 = vsel %vm217_vm0, %v240_v42, %v244_v50  ;;  %v248_v56 = vor.u32 %v246_v47, %v244_v50  ;;  %v811_v59 = vrot.slane %v1932_v21, 1  ;;  %v1807_v29 = vld [vmem:[%s2125_s1 + $0x38] sm:$0xff]   ;;  %v1806_v34 = vld [vmem:[%s1900_s7 + $0x50] ss:$0 sps:$4 sm:$0x33]   ;;  %v1811_v48 = vld [vmem:[%s2125_s1 + $0x88] sm:$0xff]  }
  0x20   : >> { %1621 = vmatmul.mubr.msk.bf16.vlgmr.msra.gmra.mrb[0].mxu1 %vm261_vm1, %v237_v41  ;;  %1668 = vmatprep.mubr.msk.bf16.mxu0 %vm261_vm1, %v685_v45  ;;  %v808_v54 = vrot.slane %v1490_v51, 1  ;;  %v813_v60 = vrot.slane %v1973_v55, 1  ;;  %v1445_v5 = vcombine.low %v426_v63, %v1905_v6  ;;  %v437_v11 = vrot.slane %v1911_v8, 1  ;;  %v1530_v45 = vld [vmem:[%s1900_s7 + $0x38] sm:$0xe] }
  0x21   : >> { %1629 = vmatpush3.bf16.msra.mxu1 %v1784_v9  ;;  %1669 = vmatmul.mubr.msk.bf16.vlgmr.msra.gmra.mrb[0].mxu0 %vm261_vm1, %v692_v46  ;;  %v812_v61 = vsel %vm435_vm2, %v809_v52, %v811_v59  ;;  %v2002_v9 = vld [vmem:[%s1900_s7 + $0x3c] sm:$0xf]  ;;  %v439_v18 = vrot.slane %v1929_v20, 1  ;;  %v441_v22 = vrot.slane %v1948_v37, 1  ;;  %v1054_v27 = vshll.u32 %v2022_v19, 16 }
  0x22   : >> { %1630 = vmatprep.subr.bf16.mxu1 %v1791_v38  ;;  %1677 = vmatpush3.bf16.msra.mxu0 %v1789_v32  ;;  %v810_v58 = vsel %vm435_vm2, %v808_v54, %v809_v52  ;;  %v814_v1 = vsel %vm435_vm2, %v811_v59, %v813_v60  ;;  %v436_v6 = vrot.slane %v1445_v5, 1  ;;  %v1809_v32 = vld [vmem:[%s2125_s1 + $0x80] sm:$0xff]   ;;  %v1061_v35 = vshll.u32 %v2026_v23, 16 }
  0x23   : >> { %1624 = vmatprep.mubr.msk.bf16.mxu1 %vm261_vm1, %v245_v53  ;;  %1678 = vmatprep.subr.bf16.mxu0 %v1792_v44  ;;  %v440_v28 = vsel %vm435_vm2, %v437_v11, %v439_v18  ;;  %v1056_v31 = vrot.slane %v1054_v27, 1  ;;  %v1058_v37 = vshrl.u32 %v2022_v19, 16  ;;  %v1065_v39 = vshrl.u32 %v2026_v23, 16 }
  0x24   : >> { %1680 = vmatprep.mubr.msk.bf16.mxu0 %vm261_vm1, %v810_v58  ;;  %v438_v15 = vsel %vm435_vm2, %v436_v6, %v437_v11  ;;  %v1069_v40 = vshll.u32 %v1810_v33, 16  ;;  %v1063_v41 = vrot.slane %v1061_v35, 1  ;;  %v1073_v50 = vshrl.u32 %v1810_v33, 16  ;;  %v1812_v58 = vld [vmem:[%s1900_s7 + $0x34] ss:$0 sps:$4 sm:$0x33]  }
  0x25   : >> { %1631 = vmatpush3.bf16.msra.mxu1 %v1791_v38  ;;  %v1060_v42 = vor.u32 %v1058_v37, %v1056_v31  ;;  %v693_v51 = vshrl.u32 %v1932_v21, 16  ;;  %v697_v52 = vshll.u32 %v1973_v55, 16  ;;  %v1181_v53 = vrot.slane %v2022_v19, 1 }
  0x26   : >> { %1640 = vmatprep.subr.bf16.mxu1 %v1794_v49  ;;  %1679 = vmatpush3.bf16.msra.mxu0 %v1792_v44  ;;  %v1067_v43 = vor.u32 %v1065_v39, %v1063_v41  ;;  %v1071_v44 = vrot.slane %v1069_v40, 1 }
  0x27   : >> { %1688 = vmatprep.subr.bf16.mxu0 %v1795_v57  ;;  %v1064_v46 = vsel %vm217_vm0, %v1060_v42, %v1063_v41 }
  0x28   : >> { %1625 = vmatmul.mubr.msk.bf16.gmra.mrb[4].mxu1 %vm261_vm1, %v248_v56  ;;  %v1072_v47 = vsel %vm217_vm0, %v1067_v43, %v1071_v44  ;;  %v1075_v54 = vor.u32 %v1073_v50, %v1071_v44  ;;  %v695_v56 = vor.u32 %v693_v51, %v1945_v36  ;;  %v1185_v36 = vrot.slane %v1810_v33, 1 }
  0x29   : >> { %1632 = vmatprep.mubr.msk.bf16.mxu1 %vm261_vm1, %v1908_v7  ;;  %v1497_v7 = vld [vmem:[%s1900_s7 + $0x38] sm:$0xf]  ;;  %s2099_s7 = scalar_lea.vmem %s1871_s23, %s1553_s4 }
  0x2a   : >> { %v1508_v13 = vcombine.low %v1497_v7, %v2002_v9 }
  0x2c   : >> { %v1048_v25 = vshrl.u32 %v1508_v13, 16 }
  0x2d   : >> { %1681 = vmatmul.mubr.msk.bf16.vlgmr.msra.gmra.mrb[0].mxu0 %vm261_vm1, %v812_v61 }
  0x2e   : >> { %1689 = vmatpush3.bf16.msra.mxu0 %v1795_v57  ;;  %1684 = vmatprep.mubr.msk.bf16.mxu0 %vm261_vm1, %v814_v1  ;;  %v699_v57 = vrot.slane %v697_v52, 1 }
  0x2f   : >> { %1690 = vmatprep.subr.bf16.mxu0 %v1798_v62 }
  0x30   : >> { %1633 = vmatmul.mubr.msk.bf16.vlgmr.msra.gmra.mrb[0].mxu1 %vm261_vm1, %v1911_v8  ;;  %v1050_v8 = vshll.u32 %v1508_v13, 16 }
  0x31   : >> { %1641 = vmatpush3.bf16.msra.mxu1 %v1794_v49  ;;  %1636 = vmatprep.mubr.msk.bf16.mxu1 %vm261_vm1, %v1929_v20  ;;  %v442_v20 = vsel %vm435_vm2, %v439_v18, %v441_v22  ;;  %v1535_v49 = vcombine.low %v1530_v45, %v2002_v9 }
  0x32   : >> { %1642 = vmatprep.subr.bf16.mxu1 %v1797_v3  ;;  %1691 = vmatpush3.bf16.msra.mxu0 %v1798_v62  ;;  %v1052_v26 = vrot.slane %v1050_v8, 1 }
  0x33   : >> { %1700 = vmatprep.subr.bf16.mxu0 %v1804_v10 }
  0x34   : >> { %v1053_v30 = vor.u32 %v1052_v26, %v1048_v25 }
  0x35   : >> { %1643 = vmatpush3.bf16.msra.mxu1 %v1797_v3  ;;  %1685 = vmatmul.mubr.msk.bf16.gmra.mrb[4].mxu0 %vm261_vm1, %v813_v60 }
  0x36   : >> { %1652 = vmatprep.subr.bf16.mxu1 %v1803_v12  ;;  %1692 = vmatprep.mubr.msk.bf16.mxu0 %vm261_vm1, %v1508_v13  ;;  %v1057_v38 = vsel %vm217_vm0, %v1053_v30, %v1056_v31 }
  0x38   : >> { %1637 = vmatmul.mubr.msk.bf16.gmra.mrb[8].mxu1 %vm261_vm1, %v1799_v14 }
  0x39   : >> { %1644 = vmatprep.mubr.msk.bf16.mxu1 %vm261_vm1, %v438_v15 }
  0x3d   : >> { %1693 = vmatmul.mubr.msk.bf16.vlgmr.msra.gmra.mrb[0].mxu0 %vm261_vm1, %v2022_v19 }
  0x3e   : >> { %1701 = vmatpush3.bf16.msra.mxu0 %v1804_v10  ;;  %1696 = vmatprep.mubr.msk.bf16.mxu0 %vm261_vm1, %v2026_v23 }
  0x3f   : >> { %1702 = vmatprep.subr.bf16.mxu0 %v1808_v24 }
  0x40   : >> { %1645 = vmatmul.mubr.msk.bf16.vlgmr.msra.gmra.mrb[0].mxu1 %vm261_vm1, %v440_v28 }
  0x41   : >> { %1653 = vmatpush3.bf16.msra.mxu1 %v1803_v12  ;;  %1648 = vmatprep.mubr.msk.bf16.mxu1 %vm261_vm1, %v442_v20 }
  0x42   : >> { %1654 = vmatprep.subr.bf16.mxu1 %v1807_v29  ;;  %1703 = vmatpush3.bf16.msra.mxu0 %v1808_v24 }
  0x43   : >> { %1712 = vmatprep.subr.bf16.mxu0 %v1809_v32 }
  0x45   : >> { %1655 = vmatpush3.bf16.msra.mxu1 %v1807_v29  ;;  %1697 = vmatmul.mubr.msk.bf16.gmra.mrb[8].mxu0 %vm261_vm1, %v1806_v34 }
  0x46   : >> { %1724 = vmatprep.subr.bf16.mxu1 %v1884_v2  ;;  %1704 = vmatprep.mubr.msk.bf16.mxu0 %vm261_vm1, %v1057_v38 }
  0x48   : >> { %1649 = vmatmul.mubr.msk.bf16.gmra.mrb[12].mxu1 %vm261_vm1, %v441_v22 }
  0x49   : >> { %1656 = vmatprep.mubr.msk.bf16.mxu1 %vm261_vm1, %v1923_v16  ;;  %v1180_v16 = vrot.slane %v1535_v49, 1 }
  0x4b   : >> { %v1182_v59 = vsel %vm435_vm2, %v1180_v16, %v1181_v53 }
  0x4d   : >> { %1705 = vmatmul.mubr.msk.bf16.vlgmr.msra.gmra.mrb[0].mxu0 %vm261_vm1, %v1064_v46 }
  0x4e   : >> { %1713 = vmatpush3.bf16.msra.mxu0 %v1809_v32  ;;  %1708 = vmatprep.mubr.msk.bf16.mxu0 %vm261_vm1, %v1072_v47 }
  0x4f   : >> { %1714 = vmatprep.subr.bf16.mxu0 %v1811_v48 }
  0x50   : >> { %1657 = vmatmul.mubr.msk.bf16.vlgmr.msra.gmra.mrb[0].mxu1 %vm261_vm1, %v1926_v17  ;;  %v700_v17 = vsel %vm217_vm0, %v695_v56, %v699_v57 }
  0x51   : >> { %1726 = vmatpush3.bf16.msra.mxu1 %v1884_v2  ;;  %1660 = vmatprep.mubr.msk.bf16.mxu1 %vm261_vm1, %v1932_v21  ;;  %v1183_v2 = vrot.slane %v2026_v23, 1  ;;  %v701_v21 = vshrl.u32 %v1973_v55, 16 }
  0x52   : >> { %1725 = vmatprep.subr.bf16.mxu1 %v1894_v4  ;;  %1715 = vmatpush3.bf16.msra.mxu0 %v1811_v48 }
  0x53   : >> { %v1184_v60 = vsel %vm435_vm2, %v1181_v53, %v1183_v2  ;;  %v703_v61 = vor.u32 %v701_v21, %v699_v57 }
  0x55   : >> { %1727 = vmatpush3.bf16.msra.mxu1 %v1894_v4  ;;  %1709 = vmatmul.mubr.msk.bf16.gmra.mrb[12].mxu0 %vm261_vm1, %v1075_v54  ;;  %v1186_v4 = vsel %vm435_vm2, %v1183_v2, %v1185_v36 }
  0x56   : >> { %1716 = vmatprep.mubr.msk.bf16.mxu0 %vm261_vm1, %v1182_v59 }
  0x58   : >> { %1661 = vmatmul.mubr.msk.bf16.gmra.mrb[16].mxu1 %vm261_vm1, %v1812_v58 }
  0x59   : >> { %1672 = vmatprep.mubr.msk.bf16.mxu1 %vm261_vm1, %v700_v17 }
  0x5d   : >> { %1717 = vmatmul.mubr.msk.bf16.vlgmr.msra.gmra.mrb[0].mxu0 %vm261_vm1, %v1184_v60 }
  0x5e   : >> { %1720 = vmatprep.mubr.msk.bf16.mxu0 %vm261_vm1, %v1186_v4 }
  0x60   : >> { %1673 = vmatmul.mubr.msk.bf16.vlgmr.msra.gmra.mrb[20].mxu1 %vm261_vm1, %v703_v61 }
  0x65   : >> { %1721 = vmatmul.mubr.msk.bf16.gmra.mrb[16].mxu0 %vm261_vm1, %v1185_v36 }
  0xfb   : >> { %v1626_v62 = vpop.f32.mrb[4].mxu1 }
  0xfc   : >> { %v324_v63 = vpop.f32.mrb[5].mxu1 }
  0xfd   : >> { %v1627_v1 = vpop.f32.mrb[6].mxu1 }
  0xfe   : >> { %v327_v55 = vpop.f32.mrb[7].mxu1 }
 0x108   : >> { %v1686_v3 = vpop.f32.mrb[4].mxu0 }
 0x109   : >> { %v889_v5 = vpop.f32.mrb[5].mxu0 }
 0x10a   : >> { %v1687_v7 = vpop.f32.mrb[6].mxu0 }
 0x10b   : >> { %v1638_v9 = vpop.f32.mrb[8].mxu1  ;;  %v892_v6 = vpop.f32.mrb[7].mxu0 }
 0x10c   : >> { %v421_v10 = vadd.f32 %v1638_v9, %v1626_v62  ;;  %v412_v11 = vpop.f32.mrb[9].mxu1 }
 0x10d   : >> { %v413_v12 = vadd.f32 %v412_v11, %v324_v63  ;;  %v1639_v13 = vpop.f32.mrb[10].mxu1 }
 0x10e   : >> { %v415_v14 = vpop.f32.mrb[11].mxu1 }
 0x10f   : >> { %v416_v15 = vadd.f32 %v415_v14, %v327_v55 }
 0x118   : >> { %v1698_v8 = vpop.f32.mrb[8].mxu0 }
 0x119   : >> { %v1018_v18 = vpop.f32.mrb[9].mxu0 }
 0x11a   : >> { %v1699_v19 = vpop.f32.mrb[10].mxu0 }
 0x11b   : >> { %v1650_v22 = vpop.f32.mrb[12].mxu1  ;;  %v1021_v24 = vpop.f32.mrb[11].mxu0 }
 0x11c   : >> { %v537_v23 = vadd.f32 %v1650_v22, %v421_v10  ;;  %v517_v25 = vpop.f32.mrb[13].mxu1 }
 0x11d   : >> { %v535_v26 = vadd.f32 %v517_v25, %v413_v12  ;;  %v1651_v27 = vpop.f32.mrb[14].mxu1 }
 0x11e   : >> { %v520_v28 = vpop.f32.mrb[15].mxu1 }
 0x11f   : >> { %v536_v20 = vadd.f32 %v520_v28, %v416_v15 }
 0x123   : >> { %v1658_v29 = vpop.f32.mrb[0].mxu1 }
 0x124   : >> { %v630_v30 = vpop.f32.mrb[1].mxu1 }
 0x125   : >> { %v1659_v31 = vpop.f32.mrb[2].mxu1 }
 0x126   : >> { %v633_v32 = vpop.f32.mrb[3].mxu1 }
 0x128   : >> { %v1710_v33 = vpop.f32.mrb[12].mxu0 }
 0x129   : >> { %v1150_v34 = vpop.f32.mrb[13].mxu0 }
 0x12a   : >> { %v1711_v35 = vpop.f32.mrb[14].mxu0 }
 0x12b   : >> { %v1662_v37 = vpop.f32.mrb[16].mxu1  ;;  %v1153_v39 = vpop.f32.mrb[15].mxu0 }
 0x12c   : >> { %v666_v38 = vadd.f32 %v1662_v37, %v537_v23  ;;  %v646_v40 = vpop.f32.mrb[17].mxu1 }
 0x12d   : >> { %v664_v41 = vadd.f32 %v646_v40, %v535_v26  ;;  %v1663_v42 = vpop.f32.mrb[18].mxu1 }
 0x12e   : >> { %v649_v43 = vpop.f32.mrb[19].mxu1 }
 0x12f   : >> { %v665_v44 = vadd.f32 %v649_v43, %v536_v20 }
 0x130   : >> { %v1718_v45 = vpop.f32.mrb[0].mxu0 }
 0x131   : >> { %v1728_v46 = vadd.f32 %v1718_v45, %v1658_v29  ;;  %v1245_v47 = vpop.f32.mrb[1].mxu0 }
 0x132   : >> { %v1729_v48 = vadd.f32 %v1245_v47, %v630_v30  ;;  %v1719_v49 = vpop.f32.mrb[2].mxu0 }
 0x133   : >> { %v1674_v50 = vpop.f32.mrb[20].mxu1  ;;  %v1290_v51 = vadd.f32 %v1728_v46, %v1861_v0  ;;  %v1730_v52 = vadd.f32 %v1719_v49, %v1659_v31  ;;  %v1248_v16 = vpop.f32.mrb[3].mxu0 }
 0x134   : >> { %v798_v53 = vadd.f32 %v1674_v50, %v666_v38  ;;  %v778_v54 = vpop.f32.mrb[21].mxu1  ;;  %v1288_v56 = vadd.f32 %v1729_v48, %v1861_v0  ;;  %v1731_v57 = vadd.f32 %v1248_v16, %v633_v32 }
 0x135   : >> { %v796_v58 = vadd.f32 %v778_v54, %v664_v41  ;;  %v1675_v59 = vpop.f32.mrb[22].mxu1  ;;  %v1297_v17 = vmax.f32 %v1290_v51, 0.0  ;;  %v1291_v2 = vadd.f32 %v1730_v52, %v1861_v0 }
 0x136   : >> { %v909_v21 = vadd.f32 %v1686_v3, %v798_v53  ;;  %v781_v36 = vpop.f32.mrb[23].mxu1  ;;  %v1295_v60 = vmax.f32 %v1288_v56, 0.0  ;;  %v1289_v61 = vadd.f32 %v1731_v57, %v1861_v0 }
 0x137   : >> { %v907_v4 = vadd.f32 %v889_v5, %v796_v58  ;;  %v797_v62 = vadd.f32 %v781_v36, %v665_v44  ;;  %v1556_v63 = vpack.c.bf16 %v1297_v17, %v1297_v17  ;;  %v1298_v1 = vmax.f32 %v1291_v2, 0.0 }
 0x138   : >> { %v1038_v55 = vadd.f32 %v1698_v8, %v909_v21  ;;  %v1554_v7 = vpack.c.bf16 %v1295_v60, %v1295_v60  ;;  %v1296_v9 = vmax.f32 %v1289_v61, 0.0  ;;  %v1722_v3 = vpop.f32.mrb[16].mxu0 }
 0x139   : >> { %v908_v10 = vadd.f32 %v892_v6, %v797_v62  ;;  %v1036_v11 = vadd.f32 %v1018_v18, %v907_v4  ;;  %1336 = vst.msk [vmem:[%s2099_s7 + $0x8] sm:$0xf] %vm1333_vm3, %v1556_v63  ;;  %v1557_v12 = vpack.c.bf16 %v1298_v1, %v1298_v1  ;;  %v1261_v14 = vpop.f32.mrb[17].mxu0 }
 0x13a   : >> { %v1170_v13 = vadd.f32 %v1710_v33, %v1038_v55  ;;  %1334 = vst.msk [vmem:[%s2099_s7] sm:$0xf] %vm1333_vm3, %v1554_v7  ;;  %v1555_v15 = vpack.c.bf16 %v1296_v9, %v1296_v9  ;;  %v1723_v19 = vpop.f32.mrb[18].mxu0 }
 0x13b   : >> { %v1168_v5 = vadd.f32 %v1150_v34, %v1036_v11  ;;  %v1037_v22 = vadd.f32 %v1021_v24, %v908_v10  ;;  %1337 = vst.msk [vmem:[%s2099_s7 + $0xc] sm:$0xf] %vm1333_vm3, %v1557_v12  ;;  %v1264_v23 = vpop.f32.mrb[19].mxu0 }
 0x13c   : >> { %v1281_v8 = vadd.f32 %v1722_v3, %v1170_v13  ;;  %1335 = vst.msk [vmem:[%s2099_s7 + $0x4] sm:$0xf] %vm1333_vm3, %v1555_v15 }
 0x13d   : >> { %v1279_v6 = vadd.f32 %v1261_v14, %v1168_v5  ;;  %v1169_v18 = vadd.f32 %v1153_v39, %v1037_v22 }
 0x13e   : >> { %v1294_v25 = vadd.f32 %v1861_v0, %v1281_v8 }
 0x13f   : >> { %v1292_v26 = vadd.f32 %v1861_v0, %v1279_v6  ;;  %v1280_v27 = vadd.f32 %v1264_v23, %v1169_v18 }
 0x140   : >> { %v1301_v28 = vmax.f32 %v1294_v25, 0.0 }
 0x141   : >> { %v1299_v20 = vmax.f32 %v1292_v26, 0.0  ;;  %v1293_v24 = vadd.f32 %v1861_v0, %v1280_v27  ;;  %177 = sbr.rel (!%p175_p4) target bundleno = 18 (0x12), region = 81 }
 0x142   : >> { %v1560_v29 = vpack.c.bf16 %v1301_v28, %v1301_v28 }
 0x143   : >> { %v1558_v30 = vpack.c.bf16 %v1299_v20, %v1299_v20  ;;  %v1300_v31 = vmax.f32 %v1293_v24, 0.0 }
 0x144   : >> { %1341 = vst.msk [vmem:[%s2099_s7 + $0x18] sm:$0x3] %vm1340_vm4, %v1560_v29 }
 0x145   : >> { %1338 = vst.msk [vmem:[%s2099_s7 + $0x10] sm:$0xf] %vm1333_vm3, %v1558_v30  ;;  %v1559_v32 = vpack.c.bf16 %v1300_v31, %v1300_v31 }
 0x147   : >> { %1339 = vst.msk [vmem:[%s2099_s7 + $0x14] sm:$0xf] %vm1333_vm3, %v1559_v32 }
 0x148 PF: > { %s13_s12 = sadd.s32 1, %s1824_s12  }
 0x149   : > { %p10_p5 = scmp.ge.s32.totalorder %s13_s12, 4  }
 0x14b   :  { %12 = sbr.rel (!%p10_p5) target bundleno = 1 (0x1), region = 92 }

// kernel: mynet1_forward.12
= control target key start
LH: loop header
LB: loop body
LE: loop exit
PB: predicated region body
PF: predicated region fallthrough
CT: control target
= control target key end

     0   :  { %s2120_s12 = smov 0   ;;  %s2432_s0 = inlined_call_operand.vmem [shape: bf16[2,48,54,64], index: 0, kind: input, shape index: {}]   ;;  %s2433_s1 = inlined_call_operand.vmem [shape: bf16[9,64,64], index: 1, kind: input, shape index: {}]   ;;  %s2434_s2 = inlined_call_operand.vmem [shape: f32[1,64], index: 2, kind: input, shape index: {}]   ;;  %s2435_s3 = inlined_call_operand.vmem [shape: bf16[2,46,52,64], index: 3, kind: output, shape index: {}]  }
   0x1 LB: > { %s1556_s13 = sadd.s32 4294967295, %s2094_s12   ;;  %p1560_p0 = scmp.ge.s32.totalorder %s2094_s12, 1  ;;  %s2094_s12 = sphi %s2120_s12, %s13_s12  }
   0x2   : > { %p137_p1 = scmp.lt.s32.totalorder %s2094_s12, 3 }
   0x4   : > { %p138_p2 = pnand %p1560_p0, %p137_p1 }
   0x5   : > { %p161_p3 = scmp.lt.s32.totalorder (!%p138_p2), %s1556_s13, 1  ;;  %v2131_v0 = vld [vmem:[%s2434_s2] ss:$0 sm:$0xff] (!%p138_p2)  ;;  %s2143_s24 = smov (!%p138_p2), 0  }
   0x6   : > { %141 = sbr.rel (%p138_p2) target bundleno = 326 (0x146), region = 32 }
   0xd   : > { %s2437_s13 = smov (!%p161_p3, %s1556_s13), 1 }
   0xe   : > { %s2012_s16 = smul.u32 1344, %s2437_s13 }
   0xf   : > { %s2013_s17 = smul.u32 1288, %s2437_s13 }
  0x10   : > { %s2136_s20 = scalar_lea.vmem %s2432_s0, %s2012_s16 }
  0x11   : > { %s2141_s23 = scalar_lea.vmem %s2435_s3, %s2013_s17 }
  0x12 LB: >> { %v2030_v1 = vld [vmem:[%s2433_s1 + $0x20] sm:$0xff]   ;;  %v2032_v3 = vld [vmem:[%s2433_s1 + $0x28] sm:$0xff]   ;;  %s1747_s4 = smul.u32 28, %s2098_s24  ;;  %v2034_v5 = vld [vmem:[%s2433_s1 + $0x30] sm:$0xff]   ;;  %vm281_vm0 = vcmask 523264   ;;  %vm471_vm2 = vcmask 1046528   ;;  %s2098_s24 = sphi %s2143_s24, %s178_s24  }
  0x13   : >> { %v2031_v2 = vld [vmem:[%s2433_s1 + $0x80] sm:$0xff]   ;;  %1828 = vmatprep.subr.bf16.mxu1 %v2030_v1  ;;  %v2033_v4 = vld [vmem:[%s2433_s1 + $0x88] sm:$0xff]   ;;  %v2035_v6 = vld [vmem:[%s2433_s1 + $0x90] sm:$0xff]   ;;  %vm225_vm1 = vsmask.f32 7424  ;;  %vm1477_vm3 = vcmask 519168  }
  0x14   : >> { %1892 = vmatprep.subr.bf16.mxu0 %v2031_v2  ;;  %1829 = vmatpush3.bf16.msra.mxu1 %v2030_v1  ;;  %s2170_s11 = scalar_lea.vmem %s2136_s20, %s1747_s4  ;;  %v2036_v7 = vld [vmem:[%s2433_s1 + $0x38] sm:$0xff]   ;;  %v2043_v26 = vld [vmem:[%s2433_s1] sm:$0xff]   ;;  %v2046_v40 = vld [vmem:[%s2433_s1 + $0x8] sm:$0xff]   ;;  %vm1484_vm4 = vcmask 517120   ;;  %s178_s24 = sadd.s32 1, %s2098_s24  }
  0x15   : >> { %1893 = vmatpush3.bf16.msra.mxu0 %v2031_v2  ;;  %1830 = vmatprep.subr.bf16.mxu1 %v2032_v3  ;;  %v2037_v8 = vld [vmem:[%s2433_s1 + $0x98] sm:$0xff]   ;;  %v182_v9 = vld [vmem:[%s2170_s11] sm:$0xf]  ;;  %v2180_v10 = vld [vmem:[%s2170_s11 + $0x4] sm:$0xf]  ;;  %p175_p4 = scmp.ge.s32.totalorder %s178_s24, 46  }
  0x16   : >> { %1894 = vmatprep.subr.bf16.mxu0 %v2033_v4  ;;  %v2183_v11 = vcombine.low %v182_v9, %v2180_v10  ;;  %v2186_v12 = vld [vmem:[%s2170_s11 + $0x8] sm:$0xff]   ;;  %v1610_v14 = vld [vmem:[%s2170_s11 + $0x1c] sm:$0xf]  ;;  %v2193_v15 = vld [vmem:[%s2170_s11 + $0x20] sm:$0xf] }
  0x17   : >> { %v2189_v13 = vld [vmem:[%s2170_s11 + $0x24] sm:$0xff]   ;;  %v234_v18 = vshll.u32 %v2186_v12, 16  ;;  %v238_v19 = vshrl.u32 %v2186_v12, 16  ;;  %v2200_v20 = vcombine.low %v1610_v14, %v2193_v15  ;;  %v2205_v25 = vld [vmem:[%s2170_s11 + $0x10] sm:$0xff]   ;;  %v1655_v63 = vld [vmem:[%s2170_s11 + $0x1c] sm:$0xe] }
  0x18   : >> { %1831 = vmatpush3.bf16.msra.mxu1 %v2032_v3  ;;  %v227_v16 = vshrl.u32 %v2183_v11, 16  ;;  %v229_v17 = vshll.u32 %v2183_v11, 16  ;;  %v750_v21 = vshll.u32 %v2189_v13, 16  ;;  %v754_v22 = vshrl.u32 %v2189_v13, 16  ;;  %v2213_v30 = vld [vmem:[%s2170_s11 + $0x2c] sm:$0xff]   ;;  %v2045_v34 = vld [vmem:[%s2433_s1 + $0xa0] sm:$0xff]  }
  0x19   : >> { %1895 = vmatpush3.bf16.msra.mxu0 %v2033_v4  ;;  %1832 = vmatprep.subr.bf16.mxu1 %v2034_v5  ;;  %v236_v24 = vrot.slane %v234_v18, 1  ;;  %v744_v27 = vshrl.u32 %v2200_v20, 16  ;;  %v746_v28 = vshll.u32 %v2200_v20, 16  ;;  %v242_v33 = vshll.u32 %v2205_v25, 16  ;;  %v2047_v43 = vld [vmem:[%s2433_s1 + $0xa8] sm:$0xff]   ;;  %v2050_v56 = vld [vmem:[%s2433_s1 + $0x10] sm:$0xff]  }
  0x1a   : >> { %1896 = vmatprep.subr.bf16.mxu0 %v2035_v6  ;;  %v231_v23 = vrot.slane %v229_v17, 1  ;;  %v752_v29 = vrot.slane %v750_v21, 1  ;;  %v757_v37 = vshll.u32 %v2213_v30, 16  ;;  %v2230_v45 = vld [vmem:[%s2170_s11 + $0x18] ss:$0 sps:$4 sm:$0x77]   ;;  %v1664_v4 = vcombine.low %v1655_v63, %v2193_v15 }
  0x1b   : >> { %v240_v32 = vor.u32 %v238_v19, %v236_v24  ;;  %v748_v35 = vrot.slane %v746_v28, 1  ;;  %v244_v39 = vrot.slane %v242_v33, 1  ;;  %v246_v46 = vshrl.u32 %v2205_v25, 16  ;;  %v2237_v49 = vld [vmem:[%s2170_s11 + $0x34] ss:$0 sps:$4 sm:$0x77]  }
  0x1c   : >> { %1833 = vmatpush3.bf16.msra.mxu1 %v2034_v5  ;;  %v232_v31 = vor.u32 %v231_v23, %v227_v16  ;;  %v756_v36 = vor.u32 %v754_v22, %v752_v29  ;;  %v759_v42 = vrot.slane %v757_v37, 1  ;;  %v761_v50 = vshrl.u32 %v2213_v30, 16  ;;  %v2051_v60 = vld [vmem:[%s2433_s1 + $0xb0] sm:$0xff]   ;;  %v2052_v3 = vld [vmem:[%s2433_s1 + $0x18] sm:$0xff]   ;;  %v2055_v9 = vld [vmem:[%s2433_s1 + $0x40] sm:$0xff]  }
  0x1d   : >> { %1897 = vmatpush3.bf16.msra.mxu0 %v2035_v6  ;;  %1834 = vmatprep.subr.bf16.mxu1 %v2036_v7  ;;  %v749_v41 = vor.u32 %v748_v35, %v744_v27  ;;  %v245_v44 = vsel %vm225_vm1, %v240_v32, %v244_v39  ;;  %v248_v51 = vor.u32 %v246_v46, %v244_v39  ;;  %v250_v52 = vshll.u32 %v2230_v45, 16  ;;  %v2053_v6 = vld [vmem:[%s2433_s1 + $0xb8] sm:$0xff]   ;;  %v2056_v15 = vld [vmem:[%s2433_s1 + $0xc0] sm:$0xff]   ;;  %v2057_v16 = vld [vmem:[%s2433_s1 + $0x48] sm:$0xff]  }
  0x1e   : >> { %1898 = vmatprep.subr.bf16.mxu0 %v2037_v8  ;;  %v237_v38 = vsel %vm225_vm1, %v232_v31, %v236_v24  ;;  %v760_v48 = vsel %vm225_vm1, %v756_v36, %v759_v42  ;;  %v254_v53 = vshrl.u32 %v2230_v45, 16  ;;  %v763_v54 = vor.u32 %v761_v50, %v759_v42  ;;  %v458_v17 = vld [vmem:[%s2170_s11] sm:$0xe]  ;;  %v2058_v21 = vld [vmem:[%s2433_s1 + $0xc8] sm:$0xff]   ;;  %v2061_v24 = vld [vmem:[%s2433_s1 + $0xd0] sm:$0xff]  }
  0x1f   : >> { %1836 = vmatprep.mubr.msk.bf16.mxu1 %vm281_vm0, %v237_v38  ;;  %v753_v47 = vsel %vm225_vm1, %v749_v41, %v752_v29  ;;  %v765_v55 = vshll.u32 %v2237_v49, 16  ;;  %v769_v57 = vshrl.u32 %v2237_v49, 16  ;;  %v252_v58 = vrot.slane %v250_v52, 1  ;;  %v2059_v23 = vld [vmem:[%s2170_s11 + $0x18] ss:$0 sps:$4 sm:$0x33]  }
  0x20   : >> { %1835 = vmatpush3.bf16.msra.mxu1 %v2036_v7  ;;  %1900 = vmatprep.mubr.msk.bf16.mxu0 %vm281_vm0, %v753_v47  ;;  %v893_v5 = vrot.slane %v2189_v13, 1  ;;  %v892_v7 = vrot.slane %v1664_v4, 1  ;;  %v895_v14 = vrot.slane %v2213_v30, 1  ;;  %v1601_v19 = vcombine.low %v458_v17, %v2180_v10  ;;  %v2060_v10 = vld [vmem:[%s2433_s1 + $0x50] sm:$0xff]   ;;  %v1673_v28 = vld [vmem:[%s2170_s11 + $0x38] sm:$0xf] }
  0x21   : >> { %1899 = vmatpush3.bf16.msra.mxu0 %v2037_v8  ;;  %1844 = vmatprep.subr.bf16.mxu1 %v2043_v26  ;;  %v767_v59 = vrot.slane %v765_v55, 1  ;;  %v253_v61 = vsel %vm225_vm1, %v248_v51, %v252_v58  ;;  %v256_v62 = vor.u32 %v254_v53, %v252_v58  ;;  %v473_v27 = vrot.slane %v2186_v12, 1  ;;  %v2305_v29 = vld [vmem:[%s2170_s11 + $0x3c] sm:$0xf]  ;;  %v2066_v35 = vld [vmem:[%s2433_s1 + $0x60] sm:$0xff]   ;;  %v2336_v42 = vld [vmem:[%s2170_s11 + $0x48] sm:$0xff]  }
  0x22   : >> { %1908 = vmatprep.subr.bf16.mxu0 %v2045_v34  ;;  %v894_v8 = vsel %vm471_vm2, %v892_v7, %v893_v5  ;;  %v896_v18 = vsel %vm471_vm2, %v893_v5, %v895_v14  ;;  %v2062_v31 = vld [vmem:[%s2433_s1 + $0x58] sm:$0xff]   ;;  %v1688_v33 = vcombine.low %v1673_v28, %v2305_v29  ;;  %v477_v36 = vrot.slane %v2230_v45, 1  ;;  %v2068_v37 = vld [vmem:[%s2433_s1 + $0xe0] sm:$0xff]   ;;  %v2072_v47 = vld [vmem:[%s2433_s1 + $0x70] sm:$0xff]  }
  0x23   : >> { %1837 = vmatmul.mubr.msk.bf16.vlgmr.msra.gmra.mrb[0].mxu1 %vm281_vm0, %v245_v44  ;;  %v768_v1 = vsel %vm225_vm1, %v763_v54, %v767_v59  ;;  %v771_v2 = vor.u32 %v769_v57, %v767_v59  ;;  %v2329_v39 = vld [vmem:[%s2170_s11 + $0x40] sm:$0xff]   ;;  %v2355_v51 = vld [vmem:[%s2170_s11 + $0x50] ss:$0 sps:$4 sm:$0x77]   ;;  %v2075_v53 = vld [vmem:[%s2433_s1 + $0x78] sm:$0xff]   ;;  %v1177_v54 = vshll.u32 %v2336_v42, 16 }
  0x24   : >> { %1845 = vmatpush3.bf16.msra.mxu1 %v2043_v26  ;;  %1901 = vmatmul.mubr.msk.bf16.vlgmr.msra.gmra.mrb[0].mxu0 %vm281_vm0, %v760_v48  ;;  %v472_v26 = vrot.slane %v1601_v19, 1  ;;  %v1166_v38 = vshll.u32 %v1688_v33, 16  ;;  %v1164_v44 = vshrl.u32 %v1688_v33, 16  ;;  %v1170_v46 = vshll.u32 %v2329_v39, 16  ;;  %v2074_v48 = vld [vmem:[%s2433_s1 + $0xf0] sm:$0xff]  }
  0x25   : >> { %1846 = vmatprep.subr.bf16.mxu1 %v2046_v40  ;;  %1909 = vmatpush3.bf16.msra.mxu0 %v2045_v34  ;;  %v475_v34 = vrot.slane %v2205_v25, 1  ;;  %v2073_v52 = vld [vmem:[%s2170_s11 + $0x50] ss:$0 sps:$4 sm:$0x33]   ;;  %v1174_v55 = vshrl.u32 %v2329_v39, 16  ;;  %v1181_v58 = vshrl.u32 %v2336_v42, 16 }
  0x26   : >> { %1910 = vmatprep.subr.bf16.mxu0 %v2047_v43  ;;  %1840 = vmatprep.mubr.msk.bf16.mxu1 %vm281_vm0, %v253_v61  ;;  %v474_v32 = vsel %vm471_vm2, %v472_v26, %v473_v27  ;;  %v1168_v45 = vrot.slane %v1166_v38, 1  ;;  %v1172_v50 = vrot.slane %v1170_v46, 1  ;;  %v1185_v59 = vshll.u32 %v2355_v51, 16  ;;  %v2077_v61 = vld [vmem:[%s2433_s1 + $0x100] sm:$0xff]   ;;  %v2081_v7 = vld [vmem:[%s2433_s1 + $0x110] sm:$0xff]  }
  0x27   : >> { %1904 = vmatprep.mubr.msk.bf16.mxu0 %vm281_vm0, %v768_v1  ;;  %v478_v41 = vsel %vm471_vm2, %v475_v34, %v477_v36 }
  0x28   : >> { %1847 = vmatpush3.bf16.msra.mxu1 %v2046_v40  ;;  %v2069_v40 = vld [vmem:[%s2433_s1 + $0x68] sm:$0xff]   ;;  %v1187_v1 = vrot.slane %v1185_v59, 1 }
  0x29   : >> { %1848 = vmatprep.subr.bf16.mxu1 %v2050_v56  ;;  %1911 = vmatpush3.bf16.msra.mxu0 %v2047_v43  ;;  %v2070_v43 = vld [vmem:[%s2433_s1 + $0xe8] sm:$0xff]  }
  0x2a   : >> { %1912 = vmatprep.subr.bf16.mxu0 %v2051_v60 }
  0x2b   : >> { %1841 = vmatmul.mubr.msk.bf16.gmra.mrb[4].mxu1 %vm281_vm0, %v256_v62  ;;  %v1176_v62 = vor.u32 %v1174_v55, %v1172_v50 }
  0x2c   : >> { %1849 = vmatpush3.bf16.msra.mxu1 %v2050_v56  ;;  %1852 = vmatprep.mubr.msk.bf16.mxu1 %vm281_vm0, %v2183_v11  ;;  %v897_v11 = vrot.slane %v2237_v49, 1  ;;  %v1169_v49 = vor.u32 %v1168_v45, %v1164_v44  ;;  %v2076_v56 = vld [vmem:[%s2433_s1 + $0xf8] sm:$0xff]  }
  0x2d   : >> { %1905 = vmatmul.mubr.msk.bf16.gmra.mrb[4].mxu0 %vm281_vm0, %v771_v2  ;;  %1850 = vmatprep.subr.bf16.mxu1 %v2052_v3  ;;  %v1718_v2 = vld [vmem:[%s2170_s11 + $0x38] sm:$0xe] }
  0x2e   : >> { %1913 = vmatpush3.bf16.msra.mxu0 %v2051_v60  ;;  %1916 = vmatprep.mubr.msk.bf16.mxu0 %vm281_vm0, %v894_v8  ;;  %v898_v22 = vsel %vm471_vm2, %v895_v14, %v897_v11  ;;  %v1173_v57 = vsel %vm225_vm1, %v1169_v49, %v1172_v50  ;;  %v1179_v60 = vrot.slane %v1177_v54, 1  ;;  %v1727_v5 = vcombine.low %v1718_v2, %v2305_v29 }
  0x2f   : >> { %1914 = vmatprep.subr.bf16.mxu0 %v2053_v6  ;;  %v1317_v8 = vrot.slane %v2355_v51, 1 }
  0x30   : >> { %1851 = vmatpush3.bf16.msra.mxu1 %v2052_v3  ;;  %v1183_v63 = vor.u32 %v1181_v58, %v1179_v60  ;;  %v1180_v3 = vsel %vm225_vm1, %v1176_v62, %v1179_v60  ;;  %v1312_v14 = vrot.slane %v1727_v5, 1 }
  0x31   : >> { %1860 = vmatprep.subr.bf16.mxu1 %v2055_v9 }
  0x32   : >> { %1915 = vmatpush3.bf16.msra.mxu0 %v2053_v6  ;;  %v1188_v4 = vsel %vm225_vm1, %v1183_v63, %v1187_v1  ;;  %v1189_v6 = vshrl.u32 %v2355_v51, 16 }
  0x33   : >> { %1853 = vmatmul.mubr.msk.bf16.vlgmr.msra.gmra.mrb[0].mxu1 %vm281_vm0, %v2186_v12  ;;  %1924 = vmatprep.subr.bf16.mxu0 %v2056_v15  ;;  %v2063_v12 = vld [vmem:[%s2433_s1 + $0xd8] sm:$0xff]  }
  0x34   : >> { %1861 = vmatpush3.bf16.msra.mxu1 %v2055_v9  ;;  %1856 = vmatprep.mubr.msk.bf16.mxu1 %vm281_vm0, %v2205_v25  ;;  %v476_v25 = vsel %vm471_vm2, %v473_v27, %v475_v34  ;;  %v2080_v9 = vld [vmem:[%s2170_s11 + $0x34] ss:$0 sps:$4 sm:$0x33]   ;;  %s1476_s11 = scalar_lea.vmem %s2141_s23, %s1747_s4 }
  0x35   : >> { %1917 = vmatmul.mubr.msk.bf16.vlgmr.msra.gmra.mrb[0].mxu0 %vm281_vm0, %v896_v18  ;;  %1862 = vmatprep.subr.bf16.mxu1 %v2057_v16 }
  0x36   : >> { %1925 = vmatpush3.bf16.msra.mxu0 %v2056_v15  ;;  %1920 = vmatprep.mubr.msk.bf16.mxu0 %vm281_vm0, %v898_v22  ;;  %v1191_v15 = vor.u32 %v1189_v6, %v1187_v1 }
  0x37   : >> { %1926 = vmatprep.subr.bf16.mxu0 %v2058_v21 }
  0x38   : >> { %1863 = vmatpush3.bf16.msra.mxu1 %v2057_v16 }
  0x39   : >> { %1864 = vmatprep.subr.bf16.mxu1 %v2060_v10 }
  0x3a   : >> { %1927 = vmatpush3.bf16.msra.mxu0 %v2058_v21 }
  0x3b   : >> { %1857 = vmatmul.mubr.msk.bf16.gmra.mrb[8].mxu1 %vm281_vm0, %v2059_v23  ;;  %1928 = vmatprep.subr.bf16.mxu0 %v2061_v24 }
  0x3c   : >> { %1865 = vmatpush3.bf16.msra.mxu1 %v2060_v10  ;;  %1868 = vmatprep.mubr.msk.bf16.mxu1 %vm281_vm0, %v474_v32 }
  0x3d   : >> { %1921 = vmatmul.mubr.msk.bf16.gmra.mrb[8].mxu0 %vm281_vm0, %v897_v11  ;;  %1866 = vmatprep.subr.bf16.mxu1 %v2062_v31  ;;  %v2082_v11 = vld [vmem:[%s2433_s1 + $0x118] sm:$0xff]  }
  0x3e   : >> { %1929 = vmatpush3.bf16.msra.mxu0 %v2061_v24  ;;  %1932 = vmatprep.mubr.msk.bf16.mxu0 %vm281_vm0, %v1688_v33 }
  0x3f   : >> { %1930 = vmatprep.subr.bf16.mxu0 %v2063_v12 }
  0x40   : >> { %1867 = vmatpush3.bf16.msra.mxu1 %v2062_v31 }
  0x41   : >> { %1876 = vmatprep.subr.bf16.mxu1 %v2066_v35 }
  0x42   : >> { %1931 = vmatpush3.bf16.msra.mxu0 %v2063_v12 }
  0x43   : >> { %1869 = vmatmul.mubr.msk.bf16.vlgmr.msra.gmra.mrb[0].mxu1 %vm281_vm0, %v476_v25  ;;  %1940 = vmatprep.subr.bf16.mxu0 %v2068_v37 }
  0x44   : >> { %1877 = vmatpush3.bf16.msra.mxu1 %v2066_v35  ;;  %1872 = vmatprep.mubr.msk.bf16.mxu1 %vm281_vm0, %v478_v41 }
  0x45   : >> { %1933 = vmatmul.mubr.msk.bf16.vlgmr.msra.gmra.mrb[0].mxu0 %vm281_vm0, %v2329_v39  ;;  %1878 = vmatprep.subr.bf16.mxu1 %v2069_v40 }
  0x46   : >> { %1941 = vmatpush3.bf16.msra.mxu0 %v2068_v37  ;;  %1936 = vmatprep.mubr.msk.bf16.mxu0 %vm281_vm0, %v2336_v42 }
  0x47   : >> { %1942 = vmatprep.subr.bf16.mxu0 %v2070_v43 }
  0x48   : >> { %1879 = vmatpush3.bf16.msra.mxu1 %v2069_v40 }
  0x49   : >> { %1880 = vmatprep.subr.bf16.mxu1 %v2072_v47 }
  0x4a   : >> { %1943 = vmatpush3.bf16.msra.mxu0 %v2070_v43 }
  0x4b   : >> { %1873 = vmatmul.mubr.msk.bf16.gmra.mrb[12].mxu1 %vm281_vm0, %v477_v36  ;;  %1944 = vmatprep.subr.bf16.mxu0 %v2074_v48 }
  0x4c   : >> { %1881 = vmatpush3.bf16.msra.mxu1 %v2072_v47  ;;  %1884 = vmatprep.mubr.msk.bf16.mxu1 %vm281_vm0, %v2200_v20  ;;  %v2078_v20 = vld [vmem:[%s2433_s1 + $0x108] sm:$0xff]  }
  0x4d   : >> { %1937 = vmatmul.mubr.msk.bf16.gmra.mrb[12].mxu0 %vm281_vm0, %v2073_v52  ;;  %1882 = vmatprep.subr.bf16.mxu1 %v2075_v53 }
  0x4e   : >> { %1945 = vmatpush3.bf16.msra.mxu0 %v2074_v48  ;;  %1948 = vmatprep.mubr.msk.bf16.mxu0 %vm281_vm0, %v1173_v57 }
  0x4f   : >> { %1946 = vmatprep.subr.bf16.mxu0 %v2076_v56 }
  0x50   : >> { %1883 = vmatpush3.bf16.msra.mxu1 %v2075_v53 }
  0x51   : >> { %1972 = vmatprep.subr.bf16.mxu1 %v2077_v61 }
  0x52   : >> { %1947 = vmatpush3.bf16.msra.mxu0 %v2076_v56 }
  0x53   : >> { %1885 = vmatmul.mubr.msk.bf16.vlgmr.msra.gmra.mrb[0].mxu1 %vm281_vm0, %v2189_v13  ;;  %1956 = vmatprep.subr.bf16.mxu0 %v2077_v61  ;;  %v1315_v13 = vrot.slane %v2336_v42, 1 }
  0x54   : >> { %1976 = vmatpush3.bf16.msra.mxu1 %v2077_v61  ;;  %1888 = vmatprep.mubr.msk.bf16.mxu1 %vm281_vm0, %v2213_v30  ;;  %v1313_v30 = vrot.slane %v2329_v39, 1 }
  0x55   : >> { %1949 = vmatmul.mubr.msk.bf16.vlgmr.msra.gmra.mrb[0].mxu0 %vm281_vm0, %v1180_v3  ;;  %1973 = vmatprep.subr.bf16.mxu1 %v2078_v20  ;;  %v1318_v16 = vsel %vm471_vm2, %v1315_v13, %v1317_v8 }
  0x56   : >> { %1957 = vmatpush3.bf16.msra.mxu0 %v2077_v61  ;;  %1952 = vmatprep.mubr.msk.bf16.mxu0 %vm281_vm0, %v1188_v4  ;;  %v1314_v17 = vsel %vm471_vm2, %v1312_v14, %v1313_v30  ;;  %v1316_v18 = vsel %vm471_vm2, %v1313_v30, %v1315_v13 }
  0x57   : >> { %1958 = vmatprep.subr.bf16.mxu0 %v2078_v20 }
  0x58   : >> { %1977 = vmatpush3.bf16.msra.mxu1 %v2078_v20 }
  0x59   : >> { %1974 = vmatprep.subr.bf16.mxu1 %v2081_v7 }
  0x5a   : >> { %1959 = vmatpush3.bf16.msra.mxu0 %v2078_v20 }
  0x5b   : >> { %1889 = vmatmul.mubr.msk.bf16.gmra.mrb[16].mxu1 %vm281_vm0, %v2080_v9  ;;  %1960 = vmatprep.subr.bf16.mxu0 %v2081_v7 }
  0x5c   : >> { %1978 = vmatpush3.bf16.msra.mxu1 %v2081_v7  ;;  %1968 = vmatprep.mubr.msk.bf16.mxu1 %vm281_vm0, %v1318_v16 }
  0x5d   : >> { %1953 = vmatmul.mubr.msk.bf16.gmra.mrb[16].mxu0 %vm281_vm0, %v1191_v15  ;;  %1975 = vmatprep.subr.bf16.mxu1 %v2082_v11 }
  0x5e   : >> { %1961 = vmatpush3.bf16.msra.mxu0 %v2081_v7  ;;  %1964 = vmatprep.mubr.msk.bf16.mxu0 %vm281_vm0, %v1314_v17 }
  0x5f   : >> { %1962 = vmatprep.subr.bf16.mxu0 %v2082_v11 }
  0x60   : >> { %1979 = vmatpush3.bf16.msra.mxu1 %v2082_v11 }
  0x62   : >> { %1963 = vmatpush3.bf16.msra.mxu0 %v2082_v11 }
  0x63   : >> { %1969 = vmatmul.mubr.msk.bf16.vlgmr.msra.gmra.mrb[20].mxu1 %vm281_vm0, %v1317_v8 }
  0x65   : >> { %1965 = vmatmul.mubr.msk.bf16.vlgmr.msra.gmra.mrb[0].mxu0 %vm281_vm0, %v1316_v18 }
  0xfe   : >> { %v1842_v19 = vpop.f32.mrb[4].mxu1 }
  0xff   : >> { %v344_v21 = vpop.f32.mrb[5].mxu1 }
 0x100   : >> { %v1906_v22 = vpop.f32.mrb[4].mxu0  ;;  %v1843_v10 = vpop.f32.mrb[6].mxu1 }
 0x101   : >> { %v858_v23 = vpop.f32.mrb[5].mxu0  ;;  %v347_v24 = vpop.f32.mrb[7].mxu1 }
 0x102   : >> { %v1907_v26 = vpop.f32.mrb[6].mxu0 }
 0x103   : >> { %v861_v27 = vpop.f32.mrb[7].mxu0 }
 0x10e   : >> { %v1858_v28 = vpop.f32.mrb[8].mxu1 }
 0x10f   : >> { %v453_v29 = vadd.f32 %v1858_v28, %v1842_v19  ;;  %v444_v31 = vpop.f32.mrb[9].mxu1 }
 0x110   : >> { %v1922_v32 = vpop.f32.mrb[8].mxu0  ;;  %v445_v33 = vadd.f32 %v444_v31, %v344_v21  ;;  %v1859_v12 = vpop.f32.mrb[10].mxu1 }
 0x111   : >> { %v985_v34 = vpop.f32.mrb[9].mxu0  ;;  %v447_v35 = vpop.f32.mrb[11].mxu1 }
 0x112   : >> { %v1923_v36 = vpop.f32.mrb[10].mxu0  ;;  %v448_v37 = vadd.f32 %v447_v35, %v347_v24 }
 0x113   : >> { %v988_v38 = vpop.f32.mrb[11].mxu0 }
 0x11e   : >> { %v1874_v25 = vpop.f32.mrb[12].mxu1 }
 0x11f   : >> { %v585_v39 = vadd.f32 %v1874_v25, %v453_v29  ;;  %v565_v40 = vpop.f32.mrb[13].mxu1 }
 0x120   : >> { %v1938_v41 = vpop.f32.mrb[12].mxu0  ;;  %v583_v42 = vadd.f32 %v565_v40, %v445_v33  ;;  %v1875_v43 = vpop.f32.mrb[14].mxu1 }
 0x121   : >> { %v1130_v44 = vpop.f32.mrb[13].mxu0  ;;  %v568_v45 = vpop.f32.mrb[15].mxu1 }
 0x122   : >> { %v1939_v46 = vpop.f32.mrb[14].mxu0  ;;  %v584_v47 = vadd.f32 %v568_v45, %v448_v37 }
 0x123   : >> { %v1133_v48 = vpop.f32.mrb[15].mxu0 }
 0x126   : >> { %v1886_v49 = vpop.f32.mrb[0].mxu1 }
 0x127   : >> { %v694_v50 = vpop.f32.mrb[1].mxu1 }
 0x128   : >> { %v1887_v51 = vpop.f32.mrb[2].mxu1 }
 0x129   : >> { %v697_v52 = vpop.f32.mrb[3].mxu1 }
 0x12e   : >> { %v1890_v53 = vpop.f32.mrb[16].mxu1 }
 0x12f   : >> { %v730_v54 = vadd.f32 %v1890_v53, %v585_v39  ;;  %v710_v55 = vpop.f32.mrb[17].mxu1 }
 0x130   : >> { %v1954_v56 = vpop.f32.mrb[16].mxu0  ;;  %v728_v57 = vadd.f32 %v710_v55, %v583_v42  ;;  %v1891_v58 = vpop.f32.mrb[18].mxu1 }
 0x131   : >> { %v878_v59 = vadd.f32 %v1906_v22, %v730_v54  ;;  %v1278_v60 = vpop.f32.mrb[17].mxu0  ;;  %v713_v61 = vpop.f32.mrb[19].mxu1 }
 0x132   : >> { %v876_v62 = vadd.f32 %v858_v23, %v728_v57  ;;  %v1955_v63 = vpop.f32.mrb[18].mxu0  ;;  %v729_v1 = vadd.f32 %v713_v61, %v584_v47 }
 0x133   : >> { %v1005_v2 = vadd.f32 %v1922_v32, %v878_v59  ;;  %v1281_v20 = vpop.f32.mrb[19].mxu0 }
 0x134   : >> { %v1003_v3 = vadd.f32 %v985_v34, %v876_v62  ;;  %v877_v4 = vadd.f32 %v861_v27, %v729_v1 }
 0x135   : >> { %v1150_v5 = vadd.f32 %v1938_v41, %v1005_v2 }
 0x136   : >> { %v1148_v6 = vadd.f32 %v1130_v44, %v1003_v3  ;;  %v1004_v7 = vadd.f32 %v988_v38, %v877_v4  ;;  %v1970_v13 = vpop.f32.mrb[20].mxu1 }
 0x137   : >> { %v1298_v8 = vadd.f32 %v1954_v56, %v1150_v5  ;;  %v1405_v9 = vpop.f32.mrb[21].mxu1 }
 0x138   : >> { %v1296_v14 = vadd.f32 %v1278_v60, %v1148_v6  ;;  %v1149_v30 = vadd.f32 %v1133_v48, %v1004_v7  ;;  %v1966_v15 = vpop.f32.mrb[0].mxu0  ;;  %v1971_v11 = vpop.f32.mrb[22].mxu1 }
 0x139   : >> { %v1980_v16 = vadd.f32 %v1966_v15, %v1886_v49  ;;  %v1425_v17 = vadd.f32 %v1970_v13, %v1298_v8  ;;  %v1389_v18 = vpop.f32.mrb[1].mxu0  ;;  %v1408_v19 = vpop.f32.mrb[23].mxu1 }
 0x13a   : >> { %v1297_v21 = vadd.f32 %v1281_v20, %v1149_v30  ;;  %v1981_v22 = vadd.f32 %v1389_v18, %v694_v50  ;;  %v1423_v10 = vadd.f32 %v1405_v9, %v1296_v14  ;;  %v1967_v23 = vpop.f32.mrb[2].mxu0 }
 0x13b   : >> { %v1434_v24 = vadd.f32 %v1980_v16, %v2131_v0  ;;  %v1438_v26 = vadd.f32 %v2131_v0, %v1425_v17  ;;  %v1982_v27 = vadd.f32 %v1967_v23, %v1887_v51  ;;  %v1392_v28 = vpop.f32.mrb[3].mxu0 }
 0x13c   : >> { %v1432_v29 = vadd.f32 %v1981_v22, %v2131_v0  ;;  %v1436_v31 = vadd.f32 %v2131_v0, %v1423_v10  ;;  %v1983_v32 = vadd.f32 %v1392_v28, %v697_v52  ;;  %v1424_v33 = vadd.f32 %v1408_v19, %v1297_v21 }
 0x13d   : >> { %v1441_v12 = vmax.f32 %v1434_v24, 0.0  ;;  %v1445_v34 = vmax.f32 %v1438_v26, 0.0  ;;  %v1435_v35 = vadd.f32 %v1982_v27, %v2131_v0 }
 0x13e   : >> { %v1439_v36 = vmax.f32 %v1432_v29, 0.0  ;;  %v1443_v37 = vmax.f32 %v1436_v31, 0.0  ;;  %v1433_v38 = vadd.f32 %v1983_v32, %v2131_v0  ;;  %v1437_v25 = vadd.f32 %v2131_v0, %v1424_v33 }
 0x13f   : >> { %v1750_v39 = vpack.c.bf16 %v1441_v12, %v1441_v12  ;;  %v1754_v40 = vpack.c.bf16 %v1445_v34, %v1445_v34  ;;  %v1442_v41 = vmax.f32 %v1435_v35, 0.0  ;;  %177 = sbr.rel (!%p175_p4) target bundleno = 18 (0x12), region = 81 }
 0x140   : >> { %v1748_v42 = vpack.c.bf16 %v1439_v36, %v1439_v36  ;;  %v1752_v43 = vpack.c.bf16 %v1443_v37, %v1443_v37  ;;  %v1440_v44 = vmax.f32 %v1433_v38, 0.0  ;;  %v1444_v45 = vmax.f32 %v1437_v25, 0.0 }
 0x141   : >> { %1480 = vst.msk [vmem:[%s1476_s11 + $0x8] sm:$0xf] %vm1477_vm3, %v1750_v39  ;;  %v1751_v46 = vpack.c.bf16 %v1442_v41, %v1442_v41 }
 0x142   : >> { %1485 = vst.msk [vmem:[%s1476_s11 + $0x18] sm:$0x3] %vm1484_vm4, %v1754_v40  ;;  %v1749_v47 = vpack.c.bf16 %v1440_v44, %v1440_v44  ;;  %v1753_v48 = vpack.c.bf16 %v1444_v45, %v1444_v45 }
 0x143   : >> { %1478 = vst.msk [vmem:[%s1476_s11] sm:$0xf] %vm1477_vm3, %v1748_v42  ;;  %1482 = vst.msk [vmem:[%s1476_s11 + $0x10] sm:$0xf] %vm1477_vm3, %v1752_v43 }
 0x144   : >> { %1481 = vst.msk [vmem:[%s1476_s11 + $0xc] sm:$0xf] %vm1477_vm3, %v1751_v46  ;;  %1479 = vst.msk [vmem:[%s1476_s11 + $0x4] sm:$0xf] %vm1477_vm3, %v1749_v47 }
 0x145   : >> { %1483 = vst.msk [vmem:[%s1476_s11 + $0x14] sm:$0xf] %vm1477_vm3, %v1753_v48 }
 0x146 PF: > { %s13_s12 = sadd.s32 1, %s2094_s12  }
 0x147   : > { %p10_p5 = scmp.ge.s32.totalorder %s13_s12, 4  }
 0x149   :  { %12 = sbr.rel (!%p10_p5) target bundleno = 1 (0x1), region = 92 }

// kernel: mynet1_forward.13
= control target key start
LH: loop header
LB: loop body
LE: loop exit
PB: predicated region body
PF: predicated region fallthrough
CT: control target
= control target key end

     0   :  { %s1703_s12 = smov 0   ;;  %s1936_s0 = inlined_call_operand.vmem [shape: bf16[2,23,28,64], index: 0, kind: input, shape index: {}]   ;;  %s1937_s1 = inlined_call_operand.vmem [shape: bf16[9,64,128], index: 1, kind: input, shape index: {}]   ;;  %s1938_s2 = inlined_call_operand.vmem [shape: f32[1,128], index: 2, kind: input, shape index: {}]   ;;  %s1939_s3 = inlined_call_operand.vmem [shape: bf16[2,21,26,128], index: 3, kind: output, shape index: {}]  }
   0x1 LB: > { %s1235_s13 = sadd.s32 4294967295, %s1677_s12   ;;  %p1239_p0 = scmp.ge.s32.totalorder %s1677_s12, 1  ;;  %s1677_s12 = sphi %s1703_s12, %s13_s12  }
   0x2   : > { %p137_p1 = scmp.lt.s32.totalorder %s1677_s12, 3 }
   0x4   : > { %p138_p2 = pnand %p1239_p0, %p137_p1 }
   0x5   : > { %p161_p3 = scmp.lt.s32.totalorder (!%p138_p2), %s1235_s13, 1  ;;  %v1714_v0 = vld [vmem:[%s1938_s2] ss:$0 sm:$0xff] (!%p138_p2)  ;;  %s1726_s24 = smov (!%p138_p2), 0  }
   0x6   : > { %141 = sbr.rel (%p138_p2) target bundleno = 325 (0x145), region = 32 }
   0xd   : > { %s1941_s13 = smov (!%p161_p3, %s1235_s13), 1 }
   0xe   : > { %s1601_s16 = smul.u32 368, %s1941_s13 }
   0xf   : > { %s1602_s17 = smul.u32 336, %s1941_s13 }
  0x10   : > { %s1719_s20 = scalar_lea.vmem %s1936_s0, %s1601_s16 }
  0x11   : > { %s1724_s23 = scalar_lea.vmem %s1939_s3, %s1602_s17 }
  0x12 LB: >> { %v1619_v1 = vld [vmem:[%s1937_s1 + $0x20] sm:$0xff]   ;;  %v1621_v3 = vld [vmem:[%s1937_s1 + $0x28] sm:$0xff]   ;;  %s1396_s4 = sshll.u32 %s1681_s24, 4  ;;  %v1623_v5 = vld [vmem:[%s1937_s1 + $0x30] sm:$0xff]   ;;  %vm214_vm0 = vsmask.f32 7424  ;;  %s1681_s24 = sphi %s1726_s24, %s178_s24  }
  0x13   : >> { %v1620_v2 = vld [vmem:[%s1937_s1 + $0x80] sm:$0xff]   ;;  %1461 = vmatprep.subr.bf16.mxu1 %v1619_v1  ;;  %v1622_v4 = vld [vmem:[%s1937_s1 + $0x88] sm:$0xff]   ;;  %v1624_v6 = vld [vmem:[%s1937_s1 + $0x90] sm:$0xff]   ;;  %s1753_s11 = scalar_lea.vmem %s1719_s20, %s1396_s4  ;;  %vm254_vm1 = vcmask 523264   ;;  %vm404_vm2 = vcmask 1046528   ;;  %s1160_s7 = scalar_lea.vmem %s1724_s23, %s1396_s4 }
  0x14   : >> { %1509 = vmatprep.subr.bf16.mxu0 %v1620_v2  ;;  %1462 = vmatpush3.bf16.msra.mxu1 %v1619_v1  ;;  %v1625_v7 = vld [vmem:[%s1937_s1 + $0x38] sm:$0xff]   ;;  %v182_v9 = vld [vmem:[%s1753_s11] sm:$0xf]  ;;  %v1763_v10 = vld [vmem:[%s1753_s11 + $0x4] sm:$0xf]  ;;  %s178_s24 = sadd.s32 1, %s1681_s24  }
  0x15   : >> { %1510 = vmatpush3.bf16.msra.mxu0 %v1620_v2  ;;  %1463 = vmatprep.subr.bf16.mxu1 %v1621_v3  ;;  %v1626_v8 = vld [vmem:[%s1937_s1 + $0x98] sm:$0xff]   ;;  %v1766_v11 = vld [vmem:[%s1753_s11 + $0x8] sm:$0xf]  ;;  %v194_v12 = vld [vmem:[%s1753_s11 + $0xc] sm:$0x3]  ;;  %v1252_v13 = vcombine.low %v182_v9, %v1763_v10  ;;  %p175_p4 = scmp.ge.s32.totalorder %s178_s24, 21  }
  0x16   : >> { %1511 = vmatprep.subr.bf16.mxu0 %v1622_v4  ;;  %v1771_v14 = vcombine.low %v1766_v11, %v194_v12  ;;  %v1629_v15 = vld [vmem:[%s1937_s1] sm:$0xff]   ;;  %v1283_v16 = vld [vmem:[%s1753_s11 + $0x10] sm:$0xf]  ;;  %v1284_v19 = vld [vmem:[%s1753_s11 + $0x14] sm:$0xf] }
  0x17   : >> { %v216_v17 = vshrl.u32 %v1252_v13, 16  ;;  %v218_v18 = vshll.u32 %v1252_v13, 16  ;;  %v1779_v20 = vld [vmem:[%s1753_s11 + $0x18] sm:$0xf]  ;;  %v1783_v23 = vcombine.low %v1283_v16, %v1284_v19  ;;  %v1303_v24 = vld [vmem:[%s1753_s11 + $0x1c] sm:$0x3] }
  0x18   : >> { %1464 = vmatpush3.bf16.msra.mxu1 %v1621_v3  ;;  %v223_v21 = vshll.u32 %v1771_v14, 16  ;;  %v227_v22 = vshrl.u32 %v1771_v14, 16  ;;  %v1787_v26 = vcombine.low %v1779_v20, %v1303_v24  ;;  %v1632_v27 = vld [vmem:[%s1937_s1 + $0xa0] sm:$0xff]   ;;  %v1633_v38 = vld [vmem:[%s1937_s1 + $0x8] sm:$0xff]   ;;  %v1635_v43 = vld [vmem:[%s1937_s1 + $0x10] sm:$0xff]   ;;  %v406_v56 = vrot.slane %v1771_v14, 1 }
  0x19   : >> { %1512 = vmatpush3.bf16.msra.mxu0 %v1622_v4  ;;  %1465 = vmatprep.subr.bf16.mxu1 %v1623_v5  ;;  %v220_v25 = vrot.slane %v218_v18, 1  ;;  %v614_v29 = vshrl.u32 %v1783_v23, 16  ;;  %v616_v30 = vshll.u32 %v1783_v23, 16  ;;  %v1634_v42 = vld [vmem:[%s1937_s1 + $0xa8] sm:$0xff]   ;;  %v1319_v44 = vld [vmem:[%s1753_s11 + $0x10] sm:$0xe] }
  0x1a   : >> { %1513 = vmatprep.subr.bf16.mxu0 %v1624_v6  ;;  %v225_v28 = vrot.slane %v223_v21, 1  ;;  %v621_v32 = vshll.u32 %v1787_v26, 16  ;;  %v625_v33 = vshrl.u32 %v1787_v26, 16  ;;  %v1328_v45 = vcombine.low %v1319_v44, %v1284_v19  ;;  %v1636_v47 = vld [vmem:[%s1937_s1 + $0xb0] sm:$0xff]   ;;  %v1637_v49 = vld [vmem:[%s1937_s1 + $0x18] sm:$0xff]   ;;  %v1639_v52 = vld [vmem:[%s1937_s1 + $0x40] sm:$0xff]  }
  0x1b   : >> { %v221_v31 = vor.u32 %v220_v25, %v216_v17  ;;  %v618_v35 = vrot.slane %v616_v30, 1  ;;  %v725_v46 = vrot.slane %v1787_v26, 1  ;;  %v1638_v50 = vld [vmem:[%s1937_s1 + $0xb8] sm:$0xff]   ;;  %v185_v53 = vld [vmem:[%s1753_s11 + $0xc] sm:$0x1]  ;;  %v1641_v57 = vld [vmem:[%s1937_s1 + $0xc0] sm:$0xff]  }
  0x1c   : >> { %1466 = vmatpush3.bf16.msra.mxu1 %v1623_v5  ;;  %v229_v34 = vor.u32 %v227_v22, %v225_v28  ;;  %v623_v37 = vrot.slane %v621_v32, 1  ;;  %v724_v48 = vrot.slane %v1328_v45, 1  ;;  %v391_v54 = vld [vmem:[%s1753_s11] sm:$0xe]  ;;  %v1260_v58 = vcombine.low %v1766_v11, %v185_v53  ;;  %v1643_v59 = vld [vmem:[%s1937_s1 + $0x48] sm:$0xff]   ;;  %v1645_v3 = vld [vmem:[%s1937_s1 + $0x50] sm:$0xff]  }
  0x1d   : >> { %1514 = vmatpush3.bf16.msra.mxu0 %v1624_v6  ;;  %1467 = vmatprep.subr.bf16.mxu1 %v1625_v7  ;;  %v226_v36 = vsel %vm214_vm0, %v221_v31, %v225_v28  ;;  %v619_v39 = vor.u32 %v618_v35, %v614_v29  ;;  %v1275_v55 = vcombine.low %v391_v54, %v1763_v10  ;;  %v1336_v61 = vld [vmem:[%s1753_s11 + $0x20] sm:$0xf]  ;;  %v1841_v62 = vld [vmem:[%s1753_s11 + $0x24] sm:$0xf]  ;;  %v1644_v2 = vld [vmem:[%s1937_s1 + $0xc8] sm:$0xff]  }
  0x1e   : >> { %1515 = vmatprep.subr.bf16.mxu0 %v1626_v8  ;;  %1469 = vmatprep.mubr.msk.bf16.mxu1 %vm254_vm1, %v226_v36  ;;  %v627_v40 = vor.u32 %v625_v33, %v623_v37  ;;  %v726_v51 = vsel %vm404_vm2, %v724_v48, %v725_v46  ;;  %v1348_v1 = vcombine.low %v1336_v61, %v1841_v62  ;;  %v1338_v4 = vld [vmem:[%s1753_s11 + $0x28] sm:$0xf]  ;;  %v1356_v5 = vld [vmem:[%s1753_s11 + $0x2c] sm:$0x3]  ;;  %v1646_v6 = vld [vmem:[%s1937_s1 + $0xd0] sm:$0xff]  }
  0x1f   : >> { %v624_v41 = vsel %vm214_vm0, %v619_v39, %v623_v37  ;;  %v405_v60 = vrot.slane %v1275_v55, 1  ;;  %v1647_v9 = vld [vmem:[%s1937_s1 + $0x58] sm:$0xff]   ;;  %v1650_v14 = vld [vmem:[%s1937_s1 + $0x60] sm:$0xff]   ;;  %v1654_v19 = vld [vmem:[%s1937_s1 + $0x68] sm:$0xff]  }
  0x20   : >> { %1468 = vmatpush3.bf16.msra.mxu1 %v1625_v7  ;;  %1517 = vmatprep.mubr.msk.bf16.mxu0 %vm254_vm1, %v624_v41  ;;  %v1860_v7 = vcombine.low %v1338_v4, %v1356_v5  ;;  %v1648_v10 = vld [vmem:[%s1937_s1 + $0xd8] sm:$0xff]   ;;  %v933_v11 = vshrl.u32 %v1348_v1, 16  ;;  %v1652_v16 = vld [vmem:[%s1937_s1 + $0xe0] sm:$0xff]   ;;  %v1655_v22 = vld [vmem:[%s1937_s1 + $0xe8] sm:$0xff]  }
  0x21   : >> { %1516 = vmatpush3.bf16.msra.mxu0 %v1626_v8  ;;  %1473 = vmatprep.subr.bf16.mxu1 %v1629_v15  ;;  %v407_v63 = vsel %vm404_vm2, %v405_v60, %v406_v56  ;;  %v935_v8 = vshll.u32 %v1348_v1, 16  ;;  %v1656_v25 = vld [vmem:[%s1937_s1 + $0x70] sm:$0xff]   ;;  %v1372_v28 = vld [vmem:[%s1753_s11 + $0x20] sm:$0xe]  ;;  %v1286_v29 = vld [vmem:[%s1753_s11 + $0x1c] sm:$0x1] }
  0x22   : >> { %1521 = vmatprep.subr.bf16.mxu0 %v1632_v27  ;;  %v1657_v26 = vld [vmem:[%s1937_s1 + $0xf0] sm:$0xff]   ;;  %v1381_v30 = vcombine.low %v1372_v28, %v1841_v62  ;;  %v944_v31 = vshrl.u32 %v1860_v7, 16  ;;  %v1296_v32 = vcombine.low %v1779_v20, %v1286_v29  ;;  %v1662_v33 = vld [vmem:[%s1937_s1 + $0x100] sm:$0xff]   ;;  %v1044_v35 = vrot.slane %v1860_v7, 1  ;;  %v1663_v37 = vld [vmem:[%s1937_s1 + $0x108] sm:$0xff]  }
  0x23   : >> { %1470 = vmatmul.mubr.msk.bf16.vlgmr.msra.gmra.mrb[0].mxu1 %vm254_vm1, %v229_v34  ;;  %v937_v12 = vrot.slane %v935_v8, 1  ;;  %v1665_v39 = vld [vmem:[%s1937_s1 + $0x118] sm:$0xff]  }
  0x24   : >> { %1474 = vmatpush3.bf16.msra.mxu1 %v1629_v15  ;;  %1481 = vmatprep.mubr.msk.bf16.mxu1 %vm254_vm1, %v1252_v13  ;;  %v940_v13 = vshll.u32 %v1860_v7, 16  ;;  %v1339_v15 = vld [vmem:[%s1753_s11 + $0x2c] sm:$0x1]  ;;  %v1043_v34 = vrot.slane %v1381_v30, 1 }
  0x25   : >> { %1475 = vmatprep.subr.bf16.mxu1 %v1633_v38  ;;  %1518 = vmatmul.mubr.msk.bf16.vlgmr.msra.gmra.mrb[0].mxu0 %vm254_vm1, %v627_v40  ;;  %v938_v17 = vor.u32 %v937_v12, %v933_v11  ;;  %v1349_v21 = vcombine.low %v1338_v4, %v1339_v15 }
  0x26   : >> { %1522 = vmatpush3.bf16.msra.mxu0 %v1632_v27  ;;  %1529 = vmatprep.mubr.msk.bf16.mxu0 %vm254_vm1, %v726_v51  ;;  %v942_v18 = vrot.slane %v940_v13, 1  ;;  %v1658_v27 = vld [vmem:[%s1937_s1 + $0x78] sm:$0xff]   ;;  %v1045_v20 = vsel %vm404_vm2, %v1043_v34, %v1044_v35 }
  0x27   : >> { %1523 = vmatprep.subr.bf16.mxu0 %v1634_v42 }
  0x28   : >> { %1476 = vmatpush3.bf16.msra.mxu1 %v1633_v38  ;;  %v943_v24 = vsel %vm214_vm0, %v938_v17, %v942_v18  ;;  %v946_v36 = vor.u32 %v944_v31, %v942_v18  ;;  %v1664_v38 = vld [vmem:[%s1937_s1 + $0x110] sm:$0xff]  }
  0x29   : >> { %1477 = vmatprep.subr.bf16.mxu1 %v1635_v43 }
  0x2a   : >> { %1524 = vmatpush3.bf16.msra.mxu0 %v1634_v42 }
  0x2b   : >> { %1525 = vmatprep.subr.bf16.mxu0 %v1636_v47 }
  0x2c   : >> { %1478 = vmatpush3.bf16.msra.mxu1 %v1635_v43 }
  0x2d   : >> { %1479 = vmatprep.subr.bf16.mxu1 %v1637_v49 }
  0x2e   : >> { %1526 = vmatpush3.bf16.msra.mxu0 %v1636_v47 }
  0x2f   : >> { %1527 = vmatprep.subr.bf16.mxu0 %v1638_v50 }
  0x30   : >> { %1480 = vmatpush3.bf16.msra.mxu1 %v1637_v49 }
  0x31   : >> { %1485 = vmatprep.subr.bf16.mxu1 %v1639_v52 }
  0x32   : >> { %1528 = vmatpush3.bf16.msra.mxu0 %v1638_v50 }
  0x33   : >> { %1482 = vmatmul.mubr.msk.bf16.vlgmr.msra.gmra.mrb[0].mxu1 %vm254_vm1, %v1260_v58  ;;  %1533 = vmatprep.subr.bf16.mxu0 %v1641_v57 }
  0x34   : >> { %1486 = vmatpush3.bf16.msra.mxu1 %v1639_v52  ;;  %1493 = vmatprep.mubr.msk.bf16.mxu1 %vm254_vm1, %v407_v63 }
  0x35   : >> { %1487 = vmatprep.subr.bf16.mxu1 %v1643_v59  ;;  %1530 = vmatmul.mubr.msk.bf16.vlgmr.msra.gmra.mrb[0].mxu0 %vm254_vm1, %v725_v46 }
  0x36   : >> { %1534 = vmatpush3.bf16.msra.mxu0 %v1641_v57  ;;  %1541 = vmatprep.mubr.msk.bf16.mxu0 %vm254_vm1, %v1348_v1 }
  0x37   : >> { %1535 = vmatprep.subr.bf16.mxu0 %v1644_v2 }
  0x38   : >> { %1488 = vmatpush3.bf16.msra.mxu1 %v1643_v59 }
  0x39   : >> { %1489 = vmatprep.subr.bf16.mxu1 %v1645_v3 }
  0x3a   : >> { %1536 = vmatpush3.bf16.msra.mxu0 %v1644_v2 }
  0x3b   : >> { %1537 = vmatprep.subr.bf16.mxu0 %v1646_v6 }
  0x3c   : >> { %1490 = vmatpush3.bf16.msra.mxu1 %v1645_v3 }
  0x3d   : >> { %1491 = vmatprep.subr.bf16.mxu1 %v1647_v9 }
  0x3e   : >> { %1538 = vmatpush3.bf16.msra.mxu0 %v1646_v6 }
  0x3f   : >> { %1539 = vmatprep.subr.bf16.mxu0 %v1648_v10 }
  0x40   : >> { %1492 = vmatpush3.bf16.msra.mxu1 %v1647_v9 }
  0x41   : >> { %1497 = vmatprep.subr.bf16.mxu1 %v1650_v14 }
  0x42   : >> { %1540 = vmatpush3.bf16.msra.mxu0 %v1648_v10 }
  0x43   : >> { %1494 = vmatmul.mubr.msk.bf16.vlgmr.msra.gmra.mrb[0].mxu1 %vm254_vm1, %v406_v56  ;;  %1545 = vmatprep.subr.bf16.mxu0 %v1652_v16 }
  0x44   : >> { %1498 = vmatpush3.bf16.msra.mxu1 %v1650_v14  ;;  %1505 = vmatprep.mubr.msk.bf16.mxu1 %vm254_vm1, %v1783_v23  ;;  %v1659_v23 = vld [vmem:[%s1937_s1 + $0xf8] sm:$0xff]  }
  0x45   : >> { %1499 = vmatprep.subr.bf16.mxu1 %v1654_v19  ;;  %1542 = vmatmul.mubr.msk.bf16.vlgmr.msra.gmra.mrb[0].mxu0 %vm254_vm1, %v1349_v21 }
  0x46   : >> { %1546 = vmatpush3.bf16.msra.mxu0 %v1652_v16  ;;  %1553 = vmatprep.mubr.msk.bf16.mxu0 %vm254_vm1, %v943_v24 }
  0x47   : >> { %1547 = vmatprep.subr.bf16.mxu0 %v1655_v22 }
  0x48   : >> { %1500 = vmatpush3.bf16.msra.mxu1 %v1654_v19 }
  0x49   : >> { %1501 = vmatprep.subr.bf16.mxu1 %v1656_v25 }
  0x4a   : >> { %1548 = vmatpush3.bf16.msra.mxu0 %v1655_v22 }
  0x4b   : >> { %1549 = vmatprep.subr.bf16.mxu0 %v1657_v26 }
  0x4c   : >> { %1502 = vmatpush3.bf16.msra.mxu1 %v1656_v25 }
  0x4d   : >> { %1503 = vmatprep.subr.bf16.mxu1 %v1658_v27 }
  0x4e   : >> { %1550 = vmatpush3.bf16.msra.mxu0 %v1657_v26 }
  0x4f   : >> { %1551 = vmatprep.subr.bf16.mxu0 %v1659_v23 }
  0x50   : >> { %1504 = vmatpush3.bf16.msra.mxu1 %v1658_v27 }
  0x52   : >> { %1552 = vmatpush3.bf16.msra.mxu0 %v1659_v23 }
  0x53   : >> { %1506 = vmatmul.mubr.msk.bf16.vlgmr.msra.gmra.mrb[0].mxu1 %vm254_vm1, %v1296_v32  ;;  %1557 = vmatprep.subr.bf16.mxu0 %v1662_v33 }
  0x55   : >> { %1554 = vmatmul.mubr.msk.bf16.vlgmr.msra.gmra.mrb[0].mxu0 %vm254_vm1, %v946_v36 }
  0x56   : >> { %1558 = vmatpush3.bf16.msra.mxu0 %v1662_v33  ;;  %1565 = vmatprep.mubr.msk.bf16.mxu0 %vm254_vm1, %v1045_v20 }
  0x57   : >> { %1559 = vmatprep.subr.bf16.mxu0 %v1663_v37 }
  0x5a   : >> { %1560 = vmatpush3.bf16.msra.mxu0 %v1663_v37 }
  0x5b   : >> { %1561 = vmatprep.subr.bf16.mxu0 %v1664_v38 }
  0x5e   : >> { %1562 = vmatpush3.bf16.msra.mxu0 %v1664_v38 }
  0x5f   : >> { %1563 = vmatprep.subr.bf16.mxu0 %v1665_v39 }
  0x62   : >> { %1564 = vmatpush3.bf16.msra.mxu0 %v1665_v39 }
  0x65   : >> { %1566 = vmatmul.mubr.msk.bf16.vlgmr.msra.gmra.mrb[0].mxu0 %vm254_vm1, %v1044_v35 }
 0x126   : >> { %v1507_v40 = vpop.f32.mrb[0].mxu1 }
 0x127   : >> { %v582_v41 = vpop.f32.mrb[1].mxu1 }
 0x128   : >> { %v1508_v42 = vpop.f32.mrb[2].mxu1 }
 0x129   : >> { %v585_v43 = vpop.f32.mrb[3].mxu1 }
 0x138   : >> { %v1567_v44 = vpop.f32.mrb[0].mxu0 }
 0x139   : >> { %v1569_v45 = vadd.f32 %v1567_v44, %v1507_v40  ;;  %v1110_v46 = vpop.f32.mrb[1].mxu0 }
 0x13a   : >> { %v1570_v47 = vadd.f32 %v1110_v46, %v582_v41  ;;  %v1568_v48 = vpop.f32.mrb[2].mxu0 }
 0x13b   : >> { %v1137_v49 = vadd.f32 %v1569_v45, %v1714_v0  ;;  %v1571_v50 = vadd.f32 %v1568_v48, %v1508_v42  ;;  %v1113_v51 = vpop.f32.mrb[3].mxu0 }
 0x13c   : >> { %v1135_v52 = vadd.f32 %v1570_v47, %v1714_v0  ;;  %v1572_v53 = vadd.f32 %v1113_v51, %v585_v43 }
 0x13d   : >> { %v1141_v54 = vmax.f32 %v1137_v49, 0.0  ;;  %v1138_v55 = vadd.f32 %v1571_v50, %v1714_v0 }
 0x13e   : >> { %v1136_v56 = vadd.f32 %v1572_v53, %v1714_v0  ;;  %v1139_v59 = vmax.f32 %v1135_v52, 0.0  ;;  %177 = sbr.rel (!%p175_p4) target bundleno = 18 (0x12), region = 81 }
 0x13f   : >> { %v1399_v57 = vpack.c.bf16 %v1141_v54, %v1141_v54  ;;  %v1142_v58 = vmax.f32 %v1138_v55, 0.0 }
 0x140   : >> { %v1140_v60 = vmax.f32 %v1136_v56, 0.0 }
 0x141   : >> { %1163 = vst [vmem:[%s1160_s7 + $0x8] sm:$0xf] %v1399_v57  ;;  %v1400_v61 = vpack.c.bf16 %v1142_v58, %v1142_v58 }
 0x142   : >> { %v1405_v62 = vpack.c.bf16 %v1140_v60, %v1139_v59 }
 0x143   : >> { %1164 = vst [vmem:[%s1160_s7 + $0xc] sm:$0x1] %v1400_v61 }
 0x144   : >> { %1406 = vst [vmem:[%s1160_s7] sm:$0xff] %v1405_v62  }
 0x145 PF: > { %s13_s12 = sadd.s32 1, %s1677_s12  }
 0x146   : > { %p10_p5 = scmp.ge.s32.totalorder %s13_s12, 4  }
 0x148   :  { %12 = sbr.rel (!%p10_p5) target bundleno = 1 (0x1), region = 92 }

// kernel: mynet1_forward.14
= control target key start
LH: loop header
LB: loop body
LE: loop exit
PB: predicated region body
PF: predicated region fallthrough
CT: control target
= control target key end

     0   :  { %s2183_s12 = smov 0   ;;  %s2538_s0 = inlined_call_operand.vmem [shape: bf16[2,21,28,128], index: 0, kind: input, shape index: {}]   ;;  %s2539_s1 = inlined_call_operand.vmem [shape: bf16[9,128,128], index: 1, kind: input, shape index: {}]   ;;  %s2540_s2 = inlined_call_operand.vmem [shape: f32[1,128], index: 2, kind: input, shape index: {}]   ;;  %s2541_s3 = inlined_call_operand.vmem [shape: bf16[2,19,26,128], index: 3, kind: output, shape index: {}]  }
   0x1 LB: > { %s1489_s13 = sadd.s32 4294967295, %s2157_s12   ;;  %p1493_p0 = scmp.ge.s32.totalorder %s2157_s12, 1  ;;  %s2157_s12 = sphi %s2183_s12, %s13_s12  }
   0x2   : > { %p137_p1 = scmp.lt.s32.totalorder %s2157_s12, 3 }
   0x4   : > { %p138_p2 = pnand %p1493_p0, %p137_p1 }
   0x5   : > { %p161_p3 = scmp.lt.s32.totalorder (!%p138_p2), %s1489_s13, 1  ;;  %v2194_v0 = vld [vmem:[%s2540_s2] ss:$0 sm:$0xff] (!%p138_p2)  ;;  %s2206_s24 = smov (!%p138_p2), 0  }
   0x6   : > { %141 = sbr.rel (%p138_p2) target bundleno = 404 (0x194), region = 32 }
   0xd   : > { %s2543_s13 = smov (!%p161_p3, %s1489_s13), 1 }
   0xe   : > { %s2045_s16 = smul.u32 336, %s2543_s13 }
   0xf   : > { %s2046_s17 = smul.u32 304, %s2543_s13 }
  0x10   : > { %s2199_s20 = scalar_lea.vmem %s2538_s0, %s2045_s16 }
  0x11   : > { %s2204_s23 = scalar_lea.vmem %s2541_s3, %s2046_s17 }
  0x12 LB: >> { %v2063_v1 = vld [vmem:[%s2539_s1 + $0x40] sm:$0xff]   ;;  %v2065_v3 = vld [vmem:[%s2539_s1 + $0x48] sm:$0xff]   ;;  %v2067_v5 = vld [vmem:[%s2539_s1 + $0x50] sm:$0xff]   ;;  %s1732_s15 = sshll.u32 %s2161_s24, 4  ;;  %vm230_vm0 = vsmask.f32 7424  ;;  %s2161_s24 = sphi %s2206_s24, %s178_s24  }
  0x13   : >> { %v2064_v2 = vld [vmem:[%s2539_s1 + $0x100] sm:$0xff]   ;;  %1833 = vmatprep.subr.bf16.mxu1 %v2063_v1  ;;  %v2066_v4 = vld [vmem:[%s2539_s1 + $0x108] sm:$0xff]   ;;  %v2068_v6 = vld [vmem:[%s2539_s1 + $0x110] sm:$0xff]   ;;  %s2245_s21 = scalar_lea.vmem %s2199_s20, %s1732_s15  ;;  %vm468_vm1 = vcmask 1046528   ;;  %s1414_s16 = scalar_lea.vmem %s2204_s23, %s1732_s15 }
  0x14   : >> { %1913 = vmatprep.subr.bf16.mxu0 %v2064_v2  ;;  %1834 = vmatpush3.bf16.msra.mxu1 %v2063_v1  ;;  %v2069_v7 = vld [vmem:[%s2539_s1 + $0x58] sm:$0xff]   ;;  %v2071_v9 = vld [vmem:[%s2539_s1 + $0x60] sm:$0xff]   ;;  %v2073_v11 = vld [vmem:[%s2539_s1 + $0x68] sm:$0xff]   ;;  %s178_s24 = sadd.s32 1, %s2161_s24  }
  0x15   : >> { %1914 = vmatpush3.bf16.msra.mxu0 %v2064_v2  ;;  %1835 = vmatprep.subr.bf16.mxu1 %v2065_v3  ;;  %v2070_v8 = vld [vmem:[%s2539_s1 + $0x118] sm:$0xff]   ;;  %v2072_v10 = vld [vmem:[%s2539_s1 + $0x120] sm:$0xff]   ;;  %v2255_v14 = vld [vmem:[%s2245_s21 + $0x8] sm:$0xf]  ;;  %p175_p4 = scmp.ge.s32.totalorder %s178_s24, 19  }
  0x16   : >> { %1915 = vmatprep.subr.bf16.mxu0 %v2066_v4  ;;  %v182_v12 = vld [vmem:[%s2245_s21] sm:$0xf]  ;;  %v2252_v13 = vld [vmem:[%s2245_s21 + $0x4] sm:$0xf]  ;;  %v2074_v15 = vld [vmem:[%s2539_s1 + $0x128] sm:$0xff]  }
  0x17   : >> { %v202_v16 = vld [vmem:[%s2245_s21 + $0xc] sm:$0x3]  ;;  %v1514_v17 = vcombine.low %v182_v12, %v2252_v13  ;;  %v1559_v19 = vld [vmem:[%s2245_s21 + $0x10] sm:$0xf]  ;;  %v2267_v22 = vld [vmem:[%s2245_s21 + $0x14] sm:$0xf] }
  0x18   : >> { %1836 = vmatpush3.bf16.msra.mxu1 %v2065_v3  ;;  %v2263_v18 = vcombine.low %v2255_v14, %v202_v16  ;;  %v2270_v23 = vld [vmem:[%s2245_s21 + $0x18] sm:$0xf]  ;;  %v2075_v24 = vld [vmem:[%s2539_s1 + $0x70] sm:$0xff]   ;;  %v2277_v26 = vcombine.low %v1559_v19, %v2267_v22  ;;  %v1589_v27 = vld [vmem:[%s2245_s21 + $0x1c] sm:$0x3] }
  0x19   : >> { %1916 = vmatpush3.bf16.msra.mxu0 %v2066_v4  ;;  %1837 = vmatprep.subr.bf16.mxu1 %v2067_v5  ;;  %v232_v20 = vshrl.u32 %v1514_v17, 16  ;;  %v234_v21 = vshll.u32 %v1514_v17, 16  ;;  %v2076_v28 = vld [vmem:[%s2539_s1 + $0x130] sm:$0xff]   ;;  %v2284_v30 = vcombine.low %v2270_v23, %v1589_v27  ;;  %v2077_v36 = vld [vmem:[%s2539_s1 + $0x78] sm:$0xff]   ;;  %v2081_v44 = vld [vmem:[%s2539_s1] sm:$0xff]  }
  0x1a   : >> { %1917 = vmatprep.subr.bf16.mxu0 %v2068_v6  ;;  %v239_v25 = vshll.u32 %v2263_v18, 16  ;;  %v735_v32 = vshrl.u32 %v2277_v26, 16  ;;  %v737_v33 = vshll.u32 %v2277_v26, 16  ;;  %v2078_v38 = vld [vmem:[%s2539_s1 + $0x138] sm:$0xff]   ;;  %v243_v42 = vshrl.u32 %v2263_v18, 16  ;;  %v2084_v46 = vld [vmem:[%s2539_s1 + $0x140] sm:$0xff]  }
  0x1b   : >> { %v236_v29 = vrot.slane %v234_v21, 1  ;;  %v742_v35 = vshll.u32 %v2284_v30, 16  ;;  %v746_v43 = vshrl.u32 %v2284_v30, 16  ;;  %v2085_v49 = vld [vmem:[%s2539_s1 + $0x8] sm:$0xff]   ;;  %v2087_v51 = vld [vmem:[%s2539_s1 + $0x10] sm:$0xff]   ;;  %v874_v55 = vrot.slane %v2284_v30, 1 }
  0x1c   : >> { %1838 = vmatpush3.bf16.msra.mxu1 %v2067_v5  ;;  %v241_v31 = vrot.slane %v239_v25, 1  ;;  %v739_v37 = vrot.slane %v737_v33, 1  ;;  %v2086_v50 = vld [vmem:[%s2539_s1 + $0x148] sm:$0xff]   ;;  %v2088_v52 = vld [vmem:[%s2539_s1 + $0x150] sm:$0xff]   ;;  %v2089_v56 = vld [vmem:[%s2539_s1 + $0x18] sm:$0xff]  }
  0x1d   : >> { %1918 = vmatpush3.bf16.msra.mxu0 %v2068_v6  ;;  %1839 = vmatprep.subr.bf16.mxu1 %v2069_v7  ;;  %v237_v34 = vor.u32 %v236_v29, %v232_v20  ;;  %v744_v40 = vrot.slane %v742_v35, 1  ;;  %v1615_v53 = vld [vmem:[%s2245_s21 + $0x10] sm:$0xe]  ;;  %v2090_v58 = vld [vmem:[%s2539_s1 + $0x158] sm:$0xff]   ;;  %v2091_v60 = vld [vmem:[%s2539_s1 + $0x20] sm:$0xff]  }
  0x1e   : >> { %1919 = vmatprep.subr.bf16.mxu0 %v2070_v8  ;;  %v740_v41 = vor.u32 %v739_v37, %v735_v32  ;;  %v245_v47 = vor.u32 %v243_v42, %v241_v31  ;;  %v1632_v54 = vcombine.low %v1615_v53, %v2267_v22  ;;  %v2092_v61 = vld [vmem:[%s2539_s1 + $0x160] sm:$0xff]   ;;  %v2093_v62 = vld [vmem:[%s2539_s1 + $0x28] sm:$0xff]   ;;  %v2095_v1 = vld [vmem:[%s2539_s1 + $0x30] sm:$0xff]  }
  0x1f   : >> { %v242_v39 = vsel %vm230_vm0, %v237_v34, %v241_v31  ;;  %v748_v48 = vor.u32 %v746_v43, %v744_v40  ;;  %v2094_v63 = vld [vmem:[%s2539_s1 + $0x168] sm:$0xff]   ;;  %v2096_v2 = vld [vmem:[%s2539_s1 + $0x170] sm:$0xff]   ;;  %v1642_v3 = vld [vmem:[%s2245_s21 + $0x20] sm:$0xf] }
  0x20   : >> { %1840 = vmatpush3.bf16.msra.mxu1 %v2069_v7  ;;  %1849 = vmatprep.mubr.bf16.mxu1 %v242_v39  ;;  %v745_v45 = vsel %vm230_vm0, %v740_v41, %v744_v40  ;;  %v873_v57 = vrot.slane %v1632_v54, 1  ;;  %v1643_v4 = vld [vmem:[%s2245_s21 + $0x24] sm:$0xf]  ;;  %v447_v5 = vld [vmem:[%s2245_s21] sm:$0xe]  ;;  %v2097_v7 = vld [vmem:[%s2539_s1 + $0x38] sm:$0xff]  }
  0x21   : >> { %1920 = vmatpush3.bf16.msra.mxu0 %v2070_v8  ;;  %1841 = vmatprep.subr.bf16.mxu1 %v2071_v9  ;;  %v1662_v6 = vcombine.low %v1642_v3, %v1643_v4  ;;  %v1698_v8 = vld [vmem:[%s2245_s21 + $0x20] sm:$0xe]  ;;  %v1549_v16 = vcombine.low %v447_v5, %v2252_v13  ;;  %v2103_v32 = vld [vmem:[%s2539_s1 + $0x88] sm:$0xff]   ;;  %v2106_v39 = vld [vmem:[%s2539_s1 + $0x190] sm:$0xff]  }
  0x22   : >> { %1921 = vmatprep.subr.bf16.mxu0 %v2072_v10  ;;  %1929 = vmatprep.mubr.bf16.mxu0 %v745_v45  ;;  %v875_v59 = vsel %vm468_vm1, %v873_v57, %v874_v55  ;;  %v2099_v20 = vld [vmem:[%s2539_s1 + $0x80] sm:$0xff]   ;;  %v1715_v21 = vcombine.low %v1698_v8, %v1643_v4  ;;  %v2104_v34 = vld [vmem:[%s2539_s1 + $0x188] sm:$0xff]   ;;  %v2405_v30 = vld [vmem:[%s2245_s21 + $0x1c] sm:$0x1] }
  0x23   : >> { %v1141_v12 = vshll.u32 %v1662_v6, 16  ;;  %v1139_v19 = vshrl.u32 %v1662_v6, 16  ;;  %v469_v27 = vrot.slane %v1549_v16, 1  ;;  %v2107_v40 = vld [vmem:[%s2539_s1 + $0x98] sm:$0xff]   ;;  %v1580_v41 = vcombine.low %v2270_v23, %v2405_v30  ;;  %v2109_v43 = vld [vmem:[%s2539_s1 + $0xa0] sm:$0xff]   ;;  %v2111_v45 = vld [vmem:[%s2539_s1 + $0xa8] sm:$0xff]  }
  0x24   : >> { %1842 = vmatpush3.bf16.msra.mxu1 %v2071_v9  ;;  %v2355_v9 = vld [vmem:[%s2245_s21 + $0x28] sm:$0xf]  ;;  %v1277_v33 = vrot.slane %v1715_v21, 1  ;;  %v2108_v42 = vld [vmem:[%s2539_s1 + $0x198] sm:$0xff]   ;;  %v2121_v53 = vld [vmem:[%s2539_s1 + $0x1c0] sm:$0xff]  }
  0x25   : >> { %1922 = vmatpush3.bf16.msra.mxu0 %v2072_v10  ;;  %1843 = vmatprep.subr.bf16.mxu1 %v2073_v11  ;;  %v2098_v10 = vld [vmem:[%s2539_s1 + $0x178] sm:$0xff]   ;;  %v1143_v22 = vrot.slane %v1141_v12, 1  ;;  %v2126_v57 = vld [vmem:[%s2539_s1 + $0xd0] sm:$0xff]   ;;  %v2139_v5 = vld [vmem:[%s2539_s1 + $0x200] sm:$0xff]  }
  0x26   : >> { %1923 = vmatprep.subr.bf16.mxu0 %v2074_v15  ;;  %v2137_v3 = vld [vmem:[%s2539_s1 + $0x1f8] sm:$0xff]   ;;  %v2141_v8 = vld [vmem:[%s2539_s1 + $0x210] sm:$0xff]   ;;  %v2143_v23 = vld [vmem:[%s2539_s1 + $0x220] sm:$0xff]  }
  0x27   : >> { %v1144_v29 = vor.u32 %v1143_v22, %v1139_v19  ;;  %v2146_v12 = vld [vmem:[%s2539_s1 + $0x238] sm:$0xff]  }
  0x28   : >> { %1844 = vmatpush3.bf16.msra.mxu1 %v2073_v11  ;;  %v185_v11 = vld [vmem:[%s2245_s21 + $0xc] sm:$0x1] }
  0x29   : >> { %1924 = vmatpush3.bf16.msra.mxu0 %v2074_v15  ;;  %1845 = vmatprep.subr.bf16.mxu1 %v2075_v24  ;;  %v1672_v15 = vld [vmem:[%s2245_s21 + $0x2c] sm:$0x3]  ;;  %v1524_v25 = vcombine.low %v2255_v14, %v185_v11  ;;  %v2145_v11 = vld [vmem:[%s2539_s1 + $0x230] sm:$0xff]  }
  0x2a   : >> { %1925 = vmatprep.subr.bf16.mxu0 %v2076_v28 }
  0x2c   : >> { %1846 = vmatpush3.bf16.msra.mxu1 %v2075_v24  ;;  %v2101_v24 = vld [vmem:[%s2539_s1 + $0x180] sm:$0xff]  }
  0x2d   : >> { %1926 = vmatpush3.bf16.msra.mxu0 %v2076_v28  ;;  %1847 = vmatprep.subr.bf16.mxu1 %v2077_v36  ;;  %v470_v28 = vrot.slane %v2263_v18, 1  ;;  %v2128_v18 = vld [vmem:[%s2539_s1 + $0xd8] sm:$0xff]  }
  0x2e   : >> { %1927 = vmatprep.subr.bf16.mxu0 %v2078_v38 }
  0x30   : >> { %1848 = vmatpush3.bf16.msra.mxu1 %v2077_v36  ;;  %v471_v36 = vsel %vm468_vm1, %v469_v27, %v470_v28 }
  0x31   : >> { %1928 = vmatpush3.bf16.msra.mxu0 %v2078_v38  ;;  %1853 = vmatprep.subr.bf16.mxu1 %v2081_v44  ;;  %v2105_v38 = vld [vmem:[%s2539_s1 + $0x90] sm:$0xff]  }
  0x32   : >> { %1933 = vmatprep.subr.bf16.mxu0 %v2084_v46 }
  0x33   : >> { %1850 = vmatmul.mubr.bf16.vlgmr.msra.gmra.mrb[0].mxu1 %v245_v47  ;;  %v2113_v47 = vld [vmem:[%s2539_s1 + $0xb0] sm:$0xff]  }
  0x34   : >> { %1854 = vmatpush3.bf16.msra.mxu1 %v2081_v44  ;;  %1930 = vmatmul.mubr.bf16.vlgmr.msra.gmra.mrb[0].mxu0 %v748_v48  ;;  %v2110_v44 = vld [vmem:[%s2539_s1 + $0x1a0] sm:$0xff]   ;;  %v2114_v48 = vld [vmem:[%s2539_s1 + $0x1b0] sm:$0xff]  }
  0x35   : >> { %1934 = vmatpush3.bf16.msra.mxu0 %v2084_v46  ;;  %1855 = vmatprep.subr.bf16.mxu1 %v2085_v49  ;;  %v2112_v46 = vld [vmem:[%s2539_s1 + $0x1a8] sm:$0xff]  }
  0x36   : >> { %1935 = vmatprep.subr.bf16.mxu0 %v2086_v50  ;;  %1869 = vmatprep.mubr.bf16.mxu1 %v1514_v17  ;;  %v2364_v17 = vcombine.low %v2355_v9, %v1672_v15 }
  0x37   : >> { %1949 = vmatprep.mubr.bf16.mxu0 %v875_v59  ;;  %v2129_v59 = vld [vmem:[%s2539_s1 + $0x1d8] sm:$0xff]  }
  0x38   : >> { %1856 = vmatpush3.bf16.msra.mxu1 %v2085_v49  ;;  %v1146_v13 = vshll.u32 %v2364_v17, 16  ;;  %v1278_v35 = vrot.slane %v2364_v17, 1  ;;  %v2115_v49 = vld [vmem:[%s2539_s1 + $0xb8] sm:$0xff]   ;;  %v1150_v4 = vshrl.u32 %v2364_v17, 16 }
  0x39   : >> { %1936 = vmatpush3.bf16.msra.mxu0 %v2086_v50  ;;  %1857 = vmatprep.subr.bf16.mxu1 %v2087_v51  ;;  %v2116_v50 = vld [vmem:[%s2539_s1 + $0x1b8] sm:$0xff]  }
  0x3a   : >> { %1937 = vmatprep.subr.bf16.mxu0 %v2088_v52  ;;  %v2375_v31 = vrot.slane %v1146_v13, 1  ;;  %v2396_v37 = vsel %vm468_vm1, %v1277_v33, %v1278_v35 }
  0x3c   : >> { %1858 = vmatpush3.bf16.msra.mxu1 %v2087_v51  ;;  %v2385_v14 = vsel %vm230_vm0, %v1144_v29, %v2375_v31  ;;  %v2118_v51 = vld [vmem:[%s2539_s1 + $0xc0] sm:$0xff]  }
  0x3d   : >> { %1938 = vmatpush3.bf16.msra.mxu0 %v2088_v52  ;;  %1859 = vmatprep.subr.bf16.mxu1 %v2089_v56  ;;  %v1645_v52 = vld [vmem:[%s2245_s21 + $0x2c] sm:$0x1] }
  0x3e   : >> { %1939 = vmatprep.subr.bf16.mxu0 %v2090_v58  ;;  %v1663_v54 = vcombine.low %v2355_v9, %v1645_v52  ;;  %v2142_v9 = vld [vmem:[%s2539_s1 + $0x218] sm:$0xff]  }
  0x40   : >> { %1860 = vmatpush3.bf16.msra.mxu1 %v2089_v56  ;;  %v2125_v56 = vld [vmem:[%s2539_s1 + $0x1c8] sm:$0xff]  }
  0x41   : >> { %1940 = vmatpush3.bf16.msra.mxu0 %v2090_v58  ;;  %1861 = vmatprep.subr.bf16.mxu1 %v2091_v60  ;;  %v2127_v58 = vld [vmem:[%s2539_s1 + $0x1d0] sm:$0xff]  }
  0x42   : >> { %1941 = vmatprep.subr.bf16.mxu0 %v2092_v61 }
  0x44   : >> { %1862 = vmatpush3.bf16.msra.mxu1 %v2091_v60  ;;  %v2131_v60 = vld [vmem:[%s2539_s1 + $0x1e0] sm:$0xff]  }
  0x45   : >> { %1942 = vmatpush3.bf16.msra.mxu0 %v2092_v61  ;;  %1863 = vmatprep.subr.bf16.mxu1 %v2093_v62  ;;  %v2132_v61 = vld [vmem:[%s2539_s1 + $0xe8] sm:$0xff]  }
  0x46   : >> { %1943 = vmatprep.subr.bf16.mxu0 %v2094_v63 }
  0x48   : >> { %1864 = vmatpush3.bf16.msra.mxu1 %v2093_v62  ;;  %v2133_v62 = vld [vmem:[%s2539_s1 + $0x1e8] sm:$0xff]  }
  0x49   : >> { %1944 = vmatpush3.bf16.msra.mxu0 %v2094_v63  ;;  %1865 = vmatprep.subr.bf16.mxu1 %v2095_v1  ;;  %v2134_v63 = vld [vmem:[%s2539_s1 + $0xf0] sm:$0xff]  }
  0x4a   : >> { %1945 = vmatprep.subr.bf16.mxu0 %v2096_v2 }
  0x4c   : >> { %1866 = vmatpush3.bf16.msra.mxu1 %v2095_v1  ;;  %v2135_v1 = vld [vmem:[%s2539_s1 + $0x1f0] sm:$0xff]  }
  0x4d   : >> { %1946 = vmatpush3.bf16.msra.mxu0 %v2096_v2  ;;  %1867 = vmatprep.subr.bf16.mxu1 %v2097_v7  ;;  %v2136_v2 = vld [vmem:[%s2539_s1 + $0xf8] sm:$0xff]  }
  0x4e   : >> { %1947 = vmatprep.subr.bf16.mxu0 %v2098_v10 }
  0x50   : >> { %1868 = vmatpush3.bf16.msra.mxu1 %v2097_v7  ;;  %v2140_v7 = vld [vmem:[%s2539_s1 + $0x208] sm:$0xff]  }
  0x51   : >> { %1948 = vmatpush3.bf16.msra.mxu0 %v2098_v10  ;;  %1873 = vmatprep.subr.bf16.mxu1 %v2099_v20  ;;  %v2144_v10 = vld [vmem:[%s2539_s1 + $0x228] sm:$0xff]  }
  0x52   : >> { %1953 = vmatprep.subr.bf16.mxu0 %v2101_v24 }
  0x53   : >> { %1870 = vmatmul.mubr.bf16.vlgmr.msra.gmra.mrb[0].mxu1 %v1524_v25 }
  0x54   : >> { %1874 = vmatpush3.bf16.msra.mxu1 %v2099_v20  ;;  %1950 = vmatmul.mubr.bf16.vlgmr.msra.gmra.mrb[0].mxu0 %v874_v55  ;;  %v2124_v55 = vld [vmem:[%s2539_s1 + $0xc8] sm:$0xff]  }
  0x55   : >> { %1954 = vmatpush3.bf16.msra.mxu0 %v2101_v24  ;;  %1875 = vmatprep.subr.bf16.mxu1 %v2103_v32 }
  0x56   : >> { %1955 = vmatprep.subr.bf16.mxu0 %v2104_v34  ;;  %1889 = vmatprep.mubr.bf16.mxu1 %v471_v36 }
  0x57   : >> { %1969 = vmatprep.mubr.bf16.mxu0 %v1662_v6  ;;  %v1152_v6 = vor.u32 %v1150_v4, %v2375_v31 }
  0x58   : >> { %1876 = vmatpush3.bf16.msra.mxu1 %v2103_v32 }
  0x59   : >> { %1956 = vmatpush3.bf16.msra.mxu0 %v2104_v34  ;;  %1877 = vmatprep.subr.bf16.mxu1 %v2105_v38 }
  0x5a   : >> { %1957 = vmatprep.subr.bf16.mxu0 %v2106_v39 }
  0x5c   : >> { %1878 = vmatpush3.bf16.msra.mxu1 %v2105_v38 }
  0x5d   : >> { %1958 = vmatpush3.bf16.msra.mxu0 %v2106_v39  ;;  %1879 = vmatprep.subr.bf16.mxu1 %v2107_v40 }
  0x5e   : >> { %1959 = vmatprep.subr.bf16.mxu0 %v2108_v42 }
  0x60   : >> { %1880 = vmatpush3.bf16.msra.mxu1 %v2107_v40 }
  0x61   : >> { %1960 = vmatpush3.bf16.msra.mxu0 %v2108_v42  ;;  %1881 = vmatprep.subr.bf16.mxu1 %v2109_v43 }
  0x62   : >> { %1961 = vmatprep.subr.bf16.mxu0 %v2110_v44 }
  0x64   : >> { %1882 = vmatpush3.bf16.msra.mxu1 %v2109_v43 }
  0x65   : >> { %1962 = vmatpush3.bf16.msra.mxu0 %v2110_v44  ;;  %1883 = vmatprep.subr.bf16.mxu1 %v2111_v45 }
  0x66   : >> { %1963 = vmatprep.subr.bf16.mxu0 %v2112_v46 }
  0x68   : >> { %1884 = vmatpush3.bf16.msra.mxu1 %v2111_v45 }
  0x69   : >> { %1964 = vmatpush3.bf16.msra.mxu0 %v2112_v46  ;;  %1885 = vmatprep.subr.bf16.mxu1 %v2113_v47 }
  0x6a   : >> { %1965 = vmatprep.subr.bf16.mxu0 %v2114_v48 }
  0x6c   : >> { %1886 = vmatpush3.bf16.msra.mxu1 %v2113_v47 }
  0x6d   : >> { %1966 = vmatpush3.bf16.msra.mxu0 %v2114_v48  ;;  %1887 = vmatprep.subr.bf16.mxu1 %v2115_v49 }
  0x6e   : >> { %1967 = vmatprep.subr.bf16.mxu0 %v2116_v50 }
  0x70   : >> { %1888 = vmatpush3.bf16.msra.mxu1 %v2115_v49 }
  0x71   : >> { %1968 = vmatpush3.bf16.msra.mxu0 %v2116_v50  ;;  %1893 = vmatprep.subr.bf16.mxu1 %v2118_v51 }
  0x72   : >> { %1973 = vmatprep.subr.bf16.mxu0 %v2121_v53 }
  0x73   : >> { %1890 = vmatmul.mubr.bf16.vlgmr.msra.gmra.mrb[0].mxu1 %v470_v28 }
  0x74   : >> { %1894 = vmatpush3.bf16.msra.mxu1 %v2118_v51  ;;  %1970 = vmatmul.mubr.bf16.vlgmr.msra.gmra.mrb[0].mxu0 %v1663_v54 }
  0x75   : >> { %1974 = vmatpush3.bf16.msra.mxu0 %v2121_v53  ;;  %1895 = vmatprep.subr.bf16.mxu1 %v2124_v55 }
  0x76   : >> { %1975 = vmatprep.subr.bf16.mxu0 %v2125_v56  ;;  %1909 = vmatprep.mubr.bf16.mxu1 %v2277_v26  ;;  %v2130_v26 = vld [vmem:[%s2539_s1 + $0xe0] sm:$0xff]  }
  0x77   : >> { %1989 = vmatprep.mubr.bf16.mxu0 %v2385_v14 }
  0x78   : >> { %1896 = vmatpush3.bf16.msra.mxu1 %v2124_v55 }
  0x79   : >> { %1976 = vmatpush3.bf16.msra.mxu0 %v2125_v56  ;;  %1897 = vmatprep.subr.bf16.mxu1 %v2126_v57 }
  0x7a   : >> { %1977 = vmatprep.subr.bf16.mxu0 %v2127_v58 }
  0x7c   : >> { %1898 = vmatpush3.bf16.msra.mxu1 %v2126_v57 }
  0x7d   : >> { %1978 = vmatpush3.bf16.msra.mxu0 %v2127_v58  ;;  %1899 = vmatprep.subr.bf16.mxu1 %v2128_v18 }
  0x7e   : >> { %1979 = vmatprep.subr.bf16.mxu0 %v2129_v59 }
  0x80   : >> { %1900 = vmatpush3.bf16.msra.mxu1 %v2128_v18 }
  0x81   : >> { %1980 = vmatpush3.bf16.msra.mxu0 %v2129_v59  ;;  %1901 = vmatprep.subr.bf16.mxu1 %v2130_v26 }
  0x82   : >> { %1981 = vmatprep.subr.bf16.mxu0 %v2131_v60 }
  0x84   : >> { %1902 = vmatpush3.bf16.msra.mxu1 %v2130_v26 }
  0x85   : >> { %1982 = vmatpush3.bf16.msra.mxu0 %v2131_v60  ;;  %1903 = vmatprep.subr.bf16.mxu1 %v2132_v61 }
  0x86   : >> { %1983 = vmatprep.subr.bf16.mxu0 %v2133_v62 }
  0x88   : >> { %1904 = vmatpush3.bf16.msra.mxu1 %v2132_v61 }
  0x89   : >> { %1984 = vmatpush3.bf16.msra.mxu0 %v2133_v62  ;;  %1905 = vmatprep.subr.bf16.mxu1 %v2134_v63 }
  0x8a   : >> { %1985 = vmatprep.subr.bf16.mxu0 %v2135_v1 }
  0x8c   : >> { %1906 = vmatpush3.bf16.msra.mxu1 %v2134_v63 }
  0x8d   : >> { %1986 = vmatpush3.bf16.msra.mxu0 %v2135_v1  ;;  %1907 = vmatprep.subr.bf16.mxu1 %v2136_v2 }
  0x8e   : >> { %1987 = vmatprep.subr.bf16.mxu0 %v2137_v3 }
  0x90   : >> { %1908 = vmatpush3.bf16.msra.mxu1 %v2136_v2 }
  0x91   : >> { %1988 = vmatpush3.bf16.msra.mxu0 %v2137_v3 }
  0x92   : >> { %1993 = vmatprep.subr.bf16.mxu0 %v2139_v5 }
  0x93   : >> { %1910 = vmatmul.mubr.bf16.vlgmr.msra.gmra.mrb[0].mxu1 %v1580_v41 }
  0x94   : >> { %1990 = vmatmul.mubr.bf16.vlgmr.msra.gmra.mrb[0].mxu0 %v1152_v6 }
  0x95   : >> { %1994 = vmatpush3.bf16.msra.mxu0 %v2139_v5  ;;  %2009 = vmatprep.mubr.bf16.mxu0 %v2396_v37 }
  0x96   : >> { %1995 = vmatprep.subr.bf16.mxu0 %v2140_v7 }
  0x99   : >> { %1996 = vmatpush3.bf16.msra.mxu0 %v2140_v7 }
  0x9a   : >> { %1997 = vmatprep.subr.bf16.mxu0 %v2141_v8 }
  0x9d   : >> { %1998 = vmatpush3.bf16.msra.mxu0 %v2141_v8 }
  0x9e   : >> { %1999 = vmatprep.subr.bf16.mxu0 %v2142_v9 }
  0xa1   : >> { %2000 = vmatpush3.bf16.msra.mxu0 %v2142_v9 }
  0xa2   : >> { %2001 = vmatprep.subr.bf16.mxu0 %v2143_v23 }
  0xa5   : >> { %2002 = vmatpush3.bf16.msra.mxu0 %v2143_v23 }
  0xa6   : >> { %2003 = vmatprep.subr.bf16.mxu0 %v2144_v10 }
  0xa9   : >> { %2004 = vmatpush3.bf16.msra.mxu0 %v2144_v10 }
  0xaa   : >> { %2005 = vmatprep.subr.bf16.mxu0 %v2145_v11 }
  0xad   : >> { %2006 = vmatpush3.bf16.msra.mxu0 %v2145_v11 }
  0xae   : >> { %2007 = vmatprep.subr.bf16.mxu0 %v2146_v12 }
  0xb1   : >> { %2008 = vmatpush3.bf16.msra.mxu0 %v2146_v12 }
  0xb4   : >> { %2010 = vmatmul.mubr.bf16.vlgmr.msra.gmra.mrb[0].mxu0 %v1278_v35 }
 0x166   : >> { %v1911_v15 = vpop.f32.mrb[0].mxu1 }
 0x167   : >> { %v694_v16 = vpop.f32.mrb[1].mxu1 }
 0x168   : >> { %v1912_v19 = vpop.f32.mrb[2].mxu1 }
 0x169   : >> { %v697_v20 = vpop.f32.mrb[3].mxu1 }
 0x187   : >> { %v2011_v21 = vpop.f32.mrb[0].mxu0 }
 0x188   : >> { %v2013_v22 = vadd.f32 %v2011_v21, %v1911_v15  ;;  %v1364_v24 = vpop.f32.mrb[1].mxu0 }
 0x189   : >> { %v2014_v13 = vadd.f32 %v1364_v24, %v694_v16  ;;  %v2012_v25 = vpop.f32.mrb[2].mxu0 }
 0x18a   : >> { %v1391_v27 = vadd.f32 %v2013_v22, %v2194_v0  ;;  %v2015_v28 = vadd.f32 %v2012_v25, %v1912_v19  ;;  %v1367_v29 = vpop.f32.mrb[3].mxu0 }
 0x18b   : >> { %v1389_v31 = vadd.f32 %v2014_v13, %v2194_v0  ;;  %v2016_v32 = vadd.f32 %v1367_v29, %v697_v20 }
 0x18c   : >> { %v1395_v17 = vmax.f32 %v1391_v27, 0.0  ;;  %v1392_v33 = vadd.f32 %v2015_v28, %v2194_v0 }
 0x18d   : >> { %v1390_v34 = vadd.f32 %v2016_v32, %v2194_v0  ;;  %v1393_v36 = vmax.f32 %v1389_v31, 0.0  ;;  %177 = sbr.rel (!%p175_p4) target bundleno = 18 (0x12), region = 81 }
 0x18e   : >> { %v1735_v14 = vpack.c.bf16 %v1395_v17, %v1395_v17  ;;  %v1396_v35 = vmax.f32 %v1392_v33, 0.0 }
 0x18f   : >> { %v1394_v37 = vmax.f32 %v1390_v34, 0.0 }
 0x190   : >> { %1417 = vst [vmem:[%s1414_s16 + $0x8] sm:$0xf] %v1735_v14  ;;  %v1736_v38 = vpack.c.bf16 %v1396_v35, %v1396_v35 }
 0x191   : >> { %v1741_v39 = vpack.c.bf16 %v1394_v37, %v1393_v36 }
 0x192   : >> { %1418 = vst [vmem:[%s1414_s16 + $0xc] sm:$0x1] %v1736_v38 }
 0x193   : >> { %1742 = vst [vmem:[%s1414_s16] sm:$0xff] %v1741_v39  }
 0x194 PF: > { %s13_s12 = sadd.s32 1, %s2157_s12  }
 0x195   : > { %p10_p5 = scmp.ge.s32.totalorder %s13_s12, 4  }
 0x197   :  { %12 = sbr.rel (!%p10_p5) target bundleno = 1 (0x1), region = 92 }

// kernel: mynet1_forward.17
= control target key start
LH: loop header
LB: loop body
LE: loop exit
PB: predicated region body
PF: predicated region fallthrough
CT: control target
= control target key end

     0   :  { %s504_s0 = inlined_call_operand.vmem [shape: bf16[24,256], index: 0, kind: input, shape index: {}]   ;;  %s505_s1 = inlined_call_operand.vmem [shape: bf16[256,78], index: 1, kind: input, shape index: {}]   ;;  %s506_s2 = inlined_call_operand.vmem [shape: f32[1,78], index: 2, kind: input, shape index: {}]   ;;  %s507_s3 = inlined_call_operand.hbm [shape: f32[24,78], index: 3, kind: output, shape index: {}]  }
   0x1   :  { %v343_v0 = vld [vmem:[%s505_s1 + $0x40] sm:$0xff]   ;;  %v345_v2 = vld [vmem:[%s505_s1 + $0x48] sm:$0xff]   ;;  %v347_v4 = vld [vmem:[%s505_s1 + $0x50] sm:$0xff]  }
   0x2   :  { %v344_v1 = vld [vmem:[%s505_s1] sm:$0xff]   ;;  %296 = vmatprep.subr.bf16.mxu0 %v343_v0  ;;  %324 = vmatprep.subr.bf16.mxu1 %v343_v0  ;;  %v346_v3 = vld [vmem:[%s505_s1 + $0x8] sm:$0xff]   ;;  %v348_v5 = vld [vmem:[%s505_s1 + $0x10] sm:$0xff]  }
   0x3   :  { %297 = vmatpush3.bf16.msra.mxu0 %v344_v1  ;;  %332 = vmatpush3.bf16.msra.mxu1 %v344_v1  ;;  %v349_v6 = vld [vmem:[%s505_s1 + $0x58] sm:$0xff]   ;;  %v351_v8 = vld [vmem:[%s505_s1 + $0x60] sm:$0xff]   ;;  %v353_v10 = vld [vmem:[%s505_s1 + $0x68] sm:$0xff]  }
   0x4   :  { %298 = vmatprep.subr.bf16.mxu0 %v345_v2  ;;  %325 = vmatprep.subr.bf16.mxu1 %v345_v2  ;;  %v350_v7 = vld [vmem:[%s505_s1 + $0x18] sm:$0xff]   ;;  %v352_v9 = vld [vmem:[%s505_s1 + $0x20] sm:$0xff]   ;;  %v18_v12 = vld [vmem:[%s504_s0 + $0x10] sm:$0xff] }
   0x5   :  { %v361_v11 = vld [vmem:[%s504_s0 + $0x4] ss:$8 sps:$4 sm:$0xff]  }
   0x7   :  { %299 = vmatpush3.bf16.msra.mxu0 %v346_v3  ;;  %333 = vmatpush3.bf16.msra.mxu1 %v346_v3 }
   0x8   :  { %300 = vmatprep.subr.bf16.mxu0 %v347_v4  ;;  %326 = vmatprep.subr.bf16.mxu1 %v347_v4 }
   0xb   :  { %301 = vmatpush3.bf16.msra.mxu0 %v348_v5  ;;  %334 = vmatpush3.bf16.msra.mxu1 %v348_v5 }
   0xc   :  { %302 = vmatprep.subr.bf16.mxu0 %v349_v6  ;;  %327 = vmatprep.subr.bf16.mxu1 %v349_v6 }
   0xf   :  { %303 = vmatpush3.bf16.msra.mxu0 %v350_v7  ;;  %335 = vmatpush3.bf16.msra.mxu1 %v350_v7 }
  0x10   :  { %304 = vmatprep.subr.bf16.mxu0 %v351_v8  ;;  %328 = vmatprep.subr.bf16.mxu1 %v351_v8 }
  0x11   :  { %8 = vsyncpa [#allocation3], 0  ;;  %v279_v13 = vcombine.high %v18_v12, %v18_v12  ;;  %v354_v14 = vld [vmem:[%s505_s1 + $0x28] sm:$0xff]   ;;  %v355_v15 = vld [vmem:[%s505_s1 + $0x70] sm:$0xff]   ;;  %203 = vmatprep.mubr.bf16.mxu0 %v361_v11  ;;  %v278_v20 = vcombine.low %v18_v12, %v18_v12  ;;  %vm219_vm0 = vcmask 637952  }
  0x12   :  { %v356_v16 = vld [vmem:[%s505_s1 + $0x30] sm:$0xff]   ;;  %v357_v17 = vld [vmem:[%s505_s1 + $0x78] sm:$0xff]   ;;  %v359_v19 = vld [vmem:[%s504_s0] ss:$8 sps:$4 sm:$0xff]   ;;  %s400_s0 = smov [#allocation2]  }
  0x13   :  { %305 = vmatpush3.bf16.msra.mxu0 %v352_v9  ;;  %336 = vmatpush3.bf16.msra.mxu1 %v352_v9  ;;  %v358_v18 = vld [vmem:[%s505_s1 + $0x38] sm:$0xff]   ;;  %v275_v25 = vld [vmem:[%s506_s2] ss:$0 sm:$0xff]  ;;  %s264_s1 = sshll.u32 %s400_s0, 4  ;;  %s265_s1 = int_to_ptr.vmem [resolvable:$true] %s264_s1 }
  0x14   :  { %306 = vmatprep.subr.bf16.mxu0 %v353_v10  ;;  %329 = vmatprep.subr.bf16.mxu1 %v353_v10  ;;  %s376_s2 = scalar_lea.vmem %s265_s1, 384  ;;  %p381_p1 = scmp.lt.s32.totalorder %s265_s1, %s265_s1 }
  0x15   :  { %211 = vmatprep.mubr.bf16.mxu1 %v279_v13  ;;  %p377_p0 = scmp.ne.s32.totalorder %s265_s1, %s376_s2  ;;  %p382_p2 = scmp.lt.s32.totalorder %s376_s2, %s376_s2 }
  0x17   :  { %307 = vmatpush3.bf16.msra.mxu0 %v354_v14  ;;  %337 = vmatpush3.bf16.msra.mxu1 %v354_v14  ;;  %p383_p3 = por %p382_p2, %p381_p1 }
  0x18   :  { %308 = vmatprep.subr.bf16.mxu0 %v355_v15  ;;  %330 = vmatprep.subr.bf16.mxu1 %v355_v15 }
  0x19   :  { %p384_p4 = pnand %p383_p3, %p377_p0 }
  0x1b   :  { %309 = vmatpush3.bf16.msra.mxu0 %v356_v16  ;;  %338 = vmatpush3.bf16.msra.mxu1 %v356_v16 }
  0x1c   :  { %310 = vmatprep.subr.bf16.mxu0 %v357_v17  ;;  %331 = vmatprep.subr.bf16.mxu1 %v357_v17 }
  0x1f   :  { %311 = vmatpush3.bf16.msra.mxu0 %v358_v18  ;;  %339 = vmatpush3.bf16.msra.mxu1 %v358_v18 }
  0x22   :  { %204 = vmatmul.mubr.bf16.vlgmr.msra.gmra.mrb[0].mxu0 %v359_v19  ;;  %212 = vmatmul.mubr.bf16.vlgmr.msra.gmra.mrb[0].mxu1 %v278_v20 }
  0xf5   :  { %v312_v21 = vpop.f32.mrb[0].mxu0  ;;  %v318_v22 = vpop.f32.mrb[0].mxu1 }
  0xf6   :  { %v313_v23 = vpop.f32.mrb[1].mxu0  ;;  %v319_v24 = vpop.f32.mrb[1].mxu1 }
  0xf7   :  { %v314_v26 = vadd.f32 %v313_v23, %v312_v21  ;;  %v320_v27 = vadd.f32 %v319_v24, %v318_v22  ;;  %v315_v28 = vpop.f32.mrb[2].mxu0  ;;  %v321_v29 = vpop.f32.mrb[2].mxu1 }
  0xf8   :  { %v316_v30 = vpop.f32.mrb[3].mxu0  ;;  %v322_v31 = vpop.f32.mrb[3].mxu1 }
  0xf9   :  { %v317_v32 = vadd.f32 %v316_v30, %v315_v28  ;;  %v214_v33 = vadd.f32 %v320_v27, %v275_v25  ;;  %v206_v34 = vadd.f32 %v314_v26, %v275_v25 }
  0xfb   :  { %v226_v35 = vsel %vm219_vm0, %v214_v33, -inf  ;;  %v220_v36 = vsel %vm219_vm0, %v206_v34, -inf  ;;  %v209_v37 = vadd.f32 %v317_v32, %v275_v25 }
  0xfc   :  { %227 = vmax.xlane.f32.xlu1 %v226_v35  ;;  %221 = vmax.xlane.f32.xlu0 %v220_v36 }
  0xfd   :  { %v223_v38 = vsel %vm219_vm0, %v209_v37, -inf }
 0x100   :  { %224 = vmax.xlane.f32.xlu0 %v223_v38 }
 0x189   :  { %v228_v39 = vpop.xlane.xlu1 %227  ;;  %v222_v40 = vpop.xlane.xlu0 %221 }
 0x18a   :  { %v231_v41 = vsub.f32 %v214_v33, %v228_v39  ;;  %v229_v42 = vsub.f32 %v206_v34, %v222_v40 }
 0x18c   :  { %v232_v43 = vmul.f32 1.442695, %v229_v42  ;;  %v236_v44 = vmul.f32 1.442695, %v231_v41 }
 0x18d   :  { %v225_v45 = vpop.xlane.xlu0 %224 }
 0x18e   :  { %v230_v46 = vsub.f32 %v209_v37, %v225_v45  ;;  %364 = vpow2.f32 %v232_v43 }
 0x18f   :  { %366 = vpow2.f32 %v236_v44 }
 0x190   :  { %v234_v47 = vmul.f32 1.442695, %v230_v46 }
 0x192   :  { %368 = vpow2.f32 %v234_v47 }
 0x198   :  { %v365_v48 = vpop.eup %364 }
 0x199   :  { %v238_v49 = vsel %vm219_vm0, %v365_v48, 0.0  ;;  %v367_v50 = vpop.eup %366 }
 0x19a   :  { %239 = vadd.xlane.f32.xlu1 %v238_v49  ;;  %v244_v53 = vsel %vm219_vm0, %v367_v50, 0.0 }
 0x19c   :  { %v369_v51 = vpop.eup %368 }
 0x19d   :  { %v241_v52 = vsel %vm219_vm0, %v369_v51, 0.0 }
 0x19e   :  { %242 = vadd.xlane.f32.xlu0 %v241_v52  ;;  %245 = vadd.xlane.f32.xlu1 %v244_v53 }
 0x227   :  { %v240_v54 = vpop.xlane.xlu1 %239 }
 0x228   :  { %370 = vlog2.f32 %v240_v54 }
 0x22b   :  { %v243_v55 = vpop.xlane.xlu0 %242  ;;  %v246_v56 = vpop.xlane.xlu1 %245 }
 0x22c   :  { %372 = vlog2.f32 %v243_v55 }
 0x22d   :  { %374 = vlog2.f32 %v246_v56 }
 0x232   :  { %v371_v57 = vpop.eup %370 }
 0x233   :  { %v248_v58 = vmul.f32 0.6931472, %v371_v57 }
 0x235   :  { %v253_v60 = vsub.f32 %v229_v42, %v248_v58 }
 0x236   :  { %v373_v59 = vpop.eup %372 }
 0x237   :  { %v375_v61 = vpop.eup %374  ;;  %v250_v62 = vmul.f32 0.6931472, %v373_v59  ;;  %256 = vst.msk [vmem:[#allocation2] sm:$0xff] %vm219_vm0, %v253_v60 }
 0x238   :  { %v252_v63 = vmul.f32 0.6931472, %v375_v61 }
 0x239   :  { %v254_v0 = vsub.f32 %v230_v46, %v250_v62 }
 0x23a   :  { %v255_v1 = vsub.f32 %v231_v41, %v252_v63 }
 0x23b   :  { %257 = vst.msk [vmem:[#allocation2 + $0x8] sm:$0xff] %vm219_vm0, %v254_v0 }
 0x23c   :  { %258 = vst.msk [vmem:[#allocation2 + $0x10] sm:$0xff] %vm219_vm0, %v255_v1 }
 0x23d   :  { %387 = shalt.err (!%p384_p4)
}
 0x23e   :  { %s388_s27 = scalar_lea.hbm %s507_s3, 384 }
 0x23f   :  { %p389_p5 = scmp.ne.s32.totalorder %s507_s3, %s388_s27  ;;  %p392_p6 = scmp.lt.u32.totalorder %s388_s27, %s507_s3 }
 0x241   :  { %p394_p7 = pnand %p392_p6, %p389_p5 }
 0x243   :  { %397 = shalt.err (!%p394_p7)
}
 0x244   :  { %s401_s5 = smov 128   ;;  %s402_s6 = smov 8  }
 0x245   :  { %270 = dma.vmem_to_hbm [thread:$0]  %s265_s1, 384, %s507_s3, [#allocation3], %s401_s5, %s401_s5, %s402_s6  }
 0x246   :  { %398 = dma.done.wait [#allocation3], 384  }
 0x247   :  { %399 = vsyncadd [#allocation3], 4294966912 }
 0x248   :  { %274 = vsyncpa [#allocation3], 1 }

// kernel: mynet1_forward.15
= control target key start
LH: loop header
LB: loop body
LE: loop exit
PB: predicated region body
PF: predicated region fallthrough
CT: control target
= control target key end

     0   :  { %s2284_s12 = smov 0   ;;  %s2788_s0 = inlined_call_operand.vmem [shape: bf16[2,9,15,128], index: 0, kind: input, shape index: {}]   ;;  %s2789_s1 = inlined_call_operand.vmem [shape: bf16[9,128,256], index: 1, kind: input, shape index: {}]   ;;  %s2790_s2 = inlined_call_operand.vmem [shape: f32[1,256], index: 2, kind: input, shape index: {}]   ;;  %s2791_s3 = inlined_call_operand.vmem [shape: bf16[2,7,13,256], index: 3, kind: output, shape index: {}]  }
   0x1 LB: > { %s1667_s13 = sadd.s32 4294967295, %s2257_s12   ;;  %p1671_p0 = scmp.ge.s32.totalorder %s2257_s12, 1  ;;  %s2257_s12 = sphi %s2284_s12, %s13_s12  }
   0x2   : > { %p137_p1 = scmp.lt.s32.totalorder %s2257_s12, 3 }
   0x4   : > { %p138_p2 = pnand %p1671_p0, %p137_p1 }
   0x5   : > { %p161_p3 = scmp.lt.s32.totalorder (!%p138_p2), %s1667_s13, 1  ;;  %v2295_v0 = vld [vmem:[%s2790_s2] sm:$0x3] (!%p138_p2)  ;;  %s2307_s24 = smov (!%p138_p2), 0  }
   0x6   : > { %141 = sbr.rel (%p138_p2) target bundleno = 405 (0x195), region = 32 }
   0xd   : > { %s2793_s13 = smov (!%p161_p3, %s1667_s13), 1 }
   0xe   : > { %s2006_s16 = smul.u32 72, %s2793_s13 }
   0xf   : > { %s2007_s17 = smul.u32 112, %s2793_s13 }
  0x10   : > { %s2300_s20 = scalar_lea.vmem %s2788_s0, %s2006_s16 }
  0x11   : > { %s2305_s23 = scalar_lea.vmem %s2791_s3, %s2007_s17 }
  0x12 LB: >> { %v2025_v1 = vld [vmem:[%s2789_s1 + $0x84] ss:$8 sps:$4 sm:$0xff]   ;;  %v2263_v3 = vmov 0   ;;  %v2029_v4 = vld [vmem:[%s2789_s1 + $0x80] ss:$8 sps:$4 sm:$0xff]   ;;  %s1970_s21 = sshll.u32 %s2261_s24, 3  ;;  %s2261_s24 = sphi %s2307_s24, %s178_s24  }
  0x13   : >> { %v2027_v2 = vld [vmem:[%s2789_s1 + $0x204] ss:$8 sps:$4 sm:$0xff]   ;;  %342 = vmatprep.mubr.bf16.mxu1 %v2263_v3  ;;  %923 = vmatprep.mubr.bf16.mxu0 %v2263_v3  ;;  %v2030_v5 = vld [vmem:[%s2789_s1 + $0x200] ss:$8 sps:$4 sm:$0xff]   ;;  %v2031_v6 = vld [vmem:[%s2789_s1 + $0x94] ss:$8 sps:$4 sm:$0xff]   ;;  %s2394_s5 = scalar_lea.vmem %s2300_s20, %s1970_s21 }
  0x14   : >> { %310 = vmatprep.subr.bf16.mxu1 %v2025_v1  ;;  %891 = vmatprep.subr.bf16.mxu0 %v2027_v2  ;;  %v2033_v7 = vld [vmem:[%s2789_s1 + $0x214] ss:$8 sps:$4 sm:$0xff]   ;;  %v2035_v8 = vld [vmem:[%s2789_s1 + $0x90] ss:$8 sps:$4 sm:$0xff]   ;;  %v2037_v10 = vld [vmem:[%s2789_s1 + $0xa4] ss:$8 sps:$4 sm:$0xff]  }
  0x15   : >> { %311 = vmatpush1.bf16.msra.mxu1 %v2029_v4  ;;  %892 = vmatpush1.bf16.msra.mxu0 %v2030_v5  ;;  %v2036_v9 = vld [vmem:[%s2789_s1 + $0x210] ss:$8 sps:$4 sm:$0xff]   ;;  %v2039_v11 = vld [vmem:[%s2789_s1 + $0x224] ss:$8 sps:$4 sm:$0xff]   ;;  %v2041_v12 = vld [vmem:[%s2789_s1 + $0xa0] ss:$8 sps:$4 sm:$0xff]  }
  0x16   : >> { %312 = vmatprep.subr.bf16.mxu1 %v2031_v6  ;;  %893 = vmatprep.subr.bf16.mxu0 %v2033_v7  ;;  %v2042_v13 = vld [vmem:[%s2789_s1 + $0x220] ss:$8 sps:$4 sm:$0xff]   ;;  %v2043_v14 = vld [vmem:[%s2789_s1 + $0xb4] ss:$8 sps:$4 sm:$0xff]   ;;  %v2047_v16 = vld [vmem:[%s2789_s1 + $0xb0] ss:$8 sps:$4 sm:$0xff]  }
  0x17   : >> { %v2045_v15 = vld [vmem:[%s2789_s1 + $0x234] ss:$8 sps:$4 sm:$0xff]   ;;  %v2048_v17 = vld [vmem:[%s2789_s1 + $0x230] ss:$8 sps:$4 sm:$0xff]   ;;  %v2049_v18 = vld [vmem:[%s2789_s1 + $0xc4] ss:$8 sps:$4 sm:$0xff]  }
  0x18   : >> { %v2051_v19 = vld [vmem:[%s2789_s1 + $0x244] ss:$8 sps:$4 sm:$0xff]   ;;  %v2053_v20 = vld [vmem:[%s2789_s1 + $0xc0] ss:$8 sps:$4 sm:$0xff]   ;;  %v2055_v22 = vld [vmem:[%s2789_s1 + $0xd4] ss:$8 sps:$4 sm:$0xff]  }
  0x19   : >> { %313 = vmatpush1.bf16.msra.mxu1 %v2035_v8  ;;  %894 = vmatpush1.bf16.msra.mxu0 %v2036_v9  ;;  %v2054_v21 = vld [vmem:[%s2789_s1 + $0x240] ss:$8 sps:$4 sm:$0xff]   ;;  %v2057_v23 = vld [vmem:[%s2789_s1 + $0x254] ss:$8 sps:$4 sm:$0xff]   ;;  %v2059_v24 = vld [vmem:[%s2789_s1 + $0xd0] ss:$8 sps:$4 sm:$0xff]  }
  0x1a   : >> { %314 = vmatprep.subr.bf16.mxu1 %v2037_v10  ;;  %895 = vmatprep.subr.bf16.mxu0 %v2039_v11  ;;  %v2060_v25 = vld [vmem:[%s2789_s1 + $0x250] ss:$8 sps:$4 sm:$0xff]   ;;  %v2061_v26 = vld [vmem:[%s2789_s1 + $0xe4] ss:$8 sps:$4 sm:$0xff]   ;;  %v2065_v28 = vld [vmem:[%s2789_s1 + $0xe0] ss:$8 sps:$4 sm:$0xff]  }
  0x1b   : >> { %v2063_v27 = vld [vmem:[%s2789_s1 + $0x264] ss:$8 sps:$4 sm:$0xff]   ;;  %v2066_v29 = vld [vmem:[%s2789_s1 + $0x260] ss:$8 sps:$4 sm:$0xff]   ;;  %v2067_v30 = vld [vmem:[%s2789_s1 + $0xf4] ss:$8 sps:$4 sm:$0xff]  }
  0x1c   : >> { %v2069_v31 = vld [vmem:[%s2789_s1 + $0x274] ss:$8 sps:$4 sm:$0xff]   ;;  %v2409_v32 = vld [vmem:[%s2394_s5] sm:$0x7f]   ;;  %v2412_v33 = vld [vmem:[%s2394_s5 + $0x8] sm:$0x7f]  }
  0x1d   : >> { %315 = vmatpush1.bf16.msra.mxu1 %v2041_v12  ;;  %896 = vmatpush1.bf16.msra.mxu0 %v2042_v13  ;;  %v225_v34 = vshll.u32 %v2409_v32, 16  ;;  %v223_v35 = vshrl.u32 %v2409_v32, 16  ;;  %v804_v36 = vshrl.u32 %v2412_v33, 16  ;;  %v806_v37 = vshll.u32 %v2412_v33, 16  ;;  %v2071_v38 = vld [vmem:[%s2789_s1 + $0xf0] ss:$8 sps:$4 sm:$0xff]  }
  0x1e   : >> { %316 = vmatprep.subr.bf16.mxu1 %v2043_v14  ;;  %897 = vmatprep.subr.bf16.mxu0 %v2045_v15  ;;  %v2072_v39 = vld [vmem:[%s2789_s1 + $0x270] ss:$8 sps:$4 sm:$0xff]   ;;  %v2075_v41 = vld [vmem:[%s2789_s1 + $0x4] ss:$8 sps:$4 sm:$0xff]   ;;  %v2073_v46 = vld [vmem:[%s2789_s1] ss:$8 sps:$4 sm:$0xff]  }
  0x1f   : >> { %v227_v40 = vrot.slane %v225_v34, 1  ;;  %v2078_v42 = vld [vmem:[%s2789_s1 + $0x284] ss:$8 sps:$4 sm:$0xff]   ;;  %v808_v43 = vrot.slane %v806_v37, 1  ;;  %v2076_v47 = vld [vmem:[%s2789_s1 + $0x280] ss:$8 sps:$4 sm:$0xff]  }
  0x20   : >> { %v2083_v48 = vld [vmem:[%s2789_s1 + $0x14] ss:$8 sps:$4 sm:$0xff]   ;;  %v2081_v50 = vld [vmem:[%s2789_s1 + $0x10] ss:$8 sps:$4 sm:$0xff]   ;;  %v2089_v52 = vld [vmem:[%s2789_s1 + $0x24] ss:$8 sps:$4 sm:$0xff]  }
  0x21   : >> { %317 = vmatpush1.bf16.msra.mxu1 %v2047_v16  ;;  %898 = vmatpush1.bf16.msra.mxu0 %v2048_v17  ;;  %v228_v44 = vor.u32 %v227_v40, %v223_v35  ;;  %v809_v45 = vor.u32 %v808_v43, %v804_v36  ;;  %v2086_v49 = vld [vmem:[%s2789_s1 + $0x294] ss:$8 sps:$4 sm:$0xff]   ;;  %v2084_v51 = vld [vmem:[%s2789_s1 + $0x290] ss:$8 sps:$4 sm:$0xff]   ;;  %v2092_v53 = vld [vmem:[%s2789_s1 + $0x2a4] ss:$8 sps:$4 sm:$0xff]  }
  0x22   : >> { %318 = vmatprep.subr.bf16.mxu1 %v2049_v18  ;;  %899 = vmatprep.subr.bf16.mxu0 %v2051_v19  ;;  %v2087_v54 = vld [vmem:[%s2789_s1 + $0x20] ss:$8 sps:$4 sm:$0xff]   ;;  %v2095_v56 = vld [vmem:[%s2789_s1 + $0x34] ss:$8 sps:$4 sm:$0xff]   ;;  %v2093_v58 = vld [vmem:[%s2789_s1 + $0x30] ss:$8 sps:$4 sm:$0xff]  }
  0x23   : >> { %v2090_v55 = vld [vmem:[%s2789_s1 + $0x2a0] ss:$8 sps:$4 sm:$0xff]   ;;  %v2098_v57 = vld [vmem:[%s2789_s1 + $0x2b4] ss:$8 sps:$4 sm:$0xff]   ;;  %v2096_v59 = vld [vmem:[%s2789_s1 + $0x2b0] ss:$8 sps:$4 sm:$0xff]  }
  0x24   : >> { %v2101_v60 = vld [vmem:[%s2789_s1 + $0x44] ss:$8 sps:$4 sm:$0xff]   ;;  %v2099_v62 = vld [vmem:[%s2789_s1 + $0x40] ss:$8 sps:$4 sm:$0xff]   ;;  %v2107_v1 = vld [vmem:[%s2789_s1 + $0x54] ss:$8 sps:$4 sm:$0xff]  }
  0x25   : >> { %319 = vmatpush1.bf16.msra.mxu1 %v2053_v20  ;;  %900 = vmatpush1.bf16.msra.mxu0 %v2054_v21  ;;  %v2104_v61 = vld [vmem:[%s2789_s1 + $0x2c4] ss:$8 sps:$4 sm:$0xff]   ;;  %v2102_v63 = vld [vmem:[%s2789_s1 + $0x2c0] ss:$8 sps:$4 sm:$0xff]   ;;  %v2110_v2 = vld [vmem:[%s2789_s1 + $0x2d4] ss:$8 sps:$4 sm:$0xff]  }
  0x26   : >> { %320 = vmatprep.subr.bf16.mxu1 %v2055_v22  ;;  %901 = vmatprep.subr.bf16.mxu0 %v2057_v23  ;;  %v2105_v4 = vld [vmem:[%s2789_s1 + $0x50] ss:$8 sps:$4 sm:$0xff]   ;;  %v2113_v6 = vld [vmem:[%s2789_s1 + $0x64] ss:$8 sps:$4 sm:$0xff]   ;;  %v2111_v8 = vld [vmem:[%s2789_s1 + $0x60] ss:$8 sps:$4 sm:$0xff]  }
  0x27   : >> { %v2108_v5 = vld [vmem:[%s2789_s1 + $0x2d0] ss:$8 sps:$4 sm:$0xff]   ;;  %v2116_v7 = vld [vmem:[%s2789_s1 + $0x2e4] ss:$8 sps:$4 sm:$0xff]   ;;  %v2114_v9 = vld [vmem:[%s2789_s1 + $0x2e0] ss:$8 sps:$4 sm:$0xff]  }
  0x28   : >> { %v2119_v10 = vld [vmem:[%s2789_s1 + $0x74] ss:$8 sps:$4 sm:$0xff]   ;;  %v2117_v12 = vld [vmem:[%s2789_s1 + $0x70] ss:$8 sps:$4 sm:$0xff]   ;;  %v2129_v13 = vld [vmem:[%s2394_s5 + $0x8] sm:$0xfe]  }
  0x29   : >> { %321 = vmatpush1.bf16.msra.mxu1 %v2059_v24  ;;  %902 = vmatpush1.bf16.msra.mxu0 %v2060_v25  ;;  %v2122_v11 = vld [vmem:[%s2789_s1 + $0x2f4] ss:$8 sps:$4 sm:$0xff]   ;;  %v2120_v14 = vld [vmem:[%s2789_s1 + $0x2f0] ss:$8 sps:$4 sm:$0xff]   ;;  %v2125_v15 = vld [vmem:[%s2789_s1 + $0x104] ss:$8 sps:$4 sm:$0xff]  }
  0x2a   : >> { %322 = vmatprep.subr.bf16.mxu1 %v2061_v26  ;;  %903 = vmatprep.subr.bf16.mxu0 %v2063_v27  ;;  %v2128_v16 = vld [vmem:[%s2789_s1 + $0x304] ss:$8 sps:$4 sm:$0xff]   ;;  %v2123_v17 = vld [vmem:[%s2789_s1 + $0x100] ss:$8 sps:$4 sm:$0xff]   ;;  %v962_v18 = vrot.slane %v2129_v13, 1  ;;  %vm1587_vm0 = vcmask 1042432  }
  0x2b   : >> { %v2126_v19 = vld [vmem:[%s2789_s1 + $0x300] ss:$8 sps:$4 sm:$0xff]   ;;  %v2132_v20 = vld [vmem:[%s2789_s1 + $0x114] ss:$8 sps:$4 sm:$0xff]   ;;  %v2130_v22 = vld [vmem:[%s2789_s1 + $0x110] ss:$8 sps:$4 sm:$0xff]  }
  0x2c   : >> { %v2135_v21 = vld [vmem:[%s2789_s1 + $0x314] ss:$8 sps:$4 sm:$0xff]   ;;  %v2133_v23 = vld [vmem:[%s2789_s1 + $0x310] ss:$8 sps:$4 sm:$0xff]   ;;  %v2138_v24 = vld [vmem:[%s2789_s1 + $0x124] ss:$8 sps:$4 sm:$0xff]  }
  0x2d   : >> { %323 = vmatpush1.bf16.msra.mxu1 %v2065_v28  ;;  %904 = vmatpush1.bf16.msra.mxu0 %v2066_v29  ;;  %v2141_v25 = vld [vmem:[%s2789_s1 + $0x324] ss:$8 sps:$4 sm:$0xff]   ;;  %v2136_v26 = vld [vmem:[%s2789_s1 + $0x120] ss:$8 sps:$4 sm:$0xff]   ;;  %v2144_v28 = vld [vmem:[%s2789_s1 + $0x134] ss:$8 sps:$4 sm:$0xff]  }
  0x2e   : >> { %324 = vmatprep.subr.bf16.mxu1 %v2067_v30  ;;  %905 = vmatprep.subr.bf16.mxu0 %v2069_v31  ;;  %v2139_v27 = vld [vmem:[%s2789_s1 + $0x320] ss:$8 sps:$4 sm:$0xff]   ;;  %v2147_v29 = vld [vmem:[%s2789_s1 + $0x334] ss:$8 sps:$4 sm:$0xff]   ;;  %v2142_v30 = vld [vmem:[%s2789_s1 + $0x130] ss:$8 sps:$4 sm:$0xff]  }
  0x2f   : >> { %v2145_v31 = vld [vmem:[%s2789_s1 + $0x330] ss:$8 sps:$4 sm:$0xff]   ;;  %v2153_v34 = vld [vmem:[%s2789_s1 + $0x344] ss:$8 sps:$4 sm:$0xff]   ;;  %v2148_v35 = vld [vmem:[%s2789_s1 + $0x140] ss:$8 sps:$4 sm:$0xff]  }
  0x30   : >> { %v2151_v36 = vld [vmem:[%s2789_s1 + $0x340] ss:$8 sps:$4 sm:$0xff]   ;;  %v2156_v37 = vld [vmem:[%s2789_s1 + $0x154] ss:$8 sps:$4 sm:$0xff]   ;;  %v2157_v40 = vld [vmem:[%s2789_s1 + $0x350] ss:$8 sps:$4 sm:$0xff]  }
  0x31   : >> { %325 = vmatpush1.bf16.msra.mxu1 %v2071_v38  ;;  %906 = vmatpush1.bf16.msra.mxu0 %v2072_v39  ;;  %v2159_v38 = vld [vmem:[%s2789_s1 + $0x354] ss:$8 sps:$4 sm:$0xff]   ;;  %v2154_v39 = vld [vmem:[%s2789_s1 + $0x150] ss:$8 sps:$4 sm:$0xff]   ;;  %v2160_v43 = vld [vmem:[%s2789_s1 + $0x160] ss:$8 sps:$4 sm:$0xff]  }
  0x32   : >> { %434 = vmatprep.subr.bf16.mxu1 %v2075_v41  ;;  %1044 = vmatprep.subr.bf16.mxu0 %v2078_v42  ;;  %v2162_v41 = vld [vmem:[%s2789_s1 + $0x164] ss:$8 sps:$4 sm:$0xff]   ;;  %v2207_v13 = vld [vmem:[%s2789_s1 + $0x3d0] ss:$8 sps:$4 sm:$0xff]   ;;  %vm1588_vm1 = vsmask.f32 2304 }
  0x33   : >> { %v2165_v42 = vld [vmem:[%s2789_s1 + $0x364] ss:$8 sps:$4 sm:$0xff]   ;;  %vm1590_vm2 = vcmask 1046532   ;;  %vm1591_vm3 = vsmask.f32 6400  ;;  %vm1589_vm4 = vmand %vm1587_vm0, %vm1588_vm1 }
  0x34   : >> { %343 = vmatmul.mubr.bf16.vlgmr.msra.gmra.mrb[0].mxu1 %v228_v44  ;;  %924 = vmatmul.mubr.bf16.vlgmr.msra.gmra.mrb[0].mxu0 %v809_v45  ;;  %v2163_v44 = vld [vmem:[%s2789_s1 + $0x360] ss:$8 sps:$4 sm:$0xff]   ;;  %v2168_v45 = vld [vmem:[%s2789_s1 + $0x174] ss:$8 sps:$4 sm:$0xff]   ;;  %vm1592_vm5 = vmand %vm1590_vm2, %vm1591_vm3 }
  0x35   : >> { %435 = vmatpush1.bf16.msra.mxu1 %v2073_v46  ;;  %1045 = vmatpush1.bf16.msra.mxu0 %v2076_v47  ;;  %v2171_v46 = vld [vmem:[%s2789_s1 + $0x374] ss:$8 sps:$4 sm:$0xff]   ;;  %v2166_v47 = vld [vmem:[%s2789_s1 + $0x170] ss:$8 sps:$4 sm:$0xff]   ;;  %vm1593_vm6 = vmor %vm1592_vm5, %vm1589_vm4 }
  0x36   : >> { %436 = vmatprep.subr.bf16.mxu1 %v2083_v48  ;;  %1046 = vmatprep.subr.bf16.mxu0 %v2086_v49  ;;  %v2178_v48 = vld [vmem:[%s2394_s5] sm:$0xfe]   ;;  %v2169_v49 = vld [vmem:[%s2789_s1 + $0x370] ss:$8 sps:$4 sm:$0xff]  }
  0x37   : >> { %466 = vmatprep.mubr.bf16.mxu1 %v2263_v3  ;;  %1076 = vmatprep.mubr.bf16.mxu0 %v2263_v3 }
  0x39   : >> { %437 = vmatpush1.bf16.msra.mxu1 %v2081_v50  ;;  %1047 = vmatpush1.bf16.msra.mxu0 %v2084_v51  ;;  %v2174_v50 = vld [vmem:[%s2789_s1 + $0x184] ss:$8 sps:$4 sm:$0xff]  }
  0x3a   : >> { %438 = vmatprep.subr.bf16.mxu1 %v2089_v52  ;;  %1048 = vmatprep.subr.bf16.mxu0 %v2092_v53  ;;  %v2177_v51 = vld [vmem:[%s2789_s1 + $0x384] ss:$8 sps:$4 sm:$0xff]   ;;  %v2172_v52 = vld [vmem:[%s2789_s1 + $0x180] ss:$8 sps:$4 sm:$0xff]   ;;  %v501_v53 = vrot.slane %v2178_v48, 1 }
  0x3d   : >> { %439 = vmatpush1.bf16.msra.mxu1 %v2087_v54  ;;  %1049 = vmatpush1.bf16.msra.mxu0 %v2090_v55  ;;  %v2633_v54 = vld [vmem:[%s2394_s5 + $0x10] sm:$0x7f]   ;;  %v2175_v55 = vld [vmem:[%s2789_s1 + $0x380] ss:$8 sps:$4 sm:$0xff]  }
  0x3e   : >> { %440 = vmatprep.subr.bf16.mxu1 %v2095_v56  ;;  %1050 = vmatprep.subr.bf16.mxu0 %v2098_v57  ;;  %v2182_v56 = vld [vmem:[%s2789_s1 + $0x194] ss:$8 sps:$4 sm:$0xff]  }
  0x3f   : >> { %v2185_v57 = vld [vmem:[%s2789_s1 + $0x394] ss:$8 sps:$4 sm:$0xff]  }
  0x41   : >> { %441 = vmatpush1.bf16.msra.mxu1 %v2093_v58  ;;  %1051 = vmatpush1.bf16.msra.mxu0 %v2096_v59  ;;  %v2180_v58 = vld [vmem:[%s2789_s1 + $0x190] ss:$8 sps:$4 sm:$0xff]  }
  0x42   : >> { %442 = vmatprep.subr.bf16.mxu1 %v2101_v60  ;;  %1052 = vmatprep.subr.bf16.mxu0 %v2104_v61  ;;  %v2183_v59 = vld [vmem:[%s2789_s1 + $0x390] ss:$8 sps:$4 sm:$0xff]   ;;  %v2188_v60 = vld [vmem:[%s2789_s1 + $0x1a4] ss:$8 sps:$4 sm:$0xff]  }
  0x43   : >> { %v2191_v61 = vld [vmem:[%s2789_s1 + $0x3a4] ss:$8 sps:$4 sm:$0xff]  }
  0x45   : >> { %443 = vmatpush1.bf16.msra.mxu1 %v2099_v62  ;;  %1053 = vmatpush1.bf16.msra.mxu0 %v2102_v63  ;;  %v2186_v62 = vld [vmem:[%s2789_s1 + $0x1a0] ss:$8 sps:$4 sm:$0xff]  }
  0x46   : >> { %444 = vmatprep.subr.bf16.mxu1 %v2107_v1  ;;  %1054 = vmatprep.subr.bf16.mxu0 %v2110_v2  ;;  %v2189_v63 = vld [vmem:[%s2789_s1 + $0x3a0] ss:$8 sps:$4 sm:$0xff]   ;;  %v2194_v1 = vld [vmem:[%s2789_s1 + $0x1b4] ss:$8 sps:$4 sm:$0xff]  }
  0x47   : >> { %v2197_v2 = vld [vmem:[%s2789_s1 + $0x3b4] ss:$8 sps:$4 sm:$0xff]  }
  0x49   : >> { %445 = vmatpush1.bf16.msra.mxu1 %v2105_v4  ;;  %1055 = vmatpush1.bf16.msra.mxu0 %v2108_v5  ;;  %v2192_v4 = vld [vmem:[%s2789_s1 + $0x1b0] ss:$8 sps:$4 sm:$0xff]  }
  0x4a   : >> { %446 = vmatprep.subr.bf16.mxu1 %v2113_v6  ;;  %1056 = vmatprep.subr.bf16.mxu0 %v2116_v7  ;;  %v2195_v5 = vld [vmem:[%s2789_s1 + $0x3b0] ss:$8 sps:$4 sm:$0xff]   ;;  %v2200_v6 = vld [vmem:[%s2789_s1 + $0x1c4] ss:$8 sps:$4 sm:$0xff]  }
  0x4b   : >> { %v2203_v7 = vld [vmem:[%s2789_s1 + $0x3c4] ss:$8 sps:$4 sm:$0xff]  }
  0x4d   : >> { %447 = vmatpush1.bf16.msra.mxu1 %v2111_v8  ;;  %1057 = vmatpush1.bf16.msra.mxu0 %v2114_v9  ;;  %v2198_v8 = vld [vmem:[%s2789_s1 + $0x1c0] ss:$8 sps:$4 sm:$0xff]  }
  0x4e   : >> { %448 = vmatprep.subr.bf16.mxu1 %v2119_v10  ;;  %1058 = vmatprep.subr.bf16.mxu0 %v2122_v11  ;;  %v2201_v9 = vld [vmem:[%s2789_s1 + $0x3c0] ss:$8 sps:$4 sm:$0xff]   ;;  %v2206_v10 = vld [vmem:[%s2789_s1 + $0x1d4] ss:$8 sps:$4 sm:$0xff]  }
  0x4f   : >> { %v2209_v11 = vld [vmem:[%s2789_s1 + $0x3d4] ss:$8 sps:$4 sm:$0xff]  }
  0x51   : >> { %449 = vmatpush1.bf16.msra.mxu1 %v2117_v12  ;;  %1059 = vmatpush1.bf16.msra.mxu0 %v2120_v14  ;;  %v2204_v12 = vld [vmem:[%s2789_s1 + $0x1d0] ss:$8 sps:$4 sm:$0xff]   ;;  %v2212_v14 = vld [vmem:[%s2789_s1 + $0x1e4] ss:$8 sps:$4 sm:$0xff]  }
  0x52   : >> { %583 = vmatprep.subr.bf16.mxu1 %v2125_v15  ;;  %1200 = vmatprep.subr.bf16.mxu0 %v2128_v16  ;;  %v2215_v15 = vld [vmem:[%s2789_s1 + $0x3e4] ss:$8 sps:$4 sm:$0xff]   ;;  %v1267_v16 = vshll.u32 %v2633_v54, 16 }
  0x54   : >> { %467 = vmatmul.mubr.bf16.vlgmr.msra.gmra.mrb[0].mxu1 %v2409_v32  ;;  %1077 = vmatmul.mubr.bf16.vlgmr.msra.gmra.mrb[0].mxu0 %v962_v18  ;;  %v2150_v32 = vld [vmem:[%s2789_s1 + $0x144] ss:$8 sps:$4 sm:$0xff]   ;;  %v2213_v18 = vld [vmem:[%s2789_s1 + $0x3e0] ss:$8 sps:$4 sm:$0xff]  }
  0x55   : >> { %584 = vmatpush1.bf16.msra.mxu1 %v2123_v17  ;;  %1201 = vmatpush1.bf16.msra.mxu0 %v2126_v19  ;;  %v2210_v17 = vld [vmem:[%s2789_s1 + $0x1e0] ss:$8 sps:$4 sm:$0xff]   ;;  %v2218_v19 = vld [vmem:[%s2789_s1 + $0x1f4] ss:$8 sps:$4 sm:$0xff]  }
  0x56   : >> { %585 = vmatprep.subr.bf16.mxu1 %v2132_v20  ;;  %1202 = vmatprep.subr.bf16.mxu0 %v2135_v21  ;;  %v2221_v20 = vld [vmem:[%s2789_s1 + $0x3f4] ss:$8 sps:$4 sm:$0xff]   ;;  %v1265_v21 = vshrl.u32 %v2633_v54, 16 }
  0x57   : >> { %615 = vmatprep.mubr.bf16.mxu1 %v2263_v3  ;;  %1232 = vmatprep.mubr.bf16.mxu0 %v2263_v3 }
  0x59   : >> { %586 = vmatpush1.bf16.msra.mxu1 %v2130_v22  ;;  %1203 = vmatpush1.bf16.msra.mxu0 %v2133_v23  ;;  %v1269_v22 = vrot.slane %v1267_v16, 1  ;;  %v2216_v23 = vld [vmem:[%s2789_s1 + $0x1f0] ss:$8 sps:$4 sm:$0xff]  }
  0x5a   : >> { %587 = vmatprep.subr.bf16.mxu1 %v2138_v24  ;;  %1204 = vmatprep.subr.bf16.mxu0 %v2141_v25  ;;  %v2219_v24 = vld [vmem:[%s2789_s1 + $0x3f0] ss:$8 sps:$4 sm:$0xff]   ;;  %v2224_v25 = vld [vmem:[%s2789_s1 + $0x404] ss:$8 sps:$4 sm:$0xff]  }
  0x5d   : >> { %588 = vmatpush1.bf16.msra.mxu1 %v2136_v26  ;;  %1205 = vmatpush1.bf16.msra.mxu0 %v2139_v27  ;;  %v1270_v26 = vor.u32 %v1269_v22, %v1265_v21  ;;  %v2222_v27 = vld [vmem:[%s2789_s1 + $0x400] ss:$8 sps:$4 sm:$0xff]  }
  0x5e   : >> { %589 = vmatprep.subr.bf16.mxu1 %v2144_v28  ;;  %1206 = vmatprep.subr.bf16.mxu0 %v2147_v29  ;;  %v2227_v28 = vld [vmem:[%s2789_s1 + $0x414] ss:$8 sps:$4 sm:$0xff]   ;;  %v2225_v29 = vld [vmem:[%s2789_s1 + $0x410] ss:$8 sps:$4 sm:$0xff]  }
  0x61   : >> { %590 = vmatpush1.bf16.msra.mxu1 %v2142_v30  ;;  %1207 = vmatpush1.bf16.msra.mxu0 %v2145_v31  ;;  %v2230_v30 = vld [vmem:[%s2789_s1 + $0x424] ss:$8 sps:$4 sm:$0xff]   ;;  %v2228_v31 = vld [vmem:[%s2789_s1 + $0x420] ss:$8 sps:$4 sm:$0xff]  }
  0x62   : >> { %591 = vmatprep.subr.bf16.mxu1 %v2150_v32  ;;  %1208 = vmatprep.subr.bf16.mxu0 %v2153_v34  ;;  %v2236_v32 = vld [vmem:[%s2789_s1 + $0x444] ss:$8 sps:$4 sm:$0xff]   ;;  %v2234_v34 = vld [vmem:[%s2789_s1 + $0x440] ss:$8 sps:$4 sm:$0xff]  }
  0x65   : >> { %592 = vmatpush1.bf16.msra.mxu1 %v2148_v35  ;;  %1209 = vmatpush1.bf16.msra.mxu0 %v2151_v36  ;;  %v2239_v35 = vld [vmem:[%s2789_s1 + $0x454] ss:$8 sps:$4 sm:$0xff]   ;;  %v2237_v36 = vld [vmem:[%s2789_s1 + $0x450] ss:$8 sps:$4 sm:$0xff]  }
  0x66   : >> { %593 = vmatprep.subr.bf16.mxu1 %v2156_v37  ;;  %1210 = vmatprep.subr.bf16.mxu0 %v2159_v38  ;;  %v2242_v37 = vld [vmem:[%s2789_s1 + $0x464] ss:$8 sps:$4 sm:$0xff]   ;;  %v2240_v38 = vld [vmem:[%s2789_s1 + $0x460] ss:$8 sps:$4 sm:$0xff]  }
  0x69   : >> { %594 = vmatpush1.bf16.msra.mxu1 %v2154_v39  ;;  %1211 = vmatpush1.bf16.msra.mxu0 %v2157_v40  ;;  %v2245_v39 = vld [vmem:[%s2789_s1 + $0x474] ss:$8 sps:$4 sm:$0xff]  }
  0x6a   : >> { %595 = vmatprep.subr.bf16.mxu1 %v2162_v41  ;;  %1212 = vmatprep.subr.bf16.mxu0 %v2165_v42  ;;  %v2246_v40 = vld [vmem:[%s2394_s5 + $0x10] sm:$0xfe]   ;;  %s1973_s5 = sshll.u32 %s2261_s24, 4  ;;  %s178_s24 = sadd.s32 1, %s2261_s24  }
  0x6b   : >> { %v2243_v41 = vld [vmem:[%s2789_s1 + $0x470] ss:$8 sps:$4 sm:$0xff]   ;;  %v1423_v42 = vrot.slane %v2246_v40, 1  ;;  %s1585_s26 = scalar_lea.vmem %s2305_s23, %s1973_s5  ;;  %p175_p4 = scmp.ge.s32.totalorder %s178_s24, 7  }
  0x6d   : >> { %596 = vmatpush1.bf16.msra.mxu1 %v2160_v43  ;;  %1213 = vmatpush1.bf16.msra.mxu0 %v2163_v44 }
  0x6e   : >> { %597 = vmatprep.subr.bf16.mxu1 %v2168_v45  ;;  %1214 = vmatprep.subr.bf16.mxu0 %v2171_v46 }
  0x71   : >> { %598 = vmatpush1.bf16.msra.mxu1 %v2166_v47  ;;  %1215 = vmatpush1.bf16.msra.mxu0 %v2169_v49  ;;  %v1553_v47 = vlaneseq }
  0x72   : >> { %739 = vmatprep.subr.bf16.mxu1 %v2174_v50  ;;  %1352 = vmatprep.subr.bf16.mxu0 %v2177_v51 }
  0x73   : >> { %v1554_v48 = vshrl.u32 %v1553_v47, 7 }
  0x74   : >> { %616 = vmatmul.mubr.bf16.vlgmr.msra.gmra.mrb[0].mxu1 %v501_v53  ;;  %1233 = vmatmul.mubr.bf16.vlgmr.msra.gmra.mrb[0].mxu0 %v2633_v54 }
  0x75   : >> { %740 = vmatpush1.bf16.msra.mxu1 %v2172_v52  ;;  %1353 = vmatpush1.bf16.msra.mxu0 %v2175_v55  ;;  %v1555_v49 = vsub.s32 0, %v1554_v48  ;;  %v1559_v50 = vsub.s32 1, %v1554_v48 }
  0x76   : >> { %741 = vmatprep.subr.bf16.mxu1 %v2182_v56  ;;  %1354 = vmatprep.subr.bf16.mxu0 %v2185_v57 }
  0x77   : >> { %771 = vmatprep.mubr.bf16.mxu1 %v2263_v3  ;;  %1384 = vmatprep.mubr.bf16.mxu0 %v2263_v3  ;;  %v1556_v51 = vrot.slane %v2295_v0, %v1555_v49  ;;  %v1560_v53 = vrot.slane %v2295_v0, %v1559_v50 }
  0x79   : >> { %742 = vmatpush1.bf16.msra.mxu1 %v2180_v58  ;;  %1355 = vmatpush1.bf16.msra.mxu0 %v2183_v59 }
  0x7a   : >> { %743 = vmatprep.subr.bf16.mxu1 %v2188_v60  ;;  %1356 = vmatprep.subr.bf16.mxu0 %v2191_v61 }
  0x7d   : >> { %744 = vmatpush1.bf16.msra.mxu1 %v2186_v62  ;;  %1357 = vmatpush1.bf16.msra.mxu0 %v2189_v63 }
  0x7e   : >> { %745 = vmatprep.subr.bf16.mxu1 %v2194_v1  ;;  %1358 = vmatprep.subr.bf16.mxu0 %v2197_v2 }
  0x81   : >> { %746 = vmatpush1.bf16.msra.mxu1 %v2192_v4  ;;  %1359 = vmatpush1.bf16.msra.mxu0 %v2195_v5 }
  0x82   : >> { %747 = vmatprep.subr.bf16.mxu1 %v2200_v6  ;;  %1360 = vmatprep.subr.bf16.mxu0 %v2203_v7 }
  0x85   : >> { %748 = vmatpush1.bf16.msra.mxu1 %v2198_v8  ;;  %1361 = vmatpush1.bf16.msra.mxu0 %v2201_v9  ;;  %v1594_v8 = vld [vmem:[%s1585_s26 + $0x8] sm:$0x77] }
  0x86   : >> { %749 = vmatprep.subr.bf16.mxu1 %v2206_v10  ;;  %1362 = vmatprep.subr.bf16.mxu0 %v2209_v11 }
  0x89   : >> { %750 = vmatpush1.bf16.msra.mxu1 %v2204_v12  ;;  %1363 = vmatpush1.bf16.msra.mxu0 %v2207_v13 }
  0x8a   : >> { %751 = vmatprep.subr.bf16.mxu1 %v2212_v14  ;;  %1364 = vmatprep.subr.bf16.mxu0 %v2215_v15 }
  0x8d   : >> { %752 = vmatpush1.bf16.msra.mxu1 %v2210_v17  ;;  %1365 = vmatpush1.bf16.msra.mxu0 %v2213_v18 }
  0x8e   : >> { %753 = vmatprep.subr.bf16.mxu1 %v2218_v19  ;;  %1366 = vmatprep.subr.bf16.mxu0 %v2221_v20 }
  0x91   : >> { %754 = vmatpush1.bf16.msra.mxu1 %v2216_v23  ;;  %1367 = vmatpush1.bf16.msra.mxu0 %v2219_v24 }
  0x92   : >> { %1505 = vmatprep.subr.bf16.mxu0 %v2224_v25 }
  0x94   : >> { %772 = vmatmul.mubr.bf16.vlgmr.msra.gmra.mrb[0].mxu1 %v2412_v33  ;;  %1385 = vmatmul.mubr.bf16.vlgmr.msra.gmra.mrb[0].mxu0 %v1270_v26  ;;  %v2233_v33 = vld [vmem:[%s2789_s1 + $0x434] ss:$8 sps:$4 sm:$0xff]  }
  0x95   : >> { %1506 = vmatpush1.bf16.msra.mxu0 %v2222_v27  ;;  %1537 = vmatprep.mubr.bf16.mxu0 %v2263_v3  ;;  %v2231_v3 = vld [vmem:[%s2789_s1 + $0x430] ss:$8 sps:$4 sm:$0xff]  }
  0x96   : >> { %1507 = vmatprep.subr.bf16.mxu0 %v2227_v28 }
  0x99   : >> { %1508 = vmatpush1.bf16.msra.mxu0 %v2225_v29 }
  0x9a   : >> { %1509 = vmatprep.subr.bf16.mxu0 %v2230_v30 }
  0x9d   : >> { %1510 = vmatpush1.bf16.msra.mxu0 %v2228_v31 }
  0x9e   : >> { %1511 = vmatprep.subr.bf16.mxu0 %v2233_v33 }
  0xa1   : >> { %1512 = vmatpush1.bf16.msra.mxu0 %v2231_v3 }
  0xa2   : >> { %1513 = vmatprep.subr.bf16.mxu0 %v2236_v32 }
  0xa5   : >> { %1514 = vmatpush1.bf16.msra.mxu0 %v2234_v34 }
  0xa6   : >> { %1515 = vmatprep.subr.bf16.mxu0 %v2239_v35 }
  0xa9   : >> { %1516 = vmatpush1.bf16.msra.mxu0 %v2237_v36 }
  0xaa   : >> { %1517 = vmatprep.subr.bf16.mxu0 %v2242_v37 }
  0xad   : >> { %1518 = vmatpush1.bf16.msra.mxu0 %v2240_v38 }
  0xae   : >> { %1519 = vmatprep.subr.bf16.mxu0 %v2245_v39 }
  0xb1   : >> { %1520 = vmatpush1.bf16.msra.mxu0 %v2243_v41 }
  0xb4   : >> { %1538 = vmatmul.mubr.bf16.vlgmr.msra.gmra.mrb[0].mxu0 %v1423_v42 }
 0x167   : >> { %v773_v43 = vpop.f32.mrb[0].mxu1 }
 0x168   : >> { %v775_v44 = vpop.f32.mrb[1].mxu1 }
 0x169   : >> { %v777_v45 = vpop.f32.mrb[2].mxu1 }
 0x16a   : >> { %v779_v46 = vpop.f32.mrb[3].mxu1 }
 0x187   : >> { %v1539_v52 = vpop.f32.mrb[0].mxu0 }
 0x188   : >> { %v1974_v54 = vadd.f32 %v1539_v52, %v773_v43  ;;  %v1541_v55 = vpop.f32.mrb[1].mxu0 }
 0x189   : >> { %v1975_v56 = vadd.f32 %v1541_v55, %v775_v44  ;;  %v1543_v57 = vpop.f32.mrb[2].mxu0 }
 0x18a   : >> { %v1563_v58 = vadd.f32 %v1974_v54, %v1556_v51  ;;  %v1976_v59 = vadd.f32 %v1543_v57, %v777_v45  ;;  %v1545_v60 = vpop.f32.mrb[3].mxu0 }
 0x18b   : >> { %v1564_v61 = vadd.f32 %v1975_v56, %v1560_v53  ;;  %v1977_v62 = vadd.f32 %v1545_v60, %v779_v46 }
 0x18c   : >> { %v1567_v63 = vmax.f32 %v1563_v58, 0.0  ;;  %v1565_v1 = vadd.f32 %v1976_v59, %v1556_v51 }
 0x18d   : >> { %v1568_v2 = vmax.f32 %v1564_v61, 0.0  ;;  %v1566_v4 = vadd.f32 %v1977_v62, %v1560_v53 }
 0x18e   : >> { %v1569_v5 = vmax.f32 %v1565_v1, 0.0  ;;  %177 = sbr.rel (!%p175_p4) target bundleno = 18 (0x12), region = 81 }
 0x18f   : >> { %v1971_v6 = vpack.c.bf16 %v1568_v2, %v1567_v63  ;;  %v1570_v7 = vmax.f32 %v1566_v4, 0.0 }
 0x191   : >> { %1586 = vst [vmem:[%s1585_s26] sm:$0xff] %v1971_v6  ;;  %v1972_v9 = vpack.c.bf16 %v1570_v7, %v1569_v5 }
 0x193   : >> { %v1595_v10 = vsel %vm1593_vm6, %v1972_v9, %v1594_v8 }
 0x194   : >> { %1596 = vst [vmem:[%s1585_s26 + $0x8] sm:$0x77] %v1595_v10 }
 0x195 PF: > { %s13_s12 = sadd.s32 1, %s2257_s12  }
 0x196   : > { %p10_p5 = scmp.ge.s32.totalorder %s13_s12, 4  }
 0x198   :  { %12 = sbr.rel (!%p10_p5) target bundleno = 1 (0x1), region = 92 }

// kernel: mynet1_forward.16
= control target key start
LH: loop header
LB: loop body
LE: loop exit
PB: predicated region body
PF: predicated region fallthrough
CT: control target
= control target key end

     0   :  { %s3702_s12 = smov 0   ;;  %s4645_s0 = inlined_call_operand.vmem [shape: bf16[2,7,15,256], index: 0, kind: input, shape index: {}]   ;;  %s4646_s1 = inlined_call_operand.vmem [shape: bf16[9,256,256], index: 1, kind: input, shape index: {}]   ;;  %s4647_s2 = inlined_call_operand.vmem [shape: f32[1,256], index: 2, kind: input, shape index: {}]   ;;  %s4648_s3 = inlined_call_operand.vmem [shape: bf16[2,5,13,256], index: 3, kind: output, shape index: {}]  }
   0x1 LB: > { %s2580_s13 = sadd.s32 4294967295, %s3676_s12   ;;  %p2584_p0 = scmp.ge.s32.totalorder %s3676_s12, 1  ;;  %s3676_s12 = sphi %s3702_s12, %s13_s12  }
   0x2   : > { %p137_p1 = scmp.lt.s32.totalorder %s3676_s12, 3 }
   0x4   : > { %p138_p2 = pnand %p2584_p0, %p137_p1 }
   0x5   : > { %p161_p3 = scmp.lt.s32.totalorder (!%p138_p2), %s2580_s13, 1  ;;  %v3713_v0 = vld [vmem:[%s4647_s2] sm:$0x3] (!%p138_p2)  ;;  %s3725_s24 = smov (!%p138_p2), 0  }
   0x6   : > { %141 = sbr.rel (%p138_p2) target bundleno = 565 (0x235), region = 32 }
   0xd   : > { %s4650_s13 = smov (!%p161_p3, %s2580_s13), 1 }
   0xe   : > { %s3196_s16 = smul.u32 112, %s4650_s13 }
   0xf   : > { %s3197_s17 = smul.u32 80, %s4650_s13 }
  0x10   : > { %s3718_s20 = scalar_lea.vmem %s4645_s0, %s3196_s16 }
  0x11   : > { %s3723_s23 = scalar_lea.vmem %s4648_s3, %s3197_s17 }
  0x12 LB: >> { %v3214_v1 = vld [vmem:[%s4646_s1 + $0x104] ss:$8 sps:$4 sm:$0xff]   ;;  %v3218_v3 = vld [vmem:[%s4646_s1 + $0x100] ss:$8 sps:$4 sm:$0xff]   ;;  %v3220_v5 = vld [vmem:[%s4646_s1 + $0x114] ss:$8 sps:$4 sm:$0xff]   ;;  %s3680_s24 = sphi %s3725_s24, %s177_s24  }
  0x13   : >> { %v3216_v2 = vld [vmem:[%s4646_s1 + $0x404] ss:$8 sps:$4 sm:$0xff]   ;;  %432 = vmatprep.subr.bf16.mxu1 %v3214_v1  ;;  %v3219_v4 = vld [vmem:[%s4646_s1 + $0x400] ss:$8 sps:$4 sm:$0xff]   ;;  %v3222_v6 = vld [vmem:[%s4646_s1 + $0x414] ss:$8 sps:$4 sm:$0xff]  }
  0x14   : >> { %1399 = vmatprep.subr.bf16.mxu0 %v3216_v2  ;;  %433 = vmatpush1.bf16.msra.mxu1 %v3218_v3  ;;  %v3224_v7 = vld [vmem:[%s4646_s1 + $0x110] ss:$8 sps:$4 sm:$0xff]   ;;  %v3226_v9 = vld [vmem:[%s4646_s1 + $0x124] ss:$8 sps:$4 sm:$0xff]   ;;  %v3230_v11 = vld [vmem:[%s4646_s1 + $0x120] ss:$8 sps:$4 sm:$0xff]  }
  0x15   : >> { %1400 = vmatpush1.bf16.msra.mxu0 %v3219_v4  ;;  %434 = vmatprep.subr.bf16.mxu1 %v3220_v5  ;;  %v3225_v8 = vld [vmem:[%s4646_s1 + $0x410] ss:$8 sps:$4 sm:$0xff]   ;;  %v3228_v10 = vld [vmem:[%s4646_s1 + $0x424] ss:$8 sps:$4 sm:$0xff]   ;;  %v3231_v12 = vld [vmem:[%s4646_s1 + $0x420] ss:$8 sps:$4 sm:$0xff]  }
  0x16   : >> { %1401 = vmatprep.subr.bf16.mxu0 %v3222_v6  ;;  %v3232_v13 = vld [vmem:[%s4646_s1 + $0x134] ss:$8 sps:$4 sm:$0xff]   ;;  %v3236_v15 = vld [vmem:[%s4646_s1 + $0x130] ss:$8 sps:$4 sm:$0xff]   ;;  %v3238_v17 = vld [vmem:[%s4646_s1 + $0x144] ss:$8 sps:$4 sm:$0xff]  }
  0x17   : >> { %v3234_v14 = vld [vmem:[%s4646_s1 + $0x434] ss:$8 sps:$4 sm:$0xff]   ;;  %v3237_v16 = vld [vmem:[%s4646_s1 + $0x430] ss:$8 sps:$4 sm:$0xff]   ;;  %v3240_v18 = vld [vmem:[%s4646_s1 + $0x444] ss:$8 sps:$4 sm:$0xff]  }
  0x18   : >> { %435 = vmatpush1.bf16.msra.mxu1 %v3224_v7  ;;  %v3242_v19 = vld [vmem:[%s4646_s1 + $0x140] ss:$8 sps:$4 sm:$0xff]   ;;  %v3244_v21 = vld [vmem:[%s4646_s1 + $0x154] ss:$8 sps:$4 sm:$0xff]   ;;  %v3248_v23 = vld [vmem:[%s4646_s1 + $0x150] ss:$8 sps:$4 sm:$0xff]  }
  0x19   : >> { %1402 = vmatpush1.bf16.msra.mxu0 %v3225_v8  ;;  %436 = vmatprep.subr.bf16.mxu1 %v3226_v9  ;;  %v3243_v20 = vld [vmem:[%s4646_s1 + $0x440] ss:$8 sps:$4 sm:$0xff]   ;;  %v3246_v22 = vld [vmem:[%s4646_s1 + $0x454] ss:$8 sps:$4 sm:$0xff]   ;;  %v3249_v24 = vld [vmem:[%s4646_s1 + $0x450] ss:$8 sps:$4 sm:$0xff]  }
  0x1a   : >> { %1403 = vmatprep.subr.bf16.mxu0 %v3228_v10  ;;  %v3250_v25 = vld [vmem:[%s4646_s1 + $0x164] ss:$8 sps:$4 sm:$0xff]   ;;  %v3254_v27 = vld [vmem:[%s4646_s1 + $0x160] ss:$8 sps:$4 sm:$0xff]   ;;  %v3256_v29 = vld [vmem:[%s4646_s1 + $0x174] ss:$8 sps:$4 sm:$0xff]  }
  0x1b   : >> { %v3252_v26 = vld [vmem:[%s4646_s1 + $0x464] ss:$8 sps:$4 sm:$0xff]   ;;  %v3255_v28 = vld [vmem:[%s4646_s1 + $0x460] ss:$8 sps:$4 sm:$0xff]   ;;  %v3258_v30 = vld [vmem:[%s4646_s1 + $0x474] ss:$8 sps:$4 sm:$0xff]  }
  0x1c   : >> { %437 = vmatpush1.bf16.msra.mxu1 %v3230_v11  ;;  %v3260_v31 = vld [vmem:[%s4646_s1 + $0x170] ss:$8 sps:$4 sm:$0xff]   ;;  %v3262_v33 = vld [vmem:[%s4646_s1 + $0x184] ss:$8 sps:$4 sm:$0xff]   ;;  %v3266_v35 = vld [vmem:[%s4646_s1 + $0x180] ss:$8 sps:$4 sm:$0xff]  }
  0x1d   : >> { %1404 = vmatpush1.bf16.msra.mxu0 %v3231_v12  ;;  %438 = vmatprep.subr.bf16.mxu1 %v3232_v13  ;;  %v3261_v32 = vld [vmem:[%s4646_s1 + $0x470] ss:$8 sps:$4 sm:$0xff]   ;;  %v3264_v34 = vld [vmem:[%s4646_s1 + $0x484] ss:$8 sps:$4 sm:$0xff]   ;;  %v3267_v36 = vld [vmem:[%s4646_s1 + $0x480] ss:$8 sps:$4 sm:$0xff]  }
  0x1e   : >> { %1405 = vmatprep.subr.bf16.mxu0 %v3234_v14  ;;  %v3268_v37 = vld [vmem:[%s4646_s1 + $0x194] ss:$8 sps:$4 sm:$0xff]   ;;  %v3272_v39 = vld [vmem:[%s4646_s1 + $0x190] ss:$8 sps:$4 sm:$0xff]   ;;  %v3274_v41 = vld [vmem:[%s4646_s1 + $0x1a4] ss:$8 sps:$4 sm:$0xff]  }
  0x1f   : >> { %v3270_v38 = vld [vmem:[%s4646_s1 + $0x494] ss:$8 sps:$4 sm:$0xff]   ;;  %v3273_v40 = vld [vmem:[%s4646_s1 + $0x490] ss:$8 sps:$4 sm:$0xff]   ;;  %v3276_v42 = vld [vmem:[%s4646_s1 + $0x4a4] ss:$8 sps:$4 sm:$0xff]  }
  0x20   : >> { %439 = vmatpush1.bf16.msra.mxu1 %v3236_v15  ;;  %s3160_s14 = sshll.u32 %s3680_s24, 4  ;;  %v3278_v43 = vld [vmem:[%s4646_s1 + $0x1a0] ss:$8 sps:$4 sm:$0xff]   ;;  %v3280_v45 = vld [vmem:[%s4646_s1 + $0x1b4] ss:$8 sps:$4 sm:$0xff]   ;;  %vm2500_vm0 = vcmask 1042432  }
  0x21   : >> { %1406 = vmatpush1.bf16.msra.mxu0 %v3237_v16  ;;  %440 = vmatprep.subr.bf16.mxu1 %v3238_v17  ;;  %v3279_v44 = vld [vmem:[%s4646_s1 + $0x4a0] ss:$8 sps:$4 sm:$0xff]   ;;  %v3282_v46 = vld [vmem:[%s4646_s1 + $0x4b4] ss:$8 sps:$4 sm:$0xff]   ;;  %s3872_s26 = scalar_lea.vmem %s3718_s20, %s3160_s14  ;;  %v3284_v47 = vld [vmem:[%s4646_s1 + $0x1b0] ss:$8 sps:$4 sm:$0xff]  }
  0x22   : >> { %1407 = vmatprep.subr.bf16.mxu0 %v3240_v18  ;;  %v3285_v48 = vld [vmem:[%s4646_s1 + $0x4b0] ss:$8 sps:$4 sm:$0xff]   ;;  %v3286_v49 = vld [vmem:[%s4646_s1 + $0x1c4] ss:$8 sps:$4 sm:$0xff]   ;;  %v3290_v54 = vld [vmem:[%s4646_s1 + $0x1c0] ss:$8 sps:$4 sm:$0xff]  }
  0x23   : >> { %v3884_v50 = vld [vmem:[%s3872_s26 + $0x4] ss:$8 sps:$4 sm:$0x7f]   ;;  %v3318_v55 = vld [vmem:[%s3872_s26 + $0x14] ss:$8 sps:$4 sm:$0x7f]  }
  0x24   : >> { %441 = vmatpush1.bf16.msra.mxu1 %v3242_v19  ;;  %v3288_v51 = vld [vmem:[%s4646_s1 + $0x4c4] ss:$8 sps:$4 sm:$0xff]   ;;  %v264_v52 = vshrl.u32 %v3884_v50, 16  ;;  %v266_v53 = vshll.u32 %v3884_v50, 16  ;;  %v3291_v56 = vld [vmem:[%s4646_s1 + $0x4c0] ss:$8 sps:$4 sm:$0xff]  }
  0x25   : >> { %1408 = vmatpush1.bf16.msra.mxu0 %v3243_v20  ;;  %442 = vmatprep.subr.bf16.mxu1 %v3244_v21  ;;  %v3292_v57 = vld [vmem:[%s4646_s1 + $0x1d4] ss:$8 sps:$4 sm:$0xff]   ;;  %v1231_v60 = vshrl.u32 %v3318_v55, 16  ;;  %v1233_v61 = vshll.u32 %v3318_v55, 16  ;;  %v3296_v62 = vld [vmem:[%s4646_s1 + $0x1d0] ss:$8 sps:$4 sm:$0xff]  }
  0x26   : >> { %1409 = vmatprep.subr.bf16.mxu0 %v3246_v22  ;;  %v268_v58 = vrot.slane %v266_v53, 1  ;;  %v3294_v59 = vld [vmem:[%s4646_s1 + $0x4d4] ss:$8 sps:$4 sm:$0xff]   ;;  %v3908_v63 = vld [vmem:[%s3872_s26] ss:$8 sps:$4 sm:$0x7f]  }
  0x27   : >> { %v3316_v2 = vld [vmem:[%s3872_s26 + $0x10] ss:$8 sps:$4 sm:$0x7f]   ;;  %v1235_v3 = vrot.slane %v1233_v61, 1  ;;  %v3298_v5 = vld [vmem:[%s4646_s1 + $0x1e4] ss:$8 sps:$4 sm:$0xff]  }
  0x28   : >> { %443 = vmatpush1.bf16.msra.mxu1 %v3248_v23  ;;  %v269_v1 = vor.u32 %v268_v58, %v264_v52  ;;  %v3297_v4 = vld [vmem:[%s4646_s1 + $0x4d0] ss:$8 sps:$4 sm:$0xff]   ;;  %v3300_v6 = vld [vmem:[%s4646_s1 + $0x4e4] ss:$8 sps:$4 sm:$0xff]   ;;  %v3302_v8 = vld [vmem:[%s4646_s1 + $0x1e0] ss:$8 sps:$4 sm:$0xff]  }
  0x29   : >> { %1410 = vmatpush1.bf16.msra.mxu0 %v3249_v24  ;;  %444 = vmatprep.subr.bf16.mxu1 %v3250_v25  ;;  %v1236_v7 = vor.u32 %v1235_v3, %v1231_v60  ;;  %v259_v9 = vshll.u32 %v3908_v63, 16  ;;  %v1226_v10 = vshll.u32 %v3316_v2, 16  ;;  %v3303_v11 = vld [vmem:[%s4646_s1 + $0x4e0] ss:$8 sps:$4 sm:$0xff]   ;;  %v3304_v12 = vld [vmem:[%s4646_s1 + $0x1f4] ss:$8 sps:$4 sm:$0xff]  }
  0x2a   : >> { %1411 = vmatprep.subr.bf16.mxu0 %v3252_v26  ;;  %464 = vmatprep.mubr.bf16.mxu1 %v269_v1  ;;  %v3306_v13 = vld [vmem:[%s4646_s1 + $0x4f4] ss:$8 sps:$4 sm:$0xff]   ;;  %v3308_v14 = vld [vmem:[%s4646_s1 + $0x1f0] ss:$8 sps:$4 sm:$0xff]   ;;  %v257_v15 = vshrl.u32 %v3908_v63, 16  ;;  %v1224_v17 = vshrl.u32 %v3316_v2, 16 }
  0x2b   : >> { %1431 = vmatprep.mubr.bf16.mxu0 %v1236_v7  ;;  %v261_v16 = vrot.slane %v259_v9, 1  ;;  %v1228_v18 = vrot.slane %v1226_v10, 1  ;;  %v3309_v19 = vld [vmem:[%s4646_s1 + $0x4f0] ss:$8 sps:$4 sm:$0xff]   ;;  %v3315_v20 = vld [vmem:[%s4646_s1 + $0x4] ss:$8 sps:$4 sm:$0xff]  }
  0x2c   : >> { %445 = vmatpush1.bf16.msra.mxu1 %v3254_v27  ;;  %v3321_v21 = vld [vmem:[%s4646_s1 + $0x504] ss:$8 sps:$4 sm:$0xff]   ;;  %v3313_v22 = vld [vmem:[%s4646_s1] ss:$8 sps:$4 sm:$0xff]   ;;  %v3324_v26 = vld [vmem:[%s4646_s1 + $0x14] ss:$8 sps:$4 sm:$0xff]  }
  0x2d   : >> { %1412 = vmatpush1.bf16.msra.mxu0 %v3255_v28  ;;  %446 = vmatprep.subr.bf16.mxu1 %v3256_v29  ;;  %v262_v23 = vor.u32 %v261_v16, %v257_v15  ;;  %v1229_v24 = vor.u32 %v1228_v18, %v1224_v17  ;;  %v3319_v25 = vld [vmem:[%s4646_s1 + $0x500] ss:$8 sps:$4 sm:$0xff]   ;;  %v3327_v27 = vld [vmem:[%s4646_s1 + $0x514] ss:$8 sps:$4 sm:$0xff]   ;;  %v3322_v28 = vld [vmem:[%s4646_s1 + $0x10] ss:$8 sps:$4 sm:$0xff]  }
  0x2e   : >> { %1413 = vmatprep.subr.bf16.mxu0 %v3258_v30  ;;  %v3325_v29 = vld [vmem:[%s4646_s1 + $0x510] ss:$8 sps:$4 sm:$0xff]   ;;  %v3330_v30 = vld [vmem:[%s4646_s1 + $0x24] ss:$8 sps:$4 sm:$0xff]   ;;  %v3364_v58 = vld [vmem:[%s4646_s1 + $0x80] ss:$8 sps:$4 sm:$0xff]  }
  0x2f   : >> { %v3358_v52 = vld [vmem:[%s4646_s1 + $0x70] ss:$8 sps:$4 sm:$0xff]   ;;  %v3366_v55 = vld [vmem:[%s4646_s1 + $0x84] ss:$8 sps:$4 sm:$0xff]   ;;  %v3372_v60 = vld [vmem:[%s4646_s1 + $0x94] ss:$8 sps:$4 sm:$0xff]  }
  0x30   : >> { %447 = vmatpush1.bf16.msra.mxu1 %v3260_v31  ;;  %v3333_v31 = vld [vmem:[%s4646_s1 + $0x524] ss:$8 sps:$4 sm:$0xff]   ;;  %v3361_v53 = vld [vmem:[%s4646_s1 + $0x570] ss:$8 sps:$4 sm:$0xff]   ;;  %v3375_v61 = vld [vmem:[%s4646_s1 + $0x594] ss:$8 sps:$4 sm:$0xff]  }
  0x31   : >> { %1414 = vmatpush1.bf16.msra.mxu0 %v3261_v32  ;;  %448 = vmatprep.subr.bf16.mxu1 %v3262_v33  ;;  %v3328_v32 = vld [vmem:[%s4646_s1 + $0x20] ss:$8 sps:$4 sm:$0xff]   ;;  %v3373_v1 = vld [vmem:[%s4646_s1 + $0x590] ss:$8 sps:$4 sm:$0xff]   ;;  %v3378_v2 = vld [vmem:[%s4646_s1 + $0xa4] ss:$8 sps:$4 sm:$0xff]  }
  0x32   : >> { %1415 = vmatprep.subr.bf16.mxu0 %v3264_v34  ;;  %v3331_v33 = vld [vmem:[%s4646_s1 + $0x520] ss:$8 sps:$4 sm:$0xff]   ;;  %v3336_v34 = vld [vmem:[%s4646_s1 + $0x34] ss:$8 sps:$4 sm:$0xff]   ;;  %v3381_v3 = vld [vmem:[%s4646_s1 + $0x5a4] ss:$8 sps:$4 sm:$0xff]  }
  0x33   : >> { %v3387_v7 = vld [vmem:[%s4646_s1 + $0x5b4] ss:$8 sps:$4 sm:$0xff]   ;;  %v3385_v9 = vld [vmem:[%s4646_s1 + $0x5b0] ss:$8 sps:$4 sm:$0xff]   ;;  %v3390_v10 = vld [vmem:[%s4646_s1 + $0xc4] ss:$8 sps:$4 sm:$0xff]  }
  0x34   : >> { %449 = vmatpush1.bf16.msra.mxu1 %v3266_v35  ;;  %v3339_v35 = vld [vmem:[%s4646_s1 + $0x534] ss:$8 sps:$4 sm:$0xff]   ;;  %v3394_v16 = vld [vmem:[%s4646_s1 + $0xd0] ss:$8 sps:$4 sm:$0xff]   ;;  %v3402_v18 = vld [vmem:[%s4646_s1 + $0xe4] ss:$8 sps:$4 sm:$0xff]  }
  0x35   : >> { %1416 = vmatpush1.bf16.msra.mxu0 %v3267_v36  ;;  %450 = vmatprep.subr.bf16.mxu1 %v3268_v37  ;;  %v3334_v36 = vld [vmem:[%s4646_s1 + $0x30] ss:$8 sps:$4 sm:$0xff]   ;;  %v3399_v15 = vld [vmem:[%s4646_s1 + $0x5d4] ss:$8 sps:$4 sm:$0xff]   ;;  %vm2501_vm1 = vsmask.f32 2304 }
  0x36   : >> { %1417 = vmatprep.subr.bf16.mxu0 %v3270_v38  ;;  %v3337_v37 = vld [vmem:[%s4646_s1 + $0x530] ss:$8 sps:$4 sm:$0xff]   ;;  %v3342_v38 = vld [vmem:[%s4646_s1 + $0x44] ss:$8 sps:$4 sm:$0xff]   ;;  %vm2503_vm2 = vcmask 1046532   ;;  %vm2502_vm4 = vmand %vm2500_vm0, %vm2501_vm1  ;;  %s177_s24 = sadd.s32 1, %s3680_s24  }
  0x37   : >> { %v3397_v17 = vld [vmem:[%s4646_s1 + $0x5d0] ss:$8 sps:$4 sm:$0xff]   ;;  %vm2504_vm3 = vsmask.f32 6400  ;;  %p174_p4 = scmp.ge.s32.totalorder %s177_s24, 5  }
  0x38   : >> { %451 = vmatpush1.bf16.msra.mxu1 %v3272_v39  ;;  %v3345_v39 = vld [vmem:[%s4646_s1 + $0x544] ss:$8 sps:$4 sm:$0xff]   ;;  %vm2505_vm5 = vmand %vm2503_vm2, %vm2504_vm3 }
  0x39   : >> { %1418 = vmatpush1.bf16.msra.mxu0 %v3273_v40  ;;  %452 = vmatprep.subr.bf16.mxu1 %v3274_v41  ;;  %v3340_v40 = vld [vmem:[%s4646_s1 + $0x40] ss:$8 sps:$4 sm:$0xff]   ;;  %vm2506_vm6 = vmor %vm2505_vm5, %vm2502_vm4 }
  0x3a   : >> { %1419 = vmatprep.subr.bf16.mxu0 %v3276_v42  ;;  %v3343_v41 = vld [vmem:[%s4646_s1 + $0x540] ss:$8 sps:$4 sm:$0xff]   ;;  %v3348_v42 = vld [vmem:[%s4646_s1 + $0x54] ss:$8 sps:$4 sm:$0xff]  }
  0x3c   : >> { %453 = vmatpush1.bf16.msra.mxu1 %v3278_v43  ;;  %v3351_v43 = vld [vmem:[%s4646_s1 + $0x554] ss:$8 sps:$4 sm:$0xff]  }
  0x3d   : >> { %1420 = vmatpush1.bf16.msra.mxu0 %v3279_v44  ;;  %454 = vmatprep.subr.bf16.mxu1 %v3280_v45  ;;  %v3346_v44 = vld [vmem:[%s4646_s1 + $0x50] ss:$8 sps:$4 sm:$0xff]  }
  0x3e   : >> { %1421 = vmatprep.subr.bf16.mxu0 %v3282_v46  ;;  %v3349_v45 = vld [vmem:[%s4646_s1 + $0x550] ss:$8 sps:$4 sm:$0xff]   ;;  %v3354_v46 = vld [vmem:[%s4646_s1 + $0x64] ss:$8 sps:$4 sm:$0xff]  }
  0x40   : >> { %455 = vmatpush1.bf16.msra.mxu1 %v3284_v47  ;;  %v3357_v47 = vld [vmem:[%s4646_s1 + $0x564] ss:$8 sps:$4 sm:$0xff]  }
  0x41   : >> { %1422 = vmatpush1.bf16.msra.mxu0 %v3285_v48  ;;  %456 = vmatprep.subr.bf16.mxu1 %v3286_v49  ;;  %v3352_v48 = vld [vmem:[%s4646_s1 + $0x60] ss:$8 sps:$4 sm:$0xff]  }
  0x42   : >> { %1423 = vmatprep.subr.bf16.mxu0 %v3288_v51  ;;  %v3355_v49 = vld [vmem:[%s4646_s1 + $0x560] ss:$8 sps:$4 sm:$0xff]   ;;  %v3363_v51 = vld [vmem:[%s4646_s1 + $0x574] ss:$8 sps:$4 sm:$0xff]  }
  0x44   : >> { %457 = vmatpush1.bf16.msra.mxu1 %v3290_v54  ;;  %v3417_v54 = vld [vmem:[%s3872_s26 + $0x14] ss:$8 sps:$4 sm:$0xfe]  }
  0x45   : >> { %1424 = vmatpush1.bf16.msra.mxu0 %v3291_v56  ;;  %458 = vmatprep.subr.bf16.mxu1 %v3292_v57  ;;  %v3369_v56 = vld [vmem:[%s4646_s1 + $0x584] ss:$8 sps:$4 sm:$0xff]   ;;  %v1490_v57 = vrot.slane %v3417_v54, 1 }
  0x46   : >> { %1425 = vmatprep.subr.bf16.mxu0 %v3294_v59  ;;  %v3367_v59 = vld [vmem:[%s4646_s1 + $0x580] ss:$8 sps:$4 sm:$0xff]   ;;  %v3453_v54 = vld [vmem:[%s4646_s1 + $0x264] ss:$8 sps:$4 sm:$0xff]  }
  0x48   : >> { %459 = vmatpush1.bf16.msra.mxu1 %v3296_v62  ;;  %v3370_v62 = vld [vmem:[%s4646_s1 + $0x90] ss:$8 sps:$4 sm:$0xff]  }
  0x49   : >> { %1426 = vmatpush1.bf16.msra.mxu0 %v3297_v4  ;;  %460 = vmatprep.subr.bf16.mxu1 %v3298_v5  ;;  %v3376_v4 = vld [vmem:[%s4646_s1 + $0xa0] ss:$8 sps:$4 sm:$0xff]  }
  0x4a   : >> { %1427 = vmatprep.subr.bf16.mxu0 %v3300_v6  ;;  %v3379_v5 = vld [vmem:[%s4646_s1 + $0x5a0] ss:$8 sps:$4 sm:$0xff]   ;;  %v3384_v6 = vld [vmem:[%s4646_s1 + $0xb4] ss:$8 sps:$4 sm:$0xff]  }
  0x4c   : >> { %461 = vmatpush1.bf16.msra.mxu1 %v3302_v8  ;;  %v3382_v8 = vld [vmem:[%s4646_s1 + $0xb0] ss:$8 sps:$4 sm:$0xff]  }
  0x4d   : >> { %1428 = vmatpush1.bf16.msra.mxu0 %v3303_v11  ;;  %462 = vmatprep.subr.bf16.mxu1 %v3304_v12  ;;  %v3393_v11 = vld [vmem:[%s4646_s1 + $0x5c4] ss:$8 sps:$4 sm:$0xff]   ;;  %v3388_v12 = vld [vmem:[%s4646_s1 + $0xc0] ss:$8 sps:$4 sm:$0xff]  }
  0x4e   : >> { %1429 = vmatprep.subr.bf16.mxu0 %v3306_v13  ;;  %v3391_v13 = vld [vmem:[%s4646_s1 + $0x5c0] ss:$8 sps:$4 sm:$0xff]  }
  0x50   : >> { %463 = vmatpush1.bf16.msra.mxu1 %v3308_v14  ;;  %v3396_v14 = vld [vmem:[%s4646_s1 + $0xd4] ss:$8 sps:$4 sm:$0xff]  }
  0x51   : >> { %1430 = vmatpush1.bf16.msra.mxu0 %v3309_v19  ;;  %637 = vmatprep.subr.bf16.mxu1 %v3315_v20  ;;  %v3405_v19 = vld [vmem:[%s4646_s1 + $0x5e4] ss:$8 sps:$4 sm:$0xff]   ;;  %v3400_v20 = vld [vmem:[%s4646_s1 + $0xe0] ss:$8 sps:$4 sm:$0xff]  }
  0x52   : >> { %1653 = vmatprep.subr.bf16.mxu0 %v3321_v21  ;;  %v3403_v21 = vld [vmem:[%s4646_s1 + $0x5e0] ss:$8 sps:$4 sm:$0xff]  }
  0x53   : >> { %465 = vmatmul.mubr.bf16.vlgmr.msra.gmra.mrb[0].mxu1 %v262_v23  ;;  %v3411_v23 = vld [vmem:[%s4646_s1 + $0x5f4] ss:$8 sps:$4 sm:$0xff]  }
  0x54   : >> { %1432 = vmatmul.mubr.bf16.vlgmr.msra.gmra.mrb[0].mxu0 %v1229_v24  ;;  %638 = vmatpush1.bf16.msra.mxu1 %v3313_v22  ;;  %v3408_v22 = vld [vmem:[%s4646_s1 + $0xf4] ss:$8 sps:$4 sm:$0xff]   ;;  %v3406_v24 = vld [vmem:[%s4646_s1 + $0xf0] ss:$8 sps:$4 sm:$0xff]  }
  0x55   : >> { %1654 = vmatpush1.bf16.msra.mxu0 %v3319_v25  ;;  %639 = vmatprep.subr.bf16.mxu1 %v3324_v26  ;;  %v3409_v25 = vld [vmem:[%s4646_s1 + $0x5f0] ss:$8 sps:$4 sm:$0xff]  }
  0x56   : >> { %1655 = vmatprep.subr.bf16.mxu0 %v3327_v27  ;;  %669 = vmatprep.mubr.bf16.mxu1 %v3884_v50  ;;  %v3360_v50 = vld [vmem:[%s4646_s1 + $0x74] ss:$8 sps:$4 sm:$0xff]   ;;  %v3415_v26 = vld [vmem:[%s3872_s26 + $0x10] ss:$8 sps:$4 sm:$0xfe]  }
  0x57   : >> { %1685 = vmatprep.mubr.bf16.mxu0 %v1490_v57  ;;  %v3414_v27 = vld [vmem:[%s4646_s1 + $0x204] ss:$8 sps:$4 sm:$0xff]   ;;  %v3454_v57 = vld [vmem:[%s4646_s1 + $0x660] ss:$8 sps:$4 sm:$0xff]  }
  0x58   : >> { %640 = vmatpush1.bf16.msra.mxu1 %v3322_v28  ;;  %v3420_v28 = vld [vmem:[%s4646_s1 + $0x604] ss:$8 sps:$4 sm:$0xff]  }
  0x59   : >> { %1656 = vmatpush1.bf16.msra.mxu0 %v3325_v29  ;;  %641 = vmatprep.subr.bf16.mxu1 %v3330_v30  ;;  %v3412_v29 = vld [vmem:[%s4646_s1 + $0x200] ss:$8 sps:$4 sm:$0xff]   ;;  %v1489_v30 = vrot.slane %v3415_v26, 1 }
  0x5a   : >> { %1657 = vmatprep.subr.bf16.mxu0 %v3333_v31  ;;  %v3418_v31 = vld [vmem:[%s4646_s1 + $0x600] ss:$8 sps:$4 sm:$0xff]  }
  0x5b   : >> { %v3499_v26 = vld [vmem:[%s4646_s1 + $0x2e0] ss:$8 sps:$4 sm:$0xff]  }
  0x5c   : >> { %642 = vmatpush1.bf16.msra.mxu1 %v3328_v32  ;;  %v3423_v32 = vld [vmem:[%s4646_s1 + $0x214] ss:$8 sps:$4 sm:$0xff]  }
  0x5d   : >> { %1658 = vmatpush1.bf16.msra.mxu0 %v3331_v33  ;;  %643 = vmatprep.subr.bf16.mxu1 %v3336_v34  ;;  %v3426_v33 = vld [vmem:[%s4646_s1 + $0x614] ss:$8 sps:$4 sm:$0xff]   ;;  %v3421_v34 = vld [vmem:[%s4646_s1 + $0x210] ss:$8 sps:$4 sm:$0xff]  }
  0x5e   : >> { %1659 = vmatprep.subr.bf16.mxu0 %v3339_v35  ;;  %v3424_v35 = vld [vmem:[%s4646_s1 + $0x610] ss:$8 sps:$4 sm:$0xff]  }
  0x60   : >> { %644 = vmatpush1.bf16.msra.mxu1 %v3334_v36  ;;  %v3429_v36 = vld [vmem:[%s4646_s1 + $0x224] ss:$8 sps:$4 sm:$0xff]  }
  0x61   : >> { %1660 = vmatpush1.bf16.msra.mxu0 %v3337_v37  ;;  %645 = vmatprep.subr.bf16.mxu1 %v3342_v38  ;;  %v3427_v37 = vld [vmem:[%s4646_s1 + $0x220] ss:$8 sps:$4 sm:$0xff]   ;;  %v3513_v38 = vld [vmem:[%s3872_s26 + $0x4] ss:$8 sps:$4 sm:$0xfe]  }
  0x62   : >> { %1661 = vmatprep.subr.bf16.mxu0 %v3345_v39  ;;  %v3430_v39 = vld [vmem:[%s4646_s1 + $0x620] ss:$8 sps:$4 sm:$0xff]  }
  0x64   : >> { %646 = vmatpush1.bf16.msra.mxu1 %v3340_v40  ;;  %v3435_v40 = vld [vmem:[%s4646_s1 + $0x234] ss:$8 sps:$4 sm:$0xff]  }
  0x65   : >> { %1662 = vmatpush1.bf16.msra.mxu0 %v3343_v41  ;;  %647 = vmatprep.subr.bf16.mxu1 %v3348_v42  ;;  %v724_v41 = vrot.slane %v3513_v38, 1  ;;  %v3438_v42 = vld [vmem:[%s4646_s1 + $0x634] ss:$8 sps:$4 sm:$0xff]  }
  0x66   : >> { %1663 = vmatprep.subr.bf16.mxu0 %v3351_v43  ;;  %v4180_v43 = vld [vmem:[%s3872_s26 + $0x24] ss:$8 sps:$4 sm:$0x7f]  }
  0x68   : >> { %648 = vmatpush1.bf16.msra.mxu1 %v3346_v44  ;;  %v3433_v44 = vld [vmem:[%s4646_s1 + $0x230] ss:$8 sps:$4 sm:$0xff]  }
  0x69   : >> { %1664 = vmatpush1.bf16.msra.mxu0 %v3349_v45  ;;  %649 = vmatprep.subr.bf16.mxu1 %v3354_v46  ;;  %v3436_v45 = vld [vmem:[%s4646_s1 + $0x630] ss:$8 sps:$4 sm:$0xff]   ;;  %v3441_v46 = vld [vmem:[%s4646_s1 + $0x244] ss:$8 sps:$4 sm:$0xff]  }
  0x6a   : >> { %1665 = vmatprep.subr.bf16.mxu0 %v3357_v47  ;;  %v3444_v47 = vld [vmem:[%s4646_s1 + $0x644] ss:$8 sps:$4 sm:$0xff]  }
  0x6c   : >> { %650 = vmatpush1.bf16.msra.mxu1 %v3352_v48  ;;  %v3439_v48 = vld [vmem:[%s4646_s1 + $0x240] ss:$8 sps:$4 sm:$0xff]  }
  0x6d   : >> { %1666 = vmatpush1.bf16.msra.mxu0 %v3355_v49  ;;  %651 = vmatprep.subr.bf16.mxu1 %v3360_v50  ;;  %v3442_v49 = vld [vmem:[%s4646_s1 + $0x640] ss:$8 sps:$4 sm:$0xff]   ;;  %v3447_v50 = vld [vmem:[%s4646_s1 + $0x254] ss:$8 sps:$4 sm:$0xff]  }
  0x6e   : >> { %1667 = vmatprep.subr.bf16.mxu0 %v3363_v51  ;;  %v3450_v51 = vld [vmem:[%s4646_s1 + $0x654] ss:$8 sps:$4 sm:$0xff]  }
  0x70   : >> { %652 = vmatpush1.bf16.msra.mxu1 %v3358_v52  ;;  %v3445_v52 = vld [vmem:[%s4646_s1 + $0x250] ss:$8 sps:$4 sm:$0xff]  }
  0x71   : >> { %1668 = vmatpush1.bf16.msra.mxu0 %v3361_v53  ;;  %653 = vmatprep.subr.bf16.mxu1 %v3366_v55  ;;  %v3448_v53 = vld [vmem:[%s4646_s1 + $0x650] ss:$8 sps:$4 sm:$0xff]   ;;  %v3456_v55 = vld [vmem:[%s4646_s1 + $0x664] ss:$8 sps:$4 sm:$0xff]  }
  0x72   : >> { %1669 = vmatprep.subr.bf16.mxu0 %v3369_v56  ;;  %v3451_v56 = vld [vmem:[%s4646_s1 + $0x260] ss:$8 sps:$4 sm:$0xff]  }
  0x74   : >> { %654 = vmatpush1.bf16.msra.mxu1 %v3364_v58  ;;  %v3459_v58 = vld [vmem:[%s4646_s1 + $0x274] ss:$8 sps:$4 sm:$0xff]  }
  0x75   : >> { %1670 = vmatpush1.bf16.msra.mxu0 %v3367_v59  ;;  %655 = vmatprep.subr.bf16.mxu1 %v3372_v60  ;;  %v3462_v59 = vld [vmem:[%s4646_s1 + $0x674] ss:$8 sps:$4 sm:$0xff]   ;;  %v3457_v60 = vld [vmem:[%s4646_s1 + $0x270] ss:$8 sps:$4 sm:$0xff]  }
  0x76   : >> { %1671 = vmatprep.subr.bf16.mxu0 %v3375_v61  ;;  %v3460_v61 = vld [vmem:[%s4646_s1 + $0x670] ss:$8 sps:$4 sm:$0xff]  }
  0x78   : >> { %656 = vmatpush1.bf16.msra.mxu1 %v3370_v62  ;;  %v3465_v62 = vld [vmem:[%s4646_s1 + $0x284] ss:$8 sps:$4 sm:$0xff]  }
  0x79   : >> { %1672 = vmatpush1.bf16.msra.mxu0 %v3373_v1  ;;  %657 = vmatprep.subr.bf16.mxu1 %v3378_v2  ;;  %v3468_v1 = vld [vmem:[%s4646_s1 + $0x684] ss:$8 sps:$4 sm:$0xff]   ;;  %v3463_v2 = vld [vmem:[%s4646_s1 + $0x280] ss:$8 sps:$4 sm:$0xff]  }
  0x7a   : >> { %1673 = vmatprep.subr.bf16.mxu0 %v3381_v3  ;;  %v3466_v3 = vld [vmem:[%s4646_s1 + $0x680] ss:$8 sps:$4 sm:$0xff]  }
  0x7c   : >> { %658 = vmatpush1.bf16.msra.mxu1 %v3376_v4  ;;  %v3471_v4 = vld [vmem:[%s4646_s1 + $0x294] ss:$8 sps:$4 sm:$0xff]  }
  0x7d   : >> { %1674 = vmatpush1.bf16.msra.mxu0 %v3379_v5  ;;  %659 = vmatprep.subr.bf16.mxu1 %v3384_v6  ;;  %v3474_v5 = vld [vmem:[%s4646_s1 + $0x694] ss:$8 sps:$4 sm:$0xff]   ;;  %v3469_v6 = vld [vmem:[%s4646_s1 + $0x290] ss:$8 sps:$4 sm:$0xff]  }
  0x7e   : >> { %1675 = vmatprep.subr.bf16.mxu0 %v3387_v7  ;;  %v3472_v7 = vld [vmem:[%s4646_s1 + $0x690] ss:$8 sps:$4 sm:$0xff]  }
  0x80   : >> { %660 = vmatpush1.bf16.msra.mxu1 %v3382_v8  ;;  %v3477_v8 = vld [vmem:[%s4646_s1 + $0x2a4] ss:$8 sps:$4 sm:$0xff]  }
  0x81   : >> { %1676 = vmatpush1.bf16.msra.mxu0 %v3385_v9  ;;  %661 = vmatprep.subr.bf16.mxu1 %v3390_v10  ;;  %v3480_v9 = vld [vmem:[%s4646_s1 + $0x6a4] ss:$8 sps:$4 sm:$0xff]   ;;  %v3475_v10 = vld [vmem:[%s4646_s1 + $0x2a0] ss:$8 sps:$4 sm:$0xff]  }
  0x82   : >> { %1677 = vmatprep.subr.bf16.mxu0 %v3393_v11  ;;  %v3478_v11 = vld [vmem:[%s4646_s1 + $0x6a0] ss:$8 sps:$4 sm:$0xff]  }
  0x84   : >> { %662 = vmatpush1.bf16.msra.mxu1 %v3388_v12  ;;  %v3483_v12 = vld [vmem:[%s4646_s1 + $0x2b4] ss:$8 sps:$4 sm:$0xff]  }
  0x85   : >> { %1678 = vmatpush1.bf16.msra.mxu0 %v3391_v13  ;;  %663 = vmatprep.subr.bf16.mxu1 %v3396_v14  ;;  %v3486_v13 = vld [vmem:[%s4646_s1 + $0x6b4] ss:$8 sps:$4 sm:$0xff]   ;;  %v3481_v14 = vld [vmem:[%s4646_s1 + $0x2b0] ss:$8 sps:$4 sm:$0xff]  }
  0x86   : >> { %1679 = vmatprep.subr.bf16.mxu0 %v3399_v15  ;;  %v3484_v15 = vld [vmem:[%s4646_s1 + $0x6b0] ss:$8 sps:$4 sm:$0xff]  }
  0x88   : >> { %664 = vmatpush1.bf16.msra.mxu1 %v3394_v16  ;;  %v3489_v16 = vld [vmem:[%s4646_s1 + $0x2c4] ss:$8 sps:$4 sm:$0xff]  }
  0x89   : >> { %1680 = vmatpush1.bf16.msra.mxu0 %v3397_v17  ;;  %665 = vmatprep.subr.bf16.mxu1 %v3402_v18  ;;  %v3492_v17 = vld [vmem:[%s4646_s1 + $0x6c4] ss:$8 sps:$4 sm:$0xff]   ;;  %v3487_v18 = vld [vmem:[%s4646_s1 + $0x2c0] ss:$8 sps:$4 sm:$0xff]  }
  0x8a   : >> { %1681 = vmatprep.subr.bf16.mxu0 %v3405_v19  ;;  %v3490_v19 = vld [vmem:[%s4646_s1 + $0x6c0] ss:$8 sps:$4 sm:$0xff]  }
  0x8c   : >> { %666 = vmatpush1.bf16.msra.mxu1 %v3400_v20  ;;  %v3495_v20 = vld [vmem:[%s4646_s1 + $0x2d4] ss:$8 sps:$4 sm:$0xff]  }
  0x8d   : >> { %1682 = vmatpush1.bf16.msra.mxu0 %v3403_v21  ;;  %667 = vmatprep.subr.bf16.mxu1 %v3408_v22  ;;  %v3498_v21 = vld [vmem:[%s4646_s1 + $0x6d4] ss:$8 sps:$4 sm:$0xff]   ;;  %v3493_v22 = vld [vmem:[%s4646_s1 + $0x2d0] ss:$8 sps:$4 sm:$0xff]  }
  0x8e   : >> { %1683 = vmatprep.subr.bf16.mxu0 %v3411_v23  ;;  %v3496_v23 = vld [vmem:[%s4646_s1 + $0x6d0] ss:$8 sps:$4 sm:$0xff]  }
  0x90   : >> { %668 = vmatpush1.bf16.msra.mxu1 %v3406_v24  ;;  %v3501_v24 = vld [vmem:[%s4646_s1 + $0x2e4] ss:$8 sps:$4 sm:$0xff]  }
  0x91   : >> { %1684 = vmatpush1.bf16.msra.mxu0 %v3409_v25  ;;  %887 = vmatprep.subr.bf16.mxu1 %v3414_v27  ;;  %v3504_v25 = vld [vmem:[%s4646_s1 + $0x6e4] ss:$8 sps:$4 sm:$0xff]   ;;  %v3502_v27 = vld [vmem:[%s4646_s1 + $0x6e0] ss:$8 sps:$4 sm:$0xff]  }
  0x92   : >> { %1909 = vmatprep.subr.bf16.mxu0 %v3420_v28  ;;  %v3507_v28 = vld [vmem:[%s4646_s1 + $0x2f4] ss:$8 sps:$4 sm:$0xff]  }
  0x93   : >> { %670 = vmatmul.mubr.bf16.vlgmr.msra.gmra.mrb[0].mxu1 %v3908_v63  ;;  %v3432_v63 = vld [vmem:[%s4646_s1 + $0x624] ss:$8 sps:$4 sm:$0xff]  }
  0x94   : >> { %1686 = vmatmul.mubr.bf16.vlgmr.msra.gmra.mrb[0].mxu0 %v1489_v30  ;;  %888 = vmatpush1.bf16.msra.mxu1 %v3412_v29  ;;  %v3510_v29 = vld [vmem:[%s4646_s1 + $0x6f4] ss:$8 sps:$4 sm:$0xff]   ;;  %v3505_v30 = vld [vmem:[%s4646_s1 + $0x2f0] ss:$8 sps:$4 sm:$0xff]  }
  0x95   : >> { %1910 = vmatpush1.bf16.msra.mxu0 %v3418_v31  ;;  %889 = vmatprep.subr.bf16.mxu1 %v3423_v32  ;;  %v1999_v31 = vshll.u32 %v4180_v43, 16  ;;  %v3511_v32 = vld [vmem:[%s3872_s26] ss:$8 sps:$4 sm:$0xfe]  }
  0x96   : >> { %1911 = vmatprep.subr.bf16.mxu0 %v3426_v33  ;;  %919 = vmatprep.mubr.bf16.mxu1 %v724_v41  ;;  %v3508_v33 = vld [vmem:[%s4646_s1 + $0x6f0] ss:$8 sps:$4 sm:$0xff]   ;;  %v723_v38 = vrot.slane %v3511_v32, 1  ;;  %v3525_v41 = vld [vmem:[%s4646_s1 + $0x314] ss:$8 sps:$4 sm:$0xff]  }
  0x97   : >> { %1941 = vmatprep.mubr.bf16.mxu0 %v4180_v43  ;;  %v3598_v32 = vld [vmem:[%s4646_s1 + $0x7d0] ss:$8 sps:$4 sm:$0xff]  }
  0x98   : >> { %890 = vmatpush1.bf16.msra.mxu1 %v3421_v34  ;;  %v3516_v34 = vld [vmem:[%s4646_s1 + $0x304] ss:$8 sps:$4 sm:$0xff]  }
  0x99   : >> { %1912 = vmatpush1.bf16.msra.mxu0 %v3424_v35  ;;  %891 = vmatprep.subr.bf16.mxu1 %v3429_v36  ;;  %v3522_v35 = vld [vmem:[%s4646_s1 + $0x704] ss:$8 sps:$4 sm:$0xff]   ;;  %v3514_v36 = vld [vmem:[%s4646_s1 + $0x300] ss:$8 sps:$4 sm:$0xff]  }
  0x9a   : >> { %1913 = vmatprep.subr.bf16.mxu0 %v3432_v63  ;;  %v1997_v63 = vshrl.u32 %v4180_v43, 16 }
  0x9c   : >> { %892 = vmatpush1.bf16.msra.mxu1 %v3427_v37  ;;  %v2001_v37 = vrot.slane %v1999_v31, 1  ;;  %v3595_v31 = vld [vmem:[%s4646_s1 + $0x3d0] ss:$8 sps:$4 sm:$0xff]  }
  0x9d   : >> { %1914 = vmatpush1.bf16.msra.mxu0 %v3430_v39  ;;  %893 = vmatprep.subr.bf16.mxu1 %v3435_v40  ;;  %v4346_v39 = vld [vmem:[%s3872_s26 + $0x20] ss:$8 sps:$4 sm:$0x7f]  }
  0x9e   : >> { %1915 = vmatprep.subr.bf16.mxu0 %v3438_v42  ;;  %v3520_v40 = vld [vmem:[%s4646_s1 + $0x700] ss:$8 sps:$4 sm:$0xff]   ;;  %v3528_v42 = vld [vmem:[%s4646_s1 + $0x714] ss:$8 sps:$4 sm:$0xff]   ;;  %v2002_v43 = vor.u32 %v2001_v37, %v1997_v63 }
  0x9f   : >> { %v3604_v63 = vld [vmem:[%s4646_s1 + $0x7e0] ss:$8 sps:$4 sm:$0xff]   ;;  %v3609_v37 = vld [vmem:[%s4646_s1 + $0x3f4] ss:$8 sps:$4 sm:$0xff]  }
  0xa0   : >> { %894 = vmatpush1.bf16.msra.mxu1 %v3433_v44  ;;  %v3523_v44 = vld [vmem:[%s4646_s1 + $0x310] ss:$8 sps:$4 sm:$0xff]  }
  0xa1   : >> { %1916 = vmatpush1.bf16.msra.mxu0 %v3436_v45  ;;  %895 = vmatprep.subr.bf16.mxu1 %v3441_v46  ;;  %v3526_v45 = vld [vmem:[%s4646_s1 + $0x710] ss:$8 sps:$4 sm:$0xff]   ;;  %v3531_v46 = vld [vmem:[%s4646_s1 + $0x324] ss:$8 sps:$4 sm:$0xff]  }
  0xa2   : >> { %1917 = vmatprep.subr.bf16.mxu0 %v3444_v47  ;;  %v3534_v47 = vld [vmem:[%s4646_s1 + $0x724] ss:$8 sps:$4 sm:$0xff]  }
  0xa4   : >> { %896 = vmatpush1.bf16.msra.mxu1 %v3439_v48  ;;  %v3664_v48 = vld [vmem:[%s3872_s26 + $0x14] ss:$8 sps:$4 sm:$0x7f]  }
  0xa5   : >> { %1918 = vmatpush1.bf16.msra.mxu0 %v3442_v49  ;;  %897 = vmatprep.subr.bf16.mxu1 %v3447_v50  ;;  %v3529_v49 = vld [vmem:[%s4646_s1 + $0x320] ss:$8 sps:$4 sm:$0xff]  }
  0xa6   : >> { %1919 = vmatprep.subr.bf16.mxu0 %v3450_v51  ;;  %v3532_v50 = vld [vmem:[%s4646_s1 + $0x720] ss:$8 sps:$4 sm:$0xff]   ;;  %v3537_v51 = vld [vmem:[%s4646_s1 + $0x334] ss:$8 sps:$4 sm:$0xff]  }
  0xa8   : >> { %898 = vmatpush1.bf16.msra.mxu1 %v3445_v52  ;;  %v3540_v52 = vld [vmem:[%s4646_s1 + $0x734] ss:$8 sps:$4 sm:$0xff]  }
  0xa9   : >> { %1920 = vmatpush1.bf16.msra.mxu0 %v3448_v53  ;;  %899 = vmatprep.subr.bf16.mxu1 %v3453_v54  ;;  %v3535_v53 = vld [vmem:[%s4646_s1 + $0x330] ss:$8 sps:$4 sm:$0xff]  }
  0xaa   : >> { %1921 = vmatprep.subr.bf16.mxu0 %v3456_v55  ;;  %v3538_v54 = vld [vmem:[%s4646_s1 + $0x730] ss:$8 sps:$4 sm:$0xff]   ;;  %v3543_v55 = vld [vmem:[%s4646_s1 + $0x344] ss:$8 sps:$4 sm:$0xff]  }
  0xac   : >> { %900 = vmatpush1.bf16.msra.mxu1 %v3451_v56  ;;  %v3546_v56 = vld [vmem:[%s4646_s1 + $0x744] ss:$8 sps:$4 sm:$0xff]  }
  0xad   : >> { %1922 = vmatpush1.bf16.msra.mxu0 %v3454_v57  ;;  %901 = vmatprep.subr.bf16.mxu1 %v3459_v58  ;;  %v3541_v57 = vld [vmem:[%s4646_s1 + $0x340] ss:$8 sps:$4 sm:$0xff]  }
  0xae   : >> { %1923 = vmatprep.subr.bf16.mxu0 %v3462_v59  ;;  %v3544_v58 = vld [vmem:[%s4646_s1 + $0x740] ss:$8 sps:$4 sm:$0xff]   ;;  %v3549_v59 = vld [vmem:[%s4646_s1 + $0x354] ss:$8 sps:$4 sm:$0xff]  }
  0xb0   : >> { %902 = vmatpush1.bf16.msra.mxu1 %v3457_v60  ;;  %v3552_v60 = vld [vmem:[%s4646_s1 + $0x754] ss:$8 sps:$4 sm:$0xff]  }
  0xb1   : >> { %1924 = vmatpush1.bf16.msra.mxu0 %v3460_v61  ;;  %903 = vmatprep.subr.bf16.mxu1 %v3465_v62  ;;  %v3547_v61 = vld [vmem:[%s4646_s1 + $0x350] ss:$8 sps:$4 sm:$0xff]  }
  0xb2   : >> { %1925 = vmatprep.subr.bf16.mxu0 %v3468_v1  ;;  %v3550_v62 = vld [vmem:[%s4646_s1 + $0x750] ss:$8 sps:$4 sm:$0xff]   ;;  %v3555_v1 = vld [vmem:[%s4646_s1 + $0x364] ss:$8 sps:$4 sm:$0xff]  }
  0xb4   : >> { %904 = vmatpush1.bf16.msra.mxu1 %v3463_v2  ;;  %v3558_v2 = vld [vmem:[%s4646_s1 + $0x764] ss:$8 sps:$4 sm:$0xff]  }
  0xb5   : >> { %1926 = vmatpush1.bf16.msra.mxu0 %v3466_v3  ;;  %905 = vmatprep.subr.bf16.mxu1 %v3471_v4  ;;  %v3553_v3 = vld [vmem:[%s4646_s1 + $0x360] ss:$8 sps:$4 sm:$0xff]  }
  0xb6   : >> { %1927 = vmatprep.subr.bf16.mxu0 %v3474_v5  ;;  %v3556_v4 = vld [vmem:[%s4646_s1 + $0x760] ss:$8 sps:$4 sm:$0xff]   ;;  %v3561_v5 = vld [vmem:[%s4646_s1 + $0x374] ss:$8 sps:$4 sm:$0xff]  }
  0xb8   : >> { %906 = vmatpush1.bf16.msra.mxu1 %v3469_v6  ;;  %v3564_v6 = vld [vmem:[%s4646_s1 + $0x774] ss:$8 sps:$4 sm:$0xff]  }
  0xb9   : >> { %1928 = vmatpush1.bf16.msra.mxu0 %v3472_v7  ;;  %907 = vmatprep.subr.bf16.mxu1 %v3477_v8  ;;  %v3559_v7 = vld [vmem:[%s4646_s1 + $0x370] ss:$8 sps:$4 sm:$0xff]  }
  0xba   : >> { %1929 = vmatprep.subr.bf16.mxu0 %v3480_v9  ;;  %v3562_v8 = vld [vmem:[%s4646_s1 + $0x770] ss:$8 sps:$4 sm:$0xff]   ;;  %v3567_v9 = vld [vmem:[%s4646_s1 + $0x384] ss:$8 sps:$4 sm:$0xff]  }
  0xbc   : >> { %908 = vmatpush1.bf16.msra.mxu1 %v3475_v10  ;;  %v3570_v10 = vld [vmem:[%s4646_s1 + $0x784] ss:$8 sps:$4 sm:$0xff]  }
  0xbd   : >> { %1930 = vmatpush1.bf16.msra.mxu0 %v3478_v11  ;;  %909 = vmatprep.subr.bf16.mxu1 %v3483_v12  ;;  %v3565_v11 = vld [vmem:[%s4646_s1 + $0x380] ss:$8 sps:$4 sm:$0xff]  }
  0xbe   : >> { %1931 = vmatprep.subr.bf16.mxu0 %v3486_v13  ;;  %v3568_v12 = vld [vmem:[%s4646_s1 + $0x780] ss:$8 sps:$4 sm:$0xff]   ;;  %v3573_v13 = vld [vmem:[%s4646_s1 + $0x394] ss:$8 sps:$4 sm:$0xff]  }
  0xc0   : >> { %910 = vmatpush1.bf16.msra.mxu1 %v3481_v14  ;;  %v3576_v14 = vld [vmem:[%s4646_s1 + $0x794] ss:$8 sps:$4 sm:$0xff]  }
  0xc1   : >> { %1932 = vmatpush1.bf16.msra.mxu0 %v3484_v15  ;;  %911 = vmatprep.subr.bf16.mxu1 %v3489_v16  ;;  %v3571_v15 = vld [vmem:[%s4646_s1 + $0x390] ss:$8 sps:$4 sm:$0xff]  }
  0xc2   : >> { %1933 = vmatprep.subr.bf16.mxu0 %v3492_v17  ;;  %v3574_v16 = vld [vmem:[%s4646_s1 + $0x790] ss:$8 sps:$4 sm:$0xff]   ;;  %v3579_v17 = vld [vmem:[%s4646_s1 + $0x3a4] ss:$8 sps:$4 sm:$0xff]  }
  0xc4   : >> { %912 = vmatpush1.bf16.msra.mxu1 %v3487_v18  ;;  %v3582_v18 = vld [vmem:[%s4646_s1 + $0x7a4] ss:$8 sps:$4 sm:$0xff]  }
  0xc5   : >> { %1934 = vmatpush1.bf16.msra.mxu0 %v3490_v19  ;;  %913 = vmatprep.subr.bf16.mxu1 %v3495_v20  ;;  %v3577_v19 = vld [vmem:[%s4646_s1 + $0x3a0] ss:$8 sps:$4 sm:$0xff]  }
  0xc6   : >> { %1935 = vmatprep.subr.bf16.mxu0 %v3498_v21  ;;  %v3580_v20 = vld [vmem:[%s4646_s1 + $0x7a0] ss:$8 sps:$4 sm:$0xff]   ;;  %v3585_v21 = vld [vmem:[%s4646_s1 + $0x3b4] ss:$8 sps:$4 sm:$0xff]  }
  0xc8   : >> { %914 = vmatpush1.bf16.msra.mxu1 %v3493_v22  ;;  %v3588_v22 = vld [vmem:[%s4646_s1 + $0x7b4] ss:$8 sps:$4 sm:$0xff]  }
  0xc9   : >> { %1936 = vmatpush1.bf16.msra.mxu0 %v3496_v23  ;;  %915 = vmatprep.subr.bf16.mxu1 %v3501_v24  ;;  %v3583_v23 = vld [vmem:[%s4646_s1 + $0x3b0] ss:$8 sps:$4 sm:$0xff]  }
  0xca   : >> { %1937 = vmatprep.subr.bf16.mxu0 %v3504_v25  ;;  %v3586_v24 = vld [vmem:[%s4646_s1 + $0x7b0] ss:$8 sps:$4 sm:$0xff]   ;;  %v3591_v25 = vld [vmem:[%s4646_s1 + $0x3c4] ss:$8 sps:$4 sm:$0xff]  }
  0xcc   : >> { %916 = vmatpush1.bf16.msra.mxu1 %v3499_v26  ;;  %v3594_v26 = vld [vmem:[%s4646_s1 + $0x7c4] ss:$8 sps:$4 sm:$0xff]  }
  0xcd   : >> { %1938 = vmatpush1.bf16.msra.mxu0 %v3502_v27  ;;  %917 = vmatprep.subr.bf16.mxu1 %v3507_v28  ;;  %v3589_v27 = vld [vmem:[%s4646_s1 + $0x3c0] ss:$8 sps:$4 sm:$0xff]  }
  0xce   : >> { %1939 = vmatprep.subr.bf16.mxu0 %v3510_v29  ;;  %v3592_v28 = vld [vmem:[%s4646_s1 + $0x7c0] ss:$8 sps:$4 sm:$0xff]   ;;  %v3597_v29 = vld [vmem:[%s4646_s1 + $0x3d4] ss:$8 sps:$4 sm:$0xff]  }
  0xd0   : >> { %918 = vmatpush1.bf16.msra.mxu1 %v3505_v30  ;;  %v3600_v30 = vld [vmem:[%s4646_s1 + $0x7d4] ss:$8 sps:$4 sm:$0xff]  }
  0xd1   : >> { %1940 = vmatpush1.bf16.msra.mxu0 %v3508_v33  ;;  %1143 = vmatprep.subr.bf16.mxu1 %v3516_v34  ;;  %v3603_v33 = vld [vmem:[%s4646_s1 + $0x3e4] ss:$8 sps:$4 sm:$0xff]  }
  0xd2   : >> { %2165 = vmatprep.subr.bf16.mxu0 %v3522_v35  ;;  %v3606_v34 = vld [vmem:[%s4646_s1 + $0x7e4] ss:$8 sps:$4 sm:$0xff]   ;;  %v1992_v35 = vshll.u32 %v4346_v39, 16 }
  0xd3   : >> { %920 = vmatmul.mubr.bf16.vlgmr.msra.gmra.mrb[0].mxu1 %v723_v38  ;;  %v3612_v38 = vld [vmem:[%s4646_s1 + $0x7f4] ss:$8 sps:$4 sm:$0xff]  }
  0xd4   : >> { %1942 = vmatmul.mubr.bf16.vlgmr.msra.gmra.mrb[0].mxu0 %v4346_v39  ;;  %1144 = vmatpush1.bf16.msra.mxu1 %v3514_v36  ;;  %v3601_v36 = vld [vmem:[%s4646_s1 + $0x3e0] ss:$8 sps:$4 sm:$0xff]  }
  0xd5   : >> { %2166 = vmatpush1.bf16.msra.mxu0 %v3520_v40  ;;  %1145 = vmatprep.subr.bf16.mxu1 %v3525_v41  ;;  %v3607_v40 = vld [vmem:[%s4646_s1 + $0x3f0] ss:$8 sps:$4 sm:$0xff]   ;;  %v1990_v41 = vshrl.u32 %v4346_v39, 16  ;;  %v3613_v39 = vld [vmem:[%s4646_s1 + $0x800] ss:$8 sps:$4 sm:$0xff]  }
  0xd6   : >> { %2167 = vmatprep.subr.bf16.mxu0 %v3528_v42  ;;  %1175 = vmatprep.mubr.bf16.mxu1 %v3664_v48  ;;  %v1994_v42 = vrot.slane %v1992_v35, 1  ;;  %v3618_v48 = vld [vmem:[%s4646_s1 + $0x814] ss:$8 sps:$4 sm:$0xff]  }
  0xd7   : >> { %2197 = vmatprep.mubr.bf16.mxu0 %v2002_v43  ;;  %v3610_v43 = vld [vmem:[%s4646_s1 + $0x7f0] ss:$8 sps:$4 sm:$0xff]  }
  0xd8   : >> { %1146 = vmatpush1.bf16.msra.mxu1 %v3523_v44  ;;  %v3663_v44 = vld [vmem:[%s3872_s26 + $0x24] ss:$8 sps:$4 sm:$0xfe]  }
  0xd9   : >> { %2168 = vmatpush1.bf16.msra.mxu0 %v3526_v45  ;;  %1147 = vmatprep.subr.bf16.mxu1 %v3531_v46  ;;  %v3615_v45 = vld [vmem:[%s4646_s1 + $0x804] ss:$8 sps:$4 sm:$0xff]   ;;  %v1995_v46 = vor.u32 %v1994_v42, %v1990_v41 }
  0xda   : >> { %2169 = vmatprep.subr.bf16.mxu0 %v3534_v47  ;;  %v2256_v47 = vrot.slane %v3663_v44, 1 }
  0xdc   : >> { %1148 = vmatpush1.bf16.msra.mxu1 %v3529_v49  ;;  %v3665_v49 = vld [vmem:[%s3872_s26 + $0x10] ss:$8 sps:$4 sm:$0x7f]  }
  0xdd   : >> { %2170 = vmatpush1.bf16.msra.mxu0 %v3532_v50  ;;  %1149 = vmatprep.subr.bf16.mxu1 %v3537_v51  ;;  %v3616_v50 = vld [vmem:[%s4646_s1 + $0x810] ss:$8 sps:$4 sm:$0xff]   ;;  %v3621_v51 = vld [vmem:[%s4646_s1 + $0x824] ss:$8 sps:$4 sm:$0xff]  }
  0xde   : >> { %2171 = vmatprep.subr.bf16.mxu0 %v3540_v52  ;;  %v3619_v52 = vld [vmem:[%s4646_s1 + $0x820] ss:$8 sps:$4 sm:$0xff]  }
  0xe0   : >> { %1150 = vmatpush1.bf16.msra.mxu1 %v3535_v53  ;;  %v3624_v53 = vld [vmem:[%s4646_s1 + $0x834] ss:$8 sps:$4 sm:$0xff]  }
  0xe1   : >> { %2172 = vmatpush1.bf16.msra.mxu0 %v3538_v54  ;;  %1151 = vmatprep.subr.bf16.mxu1 %v3543_v55  ;;  %v3622_v54 = vld [vmem:[%s4646_s1 + $0x830] ss:$8 sps:$4 sm:$0xff]   ;;  %v3627_v55 = vld [vmem:[%s4646_s1 + $0x844] ss:$8 sps:$4 sm:$0xff]  }
  0xe2   : >> { %2173 = vmatprep.subr.bf16.mxu0 %v3546_v56  ;;  %v3625_v56 = vld [vmem:[%s4646_s1 + $0x840] ss:$8 sps:$4 sm:$0xff]  }
  0xe4   : >> { %1152 = vmatpush1.bf16.msra.mxu1 %v3541_v57  ;;  %v3630_v57 = vld [vmem:[%s4646_s1 + $0x854] ss:$8 sps:$4 sm:$0xff]  }
  0xe5   : >> { %2174 = vmatpush1.bf16.msra.mxu0 %v3544_v58  ;;  %1153 = vmatprep.subr.bf16.mxu1 %v3549_v59  ;;  %v3628_v58 = vld [vmem:[%s4646_s1 + $0x850] ss:$8 sps:$4 sm:$0xff]   ;;  %v3633_v59 = vld [vmem:[%s4646_s1 + $0x864] ss:$8 sps:$4 sm:$0xff]  }
  0xe6   : >> { %2175 = vmatprep.subr.bf16.mxu0 %v3552_v60  ;;  %v3631_v60 = vld [vmem:[%s4646_s1 + $0x860] ss:$8 sps:$4 sm:$0xff]  }
  0xe8   : >> { %1154 = vmatpush1.bf16.msra.mxu1 %v3547_v61  ;;  %v3636_v61 = vld [vmem:[%s4646_s1 + $0x874] ss:$8 sps:$4 sm:$0xff]  }
  0xe9   : >> { %2176 = vmatpush1.bf16.msra.mxu0 %v3550_v62  ;;  %1155 = vmatprep.subr.bf16.mxu1 %v3555_v1  ;;  %v3634_v62 = vld [vmem:[%s4646_s1 + $0x870] ss:$8 sps:$4 sm:$0xff]   ;;  %v3639_v1 = vld [vmem:[%s4646_s1 + $0x884] ss:$8 sps:$4 sm:$0xff]  }
  0xea   : >> { %2177 = vmatprep.subr.bf16.mxu0 %v3558_v2  ;;  %v3637_v2 = vld [vmem:[%s4646_s1 + $0x880] ss:$8 sps:$4 sm:$0xff]  }
  0xec   : >> { %1156 = vmatpush1.bf16.msra.mxu1 %v3553_v3  ;;  %v3642_v3 = vld [vmem:[%s4646_s1 + $0x894] ss:$8 sps:$4 sm:$0xff]  }
  0xed   : >> { %2178 = vmatpush1.bf16.msra.mxu0 %v3556_v4  ;;  %1157 = vmatprep.subr.bf16.mxu1 %v3561_v5  ;;  %v3640_v4 = vld [vmem:[%s4646_s1 + $0x890] ss:$8 sps:$4 sm:$0xff]   ;;  %v3645_v5 = vld [vmem:[%s4646_s1 + $0x8a4] ss:$8 sps:$4 sm:$0xff]  }
  0xee   : >> { %2179 = vmatprep.subr.bf16.mxu0 %v3564_v6  ;;  %v3643_v6 = vld [vmem:[%s4646_s1 + $0x8a0] ss:$8 sps:$4 sm:$0xff]  }
  0xf0   : >> { %1158 = vmatpush1.bf16.msra.mxu1 %v3559_v7  ;;  %v3648_v7 = vld [vmem:[%s4646_s1 + $0x8b4] ss:$8 sps:$4 sm:$0xff]  }
  0xf1   : >> { %2180 = vmatpush1.bf16.msra.mxu0 %v3562_v8  ;;  %1159 = vmatprep.subr.bf16.mxu1 %v3567_v9  ;;  %v3646_v8 = vld [vmem:[%s4646_s1 + $0x8b0] ss:$8 sps:$4 sm:$0xff]   ;;  %v3651_v9 = vld [vmem:[%s4646_s1 + $0x8c4] ss:$8 sps:$4 sm:$0xff]  }
  0xf2   : >> { %2181 = vmatprep.subr.bf16.mxu0 %v3570_v10  ;;  %v3649_v10 = vld [vmem:[%s4646_s1 + $0x8c0] ss:$8 sps:$4 sm:$0xff]  }
  0xf4   : >> { %1160 = vmatpush1.bf16.msra.mxu1 %v3565_v11  ;;  %v3654_v11 = vld [vmem:[%s4646_s1 + $0x8d4] ss:$8 sps:$4 sm:$0xff]  }
  0xf5   : >> { %2182 = vmatpush1.bf16.msra.mxu0 %v3568_v12  ;;  %1161 = vmatprep.subr.bf16.mxu1 %v3573_v13  ;;  %v3652_v12 = vld [vmem:[%s4646_s1 + $0x8d0] ss:$8 sps:$4 sm:$0xff]   ;;  %v3657_v13 = vld [vmem:[%s4646_s1 + $0x8e4] ss:$8 sps:$4 sm:$0xff]  }
  0xf6   : >> { %2183 = vmatprep.subr.bf16.mxu0 %v3576_v14  ;;  %v3655_v14 = vld [vmem:[%s4646_s1 + $0x8e0] ss:$8 sps:$4 sm:$0xff]  }
  0xf8   : >> { %1162 = vmatpush1.bf16.msra.mxu1 %v3571_v15  ;;  %v3660_v15 = vld [vmem:[%s4646_s1 + $0x8f4] ss:$8 sps:$4 sm:$0xff]  }
  0xf9   : >> { %2184 = vmatpush1.bf16.msra.mxu0 %v3574_v16  ;;  %1163 = vmatprep.subr.bf16.mxu1 %v3579_v17  ;;  %v3661_v16 = vld [vmem:[%s3872_s26 + $0x20] ss:$8 sps:$4 sm:$0xfe]   ;;  %v3658_v17 = vld [vmem:[%s4646_s1 + $0x8f0] ss:$8 sps:$4 sm:$0xff]   ;;  %s2498_s26 = scalar_lea.vmem %s3723_s23, %s3160_s14 }
  0xfa   : >> { %2185 = vmatprep.subr.bf16.mxu0 %v3582_v18  ;;  %v2255_v18 = vrot.slane %v3661_v16, 1 }
  0xfc   : >> { %1164 = vmatpush1.bf16.msra.mxu1 %v3577_v19 }
  0xfd   : >> { %2186 = vmatpush1.bf16.msra.mxu0 %v3580_v20  ;;  %1165 = vmatprep.subr.bf16.mxu1 %v3585_v21 }
  0xfe   : >> { %2187 = vmatprep.subr.bf16.mxu0 %v3588_v22 }
 0x100   : >> { %1166 = vmatpush1.bf16.msra.mxu1 %v3583_v23  ;;  %v2467_v23 = vlaneseq }
 0x101   : >> { %2188 = vmatpush1.bf16.msra.mxu0 %v3586_v24  ;;  %1167 = vmatprep.subr.bf16.mxu1 %v3591_v25 }
 0x102   : >> { %2189 = vmatprep.subr.bf16.mxu0 %v3594_v26  ;;  %v2468_v24 = vshrl.u32 %v2467_v23, 7 }
 0x104   : >> { %1168 = vmatpush1.bf16.msra.mxu1 %v3589_v27  ;;  %v2469_v25 = vsub.s32 0, %v2468_v24  ;;  %v2473_v26 = vsub.s32 1, %v2468_v24 }
 0x105   : >> { %2190 = vmatpush1.bf16.msra.mxu0 %v3592_v28  ;;  %1169 = vmatprep.subr.bf16.mxu1 %v3597_v29 }
 0x106   : >> { %2191 = vmatprep.subr.bf16.mxu0 %v3600_v30  ;;  %v2470_v27 = vrot.slane %v3713_v0, %v2469_v25  ;;  %v2474_v29 = vrot.slane %v3713_v0, %v2473_v26 }
 0x108   : >> { %1170 = vmatpush1.bf16.msra.mxu1 %v3595_v31 }
 0x109   : >> { %2192 = vmatpush1.bf16.msra.mxu0 %v3598_v32  ;;  %1171 = vmatprep.subr.bf16.mxu1 %v3603_v33 }
 0x10a   : >> { %2193 = vmatprep.subr.bf16.mxu0 %v3606_v34 }
 0x10c   : >> { %1172 = vmatpush1.bf16.msra.mxu1 %v3601_v36 }
 0x10d   : >> { %2194 = vmatpush1.bf16.msra.mxu0 %v3604_v63  ;;  %1173 = vmatprep.subr.bf16.mxu1 %v3609_v37 }
 0x10e   : >> { %2195 = vmatprep.subr.bf16.mxu0 %v3612_v38 }
 0x110   : >> { %1174 = vmatpush1.bf16.msra.mxu1 %v3607_v40 }
 0x111   : >> { %2196 = vmatpush1.bf16.msra.mxu0 %v3610_v43 }
 0x112   : >> { %2419 = vmatprep.subr.bf16.mxu0 %v3615_v45 }
 0x113   : >> { %1176 = vmatmul.mubr.bf16.vlgmr.msra.gmra.mrb[0].mxu1 %v3665_v49 }
 0x114   : >> { %2198 = vmatmul.mubr.bf16.vlgmr.msra.gmra.mrb[0].mxu0 %v1995_v46  ;;  %v2507_v46 = vld [vmem:[%s2498_s26 + $0x8] sm:$0x77] }
 0x115   : >> { %2420 = vmatpush1.bf16.msra.mxu0 %v3613_v39  ;;  %2451 = vmatprep.mubr.bf16.mxu0 %v2256_v47 }
 0x116   : >> { %2421 = vmatprep.subr.bf16.mxu0 %v3618_v48 }
 0x119   : >> { %2422 = vmatpush1.bf16.msra.mxu0 %v3616_v50 }
 0x11a   : >> { %2423 = vmatprep.subr.bf16.mxu0 %v3621_v51 }
 0x11d   : >> { %2424 = vmatpush1.bf16.msra.mxu0 %v3619_v52 }
 0x11e   : >> { %2425 = vmatprep.subr.bf16.mxu0 %v3624_v53 }
 0x121   : >> { %2426 = vmatpush1.bf16.msra.mxu0 %v3622_v54 }
 0x122   : >> { %2427 = vmatprep.subr.bf16.mxu0 %v3627_v55 }
 0x125   : >> { %2428 = vmatpush1.bf16.msra.mxu0 %v3625_v56 }
 0x126   : >> { %2429 = vmatprep.subr.bf16.mxu0 %v3630_v57 }
 0x129   : >> { %2430 = vmatpush1.bf16.msra.mxu0 %v3628_v58 }
 0x12a   : >> { %2431 = vmatprep.subr.bf16.mxu0 %v3633_v59 }
 0x12d   : >> { %2432 = vmatpush1.bf16.msra.mxu0 %v3631_v60 }
 0x12e   : >> { %2433 = vmatprep.subr.bf16.mxu0 %v3636_v61 }
 0x131   : >> { %2434 = vmatpush1.bf16.msra.mxu0 %v3634_v62 }
 0x132   : >> { %2435 = vmatprep.subr.bf16.mxu0 %v3639_v1 }
 0x135   : >> { %2436 = vmatpush1.bf16.msra.mxu0 %v3637_v2 }
 0x136   : >> { %2437 = vmatprep.subr.bf16.mxu0 %v3642_v3 }
 0x139   : >> { %2438 = vmatpush1.bf16.msra.mxu0 %v3640_v4 }
 0x13a   : >> { %2439 = vmatprep.subr.bf16.mxu0 %v3645_v5 }
 0x13d   : >> { %2440 = vmatpush1.bf16.msra.mxu0 %v3643_v6 }
 0x13e   : >> { %2441 = vmatprep.subr.bf16.mxu0 %v3648_v7 }
 0x141   : >> { %2442 = vmatpush1.bf16.msra.mxu0 %v3646_v8 }
 0x142   : >> { %2443 = vmatprep.subr.bf16.mxu0 %v3651_v9 }
 0x145   : >> { %2444 = vmatpush1.bf16.msra.mxu0 %v3649_v10 }
 0x146   : >> { %2445 = vmatprep.subr.bf16.mxu0 %v3654_v11 }
 0x149   : >> { %2446 = vmatpush1.bf16.msra.mxu0 %v3652_v12 }
 0x14a   : >> { %2447 = vmatprep.subr.bf16.mxu0 %v3657_v13 }
 0x14d   : >> { %2448 = vmatpush1.bf16.msra.mxu0 %v3655_v14 }
 0x14e   : >> { %2449 = vmatprep.subr.bf16.mxu0 %v3660_v15 }
 0x151   : >> { %2450 = vmatpush1.bf16.msra.mxu0 %v3658_v17 }
 0x154   : >> { %2452 = vmatmul.mubr.bf16.vlgmr.msra.gmra.mrb[0].mxu0 %v2255_v18 }
 0x1e6   : >> { %v1177_v19 = vpop.f32.mrb[0].mxu1 }
 0x1e7   : >> { %v1179_v20 = vpop.f32.mrb[1].mxu1 }
 0x1e8   : >> { %v1181_v21 = vpop.f32.mrb[2].mxu1 }
 0x1e9   : >> { %v1183_v22 = vpop.f32.mrb[3].mxu1 }
 0x227   : >> { %v2453_v28 = vpop.f32.mrb[0].mxu0 }
 0x228   : >> { %v3164_v30 = vadd.f32 %v2453_v28, %v1177_v19  ;;  %v2455_v31 = vpop.f32.mrb[1].mxu0 }
 0x229   : >> { %v3165_v32 = vadd.f32 %v2455_v31, %v1179_v20  ;;  %v2457_v33 = vpop.f32.mrb[2].mxu0 }
 0x22a   : >> { %v2477_v34 = vadd.f32 %v3164_v30, %v2470_v27  ;;  %v3166_v35 = vadd.f32 %v2457_v33, %v1181_v21  ;;  %v2459_v36 = vpop.f32.mrb[3].mxu0 }
 0x22b   : >> { %v2478_v63 = vadd.f32 %v3165_v32, %v2474_v29  ;;  %v3167_v37 = vadd.f32 %v2459_v36, %v1183_v22 }
 0x22c   : >> { %v2481_v38 = vmax.f32 %v2477_v34, 0.0  ;;  %v2479_v40 = vadd.f32 %v3166_v35, %v2470_v27 }
 0x22d   : >> { %v2482_v41 = vmax.f32 %v2478_v63, 0.0  ;;  %v2480_v42 = vadd.f32 %v3167_v37, %v2474_v29 }
 0x22e   : >> { %v2483_v43 = vmax.f32 %v2479_v40, 0.0  ;;  %176 = sbr.rel (!%p174_p4) target bundleno = 18 (0x12), region = 81 }
 0x22f   : >> { %v3161_v44 = vpack.c.bf16 %v2482_v41, %v2481_v38  ;;  %v2484_v45 = vmax.f32 %v2480_v42, 0.0 }
 0x231   : >> { %2499 = vst [vmem:[%s2498_s26] sm:$0xff] %v3161_v44  ;;  %v3162_v39 = vpack.c.bf16 %v2484_v45, %v2483_v43 }
 0x233   : >> { %v2508_v47 = vsel %vm2506_vm6, %v3162_v39, %v2507_v46 }
 0x234   : >> { %2509 = vst [vmem:[%s2498_s26 + $0x8] sm:$0x77] %v2508_v47 }
 0x235 PF: > { %s13_s12 = sadd.s32 1, %s3676_s12  }
 0x236   : > { %p10_p5 = scmp.ge.s32.totalorder %s13_s12, 4  }
 0x238   :  { %12 = sbr.rel (!%p10_p5) target bundleno = 1 (0x1), region = 92 }

</bundles_post_ra>
